<compile_context>
chip_gen: v7x
topology: tpu7x:2x2x1
jax: 0.10.0
libtpu: 0.0.40
codegen_flags: <defaults>
</compile_context>

<pallas_src>
import math
import functools

import numpy as np
import jax
import jax.numpy as jnp
from jax.experimental import pallas as pl
from jax.experimental.pallas import tpu as pltpu


def _round_up(v, m):
    return (v + m - 1) // m * m


def _tensorcores_per_chip():
    """Perf-only heuristic; correctness does not depend on the answer."""
    try:
        kind = jax.devices()[0].device_kind.lower()
    except Exception:
        return 1
    # v7x has 2 TensorCores per chip; v4 / v5p are megacore (2 cores / device).
    if "v7" in kind or "v4" in kind or "v5p" in kind:
        return 2
    return 1


# ----------------------------------------------------------------------------
# Pallas kernel: fused conv1(x)+conv2(y)+bias, crop and 2x nearest upsample.
# ----------------------------------------------------------------------------
def _mrg_fused_kernel(xy_ref, w_ref, b_ref, e_ref, o_ref, col_ref, *,
                      k, wpp, hwpp, cin2, nb):
    """
    xy_ref : (nb, 2*Cin, L)       zero-padded, row-major-flattened [x ; y]
    w_ref  : (Cout, K*K*2*Cin)    packed [conv1 | conv2] weights, (ky,kx,c) order
    b_ref  : (Cout, 1)            combined bias (b1 + b2)
    e_ref  : (H*Wpp, 4*H*W)       constant 0/1 crop + 2x-nearest-upsample matrix
    o_ref  : (nb, Cout, 4*H*W)    final upsampled output (lane-dense 8x128 tiles)
    col_ref: (K*K*2*Cin, H*Wpp)   in-VMEM im2col scratch (never touches HBM)
    """
    for n in range(nb):
        # Build the im2col matrix with static lane-dim slices of the padded
        # input.  Every column of col_ref is written (no zero-fill needed, no
        # uninitialised VMEM feeds the matmuls).
        for t in range(k * k):
            ky, kx = divmod(t, k)
            off = ky * wpp + kx                       # static flat tap shift
            row = t * cin2
            col_ref[row:row + cin2, :] = xy_ref[n, :, off:off + hwpp]
        # One deep MXU contraction fusing both convs and the residual add:
        #   (Cout, 2*9*Cin) @ (2*9*Cin, H*Wpp)
        acc = jnp.dot(w_ref[...], col_ref[...], preferred_element_type=jnp.float32)
        # Crop + 2x nearest upsample as a second (tiny, ~25 MFLOP) MXU dot;
        # bias is per-channel so it broadcasts identically after upsampling.
        o_ref[n] = (jnp.dot(acc, e_ref[...], preferred_element_type=jnp.float32)
                    + b_ref[...])


# ----------------------------------------------------------------------------
# Wrapper: one concat + one pad around a single pallas_call.
# ----------------------------------------------------------------------------
def mrg_block_forward(params, x, y, *, batch_per_step=None):
    """x, y: (N, C, H, W) float32 (PyTorch NCHW). Returns (N, C, 2H, 2W)."""
    N, Cin, H, W = x.shape
    assert y.shape == x.shape
    K = 3
    Cout = params['w1'].shape[0]

    # --- geometry ------------------------------------------------------------
    # Width: 1 left pad (conv) + right pad chosen so H*Wpp is a multiple of 128
    # (lane-dense everywhere).  Height: 1 top pad (conv) + 2 bottom rows so the
    # largest tap read ((K-1)*Wpp + K-1 beyond the last output column) is in
    # bounds — Pallas does no bounds check on VMEM refs, so this is asserted.
    step = 128 // math.gcd(H, 128)
    wpp = _round_up(W + 2, step) if step <= 32 else W + 2
    hwpp = H * wpp
    L = (H + 3) * wpp
    assert L >= (K - 1) * wpp + (K - 1) + hwpp, "tap reads would run out of bounds"

    # --- batch tiling --------------------------------------------------------
    nb = batch_per_step
    if nb is None:
        nb = 1 if _tensorcores_per_chip() >= 2 else N   # v7x: one element per TC
    if nb <= 0 or N % nb != 0:
        nb = 1
    steps = N // nb

    # --- the only data-moving XLA glue: concat + single pad (+ free reshape) --
    xy = jnp.concatenate([x, y], axis=1)                          # (N, 2Cin, H, W)
    xy = jnp.pad(xy, ((0, 0), (0, 0), (1, 2), (1, wpp - W - 1)))  # (N, 2Cin, H+3, Wpp)
    xy = xy.reshape(N, 2 * Cin, L)                                # contiguous reshape

    # --- constants (folded at trace time when params are closed over) ---------
    w_cat = jnp.concatenate([params['w1'], params['w2']], axis=1)   # (Cout, 2Cin, K, K)
    w_pack = jnp.transpose(w_cat, (0, 2, 3, 1)).reshape(Cout, K * K * 2 * Cin)
    b_pack = (params['b1'] + params['b2']).reshape(Cout, 1)

    # 0/1 expansion matrix: crop (j < W only) + nearest 2x pixel duplication.
    e_np = np.zeros((hwpp, 4 * H * W), np.float32)
    for i in range(H):
        for j in range(W):
            src = i * wpp + j
            for a in (0, 1):
                for b in (0, 1):
                    e_np[src, (2 * i + a) * (2 * W) + (2 * j + b)] = 1.0
    e_mat = jnp.asarray(e_np)

    flops = N * (2 * Cout * (K * K * 2 * Cin) * hwpp + 2 * Cout * hwpp * 4 * H * W)
    bytes_accessed = 4 * (xy.size + w_pack.size + b_pack.size + e_mat.size
                          + N * Cout * 4 * H * W)
    cost = pl.CostEstimate(flops=flops, bytes_accessed=bytes_accessed,
                           transcendentals=0)

    kernel = functools.partial(_mrg_fused_kernel, k=K, wpp=wpp, hwpp=hwpp,
                               cin2=2 * Cin, nb=nb)
    out = pl.pallas_call(
        kernel,
        out_shape=jax.ShapeDtypeStruct((N, Cout, 4 * H * W), jnp.float32),
        grid=(steps,),
        in_specs=[
            pl.BlockSpec((nb, 2 * Cin, L), lambda n: (n, 0, 0)),
            pl.BlockSpec((Cout, K * K * 2 * Cin), lambda n: (0, 0)),
            pl.BlockSpec((Cout, 1), lambda n: (0, 0)),
            pl.BlockSpec((hwpp, 4 * H * W), lambda n: (0, 0)),
        ],
        out_specs=pl.BlockSpec((nb, Cout, 4 * H * W), lambda n: (n, 0, 0)),
        scratch_shapes=[pltpu.VMEM((K * K * 2 * Cin, hwpp), jnp.float32)],
        compiler_params=pltpu.CompilerParams(dimension_semantics=("parallel",)),
        cost_estimate=cost,
    )(xy, w_pack, b_pack, e_mat)

    return out.reshape(N, Cout, 2 * H, 2 * W)                     # contiguous reshape


# ----------------------------------------------------------------------------
# Parameters (PyTorch nn.Conv2d default init, deterministic) and a JAX reference.
# ----------------------------------------------------------------------------
def init_mrg_params(key, dims):
    k1, k2, k3, k4 = jax.random.split(key, 4)
    fan_in = dims * 9
    w_bound = math.sqrt(6.0 / (6.0 * fan_in))        # kaiming_uniform(a=sqrt(5))
    b_bound = 1.0 / math.sqrt(fan_in)
    return dict(
        w1=jax.random.uniform(k1, (dims, dims, 3, 3), jnp.float32, -w_bound, w_bound),
        b1=jax.random.uniform(k2, (dims,), jnp.float32, -b_bound, b_bound),
        w2=jax.random.uniform(k3, (dims, dims, 3, 3), jnp.float32, -w_bound, w_bound),
        b2=jax.random.uniform(k4, (dims,), jnp.float32, -b_bound, b_bound),
    )


def reference_forward(params, x, y):
    dn = ('NCHW', 'OIHW', 'NCHW')
    prec = jax.lax.Precision.HIGHEST
    cx = jax.lax.conv_general_dilated(x, params['w1'], (1, 1), ((1, 1), (1, 1)),
                                      dimension_numbers=dn, precision=prec)
    cx = cx + params['b1'][None, :, None, None]
    cy = jax.lax.conv_general_dilated(y, params['w2'], (1, 1), ((1, 1), (1, 1)),
                                      dimension_numbers=dn, precision=prec)
    cy = cy + params['b2'][None, :, None, None]
    up = lambda a: jnp.repeat(jnp.repeat(a, 2, axis=2), 2, axis=3)
    return up(cx) + up(cy)


# ----------------------------------------------------------------------------
if __name__ == "__main__":
    root = jax.random.PRNGKey(0)
    pkey, xkey, ykey = jax.random.split(root, 3)

    # Shapes as used by the parent network at its 16x16 / 32-channel level.
    B, dims, H, W = 2, 32, 16, 16
    params = init_mrg_params(pkey, dims)
    x = jax.random.normal(xkey, (B, dims, H, W), jnp.float32)
    y = jax.random.normal(ykey, (B, dims, H, W), jnp.float32)

    fwd = jax.jit(lambda a, b: mrg_block_forward(params, a, b))
    out = jax.block_until_ready(fwd(x, y))
    assert out.shape == (B, dims, 2 * H, 2 * W), out.shape
    assert bool(jnp.all(jnp.isfinite(out)))

    ref = reference_forward(params, x, y)
    max_err = float(jnp.max(jnp.abs(out - ref)))
    # Outputs are O(1) in magnitude; even if the in-kernel f32 dot ran at a
    # single-pass-bf16 default precision, the depth-576 contraction error is
    # bounded well below 5e-2 abs, so this tolerance covers matmul-precision
    # differences vs the HIGHEST-precision XLA reference while still catching
    # any real indexing / packing bug (which would be O(1) wrong).
    assert max_err < 5e-2, f"max abs err vs reference: {max_err}"

    print("KERNEL_OK")
</pallas_src>

<mosaic_0001>
module attributes {stable_mosaic.version = 11 : i64} {
  func.func @_mrg_fused_kernel(%arg0: i32, %arg1: memref<2x64x456xf32, #tpu.memory_space<vmem>>, %arg2: memref<32x576xf32, #tpu.memory_space<vmem>>, %arg3: memref<32x1xf32, #tpu.memory_space<vmem>>, %arg4: memref<384x1024xf32, #tpu.memory_space<vmem>>, %arg5: memref<2x32x1024xf32, #tpu.memory_space<vmem>>, %arg6: memref<576x384xf32, #tpu.memory_space<vmem>>) attributes {dimension_semantics = [#tpu.dimension_semantics<parallel>], iteration_bounds = array<i64: 1>, scalar_prefetch = 0 : i64, scratch_operands = 1 : i64, tpu.core_type = #tpu.core_type<tc>, window_params = [{transform_indices = @transform_0, window_bounds = array<i64: 2, 64, 456>}, {pipeline_mode = #tpu.pipeline_mode<synchronous>, transform_indices = @transform_1, window_bounds = array<i64: 32, 576>}, {pipeline_mode = #tpu.pipeline_mode<synchronous>, transform_indices = @transform_2, window_bounds = array<i64: 32, 1>}, {pipeline_mode = #tpu.pipeline_mode<synchronous>, transform_indices = @transform_3, window_bounds = array<i64: 384, 1024>}, {transform_indices = @transform_4, window_bounds = array<i64: 2, 32, 1024>}]} {
    %c0 = arith.constant 0 : index
    %c0_0 = arith.constant 0 : index
    %c0_1 = arith.constant 0 : index
    %0 = vector.load %arg1[%c0, %c0_0, %c0_1] : memref<2x64x456xf32, #tpu.memory_space<vmem>>, vector<1x64x384xf32>
    %1 = vector.shape_cast %0 : vector<1x64x384xf32> to vector<64x384xf32>
    %c0_2 = arith.constant 0 : index
    %c0_3 = arith.constant 0 : index
    %2 = vector.load %arg6[%c0_2, %c0_3] : memref<576x384xf32, #tpu.memory_space<vmem>>, vector<64x384xf32>
    tpu.vector_store %arg6[%c0_2, %c0_3], %1 {strides = array<i32>} : memref<576x384xf32, #tpu.memory_space<vmem>>, vector<64x384xf32>,
    %c0_4 = arith.constant 0 : index
    %c0_5 = arith.constant 0 : index
    %c1 = arith.constant 1 : index
    %3 = vector.load %arg1[%c0_4, %c0_5, %c1] : memref<2x64x456xf32, #tpu.memory_space<vmem>>, vector<1x64x384xf32>
    %4 = vector.shape_cast %3 : vector<1x64x384xf32> to vector<64x384xf32>
    %c64 = arith.constant 64 : index
    %c0_6 = arith.constant 0 : index
    %5 = vector.load %arg6[%c64, %c0_6] : memref<576x384xf32, #tpu.memory_space<vmem>>, vector<64x384xf32>
    tpu.vector_store %arg6[%c64, %c0_6], %4 {strides = array<i32>} : memref<576x384xf32, #tpu.memory_space<vmem>>, vector<64x384xf32>,
    %c0_7 = arith.constant 0 : index
    %c0_8 = arith.constant 0 : index
    %c2 = arith.constant 2 : index
    %6 = vector.load %arg1[%c0_7, %c0_8, %c2] : memref<2x64x456xf32, #tpu.memory_space<vmem>>, vector<1x64x384xf32>
    %7 = vector.shape_cast %6 : vector<1x64x384xf32> to vector<64x384xf32>
    %c128 = arith.constant 128 : index
    %c0_9 = arith.constant 0 : index
    %8 = vector.load %arg6[%c128, %c0_9] : memref<576x384xf32, #tpu.memory_space<vmem>>, vector<64x384xf32>
    tpu.vector_store %arg6[%c128, %c0_9], %7 {strides = array<i32>} : memref<576x384xf32, #tpu.memory_space<vmem>>, vector<64x384xf32>,
    %c0_10 = arith.constant 0 : index
    %c0_11 = arith.constant 0 : index
    %c24 = arith.constant 24 : index
    %9 = vector.load %arg1[%c0_10, %c0_11, %c24] : memref<2x64x456xf32, #tpu.memory_space<vmem>>, vector<1x64x384xf32>
    %10 = vector.shape_cast %9 : vector<1x64x384xf32> to vector<64x384xf32>
    %c192 = arith.constant 192 : index
    %c0_12 = arith.constant 0 : index
    %11 = vector.load %arg6[%c192, %c0_12] : memref<576x384xf32, #tpu.memory_space<vmem>>, vector<64x384xf32>
    tpu.vector_store %arg6[%c192, %c0_12], %10 {strides = array<i32>} : memref<576x384xf32, #tpu.memory_space<vmem>>, vector<64x384xf32>,
    %c0_13 = arith.constant 0 : index
    %c0_14 = arith.constant 0 : index
    %c25 = arith.constant 25 : index
    %12 = vector.load %arg1[%c0_13, %c0_14, %c25] : memref<2x64x456xf32, #tpu.memory_space<vmem>>, vector<1x64x384xf32>
    %13 = vector.shape_cast %12 : vector<1x64x384xf32> to vector<64x384xf32>
    %c256 = arith.constant 256 : index
    %c0_15 = arith.constant 0 : index
    %14 = vector.load %arg6[%c256, %c0_15] : memref<576x384xf32, #tpu.memory_space<vmem>>, vector<64x384xf32>
    tpu.vector_store %arg6[%c256, %c0_15], %13 {strides = array<i32>} : memref<576x384xf32, #tpu.memory_space<vmem>>, vector<64x384xf32>,
    %c0_16 = arith.constant 0 : index
    %c0_17 = arith.constant 0 : index
    %c26 = arith.constant 26 : index
    %15 = vector.load %arg1[%c0_16, %c0_17, %c26] : memref<2x64x456xf32, #tpu.memory_space<vmem>>, vector<1x64x384xf32>
    %16 = vector.shape_cast %15 : vector<1x64x384xf32> to vector<64x384xf32>
    %c320 = arith.constant 320 : index
    %c0_18 = arith.constant 0 : index
    %17 = vector.load %arg6[%c320, %c0_18] : memref<576x384xf32, #tpu.memory_space<vmem>>, vector<64x384xf32>
    tpu.vector_store %arg6[%c320, %c0_18], %16 {strides = array<i32>} : memref<576x384xf32, #tpu.memory_space<vmem>>, vector<64x384xf32>,
    %c0_19 = arith.constant 0 : index
    %c0_20 = arith.constant 0 : index
    %c48 = arith.constant 48 : index
    %18 = vector.load %arg1[%c0_19, %c0_20, %c48] : memref<2x64x456xf32, #tpu.memory_space<vmem>>, vector<1x64x384xf32>
    %19 = vector.shape_cast %18 : vector<1x64x384xf32> to vector<64x384xf32>
    %c384 = arith.constant 384 : index
    %c0_21 = arith.constant 0 : index
    %20 = vector.load %arg6[%c384, %c0_21] : memref<576x384xf32, #tpu.memory_space<vmem>>, vector<64x384xf32>
    tpu.vector_store %arg6[%c384, %c0_21], %19 {strides = array<i32>} : memref<576x384xf32, #tpu.memory_space<vmem>>, vector<64x384xf32>,
    %c0_22 = arith.constant 0 : index
    %c0_23 = arith.constant 0 : index
    %c49 = arith.constant 49 : index
    %21 = vector.load %arg1[%c0_22, %c0_23, %c49] : memref<2x64x456xf32, #tpu.memory_space<vmem>>, vector<1x64x384xf32>
    %22 = vector.shape_cast %21 : vector<1x64x384xf32> to vector<64x384xf32>
    %c448 = arith.constant 448 : index
    %c0_24 = arith.constant 0 : index
    %23 = vector.load %arg6[%c448, %c0_24] : memref<576x384xf32, #tpu.memory_space<vmem>>, vector<64x384xf32>
    tpu.vector_store %arg6[%c448, %c0_24], %22 {strides = array<i32>} : memref<576x384xf32, #tpu.memory_space<vmem>>, vector<64x384xf32>,
    %c0_25 = arith.constant 0 : index
    %c0_26 = arith.constant 0 : index
    %c50 = arith.constant 50 : index
    %24 = vector.load %arg1[%c0_25, %c0_26, %c50] : memref<2x64x456xf32, #tpu.memory_space<vmem>>, vector<1x64x384xf32>
    %25 = vector.shape_cast %24 : vector<1x64x384xf32> to vector<64x384xf32>
    %c512 = arith.constant 512 : index
    %c0_27 = arith.constant 0 : index
    %26 = vector.load %arg6[%c512, %c0_27] : memref<576x384xf32, #tpu.memory_space<vmem>>, vector<64x384xf32>
    tpu.vector_store %arg6[%c512, %c0_27], %25 {strides = array<i32>} : memref<576x384xf32, #tpu.memory_space<vmem>>, vector<64x384xf32>,
    %c0_28 = arith.constant 0 : index
    %c0_29 = arith.constant 0 : index
    %27 = vector.load %arg2[%c0_28, %c0_29] : memref<32x576xf32, #tpu.memory_space<vmem>>, vector<32x576xf32>
    %c0_30 = arith.constant 0 : index
    %c0_31 = arith.constant 0 : index
    %28 = vector.load %arg6[%c0_30, %c0_31] : memref<576x384xf32, #tpu.memory_space<vmem>>, vector<576x384xf32>
    %cst = arith.constant dense<0.000000e+00> : vector<32x384xf32>
    %29 = tpu.matmul %27, %28, %cst {dimension_numbers = #tpu.dot_dimension_numbers<[1], [0], [0], [1], [0, 0, 1, 1], [], []>} : vector<32x576xf32>, vector<576x384xf32>, vector<32x384xf32> -> vector<32x384xf32>
    %c0_32 = arith.constant 0 : index
    %c0_33 = arith.constant 0 : index
    %30 = vector.load %arg4[%c0_32, %c0_33] : memref<384x1024xf32, #tpu.memory_space<vmem>>, vector<384x1024xf32>
    %cst_34 = arith.constant dense<0.000000e+00> : vector<32x1024xf32>
    %31 = tpu.matmul %29, %30, %cst_34 {dimension_numbers = #tpu.dot_dimension_numbers<[1], [0], [0], [1], [0, 0, 1, 1], [], []>} : vector<32x384xf32>, vector<384x1024xf32>, vector<32x1024xf32> -> vector<32x1024xf32>
    %c0_35 = arith.constant 0 : index
    %c0_36 = arith.constant 0 : index
    %32 = vector.load %arg3[%c0_35, %c0_36] : memref<32x1xf32, #tpu.memory_space<vmem>>, vector<32x1xf32>
    %33 = vector.broadcast %32 : vector<32x1xf32> to vector<32x1024xf32>
    %34 = arith.addf %31, %33 : vector<32x1024xf32>
    %c0_37 = arith.constant 0 : index
    %c0_38 = arith.constant 0 : index
    %c0_39 = arith.constant 0 : index
    %35 = vector.load %arg5[%c0_37, %c0_38, %c0_39] : memref<2x32x1024xf32, #tpu.memory_space<vmem>>, vector<1x32x1024xf32>
    %36 = vector.shape_cast %35 : vector<1x32x1024xf32> to vector<32x1024xf32>
    %37 = vector.shape_cast %34 : vector<32x1024xf32> to vector<1x32x1024xf32>
    tpu.vector_store %arg5[%c0_37, %c0_38, %c0_39], %37 {strides = array<i32>} : memref<2x32x1024xf32, #tpu.memory_space<vmem>>, vector<1x32x1024xf32>,
    %c1_40 = arith.constant 1 : index
    %c0_41 = arith.constant 0 : index
    %c0_42 = arith.constant 0 : index
    %38 = vector.load %arg1[%c1_40, %c0_41, %c0_42] : memref<2x64x456xf32, #tpu.memory_space<vmem>>, vector<1x64x384xf32>
    %39 = vector.shape_cast %38 : vector<1x64x384xf32> to vector<64x384xf32>
    %c0_43 = arith.constant 0 : index
    %c0_44 = arith.constant 0 : index
    %40 = vector.load %arg6[%c0_43, %c0_44] : memref<576x384xf32, #tpu.memory_space<vmem>>, vector<64x384xf32>
    tpu.vector_store %arg6[%c0_43, %c0_44], %39 {strides = array<i32>} : memref<576x384xf32, #tpu.memory_space<vmem>>, vector<64x384xf32>,
    %c1_45 = arith.constant 1 : index
    %c0_46 = arith.constant 0 : index
    %c1_47 = arith.constant 1 : index
    %41 = vector.load %arg1[%c1_45, %c0_46, %c1_47] : memref<2x64x456xf32, #tpu.memory_space<vmem>>, vector<1x64x384xf32>
    %42 = vector.shape_cast %41 : vector<1x64x384xf32> to vector<64x384xf32>
    %c64_48 = arith.constant 64 : index
    %c0_49 = arith.constant 0 : index
    %43 = vector.load %arg6[%c64_48, %c0_49] : memref<576x384xf32, #tpu.memory_space<vmem>>, vector<64x384xf32>
    tpu.vector_store %arg6[%c64_48, %c0_49], %42 {strides = array<i32>} : memref<576x384xf32, #tpu.memory_space<vmem>>, vector<64x384xf32>,
    %c1_50 = arith.constant 1 : index
    %c0_51 = arith.constant 0 : index
    %c2_52 = arith.constant 2 : index
    %44 = vector.load %arg1[%c1_50, %c0_51, %c2_52] : memref<2x64x456xf32, #tpu.memory_space<vmem>>, vector<1x64x384xf32>
    %45 = vector.shape_cast %44 : vector<1x64x384xf32> to vector<64x384xf32>
    %c128_53 = arith.constant 128 : index
    %c0_54 = arith.constant 0 : index
    %46 = vector.load %arg6[%c128_53, %c0_54] : memref<576x384xf32, #tpu.memory_space<vmem>>, vector<64x384xf32>
    tpu.vector_store %arg6[%c128_53, %c0_54], %45 {strides = array<i32>} : memref<576x384xf32, #tpu.memory_space<vmem>>, vector<64x384xf32>,
    %c1_55 = arith.constant 1 : index
    %c0_56 = arith.constant 0 : index
    %c24_57 = arith.constant 24 : index
    %47 = vector.load %arg1[%c1_55, %c0_56, %c24_57] : memref<2x64x456xf32, #tpu.memory_space<vmem>>, vector<1x64x384xf32>
    %48 = vector.shape_cast %47 : vector<1x64x384xf32> to vector<64x384xf32>
    %c192_58 = arith.constant 192 : index
    %c0_59 = arith.constant 0 : index
    %49 = vector.load %arg6[%c192_58, %c0_59] : memref<576x384xf32, #tpu.memory_space<vmem>>, vector<64x384xf32>
    tpu.vector_store %arg6[%c192_58, %c0_59], %48 {strides = array<i32>} : memref<576x384xf32, #tpu.memory_space<vmem>>, vector<64x384xf32>,
    %c1_60 = arith.constant 1 : index
    %c0_61 = arith.constant 0 : index
    %c25_62 = arith.constant 25 : index
    %50 = vector.load %arg1[%c1_60, %c0_61, %c25_62] : memref<2x64x456xf32, #tpu.memory_space<vmem>>, vector<1x64x384xf32>
    %51 = vector.shape_cast %50 : vector<1x64x384xf32> to vector<64x384xf32>
    %c256_63 = arith.constant 256 : index
    %c0_64 = arith.constant 0 : index
    %52 = vector.load %arg6[%c256_63, %c0_64] : memref<576x384xf32, #tpu.memory_space<vmem>>, vector<64x384xf32>
    tpu.vector_store %arg6[%c256_63, %c0_64], %51 {strides = array<i32>} : memref<576x384xf32, #tpu.memory_space<vmem>>, vector<64x384xf32>,
    %c1_65 = arith.constant 1 : index
    %c0_66 = arith.constant 0 : index
    %c26_67 = arith.constant 26 : index
    %53 = vector.load %arg1[%c1_65, %c0_66, %c26_67] : memref<2x64x456xf32, #tpu.memory_space<vmem>>, vector<1x64x384xf32>
    %54 = vector.shape_cast %53 : vector<1x64x384xf32> to vector<64x384xf32>
    %c320_68 = arith.constant 320 : index
    %c0_69 = arith.constant 0 : index
    %55 = vector.load %arg6[%c320_68, %c0_69] : memref<576x384xf32, #tpu.memory_space<vmem>>, vector<64x384xf32>
    tpu.vector_store %arg6[%c320_68, %c0_69], %54 {strides = array<i32>} : memref<576x384xf32, #tpu.memory_space<vmem>>, vector<64x384xf32>,
    %c1_70 = arith.constant 1 : index
    %c0_71 = arith.constant 0 : index
    %c48_72 = arith.constant 48 : index
    %56 = vector.load %arg1[%c1_70, %c0_71, %c48_72] : memref<2x64x456xf32, #tpu.memory_space<vmem>>, vector<1x64x384xf32>
    %57 = vector.shape_cast %56 : vector<1x64x384xf32> to vector<64x384xf32>
    %c384_73 = arith.constant 384 : index
    %c0_74 = arith.constant 0 : index
    %58 = vector.load %arg6[%c384_73, %c0_74] : memref<576x384xf32, #tpu.memory_space<vmem>>, vector<64x384xf32>
    tpu.vector_store %arg6[%c384_73, %c0_74], %57 {strides = array<i32>} : memref<576x384xf32, #tpu.memory_space<vmem>>, vector<64x384xf32>,
    %c1_75 = arith.constant 1 : index
    %c0_76 = arith.constant 0 : index
    %c49_77 = arith.constant 49 : index
    %59 = vector.load %arg1[%c1_75, %c0_76, %c49_77] : memref<2x64x456xf32, #tpu.memory_space<vmem>>, vector<1x64x384xf32>
    %60 = vector.shape_cast %59 : vector<1x64x384xf32> to vector<64x384xf32>
    %c448_78 = arith.constant 448 : index
    %c0_79 = arith.constant 0 : index
    %61 = vector.load %arg6[%c448_78, %c0_79] : memref<576x384xf32, #tpu.memory_space<vmem>>, vector<64x384xf32>
    tpu.vector_store %arg6[%c448_78, %c0_79], %60 {strides = array<i32>} : memref<576x384xf32, #tpu.memory_space<vmem>>, vector<64x384xf32>,
    %c1_80 = arith.constant 1 : index
    %c0_81 = arith.constant 0 : index
    %c50_82 = arith.constant 50 : index
    %62 = vector.load %arg1[%c1_80, %c0_81, %c50_82] : memref<2x64x456xf32, #tpu.memory_space<vmem>>, vector<1x64x384xf32>
    %63 = vector.shape_cast %62 : vector<1x64x384xf32> to vector<64x384xf32>
    %c512_83 = arith.constant 512 : index
    %c0_84 = arith.constant 0 : index
    %64 = vector.load %arg6[%c512_83, %c0_84] : memref<576x384xf32, #tpu.memory_space<vmem>>, vector<64x384xf32>
    tpu.vector_store %arg6[%c512_83, %c0_84], %63 {strides = array<i32>} : memref<576x384xf32, #tpu.memory_space<vmem>>, vector<64x384xf32>,
    %c0_85 = arith.constant 0 : index
    %c0_86 = arith.constant 0 : index
    %65 = vector.load %arg2[%c0_85, %c0_86] : memref<32x576xf32, #tpu.memory_space<vmem>>, vector<32x576xf32>
    %c0_87 = arith.constant 0 : index
    %c0_88 = arith.constant 0 : index
    %66 = vector.load %arg6[%c0_87, %c0_88] : memref<576x384xf32, #tpu.memory_space<vmem>>, vector<576x384xf32>
    %cst_89 = arith.constant dense<0.000000e+00> : vector<32x384xf32>
    %67 = tpu.matmul %65, %66, %cst_89 {dimension_numbers = #tpu.dot_dimension_numbers<[1], [0], [0], [1], [0, 0, 1, 1], [], []>} : vector<32x576xf32>, vector<576x384xf32>, vector<32x384xf32> -> vector<32x384xf32>
    %c0_90 = arith.constant 0 : index
    %c0_91 = arith.constant 0 : index
    %68 = vector.load %arg4[%c0_90, %c0_91] : memref<384x1024xf32, #tpu.memory_space<vmem>>, vector<384x1024xf32>
    %cst_92 = arith.constant dense<0.000000e+00> : vector<32x1024xf32>
    %69 = tpu.matmul %67, %68, %cst_92 {dimension_numbers = #tpu.dot_dimension_numbers<[1], [0], [0], [1], [0, 0, 1, 1], [], []>} : vector<32x384xf32>, vector<384x1024xf32>, vector<32x1024xf32> -> vector<32x1024xf32>
    %c0_93 = arith.constant 0 : index
    %c0_94 = arith.constant 0 : index
    %70 = vector.load %arg3[%c0_93, %c0_94] : memref<32x1xf32, #tpu.memory_space<vmem>>, vector<32x1xf32>
    %71 = vector.broadcast %70 : vector<32x1xf32> to vector<32x1024xf32>
    %72 = arith.addf %69, %71 : vector<32x1024xf32>
    %c1_95 = arith.constant 1 : index
    %c0_96 = arith.constant 0 : index
    %c0_97 = arith.constant 0 : index
    %73 = vector.load %arg5[%c1_95, %c0_96, %c0_97] : memref<2x32x1024xf32, #tpu.memory_space<vmem>>, vector<1x32x1024xf32>
    %74 = vector.shape_cast %73 : vector<1x32x1024xf32> to vector<32x1024xf32>
    %75 = vector.shape_cast %72 : vector<32x1024xf32> to vector<1x32x1024xf32>
    tpu.vector_store %arg5[%c1_95, %c0_96, %c0_97], %75 {strides = array<i32>} : memref<2x32x1024xf32, #tpu.memory_space<vmem>>, vector<1x32x1024xf32>,
    return
  }
  func.func @transform_0(%arg0: i32) -> (i32, i32, i32) {
    %c0_i32 = arith.constant 0 : i32
    %c0_i32_0 = arith.constant 0 : i32
    %c0_i32_1 = arith.constant 0 : i32
    return %arg0, %c0_i32, %c0_i32_0 : i32, i32, i32
  }
  func.func @transform_1(%arg0: i32) -> (i32, i32) {
    %c0_i32 = arith.constant 0 : i32
    %c0_i32_0 = arith.constant 0 : i32
    %c0_i32_1 = arith.constant 0 : i32
    return %c0_i32, %c0_i32_0 : i32, i32
  }
  func.func @transform_2(%arg0: i32) -> (i32, i32) {
    %c0_i32 = arith.constant 0 : i32
    %c0_i32_0 = arith.constant 0 : i32
    %c0_i32_1 = arith.constant 0 : i32
    return %c0_i32, %c0_i32_0 : i32, i32
  }
  func.func @transform_3(%arg0: i32) -> (i32, i32) {
    %c0_i32 = arith.constant 0 : i32
    %c0_i32_0 = arith.constant 0 : i32
    %c0_i32_1 = arith.constant 0 : i32
    return %c0_i32, %c0_i32_0 : i32, i32
  }
  func.func @transform_4(%arg0: i32) -> (i32, i32, i32) {
    %c0_i32 = arith.constant 0 : i32
    %c0_i32_0 = arith.constant 0 : i32
    %c0_i32_1 = arith.constant 0 : i32
    return %arg0, %c0_i32, %c0_i32_0 : i32, i32, i32
  }
}

</mosaic_0001>

<bundles_post_ra>
// kernel: _lambda_.1
= control target key start
LH: loop header
LB: loop body
LE: loop exit
PB: predicated region body
PF: predicated region fallthrough
CT: control target
= control target key end

     0   :  { %s10412_s7 = smov 127   ;;  %s10413_s13 = smov 126   ;;  %vm193_vm0 = vcmask 1039360   ;;  %vm394_vm1 = vcmask 1031168   ;;  %vm595_vm2 = vcmask 850944   ;;  %vm796_vm3 = vcmask 842752   ;;  %s17291_s0 = inlined_call_operand.vmem [shape: f32[2,64,456], index: 0, kind: input, shape index: {}]   ;;  %s17292_s1 = inlined_call_operand.vmem [shape: f32[32,576], index: 1, kind: input, shape index: {}]   ;;  %s17293_s3 = inlined_call_operand.vmem [shape: f32[384,1024], index: 3, kind: input, shape index: {}]   ;;  %s17294_s2 = inlined_call_operand.vmem [shape: f32[32,1], index: 2, kind: input, shape index: {}]   ;;  %s17295_s4 = inlined_call_operand.vmem [shape: f32[2,32,1024], index: 4, kind: output, shape index: {}]  }
   0x1   :  { %v66_v0 = vld [vmem:[%s17291_s0 + $0x8] sm:$0xff]  ;;  %v67_v1 = vld [vmem:[%s17291_s0 + $0x10] sm:$0xff]  ;;  %v65_v2 = vld [vmem:[%s17291_s0] sm:$0xff]  ;;  %s10414_s14 = smov 104   ;;  %s10415_s17 = smov 103   ;;  %vm997_vm4 = vcmask 834560  }
   0x2   :  { %v10456_v3 = vpack.i.bf16 %v67_v1, %v66_v0  ;;  %v69_v4 = vld [vmem:[%s17291_s0 + $0x20] sm:$0xff]  ;;  %v70_v5 = vld [vmem:[%s17291_s0 + $0x28] sm:$0xff]  ;;  %v71_v6 = vld [vmem:[%s17291_s0 + $0x30] sm:$0xff]  ;;  %s10416_s18 = smov 102   ;;  %s10417_s23 = smov 80   ;;  %vm1198_vm5 = vcmask 654336  }
   0x3   :  { %v10467_v7 = vpack.i.bf16 %v69_v4, %v65_v2  ;;  %v74_v8 = vld [vmem:[%s17291_s0 + $0x48] sm:$0xff]  ;;  %v75_v9 = vld [vmem:[%s17291_s0 + $0x50] sm:$0xff]  ;;  %v7744_v11 = vpack.c.bf16 %v70_v5, %v66_v0  ;;  %v7746_v12 = vpack.c.bf16 %v69_v4, %v65_v2  ;;  %v10480_v13 = vpack.i.bf16 %v71_v6, %v70_v5  ;;  %v73_v17 = vld [vmem:[%s17291_s0 + $0x40] sm:$0xff]  ;;  %s10418_s11 = smov 79   ;;  %s10419_s22 = smov 78  }
   0x4   :  { %v78_v10 = vld [vmem:[%s17291_s0 + $0x68] sm:$0xff]  ;;  %9131 = vrot.lane.b32.xlu0 %v10456_v3, %s10412_s7  ;;  %v10484_v15 = vpack.i.bf16 %v75_v9, %v74_v8  ;;  %v79_v16 = vld [vmem:[%s17291_s0 + $0x70] sm:$0xff]  ;;  %v77_v18 = vld [vmem:[%s17291_s0 + $0x60] sm:$0xff]  ;;  %vm1399_vm6 = vcmask 646144   ;;  %vm1600_vm7 = vcmask 637952   ;;  %vm1909_vm8 = vcmask 523264  }
   0x5   :  { %v7748_v14 = vpack.c.bf16 %v78_v10, %v74_v8  ;;  %9141 = vrot.lane.b32.xlu1 %v10467_v7, %s10412_s7  ;;  %7745 = vmatprep.subr.bf16.mxu0 %v7744_v11  ;;  %v82_v19 = vld [vmem:[%s17291_s0 + $0x88] sm:$0xff]  ;;  %v7750_v21 = vpack.c.bf16 %v77_v18, %v73_v17  ;;  %v10503_v23 = vpack.i.bf16 %v79_v16, %v78_v10  ;;  %v83_v25 = vld [vmem:[%s17291_s0 + $0x90] sm:$0xff]  ;;  %v81_v26 = vld [vmem:[%s17291_s0 + $0x80] sm:$0xff] }
   0x6   :  { %v86_v20 = vld [vmem:[%s17291_s0 + $0xa8] sm:$0xff]  ;;  %7747 = vmatpush1.bf16.msra.mxu0 %v7746_v12  ;;  %v10507_v24 = vpack.i.bf16 %v77_v18, %v73_v17  ;;  %v85_v27 = vld [vmem:[%s17291_s0 + $0xa0] sm:$0xff]  ;;  %v87_v28 = vld [vmem:[%s17291_s0 + $0xb0] sm:$0xff]  ;;  %v10529_v33 = vpack.i.bf16 %v83_v25, %v82_v19 }
   0x7   :  { %7749 = vmatprep.subr.bf16.mxu0 %v7748_v14  ;;  %v7752_v22 = vpack.c.bf16 %v86_v20, %v82_v19  ;;  %v90_v29 = vld [vmem:[%s17291_s0 + $0xc8] sm:$0xff]  ;;  %v7754_v31 = vpack.c.bf16 %v85_v27, %v81_v26  ;;  %v10533_v34 = vpack.i.bf16 %v87_v28, %v86_v20  ;;  %v89_v35 = vld [vmem:[%s17291_s0 + $0xc0] sm:$0xff]  ;;  %v91_v37 = vld [vmem:[%s17291_s0 + $0xd0] sm:$0xff]  ;;  %v10546_v39 = vpack.i.bf16 %v85_v27, %v81_v26 }
   0x8   :  { %9136 = vrot.lane.b32.xlu0 %v10480_v13, %s10412_s7  ;;  %v94_v30 = vld [vmem:[%s17291_s0 + $0xe8] sm:$0xff]  ;;  %v93_v36 = vld [vmem:[%s17291_s0 + $0xe0] sm:$0xff]  ;;  %v10550_v40 = vpack.i.bf16 %v91_v37, %v90_v29  ;;  %v95_v41 = vld [vmem:[%s17291_s0 + $0xf0] sm:$0xff] }
   0x9   :  { %9146 = vrot.lane.b32.xlu1 %v10484_v15, %s10412_s7  ;;  %v7756_v32 = vpack.c.bf16 %v94_v30, %v90_v29  ;;  %v7758_v38 = vpack.c.bf16 %v93_v36, %v89_v35  ;;  %v10557_v42 = vpack.i.bf16 %v95_v41, %v94_v30  ;;  %v10561_v43 = vpack.i.bf16 %v93_v36, %v89_v35  ;;  %v1674_v44 = vld [vmem:[%s17292_s1 + $0x8] sm:$0xff]  ;;  %v269_v45 = vld [vmem:[%s17291_s0 + $0x18] sm:$0xff] }
   0xa   :  { %7751 = vmatpush1.bf16.msra.mxu0 %v7750_v21  ;;  %1986 = vmatprep.mubr.f32.mxu0 %v1674_v44  ;;  %v273_v46 = vld [vmem:[%s17291_s0 + $0x38] sm:$0xff] }
   0xb   :  { %7753 = vmatprep.subr.bf16.mxu0 %v7752_v22  ;;  %2253 = vmatprep.mubr.f32.mxu1 %v1674_v44  ;;  %v10674_v52 = vpack.i.bf16 %v273_v46, %v269_v45  ;;  %v277_v0 = vld [vmem:[%s17291_s0 + $0x58] sm:$0xff] }
   0xc   :  { %9151 = vrot.lane.b32.xlu0 %v10503_v23, %s10412_s7  ;;  %v281_v1 = vld [vmem:[%s17291_s0 + $0x78] sm:$0xff] }
   0xd   :  { %9156 = vrot.lane.b32.xlu1 %v10507_v24, %s10412_s7  ;;  %v10710_v12 = vpack.i.bf16 %v281_v1, %v277_v0  ;;  %v285_v30 = vld [vmem:[%s17291_s0 + $0x98] sm:$0xff] }
   0xe   :  { %7755 = vmatpush1.bf16.msra.mxu0 %v7754_v31  ;;  %v289_v31 = vld [vmem:[%s17291_s0 + $0xb8] sm:$0xff] }
   0xf   :  { %7757 = vmatprep.subr.bf16.mxu0 %v7756_v32  ;;  %v10750_v44 = vpack.i.bf16 %v289_v31, %v285_v30  ;;  %v293_v1 = vld [vmem:[%s17291_s0 + $0xd8] sm:$0xff] }
  0x10   :  { %9161 = vrot.lane.b32.xlu0 %v10529_v33, %s10412_s7 }
  0x11   :  { %9166 = vrot.lane.b32.xlu1 %v10533_v34, %s10412_s7 }
  0x12   :  { %7759 = vmatpush1.bf16.msra.mxu0 %v7758_v38 }
  0x14   :  { %9171 = vrot.lane.b32.xlu0 %v10546_v39, %s10412_s7 }
  0x15   :  { %9176 = vrot.lane.b32.xlu1 %v10550_v40, %s10412_s7 }
  0x18   :  { %9181 = vrot.lane.b32.xlu0 %v10557_v42, %s10412_s7 }
  0x19   :  { %9186 = vrot.lane.b32.xlu1 %v10561_v43, %s10412_s7 }
  0x1c   :  { %9191 = vrot.lane.b32.xlu0 %v10456_v3, %s10413_s13 }
  0x1d   :  { %9196 = vrot.lane.b32.xlu1 %v10480_v13, %s10413_s13 }
  0x20   :  { %9201 = vrot.lane.b32.xlu0 %v10467_v7, %s10413_s13 }
  0x21   :  { %9206 = vrot.lane.b32.xlu1 %v10484_v15, %s10413_s13 }
  0x24   :  { %9211 = vrot.lane.b32.xlu0 %v10503_v23, %s10413_s13 }
  0x25   :  { %9216 = vrot.lane.b32.xlu1 %v10507_v24, %s10413_s13 }
  0x28   :  { %9221 = vrot.lane.b32.xlu0 %v10529_v33, %s10413_s13 }
  0x29   :  { %9226 = vrot.lane.b32.xlu1 %v10533_v34, %s10413_s13 }
  0x2c   :  { %9231 = vrot.lane.b32.xlu0 %v10546_v39, %s10413_s13 }
  0x2d   :  { %9236 = vrot.lane.b32.xlu1 %v10550_v40, %s10413_s13 }
  0x30   :  { %9241 = vrot.lane.b32.xlu0 %v10557_v42, %s10413_s13 }
  0x31   :  { %9246 = vrot.lane.b32.xlu1 %v10561_v43, %s10413_s13 }
  0x34   :  { %9251 = vrot.lane.b32.xlu0 %v10456_v3, %s10414_s14 }
  0x35   :  { %9256 = vrot.lane.b32.xlu1 %v10480_v13, %s10414_s14 }
  0x38   :  { %9261 = vrot.lane.b32.xlu0 %v10467_v7, %s10414_s14 }
  0x39   :  { %9266 = vrot.lane.b32.xlu1 %v10484_v15, %s10414_s14 }
  0x3c   :  { %9271 = vrot.lane.b32.xlu0 %v10503_v23, %s10414_s14 }
  0x3d   :  { %9276 = vrot.lane.b32.xlu1 %v10507_v24, %s10414_s14 }
  0x40   :  { %9281 = vrot.lane.b32.xlu0 %v10529_v33, %s10414_s14 }
  0x41   :  { %9286 = vrot.lane.b32.xlu1 %v10533_v34, %s10414_s14 }
  0x44   :  { %9291 = vrot.lane.b32.xlu0 %v10546_v39, %s10414_s14 }
  0x45   :  { %9296 = vrot.lane.b32.xlu1 %v10550_v40, %s10414_s14 }
  0x48   :  { %9301 = vrot.lane.b32.xlu0 %v10557_v42, %s10414_s14 }
  0x49   :  { %9306 = vrot.lane.b32.xlu1 %v10561_v43, %s10414_s14 }
  0x4c   :  { %9311 = vrot.lane.b32.xlu0 %v10456_v3, %s10415_s17 }
  0x4d   :  { %9316 = vrot.lane.b32.xlu1 %v10480_v13, %s10415_s17 }
  0x50   :  { %9321 = vrot.lane.b32.xlu0 %v10467_v7, %s10415_s17 }
  0x51   :  { %9326 = vrot.lane.b32.xlu1 %v10484_v15, %s10415_s17 }
  0x54   :  { %9331 = vrot.lane.b32.xlu0 %v10503_v23, %s10415_s17 }
  0x55   :  { %9336 = vrot.lane.b32.xlu1 %v10507_v24, %s10415_s17 }
  0x58   :  { %9341 = vrot.lane.b32.xlu0 %v10529_v33, %s10415_s17 }
  0x59   :  { %9346 = vrot.lane.b32.xlu1 %v10533_v34, %s10415_s17 }
  0x5c   :  { %9351 = vrot.lane.b32.xlu0 %v10546_v39, %s10415_s17 }
  0x5d   :  { %9356 = vrot.lane.b32.xlu1 %v10550_v40, %s10415_s17 }
  0x60   :  { %9361 = vrot.lane.b32.xlu0 %v10557_v42, %s10415_s17 }
  0x61   :  { %9366 = vrot.lane.b32.xlu1 %v10561_v43, %s10415_s17 }
  0x64   :  { %9371 = vrot.lane.b32.xlu0 %v10456_v3, %s10416_s18 }
  0x65   :  { %9376 = vrot.lane.b32.xlu1 %v10480_v13, %s10416_s18 }
  0x68   :  { %9381 = vrot.lane.b32.xlu0 %v10467_v7, %s10416_s18 }
  0x69   :  { %9386 = vrot.lane.b32.xlu1 %v10484_v15, %s10416_s18 }
  0x6c   :  { %9391 = vrot.lane.b32.xlu0 %v10503_v23, %s10416_s18 }
  0x6d   :  { %9396 = vrot.lane.b32.xlu1 %v10507_v24, %s10416_s18 }
  0x70   :  { %9401 = vrot.lane.b32.xlu0 %v10529_v33, %s10416_s18 }
  0x71   :  { %9406 = vrot.lane.b32.xlu1 %v10533_v34, %s10416_s18 }
  0x74   :  { %9411 = vrot.lane.b32.xlu0 %v10546_v39, %s10416_s18 }
  0x75   :  { %9416 = vrot.lane.b32.xlu1 %v10550_v40, %s10416_s18 }
  0x76   :  { %v10668_v47 = vpop.permute.xlu0 %9131 }
  0x77   :  { %v9142_v48 = vpop.permute.xlu1 %9141  ;;  %v17307_v49 = vunpack.i.h.bf16 %v10668_v47  ;;  %v9133_v50 = vunpack.i.l.bf16 %v10668_v47 }
  0x78   :  { %v9143_v51 = vunpack.i.l.bf16 %v9142_v48  ;;  %9421 = vrot.lane.b32.xlu0 %v10557_v42, %s10416_s18  ;;  %v9144_v54 = vunpack.i.h.bf16 %v9142_v48 }
  0x79   :  { %9426 = vrot.lane.b32.xlu1 %v10561_v43, %s10416_s18  ;;  %v195_v58 = vsel %vm193_vm0, %v9133_v50, %v17307_v49 }
  0x7a   :  { %v10678_v53 = vpop.permute.xlu0 %9136  ;;  %v194_v59 = vsel %vm193_vm0, %v9143_v51, %v9133_v50 }
  0x7b   :  { %v17306_v55 = vunpack.i.h.bf16 %v10678_v53  ;;  %v9138_v56 = vunpack.i.l.bf16 %v10678_v53  ;;  %v10682_v57 = vpop.permute.xlu1 %9146 }
  0x7c   :  { %9431 = vrot.lane.b32.xlu0 %v10674_v52, %s10413_s13  ;;  %v17303_v60 = vunpack.i.h.bf16 %v10682_v57  ;;  %v9148_v61 = vunpack.i.l.bf16 %v10682_v57 }
  0x7d   :  { %9436 = vrot.lane.b32.xlu1 %v10456_v3, %s10417_s23  ;;  %v198_v62 = vsel %vm193_vm0, %v9138_v56, %v17306_v55  ;;  %v197_v63 = vsel %vm193_vm0, %v9144_v54, %v9138_v56 }
  0x7e   :  { %v10704_v2 = vpop.permute.xlu0 %9151  ;;  %v7760_v4 = vpack.c.bf16 %v198_v62, %v195_v58  ;;  %v7762_v5 = vpack.c.bf16 %v197_v63, %v194_v59  ;;  %v201_v14 = vsel %vm193_vm0, %v9148_v61, %v17303_v60 }
  0x7f   :  { %v17302_v6 = vunpack.i.h.bf16 %v10704_v2  ;;  %v9153_v8 = vunpack.i.l.bf16 %v10704_v2  ;;  %v9157_v9 = vpop.permute.xlu1 %9156 }
  0x80   :  { %v9159_v10 = vunpack.i.h.bf16 %v9157_v9  ;;  %v9158_v11 = vunpack.i.l.bf16 %v9157_v9  ;;  %9441 = vrot.lane.b32.xlu0 %v10480_v13, %s10417_s23  ;;  %7761 = vmatprep.subr.bf16.mxu0 %v7760_v4  ;;  %v297_v4 = vld [vmem:[%s17291_s0 + $0xf8] sm:$0xff] }
  0x81   :  { %9446 = vrot.lane.b32.xlu1 %v10467_v7, %s10417_s23  ;;  %7763 = vmatpush1.bf16.msra.mxu0 %v7762_v5  ;;  %v204_v16 = vsel %vm193_vm0, %v9153_v8, %v17302_v6 }
  0x82   :  { %v10720_v17 = vpop.permute.xlu0 %9161  ;;  %v7764_v18 = vpack.c.bf16 %v204_v16, %v201_v14  ;;  %v200_v19 = vsel %vm193_vm0, %v9158_v11, %v9148_v61  ;;  %v203_v20 = vsel %vm193_vm0, %v9159_v10, %v9153_v8 }
  0x83   :  { %v17299_v21 = vunpack.i.h.bf16 %v10720_v17  ;;  %v9163_v22 = vunpack.i.l.bf16 %v10720_v17  ;;  %v10726_v25 = vpop.permute.xlu1 %9166  ;;  %v7766_v26 = vpack.c.bf16 %v203_v20, %v200_v19  ;;  %v10790_v20 = vpack.i.bf16 %v297_v4, %v293_v1 }
  0x84   :  { %v17298_v27 = vunpack.i.h.bf16 %v10726_v25  ;;  %v9168_v28 = vunpack.i.l.bf16 %v10726_v25  ;;  %9451 = vrot.lane.b32.xlu0 %v10710_v12, %s10413_s13  ;;  %7765 = vmatprep.subr.bf16.mxu0 %v7764_v18 }
  0x85   :  { %9456 = vrot.lane.b32.xlu1 %v10484_v15, %s10417_s23  ;;  %7767 = vmatpush1.bf16.msra.mxu0 %v7766_v26  ;;  %v207_v29 = vsel %vm193_vm0, %v9163_v22, %v17299_v21 }
  0x86   :  { %v9172_v32 = vpop.permute.xlu0 %9171  ;;  %v210_v35 = vsel %vm193_vm0, %v9168_v28, %v17298_v27 }
  0x87   :  { %v9174_v36 = vunpack.i.h.bf16 %v9172_v32  ;;  %v9173_v37 = vunpack.i.l.bf16 %v9172_v32  ;;  %v10746_v38 = vpop.permute.xlu1 %9176  ;;  %v7768_v41 = vpack.c.bf16 %v210_v35, %v207_v29 }
  0x88   :  { %9461 = vrot.lane.b32.xlu0 %v10503_v23, %s10417_s23  ;;  %v17297_v45 = vunpack.i.h.bf16 %v10746_v38  ;;  %v9178_v46 = vunpack.i.l.bf16 %v10746_v38 }
  0x89   :  { %9466 = vrot.lane.b32.xlu1 %v10507_v24, %s10417_s23  ;;  %7769 = vmatprep.subr.bf16.mxu0 %v7768_v41  ;;  %v206_v48 = vsel %vm193_vm0, %v9173_v37, %v9163_v22  ;;  %v209_v50 = vsel %vm193_vm0, %v9174_v36, %v9168_v28 }
  0x8a   :  { %v10758_v51 = vpop.permute.xlu0 %9181  ;;  %v7770_v54 = vpack.c.bf16 %v209_v50, %v206_v48  ;;  %v213_v63 = vsel %vm193_vm0, %v9178_v46, %v17297_v45 }
  0x8b   :  { %v17296_v56 = vunpack.i.h.bf16 %v10758_v51  ;;  %v9183_v58 = vunpack.i.l.bf16 %v10758_v51  ;;  %v9187_v59 = vpop.permute.xlu1 %9186 }
  0x8c   :  { %v9189_v61 = vunpack.i.h.bf16 %v9187_v59  ;;  %v9188_v62 = vunpack.i.l.bf16 %v9187_v59  ;;  %9471 = vrot.lane.b32.xlu0 %v10750_v44, %s10413_s13  ;;  %7771 = vmatpush1.bf16.msra.mxu0 %v7770_v54 }
  0x8d   :  { %9476 = vrot.lane.b32.xlu1 %v10529_v33, %s10417_s23  ;;  %v216_v0 = vsel %vm193_vm0, %v9183_v58, %v17296_v56 }
  0x8e   :  { %v10778_v5 = vpop.permute.xlu0 %9191  ;;  %v7772_v8 = vpack.c.bf16 %v216_v0, %v213_v63  ;;  %v212_v33 = vsel %vm193_vm0, %v9188_v62, %v9178_v46  ;;  %v215_v9 = vsel %vm193_vm0, %v9189_v61, %v9183_v58 }
  0x8f   :  { %v17321_v10 = vunpack.i.h.bf16 %v10778_v5  ;;  %v9193_v11 = vunpack.i.l.bf16 %v10778_v5  ;;  %v10784_v14 = vpop.permute.xlu1 %9196  ;;  %v7774_v16 = vpack.c.bf16 %v215_v9, %v212_v33 }
  0x90   :  { %v17320_v18 = vunpack.i.h.bf16 %v10784_v14  ;;  %v9198_v19 = vunpack.i.l.bf16 %v10784_v14  ;;  %9481 = vrot.lane.b32.xlu0 %v10533_v34, %s10417_s23  ;;  %7773 = vmatprep.subr.bf16.mxu0 %v7772_v8 }
  0x91   :  { %9486 = vrot.lane.b32.xlu1 %v10546_v39, %s10417_s23  ;;  %7775 = vmatpush1.bf16.msra.mxu0 %v7774_v16  ;;  %v396_v22 = vsel %vm394_vm1, %v9193_v11, %v17321_v10 }
  0x92   :  { %v9202_v26 = vpop.permute.xlu0 %9201  ;;  %v399_v28 = vsel %vm394_vm1, %v9198_v19, %v17320_v18 }
  0x93   :  { %v9204_v29 = vunpack.i.h.bf16 %v9202_v26  ;;  %v9203_v30 = vunpack.i.l.bf16 %v9202_v26  ;;  %v10800_v31 = vpop.permute.xlu1 %9206  ;;  %v7776_v34 = vpack.c.bf16 %v399_v28, %v396_v22 }
  0x94   :  { %9491 = vrot.lane.b32.xlu0 %v10790_v20, %s10413_s13  ;;  %v17319_v39 = vunpack.i.h.bf16 %v10800_v31  ;;  %v9208_v32 = vunpack.i.l.bf16 %v10800_v31 }
  0x95   :  { %9496 = vrot.lane.b32.xlu1 %v10550_v40, %s10417_s23  ;;  %7777 = vmatprep.subr.bf16.mxu0 %v7776_v34  ;;  %v395_v35 = vsel %vm394_vm1, %v9203_v30, %v9193_v11  ;;  %v398_v36 = vsel %vm394_vm1, %v9204_v29, %v9198_v19 }
  0x96   :  { %v10810_v37 = vpop.permute.xlu0 %9211  ;;  %v7778_v41 = vpack.c.bf16 %v398_v36, %v395_v35  ;;  %v402_v40 = vsel %vm394_vm1, %v9208_v32, %v17319_v39 }
  0x97   :  { %v17318_v46 = vunpack.i.h.bf16 %v10810_v37  ;;  %v9213_v48 = vunpack.i.l.bf16 %v10810_v37  ;;  %v9217_v50 = vpop.permute.xlu1 %9216 }
  0x98   :  { %v9219_v54 = vunpack.i.h.bf16 %v9217_v50  ;;  %v9218_v58 = vunpack.i.l.bf16 %v9217_v50  ;;  %9501 = vrot.lane.b32.xlu0 %v10557_v42, %s10417_s23  ;;  %7779 = vmatpush1.bf16.msra.mxu0 %v7778_v41 }
  0x99   :  { %9506 = vrot.lane.b32.xlu1 %v10561_v43, %s10417_s23  ;;  %v405_v59 = vsel %vm394_vm1, %v9213_v48, %v17318_v46 }
  0x9a   :  { %v10824_v61 = vpop.permute.xlu0 %9221  ;;  %v7780_v62 = vpack.c.bf16 %v405_v59, %v402_v40  ;;  %v401_v63 = vsel %vm394_vm1, %v9218_v58, %v9208_v32  ;;  %v404_v0 = vsel %vm394_vm1, %v9219_v54, %v9213_v48 }
  0x9b   :  { %v17317_v42 = vunpack.i.h.bf16 %v10824_v61  ;;  %v9223_v1 = vunpack.i.l.bf16 %v10824_v61  ;;  %v10830_v43 = vpop.permute.xlu1 %9226  ;;  %v7782_v4 = vpack.c.bf16 %v404_v0, %v401_v63 }
  0x9c   :  { %v17316_v8 = vunpack.i.h.bf16 %v10830_v43  ;;  %v9228_v33 = vunpack.i.l.bf16 %v10830_v43  ;;  %9511 = vrot.lane.b32.xlu0 %v10674_v52, %s10414_s14  ;;  %7781 = vmatprep.subr.bf16.mxu0 %v7780_v62 }
  0x9d   :  { %9516 = vrot.lane.b32.xlu1 %v10674_v52, %s10412_s7  ;;  %7783 = vmatpush1.bf16.msra.mxu0 %v7782_v4  ;;  %v408_v9 = vsel %vm394_vm1, %v9223_v1, %v17317_v42 }
  0x9e   :  { %v9232_v11 = vpop.permute.xlu0 %9231  ;;  %v411_v16 = vsel %vm394_vm1, %v9228_v33, %v17316_v8 }
  0x9f   :  { %v9234_v19 = vunpack.i.h.bf16 %v9232_v11  ;;  %v9233_v22 = vunpack.i.l.bf16 %v9232_v11  ;;  %v10844_v26 = vpop.permute.xlu1 %9236  ;;  %v7784_v28 = vpack.c.bf16 %v411_v16, %v408_v9 }
  0xa0   :  { %9521 = vrot.lane.b32.xlu0 %v10456_v3, %s10418_s11  ;;  %v17314_v29 = vunpack.i.h.bf16 %v10844_v26  ;;  %v9238_v30 = vunpack.i.l.bf16 %v10844_v26 }
  0xa1   :  { %9526 = vrot.lane.b32.xlu1 %v10480_v13, %s10418_s11  ;;  %7785 = vmatprep.subr.bf16.mxu0 %v7784_v28  ;;  %v407_v34 = vsel %vm394_vm1, %v9233_v22, %v9223_v1  ;;  %v410_v32 = vsel %vm394_vm1, %v9234_v19, %v9228_v33 }
  0xa2   :  { %v10854_v35 = vpop.permute.xlu0 %9241  ;;  %v7786_v36 = vpack.c.bf16 %v410_v32, %v407_v34  ;;  %v414_v13 = vsel %vm394_vm1, %v9238_v30, %v17314_v29 }
  0xa3   :  { %v17313_v41 = vunpack.i.h.bf16 %v10854_v35  ;;  %v9243_v48 = vunpack.i.l.bf16 %v10854_v35  ;;  %v9247_v3 = vpop.permute.xlu1 %9246 }
  0xa4   :  { %v9249_v50 = vunpack.i.h.bf16 %v9247_v3  ;;  %v9248_v54 = vunpack.i.l.bf16 %v9247_v3  ;;  %9531 = vrot.lane.b32.xlu0 %v10467_v7, %s10418_s11  ;;  %7787 = vmatpush1.bf16.msra.mxu0 %v7786_v36  ;;  %v1288_v3 = vld [vmem:[%s17291_s0 + $0x88] sm:$0xff] }
  0xa5   :  { %9536 = vrot.lane.b32.xlu1 %v10710_v12, %s10414_s14  ;;  %v417_v58 = vsel %vm394_vm1, %v9243_v48, %v17313_v41 }
  0xa6   :  { %v10868_v40 = vpop.permute.xlu0 %9251  ;;  %v7788_v59 = vpack.c.bf16 %v417_v58, %v414_v13  ;;  %v413_v62 = vsel %vm394_vm1, %v9248_v54, %v9238_v30  ;;  %v416_v63 = vsel %vm394_vm1, %v9249_v50, %v9243_v48  ;;  %v10914_v13 = vld [vmem:[%s17291_s0 + $0xb0] sm:$0xff] }
  0xa7   :  { %v17312_v7 = vunpack.i.h.bf16 %v10868_v40  ;;  %v9253_v0 = vunpack.i.l.bf16 %v10868_v40  ;;  %v10874_v1 = vpop.permute.xlu1 %9256  ;;  %v7790_v4 = vpack.c.bf16 %v416_v63, %v413_v62 }
  0xa8   :  { %v17309_v33 = vunpack.i.h.bf16 %v10874_v1  ;;  %v9258_v9 = vunpack.i.l.bf16 %v10874_v1  ;;  %9541 = vrot.lane.b32.xlu0 %v10710_v12, %s10412_s7  ;;  %7789 = vmatprep.subr.bf16.mxu0 %v7788_v59 }
  0xa9   :  { %9546 = vrot.lane.b32.xlu1 %v10484_v15, %s10418_s11  ;;  %7791 = vmatpush1.bf16.msra.mxu0 %v7790_v4  ;;  %v597_v11 = vsel %vm595_vm2, %v9253_v0, %v17312_v7  ;;  %v11062_v7 = vld [vmem:[%s17292_s1 + $0x30] sm:$0xff] }
  0xaa   :  { %v9262_v16 = vpop.permute.xlu0 %9261  ;;  %v600_v19 = vsel %vm595_vm2, %v9258_v9, %v17309_v33 }
  0xab   :  { %v9264_v22 = vunpack.i.h.bf16 %v9262_v16  ;;  %v9263_v28 = vunpack.i.l.bf16 %v9262_v16  ;;  %v10888_v30 = vpop.permute.xlu1 %9266  ;;  %v7792_v34 = vpack.c.bf16 %v600_v19, %v597_v11  ;;  %v1287_v19 = vld [vmem:[%s17291_s0 + $0x80] sm:$0xff] }
  0xac   :  { %9551 = vrot.lane.b32.xlu0 %v10503_v23, %s10418_s11  ;;  %v17305_v15 = vunpack.i.h.bf16 %v10888_v30  ;;  %v9268_v32 = vunpack.i.l.bf16 %v10888_v30  ;;  %v10904_v23 = vld [vmem:[%s17291_s0 + $0x90] sm:$0xff] }
  0xad   :  { %9556 = vrot.lane.b32.xlu1 %v10507_v24, %s10418_s11  ;;  %7793 = vmatprep.subr.bf16.mxu0 %v7792_v34  ;;  %v596_v36 = vsel %vm595_vm2, %v9263_v28, %v9253_v0  ;;  %v599_v48 = vsel %vm595_vm2, %v9264_v22, %v9258_v9  ;;  %v1292_v24 = vld [vmem:[%s17291_s0 + $0xa8] sm:$0xff]  ;;  %v10921_v4 = vpack.i.bf16 %v10904_v23, %v1288_v3  ;;  %v1291_v22 = vld [vmem:[%s17291_s0 + $0xa0] sm:$0xff] }
  0xae   :  { %v10906_v50 = vpop.permute.xlu0 %9271  ;;  %v7794_v54 = vpack.c.bf16 %v599_v48, %v596_v36  ;;  %v10926_v9 = vpack.i.bf16 %v10914_v13, %v1292_v24  ;;  %v603_v11 = vsel %vm595_vm2, %v9268_v32, %v17305_v15 }
  0xaf   :  { %v17304_v58 = vunpack.i.h.bf16 %v10906_v50  ;;  %v9273_v59 = vunpack.i.l.bf16 %v10906_v50  ;;  %v9277_v62 = vpop.permute.xlu1 %9276 }
  0xb0   :  { %v9279_v63 = vunpack.i.h.bf16 %v9277_v62  ;;  %v9278_v0 = vunpack.i.l.bf16 %v9277_v62  ;;  %9561 = vrot.lane.b32.xlu0 %v10750_v44, %s10414_s14  ;;  %7795 = vmatpush1.bf16.msra.mxu0 %v7794_v54 }
  0xb1   :  { %9566 = vrot.lane.b32.xlu1 %v10750_v44, %s10412_s7  ;;  %v606_v16 = vsel %vm595_vm2, %v9273_v59, %v17304_v58 }
  0xb2   :  { %v10940_v28 = vpop.permute.xlu0 %9281  ;;  %v7796_v34 = vpack.c.bf16 %v606_v16, %v603_v11  ;;  %v602_v36 = vsel %vm595_vm2, %v9278_v0, %v9268_v32  ;;  %v605_v48 = vsel %vm595_vm2, %v9279_v63, %v9273_v59  ;;  %v10952_v11 = vpack.i.bf16 %v1291_v22, %v1287_v19  ;;  %v1296_v59 = vld [vmem:[%s17291_s0 + $0xc8] sm:$0xff]  ;;  %v10965_v63 = vld [vmem:[%s17291_s0 + $0xd0] sm:$0xff] }
  0xb3   :  { %v17301_v3 = vunpack.i.h.bf16 %v10940_v28  ;;  %v9283_v54 = vunpack.i.l.bf16 %v10940_v28  ;;  %v10946_v24 = vpop.permute.xlu1 %9286  ;;  %v7798_v62 = vpack.c.bf16 %v605_v48, %v602_v36  ;;  %v10975_v48 = vpack.i.bf16 %v10965_v63, %v1296_v59  ;;  %v10989_v59 = vld [vmem:[%s17291_s0 + $0xf0] sm:$0xff] }
  0xb4   :  { %v17300_v56 = vunpack.i.h.bf16 %v10946_v24  ;;  %v9288_v45 = vunpack.i.l.bf16 %v10946_v24  ;;  %9571 = vrot.lane.b32.xlu0 %v10921_v4, %s10418_s11  ;;  %7797 = vmatprep.subr.bf16.mxu0 %v7796_v34 }
  0xb5   :  { %9576 = vrot.lane.b32.xlu1 %v10926_v9, %s10418_s11  ;;  %7799 = vmatpush1.bf16.msra.mxu0 %v7798_v62  ;;  %v609_v32 = vsel %vm595_vm2, %v9283_v54, %v17301_v3 }
  0xb6   :  { %v9292_v0 = vpop.permute.xlu0 %9291  ;;  %v612_v16 = vsel %vm595_vm2, %v9288_v45, %v17300_v56 }
  0xb7   :  { %v9294_v19 = vunpack.i.h.bf16 %v9292_v0  ;;  %v9293_v22 = vunpack.i.l.bf16 %v9292_v0  ;;  %v10970_v34 = vpop.permute.xlu1 %9296  ;;  %v7800_v36 = vpack.c.bf16 %v612_v16, %v609_v32  ;;  %v1300_v32 = vld [vmem:[%s17291_s0 + $0xe8] sm:$0xff] }
  0xb8   :  { %9581 = vrot.lane.b32.xlu0 %v10952_v11, %s10418_s11  ;;  %v17308_v62 = vunpack.i.h.bf16 %v10970_v34  ;;  %v9298_v27 = vunpack.i.l.bf16 %v10970_v34 }
  0xb9   :  { %9586 = vrot.lane.b32.xlu1 %v10790_v20, %s10414_s14  ;;  %7801 = vmatprep.subr.bf16.mxu0 %v7800_v36  ;;  %v608_v21 = vsel %vm595_vm2, %v9293_v22, %v9283_v54  ;;  %v611_v0 = vsel %vm595_vm2, %v9294_v19, %v9288_v45  ;;  %v1295_v36 = vld [vmem:[%s17291_s0 + $0xc0] sm:$0xff] }
  0xba   :  { %v10991_v16 = vpop.permute.xlu0 %9301  ;;  %v7802_v56 = vpack.c.bf16 %v611_v0, %v608_v21  ;;  %v1299_v45 = vld [vmem:[%s17291_s0 + $0xe0] sm:$0xff]  ;;  %v11004_v21 = vpack.i.bf16 %v10989_v59, %v1300_v32  ;;  %v615_v60 = vsel %vm595_vm2, %v9298_v27, %v17308_v62 }
  0xbb   :  { %v17311_v54 = vunpack.i.h.bf16 %v10991_v16  ;;  %v9303_v19 = vunpack.i.l.bf16 %v10991_v16  ;;  %v9307_v22 = vpop.permute.xlu1 %9306  ;;  %v11008_v0 = vpack.i.bf16 %v1299_v45, %v1295_v36 }
  0xbc   :  { %v9309_v3 = vunpack.i.h.bf16 %v9307_v22  ;;  %v9308_v6 = vunpack.i.l.bf16 %v9307_v22  ;;  %9591 = vrot.lane.b32.xlu0 %v10790_v20, %s10412_s7  ;;  %7803 = vmatpush1.bf16.msra.mxu0 %v7802_v56 }
  0xbd   :  { %9596 = vrot.lane.b32.xlu1 %v10975_v48, %s10418_s11  ;;  %v618_v22 = vsel %vm595_vm2, %v9303_v19, %v17311_v54 }
  0xbe   :  { %v11016_v58 = vpop.permute.xlu0 %9311  ;;  %v7804_v15 = vpack.c.bf16 %v618_v22, %v615_v60  ;;  %v614_v56 = vsel %vm595_vm2, %v9308_v6, %v9298_v27  ;;  %v617_v32 = vsel %vm595_vm2, %v9309_v3, %v9303_v19  ;;  %v1473_v60 = vld [vmem:[%s17291_s0 + $0x8] sm:$0xff]  ;;  %v11034_v6 = vld [vmem:[%s17291_s0 + $0x10] sm:$0xff]  ;;  %v11052_v19 = vld [vmem:[%s17292_s1] sm:$0xff] }
  0xbf   :  { %v17310_v55 = vunpack.i.h.bf16 %v11016_v58  ;;  %v9313_v36 = vunpack.i.l.bf16 %v11016_v58  ;;  %v11022_v45 = vpop.permute.xlu1 %9316  ;;  %v7806_v49 = vpack.c.bf16 %v617_v32, %v614_v56  ;;  %v11047_v3 = vld [vmem:[%s17291_s0 + $0x30] sm:$0xff]  ;;  %v9620_v41 = vpack.i.bf16 %v11034_v6, %v1473_v60  ;;  %v1472_v60 = vld [vmem:[%s17291_s0] sm:$0xff] }
  0xc0   :  { %v17315_v62 = vunpack.i.h.bf16 %v11022_v45  ;;  %v9318_v33 = vunpack.i.l.bf16 %v11022_v45  ;;  %9601 = vrot.lane.b32.xlu0 %v11004_v21, %s10418_s11  ;;  %7805 = vmatprep.subr.bf16.mxu0 %v7804_v15  ;;  %v1477_v15 = vld [vmem:[%s17291_s0 + $0x28] sm:$0xff] }
  0xc1   :  { %9606 = vrot.lane.b32.xlu1 %v11008_v0, %s10418_s11  ;;  %7807 = vmatpush1.bf16.msra.mxu0 %v7806_v49  ;;  %v798_v27 = vsel %vm796_vm3, %v9313_v36, %v17310_v55  ;;  %v9625_v29 = vpack.i.bf16 %v11047_v3, %v1477_v15  ;;  %v1476_v15 = vld [vmem:[%s17291_s0 + $0x20] sm:$0xff] }
  0xc2   :  { %v9322_v22 = vpop.permute.xlu0 %9321  ;;  %v801_v49 = vsel %vm796_vm3, %v9318_v33, %v17315_v62 }
  0xc3   :  { %v9324_v56 = vunpack.i.h.bf16 %v9322_v22  ;;  %v9323_v32 = vunpack.i.l.bf16 %v9322_v22  ;;  %v11057_v55 = vpop.permute.xlu1 %9326  ;;  %v7808_v54 = vpack.c.bf16 %v801_v49, %v798_v27 }
  0xc4   :  { %17645 = vst [vmem:[#allocation3_spill] sm:$0xff] %v11057_v55  ;;  %9611 = vrot.lane.b32.xlu0 %v10674_v52, %s10417_s23  ;;  %1987 = vmatmul.mubr.f32.vlgmr.msra.gmra.mrb[0].mxu0 %v11052_v19  ;;  %v17323_v27 = vunpack.i.h.bf16 %v11057_v55  ;;  %v9328_v49 = vunpack.i.l.bf16 %v11057_v55 }
  0xc5   :  { %v797_v62 = vsel %vm796_vm3, %v9323_v32, %v9313_v36  ;;  %v800_v22 = vsel %vm796_vm3, %v9324_v56, %v9318_v33  ;;  %9616 = vrot.lane.b32.xlu1 %v10674_v52, %s10415_s17  ;;  %7809 = vmatprep.subr.bf16.mxu0 %v7808_v54  ;;  %v11087_v33 = vld [vmem:[%s17292_s1 + $0x28] sm:$0xff]  ;;  %v11094_v32 = vld [vmem:[%s17292_s1 + $0x58] sm:$0xff] }
  0xc6   :  { %v11081_v8 = vpop.permute.xlu0 %9331  ;;  %v7810_v36 = vpack.c.bf16 %v800_v22, %v797_v62  ;;  %1992 = vmatprep.mubr.f32.mxu0 %v11062_v7  ;;  %17647 = vst [vmem:[#allocation5_spill] sm:$0xff] %v11087_v33  ;;  %17648 = vst [vmem:[#allocation6_spill] sm:$0xff] %v11094_v32  ;;  %v9630_v62 = vpack.i.bf16 %v1476_v15, %v1472_v60  ;;  %v804_v22 = vsel %vm796_vm3, %v9328_v49, %v17323_v27  ;;  %v11115_v60 = vld [vmem:[%s17291_s0 + $0x50] sm:$0xff]  ;;  %v1484_v27 = vld [vmem:[%s17291_s0 + $0x60] sm:$0xff] }
  0xc7   :  { %17646 = vst [vmem:[#allocation4_spill] sm:$0xff] %v11081_v8  ;;  %v17322_v52 = vunpack.i.h.bf16 %v11081_v8  ;;  %v9333_v54 = vunpack.i.l.bf16 %v11081_v8  ;;  %v9337_v56 = vpop.permute.xlu1 %9336 }
  0xc8   :  { %v9339_v42 = vunpack.i.h.bf16 %v9337_v56  ;;  %v9338_v46 = vunpack.i.l.bf16 %v9337_v56  ;;  %9621 = vrot.lane.b32.xlu0 %v9620_v41, %s10419_s22  ;;  %7811 = vmatpush1.bf16.msra.mxu0 %v7810_v36 }
  0xc9   :  { %9626 = vrot.lane.b32.xlu1 %v9625_v29, %s10419_s22  ;;  %v807_v39 = vsel %vm796_vm3, %v9333_v54, %v17322_v52  ;;  %1993 = vmatmul.mubr.f32.gmra.mrb[2].mxu0 %v11087_v33  ;;  %v1481_v29 = vld [vmem:[%s17291_s0 + $0x48] sm:$0xff]  ;;  %v1480_v52 = vld [vmem:[%s17291_s0 + $0x40] sm:$0xff] }
  0xca   :  { %v806_v18 = vsel %vm796_vm3, %v9339_v42, %v9333_v54  ;;  %v803_v56 = vsel %vm796_vm3, %v9338_v46, %v9328_v49  ;;  %v11107_v10 = vpop.permute.xlu0 %9341  ;;  %v7812_v41 = vpack.c.bf16 %v807_v39, %v804_v22  ;;  %1998 = vmatprep.mubr.f32.mxu0 %v11094_v32  ;;  %v11125_v39 = vld [vmem:[%s17292_s1 + $0x50] sm:$0xff]  ;;  %v1485_v22 = vld [vmem:[%s17291_s0 + $0x68] sm:$0xff]  ;;  %v11165_v32 = vld [vmem:[%s17292_s1 + $0x78] sm:$0xff] }
  0xcb   :  { %17649 = vst [vmem:[#allocation7_spill] sm:$0xff] %v11107_v10  ;;  %v17324_v15 = vunpack.i.h.bf16 %v11107_v10  ;;  %v9343_v42 = vunpack.i.l.bf16 %v11107_v10  ;;  %v11120_v36 = vpop.permute.xlu1 %9346  ;;  %v7814_v46 = vpack.c.bf16 %v806_v18, %v803_v56  ;;  %17651 = vst [vmem:[#allocation9_spill] sm:$0xff] %v11125_v39  ;;  %v11136_v18 = vld [vmem:[%s17292_s1 + $0x80] sm:$0xff]  ;;  %v9645_v56 = vpack.i.bf16 %v11115_v60, %v1481_v29 }
  0xcc   :  { %17650 = vst [vmem:[#allocation8_spill] sm:$0xff] %v11120_v36  ;;  %v17330_v49 = vunpack.i.h.bf16 %v11120_v36  ;;  %v9348_v54 = vunpack.i.l.bf16 %v11120_v36  ;;  %9631 = vrot.lane.b32.xlu0 %v9630_v62, %s10419_s22  ;;  %7813 = vmatprep.subr.bf16.mxu0 %v7812_v41  ;;  %17652 = vst [vmem:[#allocation10_spill] sm:$0xff] %v11136_v18  ;;  %v11147_v41 = vld [vmem:[%s17291_s0 + $0x70] sm:$0xff] }
  0xcd   :  { %9636 = vrot.lane.b32.xlu1 %v10710_v12, %s10417_s23  ;;  %7815 = vmatpush1.bf16.msra.mxu0 %v7814_v46  ;;  %v810_v62 = vsel %vm796_vm3, %v9343_v42, %v17324_v15  ;;  %v9650_v36 = vpack.i.bf16 %v11147_v41, %v1485_v22 }
  0xce   :  { %v9352_v46 = vpop.permute.xlu0 %9351  ;;  %v813_v29 = vsel %vm796_vm3, %v9348_v54, %v17330_v49  ;;  %1999 = vmatmul.mubr.f32.gmra.mrb[4].mxu0 %v11125_v39  ;;  %v9655_v49 = vpack.i.bf16 %v1484_v27, %v1480_v52 }
  0xcf   :  { %v9354_v15 = vunpack.i.h.bf16 %v9352_v46  ;;  %v9353_v10 = vunpack.i.l.bf16 %v9352_v46  ;;  %v11159_v8 = vpop.permute.xlu1 %9356  ;;  %v7816_v55 = vpack.c.bf16 %v813_v29, %v810_v62  ;;  %2004 = vmatprep.mubr.f32.mxu0 %v11136_v18  ;;  %v11173_v46 = vld [vmem:[%s17292_s1 + $0x18] sm:$0xff] }
  0xd0   :  { %9641 = vrot.lane.b32.xlu0 %v10710_v12, %s10415_s17  ;;  %v17334_v18 = vunpack.i.h.bf16 %v11159_v8  ;;  %v9358_v39 = vunpack.i.l.bf16 %v11159_v8 }
  0xd1   :  { %v809_v62 = vsel %vm796_vm3, %v9353_v10, %v9343_v42  ;;  %v812_v29 = vsel %vm796_vm3, %v9354_v15, %v9348_v54  ;;  %9646 = vrot.lane.b32.xlu1 %v9645_v56, %s10419_s22  ;;  %7817 = vmatprep.subr.bf16.mxu0 %v7816_v55 }
  0xd2   :  { %v11180_v12 = vpop.permute.xlu0 %9361  ;;  %v7818_v22 = vpack.c.bf16 %v812_v29, %v809_v62  ;;  %2005 = vmatmul.mubr.f32.gmra.mrb[6].mxu0 %v11165_v32  ;;  %v816_v55 = vsel %vm796_vm3, %v9358_v39, %v17334_v18 }
  0xd3   :  { %17653 = vst [vmem:[#allocation11_spill] sm:$0xff] %v11180_v12  ;;  %v17339_v27 = vunpack.i.h.bf16 %v11180_v12  ;;  %v9363_v52 = vunpack.i.l.bf16 %v11180_v12  ;;  %v9367_v33 = vpop.permute.xlu1 %9366  ;;  %2075 = vmatprep.mubr.f32.mxu0 %v11173_v46 }
  0xd4   :  { %v9369_v10 = vunpack.i.h.bf16 %v9367_v33  ;;  %v9368_v15 = vunpack.i.l.bf16 %v9367_v33  ;;  %9651 = vrot.lane.b32.xlu0 %v9650_v36, %s10419_s22  ;;  %7819 = vmatpush1.bf16.msra.mxu0 %v7818_v22 }
  0xd5   :  { %9656 = vrot.lane.b32.xlu1 %v9655_v49, %s10419_s22  ;;  %v819_v42 = vsel %vm796_vm3, %v9363_v52, %v17339_v27 }
  0xd6   :  { %v818_v54 = vsel %vm796_vm3, %v9369_v10, %v9363_v52  ;;  %v815_v56 = vsel %vm796_vm3, %v9368_v15, %v9358_v39  ;;  %v11196_v62 = vpop.permute.xlu0 %9371  ;;  %v7820_v33 = vpack.c.bf16 %v819_v42, %v816_v55 }
  0xd7   :  { %v17337_v36 = vunpack.i.h.bf16 %v11196_v62  ;;  %v9373_v49 = vunpack.i.l.bf16 %v11196_v62  ;;  %v11200_v29 = vpop.permute.xlu1 %9376  ;;  %v7822_v22 = vpack.c.bf16 %v818_v54, %v815_v56 }
  0xd8   :  { %v17336_v18 = vunpack.i.h.bf16 %v11200_v29  ;;  %v9378_v12 = vunpack.i.l.bf16 %v11200_v29  ;;  %9661 = vrot.lane.b32.xlu0 %v10750_v44, %s10417_s23  ;;  %7821 = vmatprep.subr.bf16.mxu0 %v7820_v33 }
  0xd9   :  { %9666 = vrot.lane.b32.xlu1 %v10750_v44, %s10415_s17  ;;  %7823 = vmatpush1.bf16.msra.mxu0 %v7822_v22  ;;  %v999_v39 = vsel %vm997_vm4, %v9373_v49, %v17337_v36 }
  0xda   :  { %v9382_v52 = vpop.permute.xlu0 %9381  ;;  %v1002_v10 = vsel %vm997_vm4, %v9378_v12, %v17336_v18 }
  0xdb   :  { %v9384_v15 = vunpack.i.h.bf16 %v9382_v52  ;;  %v9383_v55 = vunpack.i.l.bf16 %v9382_v52  ;;  %v11214_v42 = vpop.permute.xlu1 %9386  ;;  %v7824_v54 = vpack.c.bf16 %v1002_v10, %v999_v39 }
  0xdc   :  { %9671 = vrot.lane.b32.xlu0 %v10921_v4, %s10419_s22  ;;  %v17338_v33 = vunpack.i.h.bf16 %v11214_v42  ;;  %v9388_v22 = vunpack.i.l.bf16 %v11214_v42 }
  0xdd   :  { %v998_v44 = vsel %vm997_vm4, %v9383_v55, %v9373_v49  ;;  %v1001_v56 = vsel %vm997_vm4, %v9384_v15, %v9378_v12  ;;  %9676 = vrot.lane.b32.xlu1 %v10926_v9, %s10419_s22  ;;  %7825 = vmatprep.subr.bf16.mxu0 %v7824_v54 }
  0xde   :  { %v11224_v18 = vpop.permute.xlu0 %9391  ;;  %v7826_v52 = vpack.c.bf16 %v1001_v56, %v998_v44  ;;  %v1005_v9 = vsel %vm997_vm4, %v9388_v22, %v17338_v33 }
  0xdf   :  { %v17341_v39 = vunpack.i.h.bf16 %v11224_v18  ;;  %v9393_v10 = vunpack.i.l.bf16 %v11224_v18  ;;  %v9397_v4 = vpop.permute.xlu1 %9396 }
  0xe0   :  { %v9399_v36 = vunpack.i.h.bf16 %v9397_v4  ;;  %v9398_v49 = vunpack.i.l.bf16 %v9397_v4  ;;  %9681 = vrot.lane.b32.xlu0 %v10952_v11, %s10419_s22  ;;  %7827 = vmatpush1.bf16.msra.mxu0 %v7826_v52 }
  0xe1   :  { %9686 = vrot.lane.b32.xlu1 %v10790_v20, %s10417_s23  ;;  %v1008_v12 = vsel %vm997_vm4, %v9393_v10, %v17341_v39 }
  0xe2   :  { %v1007_v15 = vsel %vm997_vm4, %v9399_v36, %v9393_v10  ;;  %v1004_v55 = vsel %vm997_vm4, %v9398_v49, %v9388_v22  ;;  %v11240_v54 = vpop.permute.xlu0 %9401  ;;  %v7828_v44 = vpack.c.bf16 %v1008_v12, %v1005_v9  ;;  %v1274_v22 = vld [vmem:[%s17291_s0 + $0x18] sm:$0xff] }
  0xe3   :  { %17654 = vst [vmem:[#allocation12_spill] sm:$0xff] %v11240_v54  ;;  %v17340_v11 = vunpack.i.h.bf16 %v11240_v54  ;;  %v9403_v56 = vunpack.i.l.bf16 %v11240_v54  ;;  %v11244_v52 = vpop.permute.xlu1 %9406  ;;  %v7830_v4 = vpack.c.bf16 %v1007_v15, %v1004_v55  ;;  %v1278_v10 = vld [vmem:[%s17291_s0 + $0x38] sm:$0xff]  ;;  %v7890_v54 = vpack.c.bf16 %v11047_v3, %v11034_v6 }
  0xe4   :  { %17655 = vst [vmem:[#allocation13_spill] sm:$0xff] %v11244_v52  ;;  %v17343_v33 = vunpack.i.h.bf16 %v11244_v52  ;;  %v9408_v27 = vunpack.i.l.bf16 %v11244_v52  ;;  %9691 = vrot.lane.b32.xlu0 %v10790_v20, %s10415_s17  ;;  %7829 = vmatprep.subr.bf16.mxu0 %v7828_v44  ;;  %v11268_v44 = vpack.i.bf16 %v1278_v10, %v1274_v22 }
  0xe5   :  { %9696 = vrot.lane.b32.xlu1 %v10975_v48, %s10419_s22  ;;  %7831 = vmatpush1.bf16.msra.mxu0 %v7830_v4  ;;  %v1011_v36 = vsel %vm997_vm4, %v9403_v56, %v17340_v11 }
  0xe6   :  { %v9412_v49 = vpop.permute.xlu0 %9411  ;;  %v1014_v9 = vsel %vm997_vm4, %v9408_v27, %v17343_v33 }
  0xe7   :  { %v9414_v12 = vunpack.i.h.bf16 %v9412_v49  ;;  %v9413_v48 = vunpack.i.l.bf16 %v9412_v49  ;;  %v11264_v15 = vpop.permute.xlu1 %9416  ;;  %v7832_v55 = vpack.c.bf16 %v1014_v9, %v1011_v36  ;;  %v1282_v36 = vld [vmem:[%s17291_s0 + $0x58] sm:$0xff] }
  0xe8   :  { %17656 = vst [vmem:[#allocation14_spill] sm:$0xff] %v11264_v15  ;;  %9701 = vrot.lane.b32.xlu0 %v11004_v21, %s10419_s22  ;;  %v17344_v39 = vunpack.i.h.bf16 %v11264_v15  ;;  %v9418_v52 = vunpack.i.l.bf16 %v11264_v15  ;;  %v1286_v21 = vld [vmem:[%s17291_s0 + $0x78] sm:$0xff] }
  0xe9   :  { %v1010_v4 = vsel %vm997_vm4, %v9413_v48, %v9403_v56  ;;  %v1013_v11 = vsel %vm997_vm4, %v9414_v12, %v9408_v27  ;;  %9706 = vrot.lane.b32.xlu1 %v11008_v0, %s10419_s22  ;;  %7833 = vmatprep.subr.bf16.mxu0 %v7832_v55  ;;  %v11288_v0 = vpack.i.bf16 %v1286_v21, %v1282_v36  ;;  %v1290_v55 = vld [vmem:[%s17291_s0 + $0x98] sm:$0xff] }
  0xea   :  { %v11282_v22 = vpop.permute.xlu0 %9421  ;;  %v7834_v56 = vpack.c.bf16 %v1013_v11, %v1010_v4  ;;  %v1017_v11 = vsel %vm997_vm4, %v9418_v52, %v17344_v39  ;;  %v1294_v4 = vld [vmem:[%s17291_s0 + $0xb8] sm:$0xff] }
  0xeb   :  { %17657 = vst [vmem:[#allocation15_spill] sm:$0xff] %v11282_v22  ;;  %v17347_v27 = vunpack.i.h.bf16 %v11282_v22  ;;  %v9423_v10 = vunpack.i.l.bf16 %v11282_v22  ;;  %v9427_v49 = vpop.permute.xlu1 %9426 }
  0xec   :  { %v9429_v9 = vunpack.i.h.bf16 %v9427_v49  ;;  %v9428_v12 = vunpack.i.l.bf16 %v9427_v49  ;;  %9711 = vrot.lane.b32.xlu0 %v11268_v44, %s10418_s11  ;;  %7835 = vmatpush1.bf16.msra.mxu0 %v7834_v56 }
  0xed   :  { %9716 = vrot.lane.b32.xlu1 %v11268_v44, %s10416_s18  ;;  %v1020_v48 = vsel %vm997_vm4, %v9423_v10, %v17347_v27  ;;  %v11310_v27 = vpack.i.bf16 %v1294_v4, %v1290_v55 }
  0xee   :  { %v1019_v36 = vsel %vm997_vm4, %v9429_v9, %v9423_v10  ;;  %v1016_v21 = vsel %vm997_vm4, %v9428_v12, %v9418_v52  ;;  %v9432_v56 = vpop.permute.xlu0 %9431  ;;  %v7836_v49 = vpack.c.bf16 %v1020_v48, %v1017_v11  ;;  %v17658_v9 = vunpack.i.h.bf16 %v10778_v5 }
  0xef   :  { %v9434_v33 = vunpack.i.h.bf16 %v9432_v56  ;;  %v9433_v39 = vunpack.i.l.bf16 %v9432_v56  ;;  %v11306_v15 = vpop.permute.xlu1 %9436  ;;  %v7838_v22 = vpack.c.bf16 %v1019_v36, %v1016_v21  ;;  %v17659_v11 = vunpack.i.h.bf16 %v10784_v14 }
  0xf0   :  { %9721 = vrot.lane.b32.xlu0 %v11288_v0, %s10418_s11  ;;  %7837 = vmatprep.subr.bf16.mxu0 %v7836_v49  ;;  %v9439_v10 = vunpack.i.h.bf16 %v11306_v15  ;;  %v9438_v52 = vunpack.i.l.bf16 %v11306_v15  ;;  %v17684_v15 = vunpack.i.h.bf16 %v11022_v45 }
  0xf1   :  { %9726 = vrot.lane.b32.xlu1 %v11288_v0, %s10416_s18  ;;  %7839 = vmatpush1.bf16.msra.mxu0 %v7838_v22  ;;  %v397_v12 = vsel %vm394_vm1, %v17658_v9, %v9433_v39  ;;  %v400_v48 = vsel %vm394_vm1, %v17659_v11, %v9434_v33 }
  0xf2   :  { %v11324_v55 = vpop.permute.xlu0 %9441  ;;  %v7888_v6 = vpack.c.bf16 %v400_v48, %v397_v12  ;;  %v1200_v5 = vsel %vm1198_vm5, %v9438_v52, %v9439_v10 }
  0xf3   :  { %v17355_v3 = vunpack.i.h.bf16 %v11324_v55  ;;  %v9443_v4 = vunpack.i.l.bf16 %v11324_v55  ;;  %v9447_v36 = vpop.permute.xlu1 %9446 }
  0xf4   :  { %v9449_v21 = vunpack.i.h.bf16 %v9447_v36  ;;  %v9448_v56 = vunpack.i.l.bf16 %v9447_v36  ;;  %9731 = vrot.lane.b32.xlu0 %v11310_v27, %s10418_s11  ;;  %7889 = vmatprep.subr.bf16.mxu1 %v7888_v6  ;;  %v7894_v6 = vpack.c.bf16 %v11147_v41, %v11115_v60  ;;  %v1499_v60 = vld [vmem:[%s17291_s0 + $0xd8] sm:$0xff] }
  0xf5   :  { %9736 = vrot.lane.b32.xlu1 %v11310_v27, %s10416_s18  ;;  %v1203_v14 = vsel %vm1198_vm5, %v9443_v4, %v17355_v3  ;;  %7891 = vmatpush3.bf16.msra.mxu1 %v7890_v54 }
  0xf6   :  { %v1202_v33 = vsel %vm1198_vm5, %v9449_v21, %v9443_v4  ;;  %v1199_v39 = vsel %vm1198_vm5, %v9448_v56, %v9438_v52  ;;  %v9452_v22 = vpop.permute.xlu0 %9451  ;;  %v7840_v49 = vpack.c.bf16 %v1203_v14, %v1200_v5  ;;  %v17660_v52 = vunpack.i.h.bf16 %v10800_v31 }
  0xf7   :  { %v9454_v9 = vunpack.i.h.bf16 %v9452_v22  ;;  %v9453_v12 = vunpack.i.l.bf16 %v9452_v22  ;;  %v11340_v11 = vpop.permute.xlu1 %9456  ;;  %v7842_v48 = vpack.c.bf16 %v1202_v33, %v1199_v39  ;;  %v17661_v21 = vunpack.i.h.bf16 %v10810_v37  ;;  %v7205_v22 = vld [vmem:[%s17291_s0 + $0x108] sm:$0xff] }
  0xf8   :  { %9741 = vrot.lane.b32.xlu0 %v10790_v20, %s10418_s11  ;;  %7841 = vmatprep.subr.bf16.mxu0 %v7840_v49  ;;  %v17350_v54 = vunpack.i.h.bf16 %v11340_v11  ;;  %v9458_v4 = vunpack.i.l.bf16 %v11340_v11 }
  0xf9   :  { %9746 = vrot.lane.b32.xlu1 %v10790_v20, %s10416_s18  ;;  %7843 = vmatpush1.bf16.msra.mxu0 %v7842_v48  ;;  %v403_v36 = vsel %vm394_vm1, %v17660_v52, %v9453_v12  ;;  %v406_v56 = vsel %vm394_vm1, %v17661_v21, %v9454_v9  ;;  %v1503_v20 = vld [vmem:[%s17291_s0 + $0xf8] sm:$0xff]  ;;  %v7209_v48 = vld [vmem:[%s17291_s0 + $0x128] sm:$0xff] }
  0xfa   :  { %v11356_v5 = vpop.permute.xlu0 %9461  ;;  %v7892_v14 = vpack.c.bf16 %v406_v56, %v403_v36  ;;  %v9765_v49 = vpack.i.bf16 %v1503_v20, %v1499_v60  ;;  %v1206_v9 = vsel %vm1198_vm5, %v9458_v4, %v17350_v54 }
  0xfb   :  { %v17349_v41 = vunpack.i.h.bf16 %v11356_v5  ;;  %v9463_v31 = vunpack.i.l.bf16 %v11356_v5  ;;  %v9467_v33 = vpop.permute.xlu1 %9466 }
  0xfc   :  { %v9469_v39 = vunpack.i.h.bf16 %v9467_v33  ;;  %v9468_v37 = vunpack.i.l.bf16 %v9467_v33  ;;  %9751 = vrot.lane.b32.xlu0 %v11268_v44, %s10419_s22  ;;  %7893 = vmatprep.subr.bf16.mxu1 %v7892_v14  ;;  %v7206_v44 = vld [vmem:[%s17291_s0 + $0x110] sm:$0xff]  ;;  %v7898_v33 = vpack.c.bf16 %v10914_v13, %v10904_v23  ;;  %v7204_v23 = vld [vmem:[%s17291_s0 + $0x100] sm:$0xff] }
  0xfd   :  { %9756 = vrot.lane.b32.xlu1 %v11288_v0, %s10419_s22  ;;  %v1209_v12 = vsel %vm1198_vm5, %v9463_v31, %v17349_v41  ;;  %7895 = vmatpush3.bf16.msra.mxu1 %v7894_v6  ;;  %v7210_v0 = vld [vmem:[%s17291_s0 + $0x130] sm:$0xff]  ;;  %v11396_v41 = vpack.i.bf16 %v7206_v44, %v7205_v22  ;;  %v7208_v13 = vld [vmem:[%s17291_s0 + $0x120] sm:$0xff] }
  0xfe   :  { %v1208_v52 = vsel %vm1198_vm5, %v9469_v39, %v9463_v31  ;;  %v1205_v36 = vsel %vm1198_vm5, %v9468_v37, %v9458_v4  ;;  %v9472_v21 = vpop.permute.xlu0 %9471  ;;  %v7844_v56 = vpack.c.bf16 %v1209_v12, %v1206_v9  ;;  %v11398_v54 = vpack.i.bf16 %v7210_v0, %v7209_v48 }
  0xff   :  { %v9474_v14 = vunpack.i.h.bf16 %v9472_v21  ;;  %v9473_v6 = vunpack.i.l.bf16 %v9472_v21  ;;  %v11390_v60 = vpop.permute.xlu1 %9476  ;;  %v7846_v20 = vpack.c.bf16 %v1208_v52, %v1205_v36  ;;  %v17662_v39 = vunpack.i.h.bf16 %v10824_v61  ;;  %v7213_v61 = vld [vmem:[%s17291_s0 + $0x148] sm:$0xff] }
 0x100   :  { %9761 = vrot.lane.b32.xlu0 %v11310_v27, %s10419_s22  ;;  %7845 = vmatprep.subr.bf16.mxu0 %v7844_v56  ;;  %v17352_v4 = vunpack.i.h.bf16 %v11390_v60  ;;  %v9478_v31 = vunpack.i.l.bf16 %v11390_v60  ;;  %v17663_v27 = vunpack.i.h.bf16 %v10830_v43  ;;  %v7214_v43 = vld [vmem:[%s17291_s0 + $0x150] sm:$0xff]  ;;  %v11427_v36 = vpack.i.bf16 %v7208_v13, %v7204_v23  ;;  %v7217_v21 = vld [vmem:[%s17291_s0 + $0x168] sm:$0xff] }
 0x101   :  { %9766 = vrot.lane.b32.xlu1 %v9765_v49, %s10419_s22  ;;  %7847 = vmatpush1.bf16.msra.mxu0 %v7846_v20  ;;  %v409_v37 = vsel %vm394_vm1, %v17662_v39, %v9473_v6  ;;  %v7218_v6 = vld [vmem:[%s17291_s0 + $0x170] sm:$0xff]  ;;  %v11443_v20 = vpack.i.bf16 %v7214_v43, %v7213_v61  ;;  %v7212_v39 = vld [vmem:[%s17291_s0 + $0x140] sm:$0xff]  ;;  %v7902_v43 = vpack.c.bf16 %v10989_v59, %v10965_v63  ;;  %v7221_v59 = vld [vmem:[%s17291_s0 + $0x188] sm:$0xff] }
 0x102   :  { %v412_v9 = vsel %vm394_vm1, %v17663_v27, %v9474_v14  ;;  %v11415_v22 = vpop.permute.xlu0 %9481  ;;  %v1212_v56 = vsel %vm1198_vm5, %v9478_v31, %v17352_v4 }
 0x103   :  { %v7896_v49 = vpack.c.bf16 %v412_v9, %v409_v37  ;;  %v17351_v12 = vunpack.i.h.bf16 %v11415_v22  ;;  %v9483_v44 = vunpack.i.l.bf16 %v11415_v22  ;;  %v9487_v48 = vpop.permute.xlu1 %9486  ;;  %v7216_v37 = vld [vmem:[%s17291_s0 + $0x160] sm:$0xff] }
 0x104   :  { %v9489_v0 = vunpack.i.h.bf16 %v9487_v48  ;;  %v9488_v52 = vunpack.i.l.bf16 %v9487_v48  ;;  %9771 = vrot.lane.b32.xlu0 %v11396_v41, %s10412_s7  ;;  %v11461_v4 = vpack.i.bf16 %v7216_v37, %v7212_v39 }
 0x105   :  { %7897 = vmatprep.subr.bf16.mxu1 %v7896_v49  ;;  %v1215_v14 = vsel %vm1198_vm5, %v9483_v44, %v17351_v12  ;;  %9776 = vrot.lane.b32.xlu1 %v11398_v54, %s10412_s7  ;;  %v11459_v12 = vpack.i.bf16 %v7218_v6, %v7217_v21  ;;  %v7222_v21 = vld [vmem:[%s17291_s0 + $0x190] sm:$0xff] }
 0x106   :  { %7899 = vmatpush3.bf16.msra.mxu1 %v7898_v33  ;;  %v1214_v27 = vsel %vm1198_vm5, %v9489_v0, %v9483_v44  ;;  %v1211_v33 = vsel %vm1198_vm5, %v9488_v52, %v9478_v31  ;;  %v9492_v9 = vpop.permute.xlu0 %9491  ;;  %v7848_v23 = vpack.c.bf16 %v1215_v14, %v1212_v56  ;;  %v17664_v0 = vunpack.i.h.bf16 %v10844_v26  ;;  %v7226_v6 = vld [vmem:[%s17291_s0 + $0x1b0] sm:$0xff] }
 0x107   :  { %v9494_v13 = vunpack.i.h.bf16 %v9492_v9  ;;  %v9493_v49 = vunpack.i.l.bf16 %v9492_v9  ;;  %v11453_v48 = vpop.permute.xlu1 %9496  ;;  %v7850_v61 = vpack.c.bf16 %v1214_v27, %v1211_v33  ;;  %v17665_v56 = vunpack.i.h.bf16 %v10854_v35  ;;  %v7225_v35 = vld [vmem:[%s17291_s0 + $0x1a8] sm:$0xff] }
 0x108   :  { %7849 = vmatprep.subr.bf16.mxu0 %v7848_v23  ;;  %9781 = vrot.lane.b32.xlu0 %v11427_v36, %s10412_s7  ;;  %v17354_v31 = vunpack.i.h.bf16 %v11453_v48  ;;  %v9498_v44 = vunpack.i.l.bf16 %v11453_v48  ;;  %v11491_v23 = vpack.i.bf16 %v7222_v21, %v7221_v59 }
 0x109   :  { %7851 = vmatpush1.bf16.msra.mxu0 %v7850_v61  ;;  %v415_v52 = vsel %vm394_vm1, %v17664_v0, %v9493_v49  ;;  %v418_v63 = vsel %vm394_vm1, %v17665_v56, %v9494_v13  ;;  %9786 = vrot.lane.b32.xlu1 %v11443_v20, %s10412_s7  ;;  %v7220_v61 = vld [vmem:[%s17291_s0 + $0x180] sm:$0xff] }
 0x10a   :  { %v11479_v14 = vpop.permute.xlu0 %9501  ;;  %v7900_v26 = vpack.c.bf16 %v418_v63, %v415_v52  ;;  %v1218_v13 = vsel %vm1198_vm5, %v9498_v44, %v17354_v31  ;;  %v7224_v0 = vld [vmem:[%s17291_s0 + $0x1a0] sm:$0xff]  ;;  %v11507_v52 = vpack.i.bf16 %v7226_v6, %v7225_v35 }
 0x10b   :  { %v17353_v39 = vunpack.i.h.bf16 %v11479_v14  ;;  %v9503_v37 = vunpack.i.l.bf16 %v11479_v14  ;;  %v9507_v27 = vpop.permute.xlu1 %9506 }
 0x10c   :  { %v9509_v33 = vunpack.i.h.bf16 %v9507_v27  ;;  %v9508_v9 = vunpack.i.l.bf16 %v9507_v27  ;;  %7901 = vmatprep.subr.bf16.mxu1 %v7900_v26  ;;  %9791 = vrot.lane.b32.xlu0 %v11459_v12, %s10412_s7  ;;  %v7230_v26 = vld [vmem:[%s17291_s0 + $0x1d0] sm:$0xff] }
 0x10d   :  { %v1221_v49 = vsel %vm1198_vm5, %v9503_v37, %v17353_v39  ;;  %7903 = vmatpush3.bf16.msra.mxu1 %v7902_v43  ;;  %9796 = vrot.lane.b32.xlu1 %v11461_v4, %s10412_s7  ;;  %v7229_v43 = vld [vmem:[%s17291_s0 + $0x1c8] sm:$0xff] }
 0x10e   :  { %v1220_v56 = vsel %vm1198_vm5, %v9509_v33, %v9503_v37  ;;  %v1217_v63 = vsel %vm1198_vm5, %v9508_v9, %v9498_v44  ;;  %v9512_v59 = vpop.permute.xlu0 %9511  ;;  %v7852_v21 = vpack.c.bf16 %v1221_v49, %v1218_v13  ;;  %v11519_v44 = vpack.i.bf16 %v7224_v0, %v7220_v61  ;;  %v7234_v49 = vld [vmem:[%s17291_s0 + $0x1f0] sm:$0xff] }
 0x10f   :  { %v9514_v27 = vunpack.i.h.bf16 %v9512_v59  ;;  %v9513_v39 = vunpack.i.l.bf16 %v9512_v59  ;;  %v9517_v31 = vpop.permute.xlu1 %9516  ;;  %v7854_v3 = vpack.c.bf16 %v1220_v56, %v1217_v63  ;;  %v17666_v37 = vunpack.i.h.bf16 %v10868_v40  ;;  %v7228_v63 = vld [vmem:[%s17291_s0 + $0x1c0] sm:$0xff] }
 0x110   :  { %v9519_v35 = vunpack.i.h.bf16 %v9517_v31  ;;  %v9518_v6 = vunpack.i.l.bf16 %v9517_v31  ;;  %7853 = vmatprep.subr.bf16.mxu0 %v7852_v21  ;;  %9801 = vrot.lane.b32.xlu0 %v11491_v23, %s10412_s7  ;;  %v17667_v9 = vunpack.i.h.bf16 %v10874_v1  ;;  %v7233_v31 = vld [vmem:[%s17291_s0 + $0x1e8] sm:$0xff]  ;;  %v17668_v1 = vunpack.i.h.bf16 %v10668_v47  ;;  %v7232_v59 = vld [vmem:[%s17291_s0 + $0x1e0] sm:$0xff] }
 0x111   :  { %7855 = vmatpush1.bf16.msra.mxu0 %v7854_v3  ;;  %v598_v33 = vsel %vm595_vm2, %v17666_v37, %v9513_v39  ;;  %9806 = vrot.lane.b32.xlu1 %v11507_v52, %s10412_s7  ;;  %v11535_v3 = vpack.i.bf16 %v7230_v26, %v7229_v43  ;;  %v17669_v0 = vunpack.i.h.bf16 %v10678_v53  ;;  %v11566_v37 = vpack.i.bf16 %v7232_v59, %v7228_v63 }
 0x112   :  { %v601_v13 = vsel %vm595_vm2, %v17667_v9, %v9514_v27  ;;  %v11537_v40 = vpop.permute.xlu0 %9521  ;;  %v196_v61 = vsel %vm193_vm0, %v17668_v1, %v9518_v6 }
 0x113   :  { %v7904_v39 = vpack.c.bf16 %v601_v13, %v598_v33  ;;  %v199_v56 = vsel %vm193_vm0, %v17669_v0, %v9519_v35  ;;  %v17357_v21 = vunpack.i.h.bf16 %v11537_v40  ;;  %v9523_v43 = vunpack.i.l.bf16 %v11537_v40  ;;  %v11553_v47 = vpop.permute.xlu1 %9526 }
 0x114   :  { %v7906_v26 = vpack.c.bf16 %v199_v56, %v196_v61  ;;  %v17356_v53 = vunpack.i.h.bf16 %v11553_v47  ;;  %v9528_v27 = vunpack.i.l.bf16 %v11553_v47  ;;  %9811 = vrot.lane.b32.xlu0 %v11519_v44, %s10412_s7  ;;  %v11559_v35 = vpack.i.bf16 %v7234_v49, %v7233_v31 }
 0x115   :  { %7905 = vmatprep.subr.bf16.mxu1 %v7904_v39  ;;  %v1401_v6 = vsel %vm1399_vm6, %v9523_v43, %v17357_v21  ;;  %9816 = vrot.lane.b32.xlu1 %v11535_v3, %s10412_s7 }
 0x116   :  { %7907 = vmatpush3.bf16.msra.mxu1 %v7906_v26  ;;  %v9532_v33 = vpop.permute.xlu0 %9531  ;;  %v1404_v9 = vsel %vm1399_vm6, %v9528_v27, %v17356_v53  ;;  %v17670_v26 = vunpack.i.h.bf16 %v10888_v30  ;;  %v17672_v30 = vunpack.i.h.bf16 %v10682_v57 }
 0x117   :  { %v9534_v13 = vunpack.i.h.bf16 %v9532_v33  ;;  %v9533_v39 = vunpack.i.l.bf16 %v9532_v33  ;;  %v9537_v1 = vpop.permute.xlu1 %9536  ;;  %v7856_v31 = vpack.c.bf16 %v1404_v9, %v1401_v6  ;;  %v17671_v6 = vunpack.i.h.bf16 %v10906_v50 }
 0x118   :  { %v9539_v49 = vunpack.i.h.bf16 %v9537_v1  ;;  %v9538_v61 = vunpack.i.l.bf16 %v9537_v1  ;;  %9821 = vrot.lane.b32.xlu0 %v11559_v35, %s10412_s7 }
 0x119   :  { %v1400_v0 = vsel %vm1399_vm6, %v9533_v39, %v9523_v43  ;;  %v1403_v56 = vsel %vm1399_vm6, %v9534_v13, %v9528_v27  ;;  %7857 = vmatprep.subr.bf16.mxu0 %v7856_v31  ;;  %9826 = vrot.lane.b32.xlu1 %v11566_v37, %s10412_s7  ;;  %v17673_v39 = vunpack.i.h.bf16 %v10704_v2 }
 0x11a   :  { %v9542_v63 = vpop.permute.xlu0 %9541  ;;  %v7858_v59 = vpack.c.bf16 %v1403_v56, %v1400_v0  ;;  %v604_v33 = vsel %vm595_vm2, %v17670_v26, %v9538_v61  ;;  %v607_v9 = vsel %vm595_vm2, %v17671_v6, %v9539_v49 }
 0x11b   :  { %v9544_v1 = vunpack.i.h.bf16 %v9542_v63  ;;  %v9543_v53 = vunpack.i.l.bf16 %v9542_v63  ;;  %v11583_v21 = vpop.permute.xlu1 %9546  ;;  %v7908_v43 = vpack.c.bf16 %v607_v9, %v604_v33 }
 0x11c   :  { %7859 = vmatpush1.bf16.msra.mxu0 %v7858_v59  ;;  %9831 = vrot.lane.b32.xlu0 %v11396_v41, %s10413_s13  ;;  %v9549_v27 = vunpack.i.h.bf16 %v11583_v21  ;;  %v9548_v13 = vunpack.i.l.bf16 %v11583_v21  ;;  %v2478_v21 = vld [vmem:[%s17293_s3 + $0x110] sm:$0xff] }
 0x11d   :  { %7909 = vmatprep.subr.bf16.mxu1 %v7908_v43  ;;  %v202_v50 = vsel %vm193_vm0, %v17672_v30, %v9543_v53  ;;  %v205_v31 = vsel %vm193_vm0, %v17673_v39, %v9544_v1  ;;  %9836 = vrot.lane.b32.xlu1 %v11398_v54, %s10413_s13 }
 0x11e   :  { %v11597_v49 = vpop.permute.xlu0 %9551  ;;  %v7910_v61 = vpack.c.bf16 %v205_v31, %v202_v50  ;;  %v1407_v57 = vsel %vm1399_vm6, %v9548_v13, %v9549_v27 }
 0x11f   :  { %v9554_v0 = vunpack.i.h.bf16 %v11597_v49  ;;  %v9553_v56 = vunpack.i.l.bf16 %v11597_v49  ;;  %v9557_v63 = vpop.permute.xlu1 %9556 }
 0x120   :  { %v9559_v59 = vunpack.i.h.bf16 %v9557_v63  ;;  %v9558_v26 = vunpack.i.l.bf16 %v9557_v63  ;;  %7911 = vmatpush3.bf16.msra.mxu1 %v7910_v61  ;;  %9841 = vrot.lane.b32.xlu0 %v11427_v36, %s10413_s13  ;;  %v17674_v61 = vunpack.i.h.bf16 %v10940_v28 }
 0x121   :  { %v1410_v2 = vsel %vm1399_vm6, %v9553_v56, %v9554_v0  ;;  %9846 = vrot.lane.b32.xlu1 %v11443_v20, %s10413_s13 }
 0x122   :  { %v1409_v53 = vsel %vm1399_vm6, %v9559_v59, %v9553_v56  ;;  %v1406_v33 = vsel %vm1399_vm6, %v9558_v26, %v9548_v13  ;;  %v9562_v6 = vpop.permute.xlu0 %9561  ;;  %v7860_v9 = vpack.c.bf16 %v1410_v2, %v1407_v57  ;;  %v17675_v56 = vunpack.i.h.bf16 %v10946_v24 }
 0x123   :  { %v9564_v1 = vunpack.i.h.bf16 %v9562_v6  ;;  %v9563_v43 = vunpack.i.l.bf16 %v9562_v6  ;;  %v9567_v30 = vpop.permute.xlu1 %9566  ;;  %v7862_v50 = vpack.c.bf16 %v1409_v53, %v1406_v33  ;;  %v17676_v57 = vunpack.i.h.bf16 %v10720_v17 }
 0x124   :  { %v9569_v39 = vunpack.i.h.bf16 %v9567_v30  ;;  %v9568_v31 = vunpack.i.l.bf16 %v9567_v30  ;;  %7861 = vmatprep.subr.bf16.mxu0 %v7860_v9  ;;  %9851 = vrot.lane.b32.xlu0 %v11459_v12, %s10413_s13  ;;  %v17677_v53 = vunpack.i.h.bf16 %v10726_v25 }
 0x125   :  { %7863 = vmatpush1.bf16.msra.mxu0 %v7862_v50  ;;  %v610_v63 = vsel %vm595_vm2, %v17674_v61, %v9563_v43  ;;  %v613_v13 = vsel %vm595_vm2, %v17675_v56, %v9564_v1  ;;  %9856 = vrot.lane.b32.xlu1 %v11461_v4, %s10413_s13 }
 0x126   :  { %v11623_v59 = vpop.permute.xlu0 %9571  ;;  %v7912_v26 = vpack.c.bf16 %v613_v13, %v610_v63  ;;  %v208_v2 = vsel %vm193_vm0, %v17676_v57, %v9568_v31  ;;  %v211_v28 = vsel %vm193_vm0, %v17677_v53, %v9569_v39  ;;  %v17678_v53 = vunpack.i.h.bf16 %v10970_v34 }
 0x127   :  { %v9574_v33 = vunpack.i.h.bf16 %v11623_v59  ;;  %v9573_v24 = vunpack.i.l.bf16 %v11623_v59  ;;  %v11633_v6 = vpop.permute.xlu1 %9576  ;;  %v7914_v9 = vpack.c.bf16 %v211_v28, %v208_v2  ;;  %v17680_v34 = vunpack.i.h.bf16 %v10746_v38  ;;  %v2494_v59 = vld [vmem:[%s17293_s3 + $0x190] sm:$0xff] }
 0x128   :  { %v17368_v1 = vunpack.i.h.bf16 %v11633_v6  ;;  %v9578_v43 = vunpack.i.l.bf16 %v11633_v6  ;;  %7913 = vmatprep.subr.bf16.mxu1 %v7912_v26  ;;  %9861 = vrot.lane.b32.xlu0 %v11491_v23, %s10413_s13 }
 0x129   :  { %7915 = vmatpush3.bf16.msra.mxu1 %v7914_v9  ;;  %v1413_v17 = vsel %vm1399_vm6, %v9573_v24, %v9574_v33  ;;  %9866 = vrot.lane.b32.xlu1 %v11507_v52, %s10413_s13  ;;  %v17679_v9 = vunpack.i.h.bf16 %v10991_v16 }
 0x12a   :  { %v9582_v25 = vpop.permute.xlu0 %9581  ;;  %v1416_v30 = vsel %vm1399_vm6, %v9578_v43, %v17368_v1 }
 0x12b   :  { %v9584_v50 = vunpack.i.h.bf16 %v9582_v25  ;;  %v9583_v39 = vunpack.i.l.bf16 %v9582_v25  ;;  %v9587_v31 = vpop.permute.xlu1 %9586  ;;  %v7864_v61 = vpack.c.bf16 %v1416_v30, %v1413_v17 }
 0x12c   :  { %v9589_v63 = vunpack.i.h.bf16 %v9587_v31  ;;  %v9588_v56 = vunpack.i.l.bf16 %v9587_v31  ;;  %9871 = vrot.lane.b32.xlu0 %v11519_v44, %s10413_s13 }
 0x12d   :  { %v1412_v13 = vsel %vm1399_vm6, %v9583_v39, %v9573_v24  ;;  %v1415_v26 = vsel %vm1399_vm6, %v9584_v50, %v9578_v43  ;;  %7865 = vmatprep.subr.bf16.mxu0 %v7864_v61  ;;  %9876 = vrot.lane.b32.xlu1 %v11535_v3, %s10413_s13  ;;  %v17681_v39 = vunpack.i.h.bf16 %v10758_v51 }
 0x12e   :  { %v9592_v57 = vpop.permute.xlu0 %9591  ;;  %v7866_v2 = vpack.c.bf16 %v1415_v26, %v1412_v13  ;;  %v616_v28 = vsel %vm595_vm2, %v17678_v53, %v9588_v56  ;;  %v619_v17 = vsel %vm595_vm2, %v17679_v9, %v9589_v63 }
 0x12f   :  { %v9594_v25 = vunpack.i.h.bf16 %v9592_v57  ;;  %v9593_v30 = vunpack.i.l.bf16 %v9592_v57  ;;  %v11659_v31 = vpop.permute.xlu1 %9596  ;;  %v7916_v24 = vpack.c.bf16 %v619_v17, %v616_v28 }
 0x130   :  { %7867 = vmatpush1.bf16.msra.mxu0 %v7866_v2  ;;  %9881 = vrot.lane.b32.xlu0 %v11559_v35, %s10413_s13  ;;  %v17367_v43 = vunpack.i.h.bf16 %v11659_v31  ;;  %v9598_v50 = vunpack.i.l.bf16 %v11659_v31 }
 0x131   :  { %7917 = vmatprep.subr.bf16.mxu1 %v7916_v24  ;;  %v214_v16 = vsel %vm193_vm0, %v17680_v34, %v9593_v30  ;;  %v217_v61 = vsel %vm193_vm0, %v17681_v39, %v9594_v25  ;;  %9886 = vrot.lane.b32.xlu1 %v11566_v37, %s10413_s13 }
 0x132   :  { %v11673_v63 = vpop.permute.xlu0 %9601  ;;  %v7918_v56 = vpack.c.bf16 %v217_v61, %v214_v16  ;;  %v1419_v38 = vsel %vm1399_vm6, %v9598_v50, %v17367_v43 }
 0x133   :  { %v17362_v13 = vunpack.i.h.bf16 %v11673_v63  ;;  %v9603_v26 = vunpack.i.l.bf16 %v11673_v63  ;;  %v9607_v57 = vpop.permute.xlu1 %9606 }
 0x134   :  { %v9609_v2 = vunpack.i.h.bf16 %v9607_v57  ;;  %v9608_v53 = vunpack.i.l.bf16 %v9607_v57  ;;  %7919 = vmatpush3.bf16.msra.mxu1 %v7918_v56  ;;  %9891 = vrot.lane.b32.xlu0 %v11396_v41, %s10414_s14  ;;  %v11700_v57 = vld [vmem:[%s17292_s1 + $0x10] sm:$0xff] }
 0x135   :  { %v1422_v51 = vsel %vm1399_vm6, %v9603_v26, %v17362_v13  ;;  %9896 = vrot.lane.b32.xlu1 %v11398_v54, %s10414_s14 }
 0x136   :  { %v1421_v28 = vsel %vm1399_vm6, %v9609_v2, %v9603_v26  ;;  %v1418_v9 = vsel %vm1399_vm6, %v9608_v53, %v9598_v50  ;;  %v9612_v17 = vpop.permute.xlu0 %9611  ;;  %v7868_v25 = vpack.c.bf16 %v1422_v51, %v1419_v38  ;;  %v17682_v50 = vunpack.i.h.bf16 %v11324_v55  ;;  %v11715_v53 = vld [vmem:[%s17292_s1 + $0x40] sm:$0xff] }
 0x137   :  { %v9614_v30 = vunpack.i.h.bf16 %v9612_v17  ;;  %v9613_v24 = vunpack.i.l.bf16 %v9612_v17  ;;  %v9617_v34 = vpop.permute.xlu1 %9616  ;;  %v7870_v16 = vpack.c.bf16 %v1421_v28, %v1418_v9  ;;  %2254 = vmatmul.mubr.f32.vlgmr.msra.gmra.mrb[0].mxu1 %v11052_v19  ;;  %v17683_v19 = vunpack.i.h.bf16 %v11016_v58  ;;  %v17685_v28 = vld [vmem:[#allocation5_spill] sm:$0xff] }
 0x138   :  { %v9619_v39 = vunpack.i.h.bf16 %v9617_v34  ;;  %v9618_v61 = vunpack.i.l.bf16 %v9617_v34  ;;  %7869 = vmatprep.subr.bf16.mxu0 %v7868_v25  ;;  %2258 = vmatprep.mubr.f32.mxu1 %v11062_v7 }
 0x139   :  { %7871 = vmatpush1.bf16.msra.mxu0 %v7870_v16  ;;  %v1201_v56 = vsel %vm1198_vm5, %v9439_v10, %v9613_v24  ;;  %v1204_v26 = vsel %vm1198_vm5, %v17682_v50, %v9614_v30  ;;  %9901 = vrot.lane.b32.xlu0 %v11427_v36, %s10414_s14  ;;  %v11734_v30 = vld [vmem:[%s17292_s1 + $0x38] sm:$0xff]  ;;  %v11742_v16 = vld [vmem:[%s17292_s1 + $0x68] sm:$0xff] }
 0x13a   :  { %v799_v7 = vsel %vm796_vm3, %v17683_v19, %v9618_v61  ;;  %v802_v10 = vsel %vm796_vm3, %v17684_v15, %v9619_v39  ;;  %v11710_v2 = vpop.permute.xlu0 %9621  ;;  %v7920_v55 = vpack.c.bf16 %v1204_v26, %v1201_v56  ;;  %9906 = vrot.lane.b32.xlu1 %v11443_v20, %s10414_s14  ;;  %v17686_v39 = vld [vmem:[#allocation6_spill] sm:$0xff]  ;;  %v17687_v19 = vld [vmem:[#allocation9_spill] sm:$0xff] }
 0x13b   :  { %v17361_v58 = vunpack.i.h.bf16 %v11710_v2  ;;  %v9623_v38 = vunpack.i.l.bf16 %v11710_v2  ;;  %v11721_v51 = vpop.permute.xlu1 %9626  ;;  %v7922_v45 = vpack.c.bf16 %v802_v10, %v799_v7  ;;  %2259 = vmatmul.mubr.f32.gmra.mrb[2].mxu1 %v17685_v28  ;;  %v17688_v10 = vld [vmem:[#allocation10_spill] sm:$0xff] }
 0x13c   :  { %v17360_v9 = vunpack.i.h.bf16 %v11721_v51  ;;  %v9628_v17 = vunpack.i.l.bf16 %v11721_v51  ;;  %7921 = vmatprep.subr.bf16.mxu1 %v7920_v55  ;;  %2076 = vmatmul.mubr.f32.vlgmr.msra.gmra.mrb[0].mxu0 %v11700_v57 }
 0x13d   :  { %7923 = vmatpush3.bf16.msra.mxu1 %v7922_v45  ;;  %v1602_v25 = vsel %vm1600_vm7, %v9623_v38, %v17361_v58  ;;  %2081 = vmatprep.mubr.f32.mxu0 %v11715_v53 }
 0x13e   :  { %v9632_v24 = vpop.permute.xlu0 %9631  ;;  %v1605_v34 = vsel %vm1600_vm7, %v9628_v17, %v17360_v9  ;;  %2263 = vmatprep.mubr.f32.mxu1 %v17686_v39  ;;  %9911 = vrot.lane.b32.xlu0 %v11459_v12, %s10414_s14  ;;  %v17690_v39 = vunpack.i.h.bf16 %v11356_v5  ;;  %v17691_v5 = vld [vmem:[#allocation3_spill] sm:$0xff] }
 0x13f   :  { %v9634_v61 = vunpack.i.h.bf16 %v9632_v24  ;;  %v9633_v56 = vunpack.i.l.bf16 %v9632_v24  ;;  %v9637_v50 = vpop.permute.xlu1 %9636  ;;  %v7872_v26 = vpack.c.bf16 %v1605_v34, %v1602_v25  ;;  %2264 = vmatmul.mubr.f32.gmra.mrb[4].mxu1 %v17687_v19  ;;  %9916 = vrot.lane.b32.xlu1 %v11461_v4, %s10414_s14  ;;  %v17689_v24 = vunpack.i.h.bf16 %v11340_v11  ;;  %v11764_v19 = vld [vmem:[%s17292_s1 + $0x60] sm:$0xff]  ;;  %v11773_v11 = vld [vmem:[%s17292_s1 + $0x90] sm:$0xff] }
 0x140   :  { %v9639_v7 = vunpack.i.h.bf16 %v9637_v50  ;;  %v9638_v15 = vunpack.i.l.bf16 %v9637_v50  ;;  %2082 = vmatmul.mubr.f32.gmra.mrb[2].mxu0 %v11734_v30  ;;  %2268 = vmatprep.mubr.f32.mxu1 %v17688_v10 }
 0x141   :  { %v1601_v55 = vsel %vm1600_vm7, %v9633_v56, %v9623_v38  ;;  %v1604_v45 = vsel %vm1600_vm7, %v9634_v61, %v9628_v17  ;;  %7873 = vmatprep.subr.bf16.mxu0 %v7872_v26  ;;  %2087 = vmatprep.mubr.f32.mxu0 %v11742_v16  ;;  %v17692_v26 = vunpack.i.h.bf16 %v17691_v5 }
 0x142   :  { %v9642_v28 = vpop.permute.xlu0 %9641  ;;  %v7874_v25 = vpack.c.bf16 %v1604_v45, %v1601_v55  ;;  %v1207_v34 = vsel %vm1198_vm5, %v17689_v24, %v9638_v15  ;;  %v1210_v50 = vsel %vm1198_vm5, %v17690_v39, %v9639_v7  ;;  %9921 = vrot.lane.b32.xlu0 %v11491_v23, %s10414_s14  ;;  %v17693_v15 = vld [vmem:[#allocation4_spill] sm:$0xff] }
 0x143   :  { %v9644_v38 = vunpack.i.h.bf16 %v9642_v28  ;;  %v9643_v17 = vunpack.i.l.bf16 %v9642_v28  ;;  %v11768_v61 = vpop.permute.xlu1 %9646  ;;  %v7924_v56 = vpack.c.bf16 %v1210_v50, %v1207_v34  ;;  %2269 = vmatmul.mubr.f32.gmra.mrb[6].mxu1 %v11165_v32  ;;  %9926 = vrot.lane.b32.xlu1 %v11507_v52, %s10414_s14  ;;  %v17694_v10 = vunpack.i.h.bf16 %v17693_v15 }
 0x144   :  { %7875 = vmatpush1.bf16.msra.mxu0 %v7874_v25  ;;  %2338 = vmatprep.mubr.f32.mxu1 %v11173_v46  ;;  %v17358_v45 = vunpack.i.h.bf16 %v11768_v61  ;;  %v9648_v28 = vunpack.i.l.bf16 %v11768_v61  ;;  %v11794_v46 = vld [vmem:[%s17292_s1 + $0x88] sm:$0xff] }
 0x145   :  { %v805_v7 = vsel %vm796_vm3, %v17692_v26, %v9643_v17  ;;  %v808_v55 = vsel %vm796_vm3, %v17694_v10, %v9644_v38  ;;  %7925 = vmatprep.subr.bf16.mxu1 %v7924_v56  ;;  %2088 = vmatmul.mubr.f32.gmra.mrb[4].mxu0 %v11764_v19  ;;  %v17369_v10 = vmov 0.0  }
 0x146   :  { %v11788_v32 = vpop.permute.xlu0 %9651  ;;  %v7926_v25 = vpack.c.bf16 %v808_v55, %v805_v7  ;;  %2093 = vmatprep.mubr.f32.mxu0 %v11773_v11  ;;  %9931 = vrot.lane.b32.xlu0 %v11519_v44, %s10414_s14  ;;  %v1608_v17 = vsel %vm1600_vm7, %v9648_v28, %v17358_v45 }
 0x147   :  { %v17359_v24 = vunpack.i.h.bf16 %v11788_v32  ;;  %v9653_v34 = vunpack.i.l.bf16 %v11788_v32  ;;  %v9657_v39 = vpop.permute.xlu1 %9656  ;;  %9936 = vrot.lane.b32.xlu1 %v11535_v3, %s10414_s14 }
 0x148   :  { %v9659_v50 = vunpack.i.h.bf16 %v9657_v39  ;;  %v9658_v38 = vunpack.i.l.bf16 %v9657_v39  ;;  %7927 = vmatpush3.bf16.msra.mxu1 %v7926_v25 }
 0x149   :  { %v1611_v56 = vsel %vm1600_vm7, %v9653_v34, %v17359_v24  ;;  %2094 = vmatmul.mubr.f32.gmra.mrb[6].mxu0 %v11794_v46 }
 0x14a   :  { %v1610_v5 = vsel %vm1600_vm7, %v9659_v50, %v9653_v34  ;;  %v1607_v26 = vsel %vm1600_vm7, %v9658_v38, %v9648_v28  ;;  %v9662_v7 = vpop.permute.xlu0 %9661  ;;  %v7876_v15 = vpack.c.bf16 %v1611_v56, %v1608_v17  ;;  %2164 = vmatprep.mubr.f32.mxu0 %v17369_v10  ;;  %9941 = vrot.lane.b32.xlu0 %v11559_v35, %s10414_s14  ;;  %v17695_v28 = vunpack.i.h.bf16 %v11390_v60  ;;  %v17697_v17 = vld [vmem:[#allocation7_spill] sm:$0xff] }
 0x14b   :  { %v9664_v55 = vunpack.i.h.bf16 %v9662_v7  ;;  %v9663_v25 = vunpack.i.l.bf16 %v9662_v7  ;;  %v9667_v39 = vpop.permute.xlu1 %9666  ;;  %v7878_v45 = vpack.c.bf16 %v1610_v5, %v1607_v26  ;;  %9946 = vrot.lane.b32.xlu1 %v11566_v37, %s10414_s14  ;;  %v17696_v50 = vunpack.i.h.bf16 %v11415_v22  ;;  %v17699_v5 = vld [vmem:[#allocation8_spill] sm:$0xff] }
 0x14c   :  { %v9669_v24 = vunpack.i.h.bf16 %v9667_v39  ;;  %v9668_v9 = vunpack.i.l.bf16 %v9667_v39  ;;  %7877 = vmatprep.subr.bf16.mxu0 %v7876_v15  ;;  %v17698_v56 = vunpack.i.h.bf16 %v17697_v17  ;;  %v17700_v26 = vunpack.i.h.bf16 %v17699_v5 }
 0x14d   :  { %7879 = vmatpush1.bf16.msra.mxu0 %v7878_v45  ;;  %v1213_v34 = vsel %vm1198_vm5, %v17695_v28, %v9663_v25  ;;  %v1216_v38 = vsel %vm1198_vm5, %v17696_v50, %v9664_v55 }
 0x14e   :  { %v811_v7 = vsel %vm796_vm3, %v17698_v56, %v9668_v9  ;;  %v814_v58 = vsel %vm796_vm3, %v17700_v26, %v9669_v24  ;;  %v11828_v13 = vpop.permute.xlu0 %9671  ;;  %v7928_v15 = vpack.c.bf16 %v1216_v38, %v1213_v34  ;;  %9951 = vrot.lane.b32.xlu0 %v11396_v41, %s10415_s17 }
 0x14f   :  { %v17364_v60 = vunpack.i.h.bf16 %v11828_v13  ;;  %v9673_v22 = vunpack.i.l.bf16 %v11828_v13  ;;  %v11834_v45 = vpop.permute.xlu1 %9676  ;;  %v7930_v55 = vpack.c.bf16 %v814_v58, %v811_v7  ;;  %9956 = vrot.lane.b32.xlu1 %v11398_v54, %s10415_s17 }
 0x150   :  { %v17363_v9 = vunpack.i.h.bf16 %v11834_v45  ;;  %v9678_v24 = vunpack.i.l.bf16 %v11834_v45  ;;  %7929 = vmatprep.subr.bf16.mxu1 %v7928_v15 }
 0x151   :  { %7931 = vmatpush3.bf16.msra.mxu1 %v7930_v55  ;;  %v1614_v25 = vsel %vm1600_vm7, %v9673_v22, %v17364_v60  ;;  %v17701_v55 = vunpack.i.h.bf16 %v11453_v48  ;;  %v17703_v48 = vunpack.i.h.bf16 %v11159_v8 }
 0x152   :  { %v9682_v39 = vpop.permute.xlu0 %9681  ;;  %v1617_v28 = vsel %vm1600_vm7, %v9678_v24, %v17363_v9  ;;  %9961 = vrot.lane.b32.xlu0 %v11427_v36, %s10415_s17 }
 0x153   :  { %v9684_v58 = vunpack.i.h.bf16 %v9682_v39  ;;  %v9683_v34 = vunpack.i.l.bf16 %v9682_v39  ;;  %v9687_v50 = vpop.permute.xlu1 %9686  ;;  %v7880_v38 = vpack.c.bf16 %v1617_v28, %v1614_v25  ;;  %9966 = vrot.lane.b32.xlu1 %v11443_v20, %s10415_s17  ;;  %v17702_v39 = vunpack.i.h.bf16 %v11479_v14 }
 0x154   :  { %v9689_v17 = vunpack.i.h.bf16 %v9687_v50  ;;  %v9688_v56 = vunpack.i.l.bf16 %v9687_v50 }
 0x155   :  { %v1613_v7 = vsel %vm1600_vm7, %v9683_v34, %v9673_v22  ;;  %v1616_v5 = vsel %vm1600_vm7, %v9684_v58, %v9678_v24  ;;  %7881 = vmatprep.subr.bf16.mxu0 %v7880_v38  ;;  %v17704_v58 = vld [vmem:[#allocation11_spill] sm:$0xff] }
 0x156   :  { %v9692_v26 = vpop.permute.xlu0 %9691  ;;  %v7882_v15 = vpack.c.bf16 %v1616_v5, %v1613_v7  ;;  %v1219_v9 = vsel %vm1198_vm5, %v17701_v55, %v9688_v56  ;;  %v1222_v25 = vsel %vm1198_vm5, %v17702_v39, %v9689_v17  ;;  %9971 = vrot.lane.b32.xlu0 %v11459_v12, %s10415_s17  ;;  %v17705_v14 = vunpack.i.h.bf16 %v17704_v58 }
 0x157   :  { %v9694_v28 = vunpack.i.h.bf16 %v9692_v26  ;;  %v9693_v50 = vunpack.i.l.bf16 %v9692_v26  ;;  %v11860_v60 = vpop.permute.xlu1 %9696  ;;  %v7932_v22 = vpack.c.bf16 %v1222_v25, %v1219_v9  ;;  %9976 = vrot.lane.b32.xlu1 %v11461_v4, %s10415_s17  ;;  %v2447_v26 = vld [vmem:[%s17293_s3 + $0x18] sm:$0xff] }
 0x158   :  { %7883 = vmatpush1.bf16.msra.mxu0 %v7882_v15  ;;  %v17366_v38 = vunpack.i.h.bf16 %v11860_v60  ;;  %v9698_v17 = vunpack.i.l.bf16 %v11860_v60  ;;  %v2455_v15 = vld [vmem:[%s17293_s3 + $0x58] sm:$0xff] }
 0x159   :  { %v817_v24 = vsel %vm796_vm3, %v17703_v48, %v9693_v50  ;;  %v820_v34 = vsel %vm796_vm3, %v17705_v14, %v9694_v28  ;;  %7933 = vmatprep.subr.bf16.mxu1 %v7932_v22  ;;  %v8064_v58 = vpack.c.bf16 %v2455_v15, %v2447_v26  ;;  %v2446_v14 = vld [vmem:[%s17293_s3 + $0x10] sm:$0xff]  ;;  %v2463_v26 = vld [vmem:[%s17293_s3 + $0x98] sm:$0xff] }
 0x15a   :  { %v11872_v56 = vpop.permute.xlu0 %9701  ;;  %v7934_v9 = vpack.c.bf16 %v820_v34, %v817_v24  ;;  %9981 = vrot.lane.b32.xlu0 %v11491_v23, %s10415_s17  ;;  %v1620_v25 = vsel %vm1600_vm7, %v9698_v17, %v17366_v38  ;;  %v2454_v34 = vld [vmem:[%s17293_s3 + $0x50] sm:$0xff]  ;;  %v2471_v15 = vld [vmem:[%s17293_s3 + $0xd8] sm:$0xff] }
 0x15b   :  { %v17365_v7 = vunpack.i.h.bf16 %v11872_v56  ;;  %v9703_v8 = vunpack.i.l.bf16 %v11872_v56  ;;  %v9707_v5 = vpop.permute.xlu1 %9706  ;;  %9986 = vrot.lane.b32.xlu1 %v11507_v52, %s10415_s17 }
 0x15c   :  { %v9709_v55 = vunpack.i.h.bf16 %v9707_v5  ;;  %v9708_v39 = vunpack.i.l.bf16 %v9707_v5  ;;  %7935 = vmatpush3.bf16.msra.mxu1 %v7934_v9 }
 0x15d   :  { %v1623_v28 = vsel %vm1600_vm7, %v9703_v8, %v17365_v7 }
 0x15e   :  { %v1622_v50 = vsel %vm1600_vm7, %v9709_v55, %v9703_v8  ;;  %v1619_v22 = vsel %vm1600_vm7, %v9708_v39, %v9698_v17  ;;  %v9712_v48 = vpop.permute.xlu0 %9711  ;;  %v7884_v24 = vpack.c.bf16 %v1623_v28, %v1620_v25  ;;  %9991 = vrot.lane.b32.xlu0 %v11519_v44, %s10415_s17  ;;  %v11913_v39 = vld [vmem:[%s17292_s1 + $0x20] sm:$0xff]  ;;  %v17706_v25 = vunpack.i.h.bf16 %v11537_v40  ;;  %v2462_v40 = vld [vmem:[%s17293_s3 + $0x90] sm:$0xff] }
 0x15f   :  { %v9714_v9 = vunpack.i.h.bf16 %v9712_v48  ;;  %v9713_v5 = vunpack.i.l.bf16 %v9712_v48  ;;  %v9717_v7 = vpop.permute.xlu1 %9716  ;;  %v7886_v8 = vpack.c.bf16 %v1622_v50, %v1619_v22  ;;  %9996 = vrot.lane.b32.xlu1 %v11535_v3, %s10415_s17  ;;  %v17707_v28 = vunpack.i.h.bf16 %v11553_v47 }
 0x160   :  { %v9719_v17 = vunpack.i.h.bf16 %v9717_v7  ;;  %v9718_v55 = vunpack.i.l.bf16 %v9717_v7  ;;  %7885 = vmatprep.subr.bf16.mxu0 %v7884_v24  ;;  %v8066_v22 = vpack.c.bf16 %v2454_v34, %v2446_v14  ;;  %v17708_v48 = vunpack.i.h.bf16 %v11196_v62  ;;  %v2470_v62 = vld [vmem:[%s17293_s3 + $0xd0] sm:$0xff] }
 0x161   :  { %7887 = vmatpush1.bf16.msra.mxu0 %v7886_v8  ;;  %v1402_v7 = vsel %vm1399_vm6, %v17706_v25, %v9713_v5  ;;  %v1405_v50 = vsel %vm1399_vm6, %v17707_v28, %v9714_v9  ;;  %v17709_v8 = vunpack.i.h.bf16 %v11200_v29  ;;  %v8068_v9 = vpack.c.bf16 %v2471_v15, %v2463_v26 }
 0x162   :  { %v1000_v24 = vsel %vm997_vm4, %v17708_v48, %v9718_v55  ;;  %v9722_v43 = vpop.permute.xlu0 %9721  ;;  %v7936_v1 = vpack.c.bf16 %v1405_v50, %v1402_v7  ;;  %10001 = vrot.lane.b32.xlu0 %v11559_v35, %s10415_s17  ;;  %8065 = vmatprep.subr.bf16.mxu0 %v8064_v58  ;;  %v2479_v58 = vld [vmem:[%s17293_s3 + $0x118] sm:$0xff]  ;;  %v8070_v26 = vpack.c.bf16 %v2470_v62, %v2462_v40  ;;  %v17710_v15 = vunpack.i.h.bf16 %v11224_v18  ;;  %v2486_v18 = vld [vmem:[%s17293_s3 + $0x150] sm:$0xff] }
 0x163   :  { %v1003_v38 = vsel %vm997_vm4, %v17709_v8, %v9719_v17  ;;  %v9724_v47 = vunpack.i.h.bf16 %v9722_v43  ;;  %v9723_v14 = vunpack.i.l.bf16 %v9722_v43  ;;  %v9727_v34 = vpop.permute.xlu1 %9726  ;;  %10006 = vrot.lane.b32.xlu1 %v11566_v37, %s10415_s17  ;;  %v2487_v43 = vld [vmem:[%s17293_s3 + $0x158] sm:$0xff]  ;;  %v17711_v7 = vunpack.i.h.bf16 %v11214_v42 }
 0x164   :  { %v7938_v29 = vpack.c.bf16 %v1003_v38, %v1000_v24  ;;  %v9729_v5 = vunpack.i.h.bf16 %v9727_v34  ;;  %v9728_v17 = vunpack.i.l.bf16 %v9727_v34  ;;  %7172 = vmatmul.mubr.msk.f32.vlgmr.msra.gmra.mrb[0].mxu0 %vm1909_vm8, %v11913_v39  ;;  %7937 = vmatprep.subr.bf16.mxu1 %v7936_v1  ;;  %v11949_v38 = vld [vmem:[%s17292_s1 + $0x48] sm:$0xff]  ;;  %v8072_v24 = vpack.c.bf16 %v2487_v43, %v2479_v58  ;;  %v2503_v62 = vld [vmem:[%s17293_s3 + $0x1d8] sm:$0xff]  ;;  %v17715_v43 = vld [vmem:[#allocation13_spill] sm:$0xff] }
 0x165   :  { %2170 = vmatprep.mubr.f32.mxu0 %v17369_v10  ;;  %v1408_v1 = vsel %vm1399_vm6, %v9549_v27, %v9723_v14  ;;  %v1411_v55 = vsel %vm1399_vm6, %v9554_v0, %v9724_v47  ;;  %8067 = vmatpush1.bf16.msra.mxu0 %v8066_v22  ;;  %v2495_v22 = vld [vmem:[%s17293_s3 + $0x198] sm:$0xff]  ;;  %v11985_v47 = vld [vmem:[%s17292_s1 + $0x70] sm:$0xff]  ;;  %v17712_v34 = vunpack.i.h.bf16 %v11633_v6 }
 0x166   :  { %7939 = vmatpush3.bf16.msra.mxu1 %v7938_v29  ;;  %v1009_v25 = vsel %vm997_vm4, %v17710_v15, %v9729_v5  ;;  %v1006_v28 = vsel %vm997_vm4, %v17711_v7, %v9728_v17  ;;  %v9732_v50 = vpop.permute.xlu0 %9731  ;;  %v7940_v48 = vpack.c.bf16 %v1411_v55, %v1408_v1  ;;  %10011 = vrot.lane.b32.xlu0 %v11396_v41, %s10416_s18  ;;  %v17713_v5 = vld [vmem:[#allocation12_spill] sm:$0xff]  ;;  %v17716_v1 = vunpack.i.h.bf16 %v17715_v43 }
 0x167   :  { %v9734_v27 = vunpack.i.h.bf16 %v9732_v50  ;;  %v9733_v49 = vunpack.i.l.bf16 %v9732_v50  ;;  %v9737_v0 = vpop.permute.xlu1 %9736  ;;  %v7942_v42 = vpack.c.bf16 %v1009_v25, %v1006_v28  ;;  %10016 = vrot.lane.b32.xlu1 %v11398_v54, %s10416_s18  ;;  %8069 = vmatprep.subr.bf16.mxu0 %v8068_v9  ;;  %v8074_v9 = vpack.c.bf16 %v2486_v18, %v2478_v21 }
 0x168   :  { %v9739_v8 = vunpack.i.h.bf16 %v9737_v0  ;;  %v9738_v40 = vunpack.i.l.bf16 %v9737_v0  ;;  %7173 = vmatmul.mubr.msk.f32.gmra.mrb[2].mxu0 %vm1909_vm8, %v11949_v38  ;;  %7941 = vmatprep.subr.bf16.mxu1 %v7940_v48  ;;  %v17714_v17 = vunpack.i.h.bf16 %v17713_v5  ;;  %v8076_v48 = vpack.c.bf16 %v2503_v62, %v2495_v22  ;;  %v17719_v22 = vld [vmem:[#allocation15_spill] sm:$0xff] }
 0x169   :  { %2176 = vmatprep.mubr.f32.mxu0 %v17369_v10  ;;  %v1414_v14 = vsel %vm1399_vm6, %v9574_v33, %v9733_v49  ;;  %v1417_v29 = vsel %vm1399_vm6, %v17712_v34, %v9734_v27  ;;  %8071 = vmatpush1.bf16.msra.mxu0 %v8070_v26  ;;  %v2502_v33 = vld [vmem:[%s17293_s3 + $0x1d0] sm:$0xff]  ;;  %v2511_v26 = vld [vmem:[%s17293_s3 + $0x218] sm:$0xff]  ;;  %v17717_v0 = vunpack.i.h.bf16 %v11659_v31  ;;  %v17720_v62 = vunpack.i.h.bf16 %v17719_v22 }
 0x16a   :  { %7943 = vmatpush3.bf16.msra.mxu1 %v7942_v42  ;;  %v1012_v58 = vsel %vm997_vm4, %v17714_v17, %v9738_v40  ;;  %v1015_v55 = vsel %vm997_vm4, %v17716_v1, %v9739_v8  ;;  %v9742_v15 = vpop.permute.xlu0 %9741  ;;  %v7944_v25 = vpack.c.bf16 %v1417_v29, %v1414_v14  ;;  %10021 = vrot.lane.b32.xlu0 %v11427_v36, %s10416_s18  ;;  %v2519_v27 = vld [vmem:[%s17293_s3 + $0x258] sm:$0xff] }
 0x16b   :  { %v9744_v6 = vunpack.i.h.bf16 %v9742_v15  ;;  %v9743_v7 = vunpack.i.l.bf16 %v9742_v15  ;;  %v9747_v28 = vpop.permute.xlu1 %9746  ;;  %v7946_v50 = vpack.c.bf16 %v1015_v55, %v1012_v58  ;;  %10026 = vrot.lane.b32.xlu1 %v11443_v20, %s10416_s18  ;;  %8073 = vmatprep.subr.bf16.mxu0 %v8072_v24  ;;  %v12021_v49 = vld [vmem:[%s17292_s1 + $0x98] sm:$0xff]  ;;  %v17718_v24 = vunpack.i.h.bf16 %v11673_v63 }
 0x16c   :  { %v9749_v21 = vunpack.i.h.bf16 %v9747_v28  ;;  %v9748_v18 = vunpack.i.l.bf16 %v9747_v28  ;;  %7174 = vmatmul.mubr.msk.f32.gmra.mrb[4].mxu0 %vm1909_vm8, %v11985_v47  ;;  %7945 = vmatprep.subr.bf16.mxu1 %v7944_v25  ;;  %v8078_v40 = vpack.c.bf16 %v2502_v33, %v2494_v59  ;;  %v17721_v34 = vld [vmem:[#allocation14_spill] sm:$0xff]  ;;  %v8080_v55 = vpack.c.bf16 %v2519_v27, %v2511_v26  ;;  %v2510_v59 = vld [vmem:[%s17293_s3 + $0x210] sm:$0xff] }
 0x16d   :  { %2182 = vmatprep.mubr.f32.mxu0 %v17369_v10  ;;  %v1420_v42 = vsel %vm1399_vm6, %v17717_v0, %v9743_v7  ;;  %v1423_v8 = vsel %vm1399_vm6, %v17718_v24, %v9744_v6  ;;  %v17722_v29 = vunpack.i.h.bf16 %v17721_v34  ;;  %8075 = vmatpush1.bf16.msra.mxu0 %v8074_v9  ;;  %v2518_v9 = vld [vmem:[%s17293_s3 + $0x250] sm:$0xff]  ;;  %v17723_v33 = vunpack.i.h.bf16 %v11710_v2 }
 0x16e   :  { %7947 = vmatpush3.bf16.msra.mxu1 %v7946_v50  ;;  %v1021_v14 = vsel %vm997_vm4, %v17720_v62, %v9749_v21  ;;  %v9752_v17 = vpop.permute.xlu0 %9751  ;;  %v7948_v58 = vpack.c.bf16 %v1423_v8, %v1420_v42  ;;  %10031 = vrot.lane.b32.xlu0 %v11459_v12, %s10416_s18  ;;  %v17724_v7 = vunpack.i.h.bf16 %v11721_v51  ;;  %v2527_v50 = vld [vmem:[%s17293_s3 + $0x298] sm:$0xff]  ;;  %v17725_v26 = vunpack.i.h.bf16 %v11768_v61 }
 0x16f   :  { %v1018_v5 = vsel %vm997_vm4, %v17722_v29, %v9748_v18  ;;  %v9754_v31 = vunpack.i.h.bf16 %v9752_v17  ;;  %v9753_v43 = vunpack.i.l.bf16 %v9752_v17  ;;  %v9757_v63 = vpop.permute.xlu1 %9756  ;;  %10036 = vrot.lane.b32.xlu1 %v11461_v4, %s10416_s18  ;;  %8077 = vmatprep.subr.bf16.mxu0 %v8076_v48  ;;  %v2535_v48 = vld [vmem:[%s17293_s3 + $0x2d8] sm:$0xff]  ;;  %v17726_v27 = vunpack.i.h.bf16 %v11788_v32  ;;  %v2526_v32 = vld [vmem:[%s17293_s3 + $0x290] sm:$0xff] }
 0x170   :  { %v7950_v1 = vpack.c.bf16 %v1021_v14, %v1018_v5  ;;  %v9759_v15 = vunpack.i.h.bf16 %v9757_v63  ;;  %v9758_v25 = vunpack.i.l.bf16 %v9757_v63  ;;  %7175 = vmatmul.mubr.msk.f32.gmra.mrb[6].mxu0 %vm1909_vm8, %v12021_v49  ;;  %7949 = vmatprep.subr.bf16.mxu1 %v7948_v58  ;;  %v8082_v8 = vpack.c.bf16 %v2518_v9, %v2510_v59  ;;  %v2543_v17 = vld [vmem:[%s17293_s3 + $0x318] sm:$0xff] }
 0x171   :  { %v1603_v6 = vsel %vm1600_vm7, %v17723_v33, %v9753_v43  ;;  %v1606_v28 = vsel %vm1600_vm7, %v17724_v7, %v9754_v31  ;;  %8079 = vmatpush1.bf16.msra.mxu0 %v8078_v40  ;;  %v8084_v22 = vpack.c.bf16 %v2535_v48, %v2527_v50  ;;  %v2534_v40 = vld [vmem:[%s17293_s3 + $0x2d0] sm:$0xff]  ;;  %v17727_v34 = vunpack.i.h.bf16 %v11828_v13  ;;  %v2551_v58 = vld [vmem:[%s17293_s3 + $0x358] sm:$0xff]  ;;  %v2445_v7 = vld [vmem:[%s17293_s3 + $0x8] sm:$0xff] }
 0x172   :  { %7951 = vmatpush3.bf16.msra.mxu1 %v7950_v1  ;;  %v9762_v21 = vpop.permute.xlu0 %9761  ;;  %v7952_v18 = vpack.c.bf16 %v1606_v28, %v1603_v6  ;;  %v1609_v2 = vsel %vm1600_vm7, %v17725_v26, %v9758_v25  ;;  %v1612_v51 = vsel %vm1600_vm7, %v17726_v27, %v9759_v15  ;;  %10041 = vrot.lane.b32.xlu0 %v11491_v23, %s10416_s18  ;;  %v17728_v29 = vunpack.i.h.bf16 %v11834_v45  ;;  %v7239_v13 = vld [vmem:[%s17291_s0 + $0x118] sm:$0xff]  ;;  %v2550_v15 = vld [vmem:[%s17293_s3 + $0x350] sm:$0xff]  ;;  %v2453_v28 = vld [vmem:[%s17293_s3 + $0x48] sm:$0xff] }
 0x173   :  { %v9764_v0 = vunpack.i.h.bf16 %v9762_v21  ;;  %v9763_v42 = vunpack.i.l.bf16 %v9762_v21  ;;  %v9767_v24 = vpop.permute.xlu1 %9766  ;;  %10046 = vrot.lane.b32.xlu1 %v11507_v52, %s10416_s18  ;;  %8081 = vmatprep.subr.bf16.mxu0 %v8080_v55  ;;  %v7956_v61 = vpack.c.bf16 %v1612_v51, %v1609_v2  ;;  %v7243_v45 = vld [vmem:[%s17291_s0 + $0x138] sm:$0xff]  ;;  %v8086_v43 = vpack.c.bf16 %v2534_v40, %v2526_v32  ;;  %v2542_v55 = vld [vmem:[%s17293_s3 + $0x310] sm:$0xff] }
 0x174   :  { %7953 = vmatprep.subr.bf16.mxu1 %v7952_v18  ;;  %v9769_v62 = vunpack.i.h.bf16 %v9767_v24  ;;  %v9768_v14 = vunpack.i.l.bf16 %v9767_v24  ;;  %v8088_v1 = vpack.c.bf16 %v2551_v58, %v2543_v17  ;;  %v17731_v25 = vunpack.i.h.bf16 %v11860_v60  ;;  %v2559_v33 = vld [vmem:[%s17293_s3 + $0x398] sm:$0xff]  ;;  %v2566_v26 = vld [vmem:[%s17293_s3 + $0x3d0] sm:$0xff]  ;;  %v2468_v17 = vld [vmem:[%s17293_s3 + $0xc0] sm:$0xff] }
 0x175   :  { %2339 = vmatmul.mubr.f32.vlgmr.msra.gmra.mrb[8].mxu1 %v11700_v57  ;;  %v1615_v57 = vsel %vm1600_vm7, %v17727_v34, %v9763_v42  ;;  %v1618_v5 = vsel %vm1600_vm7, %v17728_v29, %v9764_v0  ;;  %8083 = vmatpush1.bf16.msra.mxu0 %v8082_v8  ;;  %v2567_v6 = vld [vmem:[%s17293_s3 + $0x3d8] sm:$0xff]  ;;  %v12127_v60 = vpack.i.bf16 %v7243_v45, %v7239_v13  ;;  %v2452_v42 = vld [vmem:[%s17293_s3 + $0x40] sm:$0xff]  ;;  %v2574_v40 = vld [vmem:[%s17293_s3 + $0x410] sm:$0xff] }
 0x176   :  { %7955 = vmatpush3.bf16.msra.mxu1 %v7952_v18  ;;  %2343 = vmatprep.mubr.f32.mxu1 %v11715_v53  ;;  %v12091_v53 = vpop.permute.xlu0 %9771  ;;  %v7960_v63 = vpack.c.bf16 %v1618_v5, %v1615_v57  ;;  %v1621_v59 = vsel %vm1600_vm7, %v17731_v25, %v9768_v14  ;;  %v8090_v50 = vpack.c.bf16 %v2550_v15, %v2542_v55  ;;  %v2558_v18 = vld [vmem:[%s17293_s3 + $0x390] sm:$0xff]  ;;  %v2575_v2 = vld [vmem:[%s17293_s3 + $0x418] sm:$0xff]  ;;  %v2485_v13 = vld [vmem:[%s17293_s3 + $0x148] sm:$0xff] }
 0x177   :  { %7957 = vmatprep.subr.bf16.mxu1 %v7956_v61  ;;  %10051 = vrot.lane.b32.xlu0 %v11519_v44, %s10416_s18  ;;  %17729 = vst [vmem:[#allocation5_spill] sm:$0xff] %v12091_v53  ;;  %v12101_v31 = vpop.permute.xlu1 %9776  ;;  %v8092_v21 = vpack.c.bf16 %v2567_v6, %v2559_v33  ;;  %v7247_v51 = vld [vmem:[%s17291_s0 + $0x158] sm:$0xff]  ;;  %v7968_v0 = vpack.c.bf16 %v2453_v28, %v2445_v7  ;;  %v2493_v6 = vld [vmem:[%s17293_s3 + $0x188] sm:$0xff] }
 0x178   :  { %10056 = vrot.lane.b32.xlu1 %v11535_v3, %s10416_s18  ;;  %17730 = vst [vmem:[#allocation6_spill] sm:$0xff] %v12101_v31  ;;  %8085 = vmatprep.subr.bf16.mxu0 %v8084_v22  ;;  %v7251_v24 = vld [vmem:[%s17291_s0 + $0x178] sm:$0xff]  ;;  %v2469_v22 = vld [vmem:[%s17293_s3 + $0xc8] sm:$0xff]  ;;  %v8094_v32 = vpack.c.bf16 %v2566_v26, %v2558_v18  ;;  %v13260_v31 = vld [vmem:[%s17293_s3 + $0x950] sm:$0xff] }
 0x179   :  { %2344 = vmatmul.mubr.f32.gmra.mrb[10].mxu1 %v11734_v30  ;;  %v17732_v30 = vunpack.i.h.bf16 %v11872_v56  ;;  %8087 = vmatpush1.bf16.msra.mxu0 %v8086_v43  ;;  %v2591_v34 = vld [vmem:[%s17293_s3 + $0x498] sm:$0xff]  ;;  %v12198_v29 = vpack.i.bf16 %v7251_v24, %v7247_v51  ;;  %v2501_v7 = vld [vmem:[%s17293_s3 + $0x1c8] sm:$0xff]  ;;  %v2492_v51 = vld [vmem:[%s17293_s3 + $0x180] sm:$0xff] }
 0x17a   :  { %7959 = vmatpush3.bf16.msra.mxu1 %v7956_v61  ;;  %2348 = vmatprep.mubr.f32.mxu1 %v11742_v16  ;;  %v12125_v16 = vpop.permute.xlu0 %9781  ;;  %v2461_v61 = vld [vmem:[%s17293_s3 + $0x88] sm:$0xff]  ;;  %v2607_v55 = vld [vmem:[%s17293_s3 + $0x518] sm:$0xff] }
 0x17b   :  { %v1624_v9 = vsel %vm1600_vm7, %v17732_v30, %v9769_v62  ;;  %7961 = vmatprep.subr.bf16.mxu1 %v7960_v63  ;;  %10061 = vrot.lane.b32.xlu0 %v11559_v35, %s10416_s18  ;;  %17733 = vst [vmem:[#allocation9_spill] sm:$0xff] %v12125_v16  ;;  %v12131_v56 = vpop.permute.xlu1 %9786  ;;  %v2582_v62 = vld [vmem:[%s17293_s3 + $0x450] sm:$0xff]  ;;  %v7972_v5 = vpack.c.bf16 %v2469_v22, %v2461_v61  ;;  %v7255_v25 = vld [vmem:[%s17291_s0 + $0x198] sm:$0xff]  ;;  %v2484_v30 = vld [vmem:[%s17293_s3 + $0x140] sm:$0xff] }
 0x17c   :  { %10066 = vrot.lane.b32.xlu1 %v11566_v37, %s10416_s18  ;;  %17734 = vst [vmem:[#allocation10_spill] sm:$0xff] %v12131_v56  ;;  %v7964_v48 = vpack.c.bf16 %v1624_v9, %v1621_v59  ;;  %8089 = vmatprep.subr.bf16.mxu0 %v8088_v1  ;;  %v8098_v45 = vpack.c.bf16 %v2582_v62, %v2574_v40  ;;  %v2476_v59 = vld [vmem:[%s17293_s3 + $0x100] sm:$0xff]  ;;  %v7259_v9 = vld [vmem:[%s17291_s0 + $0x1b8] sm:$0xff]  ;;  %v2622_v22 = vld [vmem:[%s17293_s3 + $0x590] sm:$0xff] }
 0x17d   :  { %2349 = vmatmul.mubr.f32.gmra.mrb[12].mxu1 %v11764_v19  ;;  %v2583_v19 = vld [vmem:[%s17293_s3 + $0x458] sm:$0xff]  ;;  %8091 = vmatpush1.bf16.msra.mxu0 %v8090_v50  ;;  %v2606_v50 = vld [vmem:[%s17293_s3 + $0x510] sm:$0xff] }
 0x17e   :  { %7963 = vmatpush3.bf16.msra.mxu1 %v7960_v63  ;;  %2353 = vmatprep.mubr.f32.mxu1 %v11773_v11  ;;  %v12155_v27 = vpop.permute.xlu0 %9791  ;;  %v2444_v11 = vld [vmem:[%s17293_s3] sm:$0xff]  ;;  %v2598_v63 = vld [vmem:[%s17293_s3 + $0x4d0] sm:$0xff]  ;;  %v2623_v18 = vld [vmem:[%s17293_s3 + $0x598] sm:$0xff] }
 0x17f   :  { %7965 = vmatprep.subr.bf16.mxu1 %v7964_v48  ;;  %10071 = vrot.lane.b32.xlu0 %v12127_v60, %s10413_s13  ;;  %17735 = vst [vmem:[#allocation3_spill] sm:$0xff] %v12155_v27  ;;  %v12171_v8 = vpop.permute.xlu1 %9796  ;;  %v7970_v14 = vpack.c.bf16 %v2452_v42, %v2444_v11  ;;  %v2517_v42 = vld [vmem:[%s17293_s3 + $0x248] sm:$0xff]  ;;  %v2647_v40 = vld [vmem:[%s17293_s3 + $0x658] sm:$0xff]  ;;  %v13255_v27 = vld [vmem:[%s17293_s3 + $0x910] sm:$0xff] }
 0x180   :  { %10076 = vrot.lane.b32.xlu1 %v11396_v41, %s10417_s23  ;;  %17736 = vst [vmem:[#allocation4_spill] sm:$0xff] %v12171_v8  ;;  %8093 = vmatprep.subr.bf16.mxu0 %v8092_v21  ;;  %v8096_v41 = vpack.c.bf16 %v2583_v19, %v2575_v2  ;;  %v7978_v21 = vpack.c.bf16 %v2484_v30, %v2476_v59  ;;  %v2524_v59 = vld [vmem:[%s17293_s3 + $0x280] sm:$0xff] }
 0x181   :  { %2354 = vmatmul.mubr.f32.gmra.mrb[14].mxu1 %v11794_v46  ;;  %v2599_v46 = vld [vmem:[%s17293_s3 + $0x4d8] sm:$0xff]  ;;  %8095 = vmatpush1.bf16.msra.mxu0 %v8094_v32  ;;  %v12276_v2 = vpack.i.bf16 %v7259_v9, %v7255_v25  ;;  %v7980_v19 = vpack.c.bf16 %v2501_v7, %v2493_v6  ;;  %v2532_v30 = vld [vmem:[%s17293_s3 + $0x2c0] sm:$0xff]  ;;  %v2549_v6 = vld [vmem:[%s17293_s3 + $0x348] sm:$0xff] }
 0x182   :  { %7967 = vmatpush3.bf16.msra.mxu1 %v7964_v48  ;;  %7716 = vmatprep.mubr.msk.f32.mxu1 %vm1909_vm8, %v11913_v39  ;;  %v12196_v57 = vpop.permute.xlu0 %9801  ;;  %v2460_v39 = vld [vmem:[%s17293_s3 + $0x80] sm:$0xff]  ;;  %v8100_v43 = vpack.c.bf16 %v2599_v46, %v2591_v34  ;;  %v2614_v48 = vld [vmem:[%s17293_s3 + $0x550] sm:$0xff] }
 0x183   :  { %10081 = vrot.lane.b32.xlu0 %v11398_v54, %s10417_s23  ;;  %17737 = vst [vmem:[#allocation7_spill] sm:$0xff] %v12196_v57  ;;  %7969 = vmatprep.subr.bf16.mxu1 %v7968_v0  ;;  %v12208_v58 = vpop.permute.xlu1 %9806  ;;  %v2477_v54 = vld [vmem:[%s17293_s3 + $0x108] sm:$0xff]  ;;  %v7974_v1 = vpack.c.bf16 %v2468_v17, %v2460_v39  ;;  %v2500_v0 = vld [vmem:[%s17293_s3 + $0x1c0] sm:$0xff]  ;;  %v8106_v24 = vpack.c.bf16 %v2614_v48, %v2606_v50  ;;  %v7267_v39 = vld [vmem:[%s17291_s0 + $0x1f8] sm:$0xff] }
 0x184   :  { %10086 = vrot.lane.b32.xlu1 %v11427_v36, %s10417_s23  ;;  %17738 = vst [vmem:[#allocation8_spill] sm:$0xff] %v12208_v58  ;;  %8097 = vmatprep.subr.bf16.mxu0 %v8096_v41  ;;  %v2590_v36 = vld [vmem:[%s17293_s3 + $0x490] sm:$0xff]  ;;  %v7982_v32 = vpack.c.bf16 %v2500_v0, %v2492_v51  ;;  %v2639_v41 = vld [vmem:[%s17293_s3 + $0x618] sm:$0xff]  ;;  %v2508_v46 = vld [vmem:[%s17293_s3 + $0x200] sm:$0xff]  ;;  %v7990_v50 = vpack.c.bf16 %v2532_v30, %v2524_v59 }
 0x185   :  { %7717 = vmatmul.mubr.msk.f32.vlgmr.msra.gmra.mrb[16].mxu1 %vm1909_vm8, %v11949_v38  ;;  %v2615_v38 = vld [vmem:[%s17293_s3 + $0x558] sm:$0xff]  ;;  %8099 = vmatpush1.bf16.msra.mxu0 %v8098_v45  ;;  %v8102_v28 = vpack.c.bf16 %v2598_v63, %v2590_v36  ;;  %v2646_v36 = vld [vmem:[%s17293_s3 + $0x650] sm:$0xff]  ;;  %v2548_v51 = vld [vmem:[%s17293_s3 + $0x340] sm:$0xff] }
 0x186   :  { %7719 = vmatprep.mubr.msk.f32.mxu1 %vm1909_vm8, %v11985_v47  ;;  %7971 = vmatpush1.bf16.msra.mxu1 %v7970_v14  ;;  %v12234_v15 = vpop.permute.xlu0 %9811  ;;  %v7976_v47 = vpack.c.bf16 %v2485_v13, %v2477_v54  ;;  %v7263_v14 = vld [vmem:[%s17291_s0 + $0x1d8] sm:$0xff]  ;;  %v2525_v54 = vld [vmem:[%s17293_s3 + $0x288] sm:$0xff]  ;;  %v2572_v59 = vld [vmem:[%s17293_s3 + $0x400] sm:$0xff] }
 0x187   :  { %10091 = vrot.lane.b32.xlu0 %v12198_v29, %s10413_s13  ;;  %17739 = vst [vmem:[#allocation11_spill] sm:$0xff] %v12234_v15  ;;  %7973 = vmatprep.subr.bf16.mxu1 %v7972_v5  ;;  %v12250_v33 = vpop.permute.xlu1 %9816  ;;  %v2516_v5 = vld [vmem:[%s17293_s3 + $0x240] sm:$0xff]  ;;  %v2533_v13 = vld [vmem:[%s17293_s3 + $0x2c8] sm:$0xff]  ;;  %v12348_v25 = vpack.i.bf16 %v7267_v39, %v7263_v14  ;;  %v2671_v48 = vld [vmem:[%s17293_s3 + $0x718] sm:$0xff] }
 0x188   :  { %10096 = vrot.lane.b32.xlu1 %v11443_v20, %s10417_s23  ;;  %17740 = vst [vmem:[#allocation12_spill] sm:$0xff] %v12250_v33  ;;  %8101 = vmatprep.subr.bf16.mxu0 %v8100_v43  ;;  %v8104_v20 = vpack.c.bf16 %v2615_v38, %v2607_v55  ;;  %v8112_v43 = vpack.c.bf16 %v2647_v40, %v2639_v41  ;;  %v2663_v55 = vld [vmem:[%s17293_s3 + $0x6d8] sm:$0xff]  ;;  %v7397_v14 = vld [vmem:[%s17291_s0 + $0x108] sm:$0xff]  ;;  %v2580_v30 = vld [vmem:[%s17293_s3 + $0x440] sm:$0xff] }
 0x189   :  { %7720 = vmatmul.mubr.msk.f32.gmra.mrb[18].mxu1 %vm1909_vm8, %v12021_v49  ;;  %v2631_v49 = vld [vmem:[%s17293_s3 + $0x5d8] sm:$0xff]  ;;  %8103 = vmatpush1.bf16.msra.mxu0 %v8102_v28  ;;  %v7986_v63 = vpack.c.bf16 %v2516_v5, %v2508_v46  ;;  %v2556_v46 = vld [vmem:[%s17293_s3 + $0x380] sm:$0xff] }
 0x18a   :  { %7975 = vmatpush1.bf16.msra.mxu1 %v7974_v1  ;;  %v12274_v26 = vpop.permute.xlu0 %9821  ;;  %8105 = vmatprep.subr.bf16.mxu0 %v8104_v20  ;;  %v8108_v61 = vpack.c.bf16 %v2631_v49, %v2623_v18  ;;  %v2655_v1 = vld [vmem:[%s17293_s3 + $0x698] sm:$0xff]  ;;  %v2654_v20 = vld [vmem:[%s17293_s3 + $0x690] sm:$0xff]  ;;  %v2564_v5 = vld [vmem:[%s17293_s3 + $0x3c0] sm:$0xff] }
 0x18b   :  { %10101 = vrot.lane.b32.xlu0 %v11459_v12, %s10417_s23  ;;  %17741 = vst [vmem:[#allocation13_spill] sm:$0xff] %v12274_v26  ;;  %7977 = vmatprep.subr.bf16.mxu1 %v7976_v47  ;;  %v12286_v11 = vpop.permute.xlu1 %9826  ;;  %v2509_v12 = vld [vmem:[%s17293_s3 + $0x208] sm:$0xff]  ;;  %v7988_v47 = vpack.c.bf16 %v2533_v13, %v2525_v54  ;;  %v8116_v28 = vpack.c.bf16 %v2663_v55, %v2655_v1  ;;  %v2695_v41 = vld [vmem:[%s17293_s3 + $0x7d8] sm:$0xff]  ;;  %v7396_v55 = vld [vmem:[%s17291_s0 + $0x100] sm:$0xff] }
 0x18c   :  { %10106 = vrot.lane.b32.xlu1 %v11461_v4, %s10417_s23  ;;  %17742 = vst [vmem:[#allocation15_spill] sm:$0xff] %v12286_v11  ;;  %v2630_v4 = vld [vmem:[%s17293_s3 + $0x5d0] sm:$0xff]  ;;  %v7984_v34 = vpack.c.bf16 %v2517_v42, %v2509_v12  ;;  %v2557_v12 = vld [vmem:[%s17293_s3 + $0x388] sm:$0xff]  ;;  %v13226_v57 = vld [vmem:[%s17293_s3 + $0x918] sm:$0xff] }
 0x18d   :  { %8107 = vmatpush1.bf16.msra.mxu0 %v8106_v24  ;;  %v8110_v45 = vpack.c.bf16 %v2630_v4, %v2622_v22  ;;  %v2565_v42 = vld [vmem:[%s17293_s3 + $0x3c8] sm:$0xff]  ;;  %v2670_v22 = vld [vmem:[%s17293_s3 + $0x710] sm:$0xff] }
 0x18e   :  { %7979 = vmatpush1.bf16.msra.mxu1 %v7978_v21  ;;  %v12308_v62 = vpop.permute.xlu0 %9831  ;;  %8109 = vmatprep.subr.bf16.mxu0 %v8108_v61  ;;  %v2679_v21 = vld [vmem:[%s17293_s3 + $0x758] sm:$0xff]  ;;  %v2573_v54 = vld [vmem:[%s17293_s3 + $0x408] sm:$0xff] }
 0x18f   :  { %10111 = vrot.lane.b32.xlu0 %v12276_v2, %s10413_s13  ;;  %17743 = vst [vmem:[#allocation14_spill] sm:$0xff] %v12308_v62  ;;  %7981 = vmatprep.subr.bf16.mxu1 %v7980_v19  ;;  %v12324_v17 = vpop.permute.xlu1 %9836  ;;  %v2540_v19 = vld [vmem:[%s17293_s3 + $0x300] sm:$0xff]  ;;  %v8120_v61 = vpack.c.bf16 %v2679_v21, %v2671_v48  ;;  %v2581_v13 = vld [vmem:[%s17293_s3 + $0x448] sm:$0xff] }
 0x190   :  { %10116 = vrot.lane.b32.xlu1 %v11491_v23, %s10417_s23  ;;  %17744 = vst [vmem:[#allocation16_spill] sm:$0xff] %v12324_v17  ;;  %v2638_v23 = vld [vmem:[%s17293_s3 + $0x610] sm:$0xff]  ;;  %v7994_v4 = vpack.c.bf16 %v2548_v51, %v2540_v19  ;;  %v2596_v19 = vld [vmem:[%s17293_s3 + $0x4c0] sm:$0xff] }
 0x191   :  { %8111 = vmatpush1.bf16.msra.mxu0 %v8110_v45  ;;  %v8114_v7 = vpack.c.bf16 %v2646_v36, %v2638_v23  ;;  %v7998_v36 = vpack.c.bf16 %v2564_v5, %v2556_v46 }
 0x192   :  { %7983 = vmatpush1.bf16.msra.mxu1 %v7982_v32  ;;  %v12346_v38 = vpop.permute.xlu0 %9841  ;;  %8113 = vmatprep.subr.bf16.mxu0 %v8112_v43  ;;  %v2687_v32 = vld [vmem:[%s17293_s3 + $0x798] sm:$0xff]  ;;  %v7402_v43 = vld [vmem:[%s17291_s0 + $0x130] sm:$0xff] }
 0x193   :  { %10121 = vrot.lane.b32.xlu0 %v11507_v52, %s10417_s23  ;;  %17745 = vst [vmem:[#allocation17_spill] sm:$0xff] %v12346_v38  ;;  %7985 = vmatprep.subr.bf16.mxu1 %v7984_v34  ;;  %v12358_v9 = vpop.permute.xlu1 %9846  ;;  %v2541_v52 = vld [vmem:[%s17293_s3 + $0x308] sm:$0xff]  ;;  %v7996_v34 = vpack.c.bf16 %v2565_v42, %v2557_v12  ;;  %v8124_v23 = vpack.c.bf16 %v2695_v41, %v2687_v32  ;;  %v2604_v41 = vld [vmem:[%s17293_s3 + $0x500] sm:$0xff] }
 0x194   :  { %10126 = vrot.lane.b32.xlu1 %v11519_v44, %s10417_s23  ;;  %17746 = vst [vmem:[#allocation18_spill] sm:$0xff] %v12358_v9  ;;  %v2662_v44 = vld [vmem:[%s17293_s3 + $0x6d0] sm:$0xff]  ;;  %v7992_v49 = vpack.c.bf16 %v2549_v6, %v2541_v52  ;;  %v7400_v52 = vld [vmem:[%s17291_s0 + $0x120] sm:$0xff]  ;;  %v2605_v12 = vld [vmem:[%s17293_s3 + $0x508] sm:$0xff] }
 0x195   :  { %8115 = vmatpush1.bf16.msra.mxu0 %v8114_v7  ;;  %v8118_v24 = vpack.c.bf16 %v2662_v44, %v2654_v20  ;;  %v2597_v20 = vld [vmem:[%s17293_s3 + $0x4c8] sm:$0xff]  ;;  %v8002_v44 = vpack.c.bf16 %v2580_v30, %v2572_v59  ;;  %v12476_v48 = vpack.i.bf16 %v7400_v52, %v7396_v55  ;;  %v2628_v55 = vld [vmem:[%s17293_s3 + $0x5c0] sm:$0xff] }
 0x196   :  { %7987 = vmatpush1.bf16.msra.mxu1 %v7986_v63  ;;  %v12380_v18 = vpop.permute.xlu0 %9851  ;;  %8117 = vmatprep.subr.bf16.mxu0 %v8116_v28  ;;  %v2589_v28 = vld [vmem:[%s17293_s3 + $0x488] sm:$0xff] }
 0x197   :  { %10131 = vrot.lane.b32.xlu0 %v12348_v25, %s10413_s13  ;;  %17747 = vst [vmem:[#allocation19_spill] sm:$0xff] %v12380_v18  ;;  %7989 = vmatprep.subr.bf16.mxu1 %v7988_v47  ;;  %v12390_v0 = vpop.permute.xlu1 %9856  ;;  %v8000_v47 = vpack.c.bf16 %v2581_v13, %v2573_v54  ;;  %v8004_v21 = vpack.c.bf16 %v2597_v20, %v2589_v28  ;;  %v2613_v42 = vld [vmem:[%s17293_s3 + $0x548] sm:$0xff]  ;;  %v7404_v13 = vld [vmem:[%s17291_s0 + $0x140] sm:$0xff]  ;;  %v13292_v18 = vld [vmem:[%s17293_s3 + $0x9d8] sm:$0xff] }
 0x198   :  { %10136 = vrot.lane.b32.xlu1 %v11535_v3, %s10417_s23  ;;  %17748 = vst [vmem:[#allocation20_spill] sm:$0xff] %v12390_v0  ;;  %v2678_v3 = vld [vmem:[%s17293_s3 + $0x750] sm:$0xff]  ;;  %v8008_v32 = vpack.c.bf16 %v2613_v42, %v2605_v12  ;;  %v2629_v54 = vld [vmem:[%s17293_s3 + $0x5c8] sm:$0xff] }
 0x199   :  { %8119 = vmatpush1.bf16.msra.mxu0 %v8118_v24  ;;  %v8122_v45 = vpack.c.bf16 %v2678_v3, %v2670_v22  ;;  %v7405_v24 = vld [vmem:[%s17291_s0 + $0x148] sm:$0xff] }
 0x19a   :  { %7991 = vmatpush1.bf16.msra.mxu1 %v7990_v50  ;;  %v12412_v40 = vpop.permute.xlu0 %9861  ;;  %8121 = vmatprep.subr.bf16.mxu0 %v8120_v61  ;;  %v7406_v61 = vld [vmem:[%s17291_s0 + $0x150] sm:$0xff]  ;;  %v2645_v30 = vld [vmem:[%s17293_s3 + $0x648] sm:$0xff] }
 0x19b   :  { %10141 = vrot.lane.b32.xlu0 %v11559_v35, %s10417_s23  ;;  %17749 = vst [vmem:[#allocation21_spill] sm:$0xff] %v12412_v40  ;;  %7993 = vmatprep.subr.bf16.mxu1 %v7992_v49  ;;  %v7398_v35 = vld [vmem:[%s17291_s0 + $0x110] sm:$0xff]  ;;  %v12428_v39 = vpop.permute.xlu1 %9866  ;;  %v2588_v49 = vld [vmem:[%s17293_s3 + $0x480] sm:$0xff]  ;;  %v12520_v5 = vpack.i.bf16 %v7406_v61, %v7405_v24  ;;  %v7413_v20 = vld [vmem:[%s17291_s0 + $0x188] sm:$0xff] }
 0x19c   :  { %10146 = vrot.lane.b32.xlu1 %v11566_v37, %s10417_s23  ;;  %17750 = vst [vmem:[#allocation22_spill] sm:$0xff] %v12428_v39  ;;  %v7401_v37 = vld [vmem:[%s17291_s0 + $0x128] sm:$0xff]  ;;  %v12446_v1 = vpack.i.bf16 %v7398_v35, %v7397_v14  ;;  %v8006_v22 = vpack.c.bf16 %v2596_v19, %v2588_v49  ;;  %v2612_v14 = vld [vmem:[%s17293_s3 + $0x540] sm:$0xff]  ;;  %v7414_v19 = vld [vmem:[%s17291_s0 + $0x190] sm:$0xff] }
 0x19d   :  { %v12464_v7 = vpack.i.bf16 %v7402_v43, %v7401_v37  ;;  %8123 = vmatpush1.bf16.msra.mxu0 %v8122_v45  ;;  %v2621_v35 = vld [vmem:[%s17293_s3 + $0x588] sm:$0xff]  ;;  %v7408_v45 = vld [vmem:[%s17291_s0 + $0x160] sm:$0xff]  ;;  %v8010_v37 = vpack.c.bf16 %v2612_v14, %v2604_v41  ;;  %v12592_v41 = vpack.i.bf16 %v7414_v19, %v7413_v20  ;;  %v13195_v39 = vld [vmem:[%s17293_s3 + $0x890] sm:$0xff] }
 0x19e   :  { %7995 = vmatpush1.bf16.msra.mxu1 %v7994_v4  ;;  %v12444_v63 = vpop.permute.xlu0 %9871  ;;  %8125 = vmatprep.subr.bf16.mxu0 %v8124_v23  ;;  %v7409_v4 = vld [vmem:[%s17291_s0 + $0x168] sm:$0xff]  ;;  %v8012_v23 = vpack.c.bf16 %v2629_v54, %v2621_v35  ;;  %v12548_v59 = vpack.i.bf16 %v7408_v45, %v7404_v13  ;;  %v2644_v49 = vld [vmem:[%s17293_s3 + $0x640] sm:$0xff]  ;;  %v13200_v40 = vld [vmem:[%s17293_s3 + $0x8d0] sm:$0xff] }
 0x19f   :  { %10151 = vrot.lane.b32.xlu0 %v12127_v60, %s10414_s14  ;;  %17751 = vst [vmem:[#allocation23_spill] sm:$0xff] %v12444_v63  ;;  %7997 = vmatprep.subr.bf16.mxu1 %v7996_v34  ;;  %v12462_v6 = vpop.permute.xlu1 %9876  ;;  %v7410_v34 = vld [vmem:[%s17291_s0 + $0x170] sm:$0xff]  ;;  %v2653_v12 = vld [vmem:[%s17293_s3 + $0x688] sm:$0xff]  ;;  %v7412_v14 = vld [vmem:[%s17291_s0 + $0x180] sm:$0xff] }
 0x1a0   :  { %10156 = vrot.lane.b32.xlu1 %v12127_v60, %s10412_s7  ;;  %17752 = vst [vmem:[#allocation24_spill] sm:$0xff] %v12462_v6  ;;  %v12536_v43 = vpack.i.bf16 %v7410_v34, %v7409_v4  ;;  %v2661_v42 = vld [vmem:[%s17293_s3 + $0x6c8] sm:$0xff]  ;;  %v2652_v35 = vld [vmem:[%s17293_s3 + $0x680] sm:$0xff] }
 0x1a1   :  { %v7417_v61 = vld [vmem:[%s17291_s0 + $0x1a8] sm:$0xff]  ;;  %v8020_v34 = vpack.c.bf16 %v2661_v42, %v2653_v12  ;;  %v2660_v54 = vld [vmem:[%s17293_s3 + $0x6c0] sm:$0xff] }
 0x1a2   :  { %7999 = vmatpush1.bf16.msra.mxu1 %v7998_v36  ;;  %v12474_v50 = vpop.permute.xlu0 %9881  ;;  %v2620_v36 = vld [vmem:[%s17293_s3 + $0x580] sm:$0xff]  ;;  %v2693_v19 = vld [vmem:[%s17293_s3 + $0x7c8] sm:$0xff] }
 0x1a3   :  { %10161 = vrot.lane.b32.xlu0 %v12446_v1, %s10418_s11  ;;  %17753 = vst [vmem:[#allocation25_spill] sm:$0xff] %v12474_v50  ;;  %8001 = vmatprep.subr.bf16.mxu1 %v8000_v47  ;;  %v12486_v51 = vpop.permute.xlu1 %9886  ;;  %v8014_v28 = vpack.c.bf16 %v2628_v55, %v2620_v36  ;;  %v7416_v13 = vld [vmem:[%s17291_s0 + $0x1a0] sm:$0xff] }
 0x1a4   :  { %10166 = vrot.lane.b32.xlu1 %v12464_v7, %s10418_s11  ;;  %17754 = vst [vmem:[#allocation26_spill] sm:$0xff] %v12486_v51  ;;  %v2668_v20 = vld [vmem:[%s17293_s3 + $0x700] sm:$0xff] }
 0x1a6   :  { %8003 = vmatpush1.bf16.msra.mxu1 %v8002_v44  ;;  %v12502_v3 = vpop.permute.xlu0 %9891 }
 0x1a7   :  { %10171 = vrot.lane.b32.xlu0 %v12476_v48, %s10418_s11  ;;  %17755 = vst [vmem:[#allocation27_spill] sm:$0xff] %v12502_v3  ;;  %8005 = vmatprep.subr.bf16.mxu1 %v8004_v21  ;;  %v12518_v46 = vpop.permute.xlu1 %9896  ;;  %v2636_v21 = vld [vmem:[%s17293_s3 + $0x600] sm:$0xff] }
 0x1a8   :  { %10176 = vrot.lane.b32.xlu1 %v12198_v29, %s10414_s14  ;;  %17756 = vst [vmem:[#allocation28_spill] sm:$0xff] %v12518_v46 }
 0x1aa   :  { %8007 = vmatpush1.bf16.msra.mxu1 %v8006_v22  ;;  %v7418_v22 = vld [vmem:[%s17291_s0 + $0x1b0] sm:$0xff] }
 0x1ab   :  { %10181 = vrot.lane.b32.xlu0 %v12198_v29, %s10412_s7  ;;  %8009 = vmatprep.subr.bf16.mxu1 %v8008_v32  ;;  %v12544_v47 = vpop.permute.xlu0 %9901  ;;  %v2637_v29 = vld [vmem:[%s17293_s3 + $0x608] sm:$0xff]  ;;  %v8018_v32 = vpack.c.bf16 %v2644_v49, %v2636_v21  ;;  %v12608_v45 = vpack.i.bf16 %v7418_v22, %v7417_v61  ;;  %v2694_v21 = vld [vmem:[%s17293_s3 + $0x7d0] sm:$0xff] }
 0x1ac   :  { %17757 = vst [vmem:[#allocation29_spill] sm:$0xff] %v12544_v47  ;;  %10186 = vrot.lane.b32.xlu1 %v12520_v5, %s10418_s11  ;;  %v12556_v52 = vpop.permute.xlu1 %9906  ;;  %v8016_v44 = vpack.c.bf16 %v2645_v30, %v2637_v29  ;;  %v2686_v29 = vld [vmem:[%s17293_s3 + $0x790] sm:$0xff]  ;;  %v10220_v30 = vpack.i.bf16 %v7416_v13, %v7412_v14  ;;  %v2685_v49 = vld [vmem:[%s17293_s3 + $0x788] sm:$0xff] }
 0x1ad   :  { %17758 = vst [vmem:[#allocation30_spill] sm:$0xff] %v12556_v52  ;;  %v8126_v12 = vpack.c.bf16 %v2694_v21, %v2686_v29  ;;  %v7421_v61 = vld [vmem:[%s17291_s0 + $0x1c8] sm:$0xff]  ;;  %v7422_v22 = vld [vmem:[%s17291_s0 + $0x1d0] sm:$0xff]  ;;  %v8028_v13 = vpack.c.bf16 %v2693_v19, %v2685_v49  ;;  %v7420_v21 = vld [vmem:[%s17291_s0 + $0x1c0] sm:$0xff] }
 0x1ae   :  { %8011 = vmatpush1.bf16.msra.mxu1 %v8010_v37  ;;  %v2669_v37 = vld [vmem:[%s17293_s3 + $0x708] sm:$0xff]  ;;  %v12670_v29 = vpack.i.bf16 %v7422_v22, %v7421_v61  ;;  %v7424_v49 = vld [vmem:[%s17291_s0 + $0x1e0] sm:$0xff] }
 0x1af   :  { %10191 = vrot.lane.b32.xlu0 %v12536_v43, %s10418_s11  ;;  %8013 = vmatprep.subr.bf16.mxu1 %v8012_v23  ;;  %v2677_v23 = vld [vmem:[%s17293_s3 + $0x748] sm:$0xff] }
 0x1b0   :  { %10196 = vrot.lane.b32.xlu1 %v12548_v59, %s10418_s11  ;;  %v12580_v24 = vpop.permute.xlu0 %9911  ;;  %8127 = vmatpush1.bf16.msra.mxu0 %v8126_v12 }
 0x1b1   :  { %17759 = vst [vmem:[#allocation31_spill] sm:$0xff] %v12580_v24  ;;  %v12588_v4 = vpop.permute.xlu1 %9916 }
 0x1b2   :  { %17760 = vst [vmem:[#allocation32_spill] sm:$0xff] %v12588_v4  ;;  %8015 = vmatpush1.bf16.msra.mxu1 %v8014_v28  ;;  %v8024_v28 = vpack.c.bf16 %v2677_v23, %v2669_v37  ;;  %v2684_v37 = vld [vmem:[%s17293_s3 + $0x780] sm:$0xff] }
 0x1b3   :  { %10201 = vrot.lane.b32.xlu0 %v12276_v2, %s10414_s14  ;;  %8017 = vmatprep.subr.bf16.mxu1 %v8016_v44  ;;  %v2676_v44 = vld [vmem:[%s17293_s3 + $0x740] sm:$0xff] }
 0x1b4   :  { %10206 = vrot.lane.b32.xlu1 %v12276_v2, %s10412_s7  ;;  %v12616_v36 = vpop.permute.xlu0 %9921  ;;  %v8022_v2 = vpack.c.bf16 %v2660_v54, %v2652_v35  ;;  %v2711_v35 = vld [vmem:[%s17293_s3 + $0x858] sm:$0xff]  ;;  %v7425_v54 = vld [vmem:[%s17291_s0 + $0x1e8] sm:$0xff]  ;;  %v2692_v23 = vld [vmem:[%s17293_s3 + $0x7c0] sm:$0xff] }
 0x1b5   :  { %17761 = vst [vmem:[#allocation33_spill] sm:$0xff] %v12616_v36  ;;  %v12618_v55 = vpop.permute.xlu1 %9926  ;;  %v8030_v12 = vpack.c.bf16 %v2692_v23, %v2684_v37  ;;  %v7375_v37 = vld [vmem:[%s17291_s0 + $0x158] sm:$0xff] }
 0x1b6   :  { %17762 = vst [vmem:[#allocation34_spill] sm:$0xff] %v12618_v55  ;;  %8019 = vmatpush1.bf16.msra.mxu1 %v8018_v32  ;;  %v2703_v32 = vld [vmem:[%s17293_s3 + $0x818] sm:$0xff] }
 0x1b7   :  { %10211 = vrot.lane.b32.xlu0 %v12592_v41, %s10418_s11  ;;  %8021 = vmatprep.subr.bf16.mxu1 %v8020_v34  ;;  %v8026_v34 = vpack.c.bf16 %v2676_v44, %v2668_v20  ;;  %v2709_v20 = vld [vmem:[%s17293_s3 + $0x848] sm:$0xff]  ;;  %v7379_v23 = vld [vmem:[%s17291_s0 + $0x178] sm:$0xff] }
 0x1b8   :  { %10216 = vrot.lane.b32.xlu1 %v12608_v45, %s10418_s11  ;;  %v12642_v42 = vpop.permute.xlu0 %9931 }
 0x1b9   :  { %17763 = vst [vmem:[#allocation35_spill] sm:$0xff] %v12642_v42  ;;  %v12653_v14 = vpop.permute.xlu1 %9936 }
 0x1ba   :  { %17764 = vst [vmem:[#allocation36_spill] sm:$0xff] %v12653_v14  ;;  %8023 = vmatpush1.bf16.msra.mxu1 %v8022_v2  ;;  %v8128_v2 = vpack.c.bf16 %v2711_v35, %v2703_v32  ;;  %v12695_v32 = vpack.i.bf16 %v7424_v49, %v7420_v21 }
 0x1bb   :  { %10221 = vrot.lane.b32.xlu0 %v10220_v30, %s10418_s11  ;;  %8025 = vmatprep.subr.bf16.mxu1 %v8024_v28  ;;  %v7426_v30 = vld [vmem:[%s17291_s0 + $0x1f0] sm:$0xff]  ;;  %v2701_v28 = vld [vmem:[%s17293_s3 + $0x808] sm:$0xff] }
 0x1bc   :  { %10226 = vrot.lane.b32.xlu1 %v12348_v25, %s10414_s14  ;;  %v12681_v44 = vpop.permute.xlu0 %9941  ;;  %8129 = vmatprep.subr.bf16.mxu0 %v8128_v2  ;;  %v10240_v61 = vpack.i.bf16 %v7426_v30, %v7425_v54  ;;  %v8032_v22 = vpack.c.bf16 %v2709_v20, %v2701_v28 }
 0x1bd   :  { %17765 = vst [vmem:[#allocation37_spill] sm:$0xff] %v12681_v44  ;;  %v12689_v19 = vpop.permute.xlu1 %9946 }
 0x1be   :  { %17766 = vst [vmem:[#allocation38_spill] sm:$0xff] %v12689_v19  ;;  %8027 = vmatpush1.bf16.msra.mxu1 %v8026_v34 }
 0x1bf   :  { %10231 = vrot.lane.b32.xlu0 %v12348_v25, %s10412_s7  ;;  %8029 = vmatprep.subr.bf16.mxu1 %v8028_v13 }
 0x1c0   :  { %10236 = vrot.lane.b32.xlu1 %v12670_v29, %s10418_s11  ;;  %v12697_v35 = vpop.permute.xlu0 %9951 }
 0x1c1   :  { %17767 = vst [vmem:[#allocation39_spill] sm:$0xff] %v12697_v35  ;;  %v12699_v10 = vpop.permute.xlu1 %9956 }
 0x1c2   :  { %17768 = vst [vmem:[#allocation40_spill] sm:$0xff] %v12699_v10  ;;  %8031 = vmatpush1.bf16.msra.mxu1 %v8030_v12 }
 0x1c3   :  { %10241 = vrot.lane.b32.xlu0 %v10240_v61, %s10418_s11  ;;  %8033 = vmatprep.subr.bf16.mxu1 %v8032_v22 }
 0x1c4   :  { %10246 = vrot.lane.b32.xlu1 %v12695_v32, %s10418_s11  ;;  %v12704_v25 = vpop.permute.xlu0 %9961 }
 0x1c5   :  { %17769 = vst [vmem:[#allocation41_spill] sm:$0xff] %v12704_v25  ;;  %v12706_v34 = vpop.permute.xlu1 %9966 }
 0x1c6   :  { %v17374_v13 = vunpack.i.l.bf16 %v12706_v34 }
 0x1c7   :  { %10251 = vrot.lane.b32.xlu0 %v12127_v60, %s10417_s23 }
 0x1c8   :  { %10256 = vrot.lane.b32.xlu1 %v12127_v60, %s10415_s17  ;;  %v12712_v54 = vpop.permute.xlu0 %9971  ;;  %v12726_v60 = vpack.i.bf16 %v7379_v23, %v7375_v37 }
 0x1c9   :  { %v17372_v2 = vunpack.i.l.bf16 %v12712_v54  ;;  %v9977_v30 = vpop.permute.xlu1 %9976  ;;  %v17843_v33 = vunpack.i.h.bf16 %v12712_v54 }
 0x1ca   :  { %v9979_v28 = vunpack.i.h.bf16 %v9977_v30  ;;  %v9978_v20 = vunpack.i.l.bf16 %v9977_v30 }
 0x1cb   :  { %10261 = vrot.lane.b32.xlu0 %v12446_v1, %s10419_s22  ;;  %v7323_v1 = vld [vmem:[%s17291_s0 + $0x1b8] sm:$0xff] }
 0x1cc   :  { %10266 = vrot.lane.b32.xlu1 %v12464_v7, %s10419_s22  ;;  %v12728_v21 = vpop.permute.xlu0 %9981  ;;  %v12733_v49 = vsel %vm796_vm3, %v9979_v28, %v17372_v2  ;;  %v12738_v12 = vsel %vm796_vm3, %v9978_v20, %v17374_v13 }
 0x1cd   :  { %17770 = vst [vmem:[#allocation42_spill] sm:$0xff] %v12733_v49  ;;  %17771 = vst [vmem:[#allocation43_spill] sm:$0xff] %v12738_v12  ;;  %v12742_v61 = vpop.permute.xlu1 %9986  ;;  %v17371_v7 = vunpack.i.l.bf16 %v12728_v21  ;;  %v17849_v58 = vunpack.i.h.bf16 %v12728_v21 }
 0x1ce   :  { %17772 = vst [vmem:[#allocation44_spill] sm:$0xff] %v12742_v61  ;;  %v17373_v22 = vunpack.i.l.bf16 %v12742_v61  ;;  %v17852_v17 = vunpack.i.h.bf16 %v12742_v61  ;;  %v17853_v62 = vunpack.i.l.bf16 %v12742_v61 }
 0x1cf   :  { %10271 = vrot.lane.b32.xlu0 %v12476_v48, %s10419_s22 }
 0x1d0   :  { %10276 = vrot.lane.b32.xlu1 %v12726_v60, %s10417_s23  ;;  %v9992_v37 = vpop.permute.xlu0 %9991  ;;  %v13249_v56 = vsel %vm796_vm3, %v17853_v62, %v17852_v17  ;;  %v13270_v62 = vld [vmem:[%s17293_s3 + $0x9c8] sm:$0xff] }
 0x1d1   :  { %v9994_v23 = vunpack.i.h.bf16 %v9992_v37  ;;  %v9993_v30 = vunpack.i.l.bf16 %v9992_v37  ;;  %v12750_v28 = vpop.permute.xlu1 %9996  ;;  %v7319_v37 = vld [vmem:[%s17291_s0 + $0x198] sm:$0xff]  ;;  %17854 = vst [vmem:[#allocation114_spill] sm:$0xff] %v13249_v56 }
 0x1d2   :  { %17773 = vst [vmem:[#allocation45_spill] sm:$0xff] %v12750_v28  ;;  %v17379_v2 = vunpack.i.l.bf16 %v12750_v28  ;;  %v12780_v12 = vpack.i.bf16 %v7323_v1, %v7319_v37  ;;  %v7448_v37 = vld [vmem:[%s17291_s0 + $0x1a0] sm:$0xff] }
 0x1d3   :  { %10281 = vrot.lane.b32.xlu0 %v12726_v60, %s10415_s17  ;;  %v12757_v20 = vsel %vm796_vm3, %v9993_v30, %v17371_v7  ;;  %v12762_v48 = vsel %vm796_vm3, %v9994_v23, %v17373_v22 }
 0x1d4   :  { %17774 = vst [vmem:[#allocation46_spill] sm:$0xff] %v12757_v20  ;;  %17775 = vst [vmem:[#allocation47_spill] sm:$0xff] %v12762_v48  ;;  %10286 = vrot.lane.b32.xlu1 %v12520_v5, %s10419_s22  ;;  %v12774_v7 = vpop.permute.xlu0 %10001 }
 0x1d5   :  { %17776 = vst [vmem:[#allocation48_spill] sm:$0xff] %v12774_v7  ;;  %v17378_v23 = vunpack.i.l.bf16 %v12774_v7  ;;  %v10007_v22 = vpop.permute.xlu1 %10006 }
 0x1d6   :  { %v10009_v13 = vunpack.i.h.bf16 %v10007_v22  ;;  %v10008_v5 = vunpack.i.l.bf16 %v10007_v22 }
 0x1d7   :  { %10291 = vrot.lane.b32.xlu0 %v12536_v43, %s10419_s22  ;;  %v7391_v43 = vld [vmem:[%s17291_s0 + $0x1d8] sm:$0xff] }
 0x1d8   :  { %10296 = vrot.lane.b32.xlu1 %v12548_v59, %s10419_s22  ;;  %v12784_v49 = vpop.permute.xlu0 %10011  ;;  %v12789_v30 = vsel %vm796_vm3, %v10009_v13, %v17378_v23  ;;  %v12794_v20 = vsel %vm796_vm3, %v10008_v5, %v17379_v2  ;;  %v7444_v13 = vld [vmem:[%s17291_s0 + $0x180] sm:$0xff]  ;;  %v7395_v23 = vld [vmem:[%s17291_s0 + $0x1f8] sm:$0xff] }
 0x1d9   :  { %17777 = vst [vmem:[#allocation49_spill] sm:$0xff] %v12784_v49  ;;  %17778 = vst [vmem:[#allocation50_spill] sm:$0xff] %v12789_v30  ;;  %v12798_v1 = vpop.permute.xlu1 %10016  ;;  %v17782_v30 = vunpack.i.l.bf16 %v12784_v49 }
 0x1da   :  { %17779 = vst [vmem:[#allocation51_spill] sm:$0xff] %v12794_v20  ;;  %17780 = vst [vmem:[#allocation52_spill] sm:$0xff] %v12798_v1  ;;  %v10320_v20 = vpack.i.bf16 %v7448_v37, %v7444_v13  ;;  %v17784_v25 = vunpack.i.l.bf16 %v12798_v1 }
 0x1db   :  { %10301 = vrot.lane.b32.xlu0 %v12780_v12, %s10417_s23 }
 0x1dc   :  { %10306 = vrot.lane.b32.xlu1 %v12780_v12, %s10415_s17  ;;  %v10022_v5 = vpop.permute.xlu0 %10021 }
 0x1dd   :  { %v10024_v2 = vunpack.i.h.bf16 %v10022_v5  ;;  %v10023_v22 = vunpack.i.l.bf16 %v10022_v5  ;;  %v12818_v59 = vpop.permute.xlu1 %10026  ;;  %v12834_v5 = vpack.i.bf16 %v7395_v23, %v7391_v43  ;;  %v7339_v23 = vld [vmem:[%s17291_s0 + $0x138] sm:$0xff] }
 0x1de   :  { %17781 = vst [vmem:[#allocation53_spill] sm:$0xff] %v12818_v59  ;;  %v17388_v13 = vunpack.i.l.bf16 %v12818_v59 }
 0x1df   :  { %10311 = vrot.lane.b32.xlu0 %v12592_v41, %s10419_s22  ;;  %v12825_v48 = vsel %vm997_vm4, %v10023_v22, %v17782_v30  ;;  %v12830_v19 = vsel %vm997_vm4, %v10024_v2, %v17784_v25 }
 0x1e0   :  { %17783 = vst [vmem:[#allocation54_spill] sm:$0xff] %v12825_v48  ;;  %17785 = vst [vmem:[#allocation55_spill] sm:$0xff] %v12830_v19  ;;  %10316 = vrot.lane.b32.xlu1 %v12608_v45, %s10419_s22  ;;  %v12838_v41 = vpop.permute.xlu0 %10031 }
 0x1e1   :  { %17786 = vst [vmem:[#allocation56_spill] sm:$0xff] %v12838_v41  ;;  %v17387_v30 = vunpack.i.l.bf16 %v12838_v41  ;;  %v10037_v22 = vpop.permute.xlu1 %10036 }
 0x1e2   :  { %v10039_v37 = vunpack.i.h.bf16 %v10037_v22  ;;  %v10038_v4 = vunpack.i.l.bf16 %v10037_v22 }
 0x1e3   :  { %10321 = vrot.lane.b32.xlu0 %v10320_v20, %s10419_s22 }
 0x1e4   :  { %10326 = vrot.lane.b32.xlu1 %v12834_v5, %s10417_s23  ;;  %v12845_v45 = vpop.permute.xlu0 %10041  ;;  %v12850_v25 = vsel %vm997_vm4, %v10039_v37, %v17387_v30  ;;  %v12855_v2 = vsel %vm997_vm4, %v10038_v4, %v17388_v13  ;;  %v7335_v4 = vld [vmem:[%s17291_s0 + $0x118] sm:$0xff] }
 0x1e5   :  { %17787 = vst [vmem:[#allocation57_spill] sm:$0xff] %v12845_v45  ;;  %17788 = vst [vmem:[#allocation58_spill] sm:$0xff] %v12850_v25  ;;  %v12859_v43 = vpop.permute.xlu1 %10046  ;;  %v17393_v20 = vunpack.i.l.bf16 %v12845_v45  ;;  %v10355_v25 = vpack.i.bf16 %v7339_v23, %v7335_v4 }
 0x1e6   :  { %17789 = vst [vmem:[#allocation59_spill] sm:$0xff] %v12855_v2  ;;  %17790 = vst [vmem:[#allocation60_spill] sm:$0xff] %v12859_v43 }
 0x1e7   :  { %10331 = vrot.lane.b32.xlu0 %v12834_v5, %s10415_s17 }
 0x1e8   :  { %10336 = vrot.lane.b32.xlu1 %v12670_v29, %s10419_s22  ;;  %v17793_v29 = vunpack.i.l.bf16 %v12859_v43 }
 0x1e9   :  { %v10052_v37 = vpop.permute.xlu0 %10051 }
 0x1ea   :  { %v10054_v42 = vunpack.i.h.bf16 %v10052_v37  ;;  %v10053_v30 = vunpack.i.l.bf16 %v10052_v37  ;;  %v12873_v13 = vpop.permute.xlu1 %10056 }
 0x1eb   :  { %17791 = vst [vmem:[#allocation61_spill] sm:$0xff] %v12873_v13 }
 0x1ec   :  { %v12878_v22 = vsel %vm997_vm4, %v10053_v30, %v17393_v20  ;;  %v12883_v2 = vsel %vm997_vm4, %v10054_v42, %v17793_v29  ;;  %10346 = vrot.lane.b32.xlu1 %v12695_v32, %s10419_s22  ;;  %v7457_v30 = vld [vmem:[%s17291_s0 + $0x1e8] sm:$0xff]  ;;  %v7458_v42 = vld [vmem:[%s17291_s0 + $0x1f0] sm:$0xff] }
 0x1ed   :  { %17792 = vst [vmem:[#allocation62_spill] sm:$0xff] %v12878_v22  ;;  %17794 = vst [vmem:[#allocation63_spill] sm:$0xff] %v12883_v2  ;;  %v12889_v37 = vpop.permute.xlu0 %10061  ;;  %v10340_v32 = vpack.i.bf16 %v7458_v42, %v7457_v30  ;;  %v17798_v22 = vunpack.i.l.bf16 %v12873_v13 }
 0x1ee   :  { %17795 = vst [vmem:[#allocation64_spill] sm:$0xff] %v12889_v37  ;;  %v17396_v29 = vunpack.i.l.bf16 %v12889_v37  ;;  %v10067_v20 = vpop.permute.xlu1 %10066 }
 0x1ef   :  { %v10069_v23 = vunpack.i.h.bf16 %v10067_v20  ;;  %v10068_v4 = vunpack.i.l.bf16 %v10067_v20  ;;  %10341 = vrot.lane.b32.xlu0 %v10340_v32, %s10419_s22 }
 0x1f0   :  { %10356 = vrot.lane.b32.xlu1 %v10355_v25, %s10416_s18 }
 0x1f1   :  { %v12901_v48 = vpop.permute.xlu0 %10071  ;;  %v12906_v19 = vsel %vm997_vm4, %v10069_v23, %v17396_v29  ;;  %v12911_v2 = vsel %vm997_vm4, %v10068_v4, %v17798_v22  ;;  %v7407_v23 = vld [vmem:[%s17291_s0 + $0x158] sm:$0xff] }
 0x1f2   :  { %17796 = vst [vmem:[#allocation65_spill] sm:$0xff] %v12901_v48  ;;  %17797 = vst [vmem:[#allocation66_spill] sm:$0xff] %v12906_v19  ;;  %v12915_v20 = vpop.permute.xlu1 %10076  ;;  %v7411_v22 = vld [vmem:[%s17291_s0 + $0x178] sm:$0xff]  ;;  %v13236_v48 = vld [vmem:[%s17293_s3 + $0x900] sm:$0xff] }
 0x1f3   :  { %17799 = vst [vmem:[#allocation67_spill] sm:$0xff] %v12911_v2  ;;  %17800 = vst [vmem:[#allocation68_spill] sm:$0xff] %v12915_v20  ;;  %10351 = vrot.lane.b32.xlu0 %v10355_v25, %s10418_s11  ;;  %v10360_v29 = vpack.i.bf16 %v7411_v22, %v7407_v23  ;;  %v17804_v19 = vunpack.i.l.bf16 %v12915_v20 }
 0x1f4   :  { %10366 = vrot.lane.b32.xlu1 %v12726_v60, %s10416_s18 }
 0x1f5   :  { %v12920_v42 = vpop.permute.xlu0 %10081 }
 0x1f6   :  { %17801 = vst [vmem:[#allocation69_spill] sm:$0xff] %v12920_v42  ;;  %v17400_v4 = vunpack.i.l.bf16 %v12920_v42  ;;  %v10087_v30 = vpop.permute.xlu1 %10086  ;;  %v17879_v42 = vunpack.i.l.bf16 %v12798_v1 }
 0x1f7   :  { %v10089_v2 = vunpack.i.h.bf16 %v10087_v30  ;;  %v10088_v60 = vunpack.i.l.bf16 %v10087_v30  ;;  %10361 = vrot.lane.b32.xlu0 %v10360_v29, %s10418_s11  ;;  %v7415_v30 = vld [vmem:[%s17291_s0 + $0x198] sm:$0xff] }
 0x1f8   :  { %10376 = vrot.lane.b32.xlu1 %v12780_v12, %s10416_s18  ;;  %v7419_v12 = vld [vmem:[%s17291_s0 + $0x1b8] sm:$0xff] }
 0x1f9   :  { %v12933_v25 = vpop.permute.xlu0 %10091  ;;  %v12938_v32 = vsel %vm1198_vm5, %v10089_v2, %v17400_v4  ;;  %v12943_v47 = vsel %vm1198_vm5, %v10088_v60, %v17804_v19  ;;  %v12955_v2 = vpack.i.bf16 %v7419_v12, %v7415_v30 }
 0x1fa   :  { %17802 = vst [vmem:[#allocation70_spill] sm:$0xff] %v12933_v25  ;;  %17803 = vst [vmem:[#allocation71_spill] sm:$0xff] %v12938_v32  ;;  %v12953_v22 = vpop.permute.xlu1 %10096  ;;  %v17850_v25 = vunpack.i.l.bf16 %v12728_v21 }
 0x1fb   :  { %17805 = vst [vmem:[#allocation72_spill] sm:$0xff] %v12943_v47  ;;  %17806 = vst [vmem:[#allocation73_spill] sm:$0xff] %v12953_v22  ;;  %10371 = vrot.lane.b32.xlu0 %v12955_v2, %s10418_s11  ;;  %v17409_v60 = vunpack.i.l.bf16 %v12953_v22  ;;  %v17878_v22 = vunpack.i.h.bf16 %v12798_v1 }
 0x1fc   :  { %10386 = vrot.lane.b32.xlu1 %v12834_v5, %s10416_s18  ;;  %v13220_v9 = vsel %vm796_vm3, %v17850_v25, %v17849_v58  ;;  %v13241_v58 = vld [vmem:[%s17293_s3 + $0x940] sm:$0xff] }
 0x1fd   :  { %v12961_v19 = vpop.permute.xlu0 %10101  ;;  %17851 = vst [vmem:[#allocation113_spill] sm:$0xff] %v13220_v9  ;;  %v17884_v1 = vpack.c.bf16 %v13241_v58, %v13236_v48  ;;  %v13611_v48 = vld [vmem:[%s17293_s3 + $0x28] sm:$0xff] }
 0x1fe   :  { %17807 = vst [vmem:[#allocation74_spill] sm:$0xff] %v12961_v19  ;;  %v17408_v4 = vunpack.i.l.bf16 %v12961_v19  ;;  %v10107_v51 = vpop.permute.xlu1 %10106  ;;  %v13522_v19 = vld [vmem:[%s17293_s3 + $0xb10] sm:$0xff] }
 0x1ff   :  { %v10109_v63 = vunpack.i.h.bf16 %v10107_v51  ;;  %v10108_v0 = vunpack.i.l.bf16 %v10107_v51  ;;  %10381 = vrot.lane.b32.xlu0 %v12834_v5, %s10418_s11 }
 0x200   :  { %10396 = vrot.lane.b32.xlu1 %v10360_v29, %s10419_s22 }
 0x201   :  { %v12968_v30 = vpop.permute.xlu0 %10111  ;;  %v12973_v12 = vsel %vm1198_vm5, %v10109_v63, %v17408_v4  ;;  %v12978_v23 = vsel %vm1198_vm5, %v10108_v0, %v17409_v60 }
 0x202   :  { %17808 = vst [vmem:[#allocation75_spill] sm:$0xff] %v12968_v30  ;;  %17809 = vst [vmem:[#allocation76_spill] sm:$0xff] %v12973_v12  ;;  %v12982_v47 = vpop.permute.xlu1 %10116 }
 0x203   :  { %17810 = vst [vmem:[#allocation77_spill] sm:$0xff] %v12978_v23  ;;  %17811 = vst [vmem:[#allocation78_spill] sm:$0xff] %v12982_v47  ;;  %v17418_v29 = vunpack.i.l.bf16 %v12982_v47  ;;  %v13505_v47 = vld [vmem:[%s17293_s3 + $0xb00] sm:$0xff] }
 0x205   :  { %v12984_v5 = vpop.permute.xlu0 %10121 }
 0x206   :  { %17812 = vst [vmem:[#allocation79_spill] sm:$0xff] %v12984_v5  ;;  %v17415_v32 = vunpack.i.l.bf16 %v12984_v5  ;;  %v10127_v10 = vpop.permute.xlu1 %10126 }
 0x207   :  { %v10129_v35 = vunpack.i.h.bf16 %v10127_v10  ;;  %v10128_v63 = vunpack.i.l.bf16 %v10127_v10 }
 0x209   :  { %v12988_v4 = vpop.permute.xlu0 %10131  ;;  %v12993_v0 = vsel %vm1198_vm5, %v10129_v35, %v17415_v32  ;;  %v12998_v51 = vsel %vm1198_vm5, %v10128_v63, %v17418_v29 }
 0x20a   :  { %17813 = vst [vmem:[#allocation80_spill] sm:$0xff] %v12988_v4  ;;  %17814 = vst [vmem:[#allocation81_spill] sm:$0xff] %v12993_v0  ;;  %v13002_v23 = vpop.permute.xlu1 %10136  ;;  %v7532_v12 = vpop.f32.mrb[0].mxu1 }
 0x20b   :  { %17815 = vst [vmem:[#allocation82_spill] sm:$0xff] %v12998_v51  ;;  %17816 = vst [vmem:[#allocation83_spill] sm:$0xff] %v13002_v23  ;;  %v7533_v38 = vpop.f32.mrb[1].mxu1  ;;  %v17426_v14 = vunpack.i.l.bf16 %v13002_v23  ;;  %v13434_v23 = vld [vmem:[%s17293_s3 + $0xad8] sm:$0xff] }
 0x20c   :  { %v13004_v10 = vadd.f32 %v7533_v38, %v7532_v12 }
 0x20d   :  { %v13006_v44 = vpop.permute.xlu0 %10141 }
 0x20e   :  { %17817 = vst [vmem:[#allocation84_spill] sm:$0xff] %v13006_v44  ;;  %v17424_v35 = vunpack.i.l.bf16 %v13006_v44  ;;  %v10147_v32 = vpop.permute.xlu1 %10146  ;;  %v7535_v55 = vpop.f32.mrb[2].mxu1 }
 0x20f   :  { %v10149_v36 = vunpack.i.h.bf16 %v10147_v32  ;;  %v10148_v63 = vunpack.i.l.bf16 %v10147_v32  ;;  %v7536_v29 = vpop.f32.mrb[3].mxu1 }
 0x210   :  { %v13010_v11 = vadd.f32 %v7536_v29, %v7535_v55 }
 0x211   :  { %v13012_v60 = vpop.permute.xlu0 %10151  ;;  %v13017_v38 = vsel %vm1198_vm5, %v10149_v36, %v17424_v35  ;;  %v13022_v12 = vsel %vm1198_vm5, %v10148_v63, %v17426_v14 }
 0x212   :  { %17818 = vst [vmem:[#allocation85_spill] sm:$0xff] %v13012_v60  ;;  %17819 = vst [vmem:[#allocation86_spill] sm:$0xff] %v13017_v38  ;;  %v13026_v0 = vpop.permute.xlu1 %10156  ;;  %v7538_v32 = vpop.f32.mrb[4].mxu1 }
 0x213   :  { %17820 = vst [vmem:[#allocation87_spill] sm:$0xff] %v13022_v12  ;;  %17821 = vst [vmem:[#allocation88_spill] sm:$0xff] %v13026_v0  ;;  %v7539_v55 = vpop.f32.mrb[5].mxu1 }
 0x214   :  { %v13028_v29 = vadd.f32 %v7539_v55, %v7538_v32 }
 0x215   :  { %v13030_v24 = vpop.permute.xlu0 %10161 }
 0x216   :  { %17822 = vst [vmem:[#allocation89_spill] sm:$0xff] %v13028_v29  ;;  %17823 = vst [vmem:[#allocation90_spill] sm:$0xff] %v13030_v24  ;;  %v13032_v60 = vpop.permute.xlu1 %10166  ;;  %v7541_v36 = vpop.f32.mrb[6].mxu1  ;;  %v17433_v52 = vunpack.i.l.bf16 %v13030_v24  ;;  %v13489_v24 = vld [vmem:[%s17293_s3 + $0xb18] sm:$0xff]  ;;  %v17885_v29 = vpack.c.bf16 %v13260_v31, %v13255_v27 }
 0x217   :  { %17824 = vst [vmem:[#allocation91_spill] sm:$0xff] %v13032_v60  ;;  %v7542_v35 = vpop.f32.mrb[7].mxu1  ;;  %v17436_v63 = vunpack.i.l.bf16 %v13032_v60 }
 0x218   :  { %v13036_v14 = vadd.f32 %v7542_v35, %v7541_v36 }
 0x219   :  { %v10172_v46 = vpop.permute.xlu0 %10171 }
 0x21a   :  { %17825 = vst [vmem:[#allocation92_spill] sm:$0xff] %v13036_v14  ;;  %v10174_v51 = vunpack.i.h.bf16 %v10172_v46  ;;  %v10173_v12 = vunpack.i.l.bf16 %v10172_v46  ;;  %v13038_v38 = vpop.permute.xlu1 %10176  ;;  %v17876_v14 = vunpack.i.l.bf16 %v12784_v49 }
 0x21b   :  { %17826 = vst [vmem:[#allocation93_spill] sm:$0xff] %v13038_v38 }
 0x21c   :  { %v13043_v32 = vsel %vm1399_vm6, %v10173_v12, %v17433_v52  ;;  %v13048_v55 = vsel %vm1399_vm6, %v10174_v51, %v17436_v63 }
 0x21d   :  { %17827 = vst [vmem:[#allocation94_spill] sm:$0xff] %v13043_v32  ;;  %17828 = vst [vmem:[#allocation95_spill] sm:$0xff] %v13048_v55  ;;  %v13052_v35 = vpop.permute.xlu0 %10181  ;;  %v7435_v55 = vld [vmem:[%s17291_s0 + $0x138] sm:$0xff] }
 0x21e   :  { %17829 = vst [vmem:[#allocation96_spill] sm:$0xff] %v13052_v35  ;;  %v13054_v36 = vpop.permute.xlu1 %10186 }
 0x21f   :  { %17830 = vst [vmem:[#allocation97_spill] sm:$0xff] %v13054_v36  ;;  %v17441_v38 = vunpack.i.l.bf16 %v13054_v36 }
 0x221   :  { %v13056_v46 = vpop.permute.xlu0 %10191 }
 0x222   :  { %17831 = vst [vmem:[#allocation98_spill] sm:$0xff] %v13056_v46  ;;  %v17439_v3 = vunpack.i.l.bf16 %v13056_v46  ;;  %v10197_v12 = vpop.permute.xlu1 %10196 }
 0x223   :  { %v10199_v52 = vunpack.i.h.bf16 %v10197_v12  ;;  %v10198_v26 = vunpack.i.l.bf16 %v10197_v12  ;;  %v7431_v12 = vld [vmem:[%s17291_s0 + $0x118] sm:$0xff] }
 0x225   :  { %v13060_v4 = vpop.permute.xlu0 %10201  ;;  %v13065_v51 = vsel %vm1399_vm6, %v10199_v52, %v17439_v3  ;;  %v13070_v0 = vsel %vm1399_vm6, %v10198_v26, %v17441_v38  ;;  %v10390_v52 = vpack.i.bf16 %v7435_v55, %v7431_v12  ;;  %v17450_v26 = vunpack.i.h.bf16 %v12706_v34  ;;  %v7455_v12 = vld [vmem:[%s17291_s0 + $0x1d8] sm:$0xff] }
 0x226   :  { %17832 = vst [vmem:[#allocation99_spill] sm:$0xff] %v13060_v4  ;;  %17833 = vst [vmem:[#allocation100_spill] sm:$0xff] %v13065_v51  ;;  %v13074_v32 = vpop.permute.xlu1 %10206  ;;  %v10421_v55 = vmov 0  }
 0x227   :  { %17834 = vst [vmem:[#allocation101_spill] sm:$0xff] %v13070_v0  ;;  %17835 = vst [vmem:[#allocation102_spill] sm:$0xff] %v13074_v32  ;;  %10391 = vrot.lane.b32.xlu0 %v10390_v52, %s10419_s22  ;;  %v7459_v52 = vld [vmem:[%s17291_s0 + $0x1f8] sm:$0xff]  ;;  %10411 = vset.pattern.permute.xlu1 %v10421_v55 }
 0x228   :  { %10410 = vset.pattern.permute.xlu0 %v10421_v55  ;;  %v2828_v55 = vld [vmem:[%s17294_s2] sm:$0xff]  ;;  %v10405_v6 = vpack.i.bf16 %v7459_v52, %v7455_v12  ;;  %v13150_v52 = vld [vmem:[%s17293_s3 + $0x810] sm:$0xff] }
 0x229   :  { %v13082_v3 = vpop.permute.xlu0 %10211  ;;  %v13140_v12 = vld [vmem:[%s17293_s3 + $0x800] sm:$0xff] }
 0x22a   :  { %17836 = vst [vmem:[#allocation103_spill] sm:$0xff] %v13082_v3  ;;  %v13084_v4 = vpop.permute.xlu1 %10216  ;;  %v17451_v38 = vunpack.i.l.bf16 %v13082_v3  ;;  %10406 = vrot.lane.b32.xlu1 %v10405_v6, %s10419_s22  ;;  %v13160_v6 = vld [vmem:[%s17293_s3 + $0x888] sm:$0xff] }
 0x22b   :  { %17837 = vst [vmem:[#allocation104_spill] sm:$0xff] %v13084_v4  ;;  %v17452_v0 = vunpack.i.l.bf16 %v13084_v4  ;;  %10401 = vrot.lane.b32.xlu0 %v12955_v2, %s10419_s22 }
 0x22d   :  { %v10222_v51 = vpop.permute.xlu0 %10221 }
 0x22e   :  { %v10224_v32 = vunpack.i.h.bf16 %v10222_v51  ;;  %v10223_v35 = vunpack.i.l.bf16 %v10222_v51  ;;  %v13091_v50 = vpop.permute.xlu1 %10226  ;;  %v17839_v51 = vunpack.i.l.bf16 %v12706_v34 }
 0x22f   :  { %17838 = vst [vmem:[#allocation105_spill] sm:$0xff] %v13091_v50  ;;  %2834 = vperm.xlu0 %10410, %v2828_v55   ;;  %v13155_v55 = vld [vmem:[%s17293_s3 + $0x850] sm:$0xff] }
 0x230   :  { %v13106_v63 = vsel %vm796_vm3, %v17839_v51, %v17450_v26  ;;  %v13111_v2 = vsel %vm1399_vm6, %v10223_v35, %v17451_v38  ;;  %v13116_v50 = vsel %vm1399_vm6, %v10224_v32, %v17452_v0  ;;  %v17844_v51 = vunpack.i.l.bf16 %v12712_v54  ;;  %v13170_v32 = vld [vmem:[%s17293_s3 + $0x898] sm:$0xff]  ;;  %v2829_v35 = vld [vmem:[%s17294_s2 + $0x8] sm:$0xff] }
 0x231   :  { %17840 = vst [vmem:[#allocation106_spill] sm:$0xff] %v13106_v63  ;;  %17841 = vst [vmem:[#allocation107_spill] sm:$0xff] %v13111_v2  ;;  %v13129_v38 = vpop.permute.xlu0 %10231  ;;  %v13175_v0 = vld [vmem:[%s17293_s3 + $0x8d8] sm:$0xff]  ;;  %v13205_v2 = vld [vmem:[%s17293_s3 + $0x908] sm:$0xff]  ;;  %2839 = vperm.xlu1 %10411, %v2829_v35   ;;  %v8130_v4 = vpack.c.bf16 %v13155_v55, %v13150_v52  ;;  %v8134_v52 = vpack.c.bf16 %v13200_v40, %v13195_v39 }
 0x232   :  { %17842 = vst [vmem:[#allocation108_spill] sm:$0xff] %v13116_v50  ;;  %v13126_v26 = vsel %vm796_vm3, %v17844_v51, %v17843_v33  ;;  %17846 = vst [vmem:[#allocation110_spill] sm:$0xff] %v13129_v38  ;;  %v13134_v30 = vpop.permute.xlu1 %10236  ;;  %v13145_v33 = vld [vmem:[%s17293_s3 + $0x840] sm:$0xff]  ;;  %v13165_v51 = vld [vmem:[%s17293_s3 + $0x8c8] sm:$0xff]  ;;  %v8132_v46 = vpack.c.bf16 %v13175_v0, %v13170_v32 }
 0x233   :  { %17845 = vst [vmem:[#allocation109_spill] sm:$0xff] %v13126_v26  ;;  %17847 = vst [vmem:[#allocation111_spill] sm:$0xff] %v13134_v30  ;;  %v13185_v50 = vld [vmem:[%s17293_s3 + $0x880] sm:$0xff]  ;;  %v13210_v63 = vld [vmem:[%s17293_s3 + $0x948] sm:$0xff]  ;;  %v8034_v53 = vpack.c.bf16 %v13145_v33, %v13140_v12  ;;  %v8036_v3 = vpack.c.bf16 %v13165_v51, %v13160_v6  ;;  %v17857_v40 = vunpack.i.l.bf16 %v13134_v30 }
 0x234   :  { %v13190_v38 = vld [vmem:[%s17293_s3 + $0x8c0] sm:$0xff]  ;;  %v13231_v26 = vld [vmem:[%s17293_s3 + $0x958] sm:$0xff]  ;;  %v13265_v35 = vld [vmem:[%s17293_s3 + $0x988] sm:$0xff]  ;;  %v8040_v36 = vpack.c.bf16 %v13210_v63, %v13205_v2  ;;  %v17863_v63 = vunpack.i.h.bf16 %v12750_v28  ;;  %v17864_v2 = vunpack.i.l.bf16 %v12750_v28 }
 0x235   :  { %v13213_v15 = vpop.permute.xlu0 %10241  ;;  %v13297_v12 = vld [vmem:[%s17293_s3 + $0x980] sm:$0xff]  ;;  %v8038_v32 = vpack.c.bf16 %v13190_v38, %v13185_v50  ;;  %v13313_v55 = vld [vmem:[%s17293_s3 + $0x990] sm:$0xff]  ;;  %v13323_v51 = vld [vmem:[%s17293_s3 + $0xa08] sm:$0xff]  ;;  %v17893_v61 = vpack.c.bf16 %v13270_v62, %v13265_v35 }
 0x236   :  { %17848 = vst [vmem:[#allocation112_spill] sm:$0xff] %v13213_v15  ;;  %v10247_v25 = vpop.permute.xlu1 %10246  ;;  %v13302_v33 = vld [vmem:[%s17293_s3 + $0x9c0] sm:$0xff]  ;;  %v13318_v6 = vld [vmem:[%s17293_s3 + $0x9d0] sm:$0xff]  ;;  %v13328_v50 = vld [vmem:[%s17293_s3 + $0xa48] sm:$0xff]  ;;  %v17859_v38 = vunpack.i.l.bf16 %v13213_v15  ;;  %v13370_v15 = vsel %vm796_vm3, %v17864_v2, %v17863_v63 }
 0x237   :  { %v10249_v17 = vunpack.i.h.bf16 %v10247_v25  ;;  %v10248_v8 = vunpack.i.l.bf16 %v10247_v25  ;;  %v13274_v16 = vpop.f32.mrb[0].mxu0  ;;  %v13287_v25 = vld [vmem:[%s17293_s3 + $0x998] sm:$0xff]  ;;  %17865 = vst [vmem:[#allocation121_spill] sm:$0xff] %v13370_v15  ;;  %v13386_v63 = vld [vmem:[%s17293_s3 + $0xa10] sm:$0xff] }
 0x238   :  { %17855 = vst [vmem:[#allocation115_spill] sm:$0xff] %v13274_v16  ;;  %v13304_v0 = vpop.f32.mrb[1].mxu0  ;;  %v13349_v30 = vld [vmem:[%s17293_s3 + $0xa18] sm:$0xff]  ;;  %v13391_v2 = vld [vmem:[%s17293_s3 + $0xa50] sm:$0xff] }
 0x239   :  { %17856 = vst [vmem:[#allocation116_spill] sm:$0xff] %v13304_v0  ;;  %v13333_v39 = vsel %vm1399_vm6, %v10248_v8, %v17857_v40  ;;  %v13338_v9 = vsel %vm1399_vm6, %v10249_v17, %v17859_v38  ;;  %v13340_v56 = vpop.permute.xlu0 %10251  ;;  %2916 = vmatprep.mubr.f32.mxu1 %v13304_v0  ;;  %3094 = vmatprep.mubr.f32.mxu0 %v13304_v0  ;;  %v13354_v8 = vld [vmem:[%s17293_s3 + $0xa58] sm:$0xff]  ;;  %v13359_v17 = vld [vmem:[%s17293_s3 + $0xa00] sm:$0xff]  ;;  %v13464_v15 = vld [vmem:[%s17293_s3 + $0xad0] sm:$0xff] }
 0x23a   :  { %17858 = vst [vmem:[#allocation117_spill] sm:$0xff] %v13333_v39  ;;  %17860 = vst [vmem:[#allocation118_spill] sm:$0xff] %v13338_v9  ;;  %v13363_v38 = vpop.permute.xlu1 %10256  ;;  %2917 = vmatmul.mubr.f32.vlgmr.msra.gmra.mrb[20].mxu1 %v13274_v16  ;;  %3095 = vmatmul.mubr.f32.vlgmr.msra.gmra.mrb[8].mxu0 %v13274_v16  ;;  %v8136_v0 = vpack.c.bf16 %v13231_v26, %v13226_v57  ;;  %v13381_v40 = vld [vmem:[%s17293_s3 + $0xa40] sm:$0xff]  ;;  %v17866_v57 = vunpack.i.h.bf16 %v12774_v7  ;;  %v17867_v26 = vunpack.i.l.bf16 %v12774_v7  ;;  %v13409_v16 = vld [vmem:[%s17293_s3 + $0xa88] sm:$0xff] }
 0x23b   :  { %17861 = vst [vmem:[#allocation119_spill] sm:$0xff] %v13340_v56  ;;  %17862 = vst [vmem:[#allocation120_spill] sm:$0xff] %v13363_v38  ;;  %v13400_v39 = vpop.f32.mrb[2].mxu0  ;;  %8035 = vmatpush1.bf16.msra.mxu1 %v8034_v53  ;;  %8131 = vmatpush1.bf16.msra.mxu0 %v8130_v4  ;;  %v13419_v53 = vld [vmem:[%s17293_s3 + $0xa98] sm:$0xff]  ;;  %v13439_v4 = vld [vmem:[%s17293_s3 + $0xa80] sm:$0xff]  ;;  %v13546_v56 = vsel %vm997_vm4, %v17879_v42, %v17878_v22 }
 0x23c   :  { %v13398_v60 = vsel %vm796_vm3, %v17867_v26, %v17866_v57  ;;  %17869 = vst [vmem:[#allocation123_spill] sm:$0xff] %v13400_v39  ;;  %v13414_v57 = vld [vmem:[%s17293_s3 + $0xac8] sm:$0xff]  ;;  %v13425_v9 = vpop.f32.mrb[3].mxu0  ;;  %8037 = vmatprep.subr.bf16.mxu1 %v8036_v3  ;;  %8133 = vmatprep.subr.bf16.mxu0 %v8132_v46  ;;  %v13444_v3 = vld [vmem:[%s17293_s3 + $0xac0] sm:$0xff]  ;;  %v13459_v26 = vld [vmem:[%s17293_s3 + $0xa90] sm:$0xff] }
 0x23d   :  { %17868 = vst [vmem:[#allocation122_spill] sm:$0xff] %v13398_v60  ;;  %17870 = vst [vmem:[#allocation124_spill] sm:$0xff] %v13425_v9  ;;  %v13446_v46 = vpop.permute.xlu0 %10261  ;;  %2922 = vmatprep.mubr.f32.mxu1 %v13425_v9  ;;  %3100 = vmatprep.mubr.f32.mxu0 %v13425_v9  ;;  %v13479_v9 = vld [vmem:[%s17293_s3 + $0xb08] sm:$0xff]  ;;  %v13500_v28 = vld [vmem:[%s17293_s3 + $0xb58] sm:$0xff] }
 0x23e   :  { %17871 = vst [vmem:[#allocation125_spill] sm:$0xff] %v13446_v46  ;;  %v13466_v60 = vpop.permute.xlu1 %10266  ;;  %2923 = vmatmul.mubr.f32.gmra.mrb[22].mxu1 %v13400_v39  ;;  %3101 = vmatmul.mubr.f32.gmra.mrb[10].mxu0 %v13400_v39  ;;  %v13484_v7 = vld [vmem:[%s17293_s3 + $0xb48] sm:$0xff]  ;;  %17880 = vst [vmem:[#allocation130_spill] sm:$0xff] %v13546_v56  ;;  %v13564_v42 = vld [vmem:[%s17293_s3 + $0xbd8] sm:$0xff]  ;;  %v17888_v31 = vunpack.i.l.bf16 %v13446_v46  ;;  %v17896_v46 = vunpack.i.h.bf16 %v12818_v59 }
 0x23f   :  { %17872 = vst [vmem:[#allocation126_spill] sm:$0xff] %v13466_v60  ;;  %v13491_v39 = vpop.f32.mrb[4].mxu0  ;;  %8039 = vmatpush1.bf16.msra.mxu1 %v8038_v32  ;;  %8135 = vmatpush1.bf16.msra.mxu0 %v8134_v52  ;;  %v13510_v32 = vld [vmem:[%s17293_s3 + $0xb40] sm:$0xff]  ;;  %v13527_v52 = vld [vmem:[%s17293_s3 + $0xb50] sm:$0xff]  ;;  %v13532_v38 = vld [vmem:[%s17293_s3 + $0xb88] sm:$0xff] }
 0x240   :  { %17873 = vst [vmem:[#allocation127_spill] sm:$0xff] %v13491_v39  ;;  %v13515_v5 = vpop.f32.mrb[5].mxu0  ;;  %8041 = vmatprep.subr.bf16.mxu1 %v8040_v36  ;;  %8137 = vmatprep.subr.bf16.mxu0 %v8136_v0  ;;  %v17875_v0 = vunpack.i.h.bf16 %v12784_v49  ;;  %v13554_v49 = vld [vmem:[%s17293_s3 + $0xbc8] sm:$0xff]  ;;  %v13601_v56 = vld [vmem:[%s17293_s3 + $0xb90] sm:$0xff]  ;;  %v13643_v35 = vld [vmem:[%s17293_s3 + $0x38] sm:$0xff] }
 0x241   :  { %17874 = vst [vmem:[#allocation128_spill] sm:$0xff] %v13515_v5  ;;  %v10272_v36 = vpop.permute.xlu0 %10271  ;;  %2928 = vmatprep.mubr.f32.mxu1 %v13515_v5  ;;  %3106 = vmatprep.mubr.f32.mxu0 %v13515_v5  ;;  %v13586_v5 = vld [vmem:[%s17293_s3 + $0xbc0] sm:$0xff]  ;;  %17886 = vst [vmem:[#allocation134_spill] sm:$0xff] %v13601_v56  ;;  %v13719_v56 = vld [vmem:[%s17293_s3 + $0xb8] sm:$0xff] }
 0x242   :  { %v13539_v44 = vsel %vm997_vm4, %v17876_v14, %v17875_v0  ;;  %v13559_v14 = vld [vmem:[%s17293_s3 + $0xb98] sm:$0xff]  ;;  %v13566_v22 = vpop.permute.xlu1 %10276  ;;  %v10274_v0 = vunpack.i.h.bf16 %v10272_v36  ;;  %v10273_v20 = vunpack.i.l.bf16 %v10272_v36  ;;  %2929 = vmatmul.mubr.f32.gmra.mrb[24].mxu1 %v13491_v39  ;;  %3107 = vmatmul.mubr.f32.gmra.mrb[12].mxu0 %v13491_v39  ;;  %v13581_v36 = vld [vmem:[%s17293_s3 + $0xb80] sm:$0xff]  ;;  %v13606_v39 = vld [vmem:[%s17293_s3 + $0xbd0] sm:$0xff] }
 0x243   :  { %17877 = vst [vmem:[#allocation129_spill] sm:$0xff] %v13539_v44  ;;  %17881 = vst [vmem:[#allocation131_spill] sm:$0xff] %v13559_v14  ;;  %v13588_v44 = vpop.f32.mrb[6].mxu0  ;;  %8043 = vmatpush1.bf16.msra.mxu1 %v17884_v1  ;;  %8139 = vmatpush1.bf16.msra.mxu0 %v17885_v29  ;;  %v17890_v1 = vunpack.i.l.bf16 %v13466_v60  ;;  %v17900_v60 = vunpack.i.l.bf16 %v12838_v41 }
 0x244   :  { %17882 = vst [vmem:[#allocation132_spill] sm:$0xff] %v13566_v22  ;;  %17883 = vst [vmem:[#allocation133_spill] sm:$0xff] %v13588_v44  ;;  %v13616_v27 = vsel %vm1600_vm7, %v10273_v20, %v17888_v31  ;;  %v13623_v58 = vpop.f32.mrb[7].mxu0  ;;  %8045 = vmatprep.subr.bf16.mxu1 %v17893_v61  ;;  %v17894_v22 = vpack.c.bf16 %v13292_v18, %v13287_v25  ;;  %v13648_v18 = vld [vmem:[%s17293_s3 + $0x78] sm:$0xff]  ;;  %v13657_v25 = vld [vmem:[%s17293_s3 + $0x20] sm:$0xff] }
 0x245   :  { %17887 = vst [vmem:[#allocation135_spill] sm:$0xff] %v13606_v39  ;;  %17889 = vst [vmem:[#allocation136_spill] sm:$0xff] %v13616_v27  ;;  %v13621_v29 = vsel %vm1600_vm7, %v10274_v0, %v17890_v1  ;;  %v13638_v0 = vld [vmem:[%s17293_s3 + $0x68] sm:$0xff]  ;;  %v10282_v62 = vpop.permute.xlu0 %10281  ;;  %2934 = vmatprep.mubr.f32.mxu1 %v13623_v58  ;;  %3112 = vmatprep.mubr.f32.mxu0 %v13623_v58  ;;  %v13667_v31 = vld [vmem:[%s17293_s3 + $0x30] sm:$0xff]  ;;  %v17897_v27 = vunpack.i.l.bf16 %v12818_v59  ;;  %v17902_v59 = vpack.c.bf16 %v13302_v33, %v13297_v12 }
 0x246   :  { %17891 = vst [vmem:[#allocation137_spill] sm:$0xff] %v13621_v29  ;;  %17892 = vst [vmem:[#allocation138_spill] sm:$0xff] %v13623_v58  ;;  %8141 = vmatprep.subr.bf16.mxu0 %v17894_v22  ;;  %v13662_v22 = vld [vmem:[%s17293_s3 + $0x60] sm:$0xff]  ;;  %v13669_v1 = vpop.permute.xlu1 %10286  ;;  %v10284_v61 = vunpack.i.h.bf16 %v10282_v62  ;;  %v10283_v20 = vunpack.i.l.bf16 %v10282_v62  ;;  %v17899_v58 = vunpack.i.h.bf16 %v12838_v41  ;;  %2935 = vmatmul.mubr.f32.gmra.mrb[26].mxu1 %v13588_v44  ;;  %v17904_v39 = vunpack.i.h.bf16 %v12706_v34  ;;  %v2831_v33 = vld [vmem:[%s17294_s2 + $0x18] sm:$0xff] }
 0x247   :  { %17895 = vst [vmem:[#allocation139_spill] sm:$0xff] %v13669_v1  ;;  %v13676_v29 = vsel %vm997_vm4, %v17897_v27, %v17896_v46  ;;  %3113 = vmatmul.mubr.f32.gmra.mrb[14].mxu0 %v13588_v44  ;;  %v13694_v46 = vld [vmem:[%s17293_s3 + $0x70] sm:$0xff]  ;;  %v13704_v27 = vld [vmem:[%s17293_s3 + $0xe8] sm:$0xff]  ;;  %8047 = vmatpush1.bf16.msra.mxu1 %v17902_v59  ;;  %v17903_v44 = vpack.c.bf16 %v13318_v6, %v13313_v55  ;;  %v17906_v12 = vunpack.i.h.bf16 %v12712_v54 }
 0x248   :  { %17898 = vst [vmem:[#allocation140_spill] sm:$0xff] %v13676_v29  ;;  %v13683_v14 = vsel %vm997_vm4, %v17900_v60, %v17899_v58  ;;  %v13699_v60 = vld [vmem:[%s17293_s3 + $0xa8] sm:$0xff]  ;;  %v7576_v62 = vpop.f32.mrb[8].mxu1  ;;  %v13724_v58 = vsel %vm796_vm3, %v17904_v39, %v10283_v20  ;;  %v17908_v34 = vpack.c.bf16 %v13328_v50, %v13323_v51  ;;  %v17909_v54 = vpack.c.bf16 %v13354_v8, %v13349_v30  ;;  %v13749_v20 = vld [vmem:[%s17293_s3 + $0xf8] sm:$0xff]  ;;  %v13759_v51 = vld [vmem:[%s17293_s3 + $0xe0] sm:$0xff] }
 0x249   :  { %17901 = vst [vmem:[#allocation141_spill] sm:$0xff] %v13683_v14  ;;  %8143 = vmatpush1.bf16.msra.mxu0 %v17903_v44  ;;  %17905 = vst [vmem:[#allocation142_spill] sm:$0xff] %v13724_v58  ;;  %v13729_v59 = vsel %vm796_vm3, %v17906_v12, %v10284_v61  ;;  %v2830_v44 = vld [vmem:[%s17294_s2 + $0x10] sm:$0xff]  ;;  %v7577_v6 = vpop.f32.mrb[9].mxu1  ;;  %v13754_v61 = vld [vmem:[%s17293_s3 + $0xa0] sm:$0xff]  ;;  %v13764_v8 = vpop.permute.xlu0 %10291  ;;  %2849 = vperm.xlu0 %10410, %v2831_v33   ;;  %v17912_v30 = vpack.c.bf16 %v13381_v40, %v13359_v17 }
 0x24a   :  { %17907 = vst [vmem:[#allocation143_spill] sm:$0xff] %v13729_v59  ;;  %8049 = vmatprep.subr.bf16.mxu1 %v17908_v34  ;;  %8145 = vmatprep.subr.bf16.mxu0 %v17909_v54  ;;  %17910 = vst [vmem:[#allocation144_spill] sm:$0xff] %v13764_v8  ;;  %v7578_v12 = vadd.f32 %v7577_v6, %v7576_v62  ;;  %v17911_v34 = vmov 0.0   ;;  %v10297_v41 = vpop.permute.xlu1 %10296  ;;  %v13779_v62 = vld [vmem:[%s17293_s3 + $0xb0] sm:$0xff]  ;;  %v17913_v50 = vpack.c.bf16 %v13391_v2, %v13386_v63  ;;  %v13813_v40 = vld [vmem:[%s17293_s3 + $0x168] sm:$0xff]  ;;  %v17918_v2 = vunpack.i.l.bf16 %v13764_v8 }
 0x24b   :  { %3005 = vmatprep.mubr.f32.mxu1 %v17911_v34  ;;  %3183 = vmatprep.mubr.f32.mxu0 %v17911_v34  ;;  %v13784_v6 = vld [vmem:[%s17293_s3 + $0xf0] sm:$0xff]  ;;  %v10299_v54 = vunpack.i.h.bf16 %v10297_v41  ;;  %v10298_v39 = vunpack.i.l.bf16 %v10297_v41  ;;  %v17914_v33 = vpack.c.bf16 %v13414_v57, %v13409_v16  ;;  %v17915_v17 = vpack.c.bf16 %v13434_v23, %v13419_v53  ;;  %v13818_v63 = vld [vmem:[%s17293_s3 + $0x138] sm:$0xff]  ;;  %v13873_v41 = vld [vmem:[%s17293_s3 + $0x1a8] sm:$0xff] }
 0x24c   :  { %2844 = vperm.xlu1 %10411, %v2830_v44   ;;  %v7579_v55 = vpop.f32.mrb[10].mxu1  ;;  %8051 = vmatpush1.bf16.msra.mxu1 %v17912_v30  ;;  %v13793_v29 = vadd.f32 %v7578_v12, %v13004_v10  ;;  %v13808_v10 = vld [vmem:[%s17293_s3 + $0x128] sm:$0xff]  ;;  %v17916_v16 = vunpack.i.l.bf16 %v13669_v1  ;;  %v17920_v30 = vunpack.i.h.bf16 %v12845_v45  ;;  %v17926_v58 = vpack.c.bf16 %v13444_v3, %v13439_v4 }
 0x24d   :  { %8147 = vmatpush1.bf16.msra.mxu0 %v17913_v50  ;;  %v7580_v44 = vpop.f32.mrb[11].mxu1  ;;  %8053 = vmatprep.subr.bf16.mxu1 %v17914_v33  ;;  %v13828_v57 = vsel %vm1600_vm7, %v10299_v54, %v17918_v2  ;;  %v13830_v53 = vpop.permute.xlu0 %10301  ;;  %v17921_v50 = vunpack.i.l.bf16 %v12845_v45  ;;  %v13845_v54 = vld [vmem:[%s17293_s3 + $0x178] sm:$0xff]  ;;  %v13855_v2 = vld [vmem:[%s17293_s3 + $0x160] sm:$0xff]  ;;  %v17923_v33 = vunpack.i.h.bf16 %v12859_v43  ;;  %v17927_v59 = vpack.c.bf16 %v13464_v15, %v13459_v26  ;;  %v13894_v1 = vld [vmem:[%s17293_s3 + $0x1e8] sm:$0xff] }
 0x24e   :  { %8149 = vmatprep.subr.bf16.mxu0 %v17915_v17  ;;  %v13823_v23 = vsel %vm1600_vm7, %v10298_v39, %v17916_v16  ;;  %17919 = vst [vmem:[#allocation146_spill] sm:$0xff] %v13828_v57  ;;  %v7581_v17 = vadd.f32 %v7580_v44, %v7579_v55  ;;  %v13850_v16 = vld [vmem:[%s17293_s3 + $0x120] sm:$0xff]  ;;  %v10307_v44 = vpop.permute.xlu1 %10306  ;;  %v13868_v39 = vld [vmem:[%s17293_s3 + $0x170] sm:$0xff]  ;;  %v13904_v15 = vld [vmem:[%s17293_s3 + $0x1f8] sm:$0xff]  ;;  %v17928_v26 = vpack.c.bf16 %v13484_v7, %v13479_v9 }
 0x24f   :  { %17917 = vst [vmem:[#allocation145_spill] sm:$0xff] %v13823_v23  ;;  %v13837_v12 = vsel %vm997_vm4, %v17921_v50, %v17920_v30  ;;  %v13863_v50 = vld [vmem:[%s17293_s3 + $0x130] sm:$0xff]  ;;  %v10309_v14 = vunpack.i.h.bf16 %v10307_v44  ;;  %v10308_v55 = vunpack.i.l.bf16 %v10307_v44  ;;  %v17924_v30 = vunpack.i.l.bf16 %v12859_v43  ;;  %v17958_v45 = vld [vmem:[#allocation74_spill] sm:$0xff] }
 0x250   :  { %17922 = vst [vmem:[#allocation147_spill] sm:$0xff] %v13837_v12  ;;  %v7582_v57 = vpop.f32.mrb[12].mxu1  ;;  %8055 = vmatpush1.bf16.msra.mxu1 %v17926_v58  ;;  %v2346_v8 = vadd.f32 %v7581_v17, %v13010_v11  ;;  %v17929_v3 = vpack.c.bf16 %v13500_v28, %v13489_v24  ;;  %v13924_v17 = vld [vmem:[%s17293_s3 + $0x1e0] sm:$0xff]  ;;  %v13929_v9 = vld [vmem:[%s17293_s3 + $0x1b0] sm:$0xff]  ;;  %v17932_v24 = vunpack.i.h.bf16 %v12728_v21  ;;  %v17934_v28 = vld [vmem:[#allocation44_spill] sm:$0xff]  ;;  %v17943_v44 = vunpack.i.l.bf16 %v12873_v13 }
 0x251   :  { %v13880_v23 = vsel %vm997_vm4, %v17924_v30, %v17923_v33  ;;  %8151 = vmatpush1.bf16.msra.mxu0 %v17927_v59  ;;  %v13899_v33 = vld [vmem:[%s17293_s3 + $0x1b8] sm:$0xff]  ;;  %v7583_v4 = vpop.f32.mrb[13].mxu1  ;;  %8057 = vmatprep.subr.bf16.mxu1 %v17928_v26  ;;  %v13919_v59 = vld [vmem:[%s17293_s3 + $0x1a0] sm:$0xff]  ;;  %17931 = vst [vmem:[#allocation150_spill] sm:$0xff] %v13929_v9  ;;  %v17935_v30 = vunpack.i.h.bf16 %v17934_v28  ;;  %v13950_v21 = vld [vmem:[%s17293_s3 + $0x1f0] sm:$0xff]  ;;  %v17945_v12 = vunpack.i.h.bf16 %v12889_v37  ;;  %v17949_v28 = vpack.c.bf16 %v13527_v52, %v13522_v19 }
 0x252   :  { %17925 = vst [vmem:[#allocation148_spill] sm:$0xff] %v13880_v23  ;;  %8153 = vmatprep.subr.bf16.mxu0 %v17929_v3  ;;  %17930 = vst [vmem:[#allocation149_spill] sm:$0xff] %v13919_v59  ;;  %v13934_v7 = vsel %vm796_vm3, %v17932_v24, %v10308_v55  ;;  %v13941_v3 = vpop.permute.xlu0 %10311  ;;  %v7584_v11 = vadd.f32 %v7583_v4, %v7582_v57  ;;  %v13955_v55 = vld [vmem:[%s17293_s3 + $0x228] sm:$0xff]  ;;  %v13964_v4 = vpop.permute.xlu1 %10316  ;;  %v17946_v23 = vunpack.i.l.bf16 %v12889_v37 }
 0x253   :  { %17933 = vst [vmem:[#allocation151_spill] sm:$0xff] %v13934_v7  ;;  %v13939_v26 = vsel %vm796_vm3, %v17935_v30, %v10309_v14  ;;  %17937 = vst [vmem:[#allocation152_spill] sm:$0xff] %v13941_v3  ;;  %v13960_v14 = vld [vmem:[%s17293_s3 + $0x268] sm:$0xff]  ;;  %v17942_v30 = vunpack.i.h.bf16 %v12873_v13  ;;  %v17948_v24 = vpack.c.bf16 %v13510_v32, %v13505_v47 }
 0x254   :  { %17936 = vst [vmem:[#allocation44_spill] sm:$0xff] %v13939_v26  ;;  %17938 = vst [vmem:[#allocation153_spill] sm:$0xff] %v13950_v21  ;;  %v13982_v57 = vsel %vm997_vm4, %v17946_v23, %v17945_v12  ;;  %v7585_v7 = vpop.f32.mrb[14].mxu1  ;;  %v17950_v26 = vld [vmem:[#allocation89_spill] sm:$0xff]  ;;  %v14001_v23 = vld [vmem:[%s17293_s3 + $0x278] sm:$0xff] }
 0x255   :  { %17939 = vst [vmem:[#allocation154_spill] sm:$0xff] %v13955_v55  ;;  %17940 = vst [vmem:[#allocation155_spill] sm:$0xff] %v13960_v14  ;;  %v13975_v58 = vsel %vm997_vm4, %v17943_v44, %v17942_v30  ;;  %8059 = vmatpush1.bf16.msra.mxu1 %v17948_v24  ;;  %8155 = vmatpush1.bf16.msra.mxu0 %v17949_v28  ;;  %v13991_v13 = vadd.f32 %v7584_v11, %v17950_v26  ;;  %v13996_v44 = vld [vmem:[%s17293_s3 + $0x238] sm:$0xff]  ;;  %v17951_v52 = vld [vmem:[#allocation68_spill] sm:$0xff]  ;;  %v7586_v11 = vpop.f32.mrb[15].mxu1 }
 0x256   :  { %17941 = vst [vmem:[#allocation156_spill] sm:$0xff] %v13964_v4  ;;  %17944 = vst [vmem:[#allocation157_spill] sm:$0xff] %v13975_v58  ;;  %v10079_v12 = vunpack.i.h.bf16 %v17951_v52  ;;  %v17952_v26 = vpack.c.bf16 %v13554_v49, %v13532_v38  ;;  %v17953_v24 = vld [vmem:[#allocation131_spill] sm:$0xff]  ;;  %v10322_v32 = vpop.permute.xlu0 %10321  ;;  %v7587_v58 = vadd.f32 %v7586_v11, %v7585_v7  ;;  %v14021_v43 = vpop.permute.xlu1 %10326  ;;  %v17959_v7 = vpack.c.bf16 %v13586_v5, %v13581_v36  ;;  %v17961_v55 = vld [vmem:[#allocation134_spill] sm:$0xff] }
 0x257   :  { %17947 = vst [vmem:[#allocation158_spill] sm:$0xff] %v13982_v57  ;;  %v17954_v28 = vpack.c.bf16 %v13564_v42, %v17953_v24  ;;  %v17955_v57 = vld [vmem:[#allocation119_spill] sm:$0xff]  ;;  %v10324_v49 = vunpack.i.h.bf16 %v10322_v32  ;;  %v10323_v38 = vunpack.i.l.bf16 %v10322_v32  ;;  %v17957_v24 = vld [vmem:[#allocation73_spill] sm:$0xff]  ;;  %v17963_v32 = vld [vmem:[#allocation92_spill] sm:$0xff]  ;;  %v17968_v36 = vpack.c.bf16 %v13638_v0, %v13611_v48 }
 0x258   :  { %8061 = vmatprep.subr.bf16.mxu1 %v17952_v26  ;;  %v10253_v37 = vunpack.i.l.bf16 %v17955_v57  ;;  %v17956_v26 = vld [vmem:[#allocation69_spill] sm:$0xff]  ;;  %v10254_v47 = vunpack.i.h.bf16 %v17955_v57  ;;  %v7718_v19 = vpop.f32.mrb[16].mxu1  ;;  %v17960_v11 = vld [vmem:[#allocation135_spill] sm:$0xff]  ;;  %v2356_v21 = vadd.f32 %v7587_v58, %v17963_v32  ;;  %v17966_v57 = vunpack.i.l.bf16 %v13964_v4 }
 0x259   :  { %8157 = vmatprep.subr.bf16.mxu0 %v17954_v28  ;;  %v10084_v42 = vunpack.i.h.bf16 %v17956_v26  ;;  %8063 = vmatpush1.bf16.msra.mxu1 %v17959_v7  ;;  %v17962_v14 = vpack.c.bf16 %v17960_v11, %v17961_v55  ;;  %v17964_v28 = vunpack.i.l.bf16 %v13941_v3  ;;  %v14046_v9 = vadd.f32 %v7718_v19, %v2346_v8  ;;  %v2425_v5 = vpop.f32.mrb[17].mxu1  ;;  %v17970_v55 = vld [vmem:[#allocation132_spill] sm:$0xff]  ;;  %v17974_v11 = vld [vmem:[#allocation78_spill] sm:$0xff] }
 0x25a   :  { %v14044_v30 = vsel %vm1600_vm7, %v10324_v49, %v17966_v57  ;;  %8161 = vmatprep.subr.bf16.mxu1 %v17968_v36  ;;  %v17969_v58 = vpack.c.bf16 %v13648_v18, %v13643_v35  ;;  %v10332_v49 = vpop.permute.xlu0 %10331  ;;  %v14059_v8 = vadd.f32 %v2425_v5, %v13793_v29  ;;  %v14061_v19 = vpop.permute.xlu1 %10336  ;;  %v14064_v0 = vsel %vm1198_vm5, %v10079_v12, %v10253_v37  ;;  %v17973_v35 = vld [vmem:[#allocation79_spill] sm:$0xff]  ;;  %v17980_v18 = vld [vmem:[#allocation48_spill] sm:$0xff] }
 0x25b   :  { %8159 = vmatpush1.bf16.msra.mxu0 %v17962_v14  ;;  %v14039_v59 = vsel %vm1600_vm7, %v10323_v38, %v17964_v28  ;;  %17967 = vst [vmem:[#allocation68_spill] sm:$0xff] %v14044_v30  ;;  %v10279_v14 = vunpack.i.h.bf16 %v17970_v55  ;;  %v10278_v38 = vunpack.i.l.bf16 %v17970_v55  ;;  %17972 = vst [vmem:[#allocation119_spill] sm:$0xff] %v14061_v19  ;;  %v10334_v7 = vunpack.i.h.bf16 %v10332_v49  ;;  %v14071_v57 = vld [vmem:[%s17293_s3 + $0x220] sm:$0xff]  ;;  %v14091_v55 = vld [vmem:[%s17293_s3 + $0x230] sm:$0xff] }
 0x25c   :  { %17965 = vst [vmem:[#allocation89_spill] sm:$0xff] %v14039_v59  ;;  %8257 = vmatprep.subr.bf16.mxu0 %v17969_v58  ;;  %17971 = vst [vmem:[#allocation131_spill] sm:$0xff] %v14059_v8  ;;  %v10333_v48 = vunpack.i.l.bf16 %v10332_v49  ;;  %v14076_v29 = vld [vmem:[%s17293_s3 + $0x260] sm:$0xff]  ;;  %v14079_v5 = vsel %vm1198_vm5, %v10084_v42, %v10254_v47  ;;  %v17975_v37 = vunpack.i.l.bf16 %v17951_v52  ;;  %v7721_v58 = vpop.f32.mrb[18].mxu1  ;;  %3006 = vmatmul.mubr.f32.vlgmr.msra.gmra.mrb[20].mxu1 %v14059_v8  ;;  %v14096_v47 = vld [vmem:[%s17293_s3 + $0x270] sm:$0xff]  ;;  %v17981_v32 = vunpack.i.h.bf16 %v17980_v18 }
 0x25d   :  { %v14101_v52 = vld [vmem:[%s17293_s3 + $0x2a8] sm:$0xff]  ;;  %v17977_v49 = vld [vmem:[#allocation45_spill] sm:$0xff]  ;;  %v17983_v3 = vpack.c.bf16 %v13662_v22, %v13657_v25  ;;  %v14137_v25 = vld [vmem:[%s17293_s3 + $0x2f8] sm:$0xff]  ;;  %v17582_v22 = vunpack.i.l.bf16 %v14061_v19  ;;  %3011 = vmatprep.mubr.f32.mxu1 %v17911_v34 }
 0x25e   :  { %v14084_v36 = vsel %vm1198_vm5, %v17975_v37, %v10079_v12  ;;  %3184 = vmatmul.mubr.f32.vlgmr.msra.gmra.mrb[8].mxu0 %v14059_v8  ;;  %v10304_v12 = vunpack.i.h.bf16 %v13830_v53  ;;  %v17978_v37 = vunpack.i.h.bf16 %v17977_v49  ;;  %v14112_v59 = vsel %vm796_vm3, %v17981_v32, %v10334_v7  ;;  %v14127_v18 = vld [vmem:[%s17293_s3 + $0x2e8] sm:$0xff]  ;;  %v14132_v7 = vld [vmem:[%s17293_s3 + $0x2b8] sm:$0xff]  ;;  %v14155_v32 = vld [vmem:[%s17293_s3 + $0x2a0] sm:$0xff] }
 0x25f   :  { %17976 = vst [vmem:[#allocation69_spill] sm:$0xff] %v14084_v36  ;;  %17982 = vst [vmem:[#allocation74_spill] sm:$0xff] %v14112_v59  ;;  %v14116_v8 = vadd.f32 %v7721_v58, %v2356_v21  ;;  %8163 = vmatpush1.bf16.msra.mxu1 %v17983_v3  ;;  %v17984_v49 = vpack.c.bf16 %v13694_v46, %v13667_v31  ;;  %v17985_v46 = vunpack.i.l.bf16 %v17956_v26  ;;  %3189 = vmatprep.mubr.f32.mxu0 %v17911_v34  ;;  %v14160_v58 = vld [vmem:[%s17293_s3 + $0x2e0] sm:$0xff] }
 0x260   :  { %v14107_v28 = vsel %vm796_vm3, %v17978_v37, %v10333_v48  ;;  %v2435_v48 = vpop.f32.mrb[19].mxu1  ;;  %v10303_v26 = vunpack.i.l.bf16 %v13830_v53  ;;  %v17990_v31 = vpack.c.bf16 %v13749_v20, %v13719_v56  ;;  %3012 = vmatmul.mubr.f32.gmra.mrb[22].mxu1 %v14046_v9  ;;  %v14196_v20 = vld [vmem:[%s17293_s3 + $0x2b0] sm:$0xff] }
 0x261   :  { %17979 = vst [vmem:[#allocation73_spill] sm:$0xff] %v14107_v28  ;;  %8259 = vmatpush1.bf16.msra.mxu0 %v17984_v49  ;;  %v14145_v3 = vsel %vm1198_vm5, %v17985_v46, %v10084_v42  ;;  %v14148_v21 = vadd.f32 %v2435_v48, %v13991_v13  ;;  %v10347_v42 = vpop.permute.xlu1 %10346  ;;  %v17987_v13 = vunpack.i.h.bf16 %v17957_v24  ;;  %v17988_v49 = vunpack.i.h.bf16 %v17958_v45  ;;  %3017 = vmatprep.mubr.f32.mxu1 %v17911_v34  ;;  %v18175_v28 = vld [vmem:[#allocation85_spill] sm:$0xff] }
 0x262   :  { %17986 = vst [vmem:[#allocation135_spill] sm:$0xff] %v14145_v3  ;;  %v17989_v46 = vpack.c.bf16 %v13704_v27, %v13699_v60  ;;  %8261 = vmatprep.subr.bf16.mxu0 %v17990_v31  ;;  %v10348_v30 = vunpack.i.l.bf16 %v10347_v42  ;;  %3190 = vmatmul.mubr.f32.gmra.mrb[10].mxu0 %v14046_v9  ;;  %v17991_v31 = vld [vmem:[#allocation83_spill] sm:$0xff]  ;;  %v10349_v27 = vunpack.i.h.bf16 %v10347_v42  ;;  %v17997_v42 = vunpack.i.h.bf16 %v17973_v35  ;;  %v2810_v3 = vld [vmem:[%s17293_s3 + $0xb70] sm:$0xff] }
 0x263   :  { %v14166_v37 = vsel %vm1198_vm5, %v17987_v13, %v10278_v38  ;;  %v14171_v48 = vsel %vm1198_vm5, %v17988_v49, %v10279_v14  ;;  %v14201_v14 = vld [vmem:[%s17293_s3 + $0x2f0] sm:$0xff]  ;;  %v17993_v13 = vpack.c.bf16 %v13784_v6, %v13779_v62  ;;  %3195 = vmatprep.mubr.f32.mxu0 %v17911_v34  ;;  %v17996_v62 = vunpack.i.h.bf16 %v17974_v11  ;;  %v18003_v49 = vld [vmem:[#allocation84_spill] sm:$0xff] }
 0x264   :  { %8165 = vmatprep.subr.bf16.mxu1 %v17989_v46  ;;  %v17992_v46 = vpack.c.bf16 %v13759_v51, %v13754_v61  ;;  %v14215_v56 = vsel %vm1600_vm7, %v10348_v30, %v17582_v22  ;;  %v10328_v61 = vunpack.i.l.bf16 %v14021_v43  ;;  %v17998_v30 = vunpack.i.h.bf16 %v17957_v24  ;;  %3018 = vmatmul.mubr.f32.gmra.mrb[24].mxu1 %v14148_v21 }
 0x265   :  { %8263 = vmatpush1.bf16.msra.mxu0 %v17993_v13  ;;  %17994 = vst [vmem:[#allocation134_spill] sm:$0xff] %v14215_v56  ;;  %v10357_v51 = vpop.permute.xlu1 %10356  ;;  %v14225_v6 = vsel %vm1198_vm5, %v17996_v62, %v10303_v26  ;;  %v14230_v13 = vsel %vm1198_vm5, %v17997_v42, %v10304_v12  ;;  %v17999_v22 = vunpack.i.l.bf16 %v17957_v24  ;;  %v18001_v60 = vpack.c.bf16 %v13813_v40, %v13808_v10 }
 0x266   :  { %8167 = vmatpush1.bf16.msra.mxu1 %v17992_v46  ;;  %v14220_v46 = vpop.permute.xlu0 %10341  ;;  %v18002_v26 = vpack.c.bf16 %v13845_v54, %v13818_v63  ;;  %v10359_v12 = vunpack.i.h.bf16 %v10357_v51  ;;  %v10358_v42 = vunpack.i.l.bf16 %v10357_v51  ;;  %v17584_v24 = vunpack.i.h.bf16 %v18003_v49  ;;  %3196 = vmatmul.mubr.f32.gmra.mrb[12].mxu0 %v14148_v21 }
 0x267   :  { %17995 = vst [vmem:[#allocation92_spill] sm:$0xff] %v14220_v46  ;;  %v14237_v38 = vsel %vm1198_vm5, %v17999_v22, %v17998_v30  ;;  %8169 = vmatprep.subr.bf16.mxu1 %v18001_v60  ;;  %v17583_v53 = vunpack.i.l.bf16 %v14220_v46  ;;  %v10329_v10 = vunpack.i.h.bf16 %v14021_v43  ;;  %v18004_v63 = vunpack.i.h.bf16 %v17958_v45  ;;  %v18007_v60 = vld [vmem:[#allocation90_spill] sm:$0xff]  ;;  %v14271_v43 = vld [vmem:[%s17293_s3 + $0x328] sm:$0xff]  ;;  %3023 = vmatprep.mubr.f32.mxu1 %v17911_v34 }
 0x268   :  { %18000 = vst [vmem:[#allocation132_spill] sm:$0xff] %v14237_v38  ;;  %8265 = vmatprep.subr.bf16.mxu0 %v18002_v26  ;;  %v18005_v54 = vunpack.i.l.bf16 %v17958_v45  ;;  %v18008_v30 = vpack.c.bf16 %v13855_v2, %v13850_v16  ;;  %v18009_v26 = vpack.c.bf16 %v13868_v39, %v13863_v50  ;;  %v14276_v45 = vld [vmem:[%s17293_s3 + $0x368] sm:$0xff]  ;;  %3201 = vmatprep.mubr.f32.mxu0 %v17911_v34  ;;  %v10154_v59 = vunpack.i.h.bf16 %v18175_v28 }
 0x269   :  { %v18013_v16 = vld [vmem:[#allocation52_spill] sm:$0xff]  ;;  %v14291_v50 = vsel %vm1600_vm7, %v10349_v27, %v17583_v53  ;;  %v18020_v27 = vpack.c.bf16 %v13894_v1, %v13873_v41  ;;  %v18021_v53 = vpack.c.bf16 %v13904_v15, %v13899_v33  ;;  %3024 = vmatmul.mubr.f32.gmra.mrb[26].mxu1 %v14116_v8  ;;  %v14318_v1 = vsel %vm1198_vm5, %v17584_v24, %v10329_v10  ;;  %v18023_v33 = vld [vmem:[#allocation97_spill] sm:$0xff]  ;;  %v2555_v10 = vld [vmem:[%s17293_s3 + $0x378] sm:$0xff] }
 0x26a   :  { %v14259_v22 = vsel %vm1198_vm5, %v18005_v54, %v18004_v63  ;;  %8171 = vmatpush1.bf16.msra.mxu1 %v18008_v30  ;;  %8267 = vmatpush1.bf16.msra.mxu0 %v18009_v26  ;;  %v18010_v63 = vld [vmem:[#allocation49_spill] sm:$0xff]  ;;  %v18014_v2 = vunpack.i.h.bf16 %v18013_v16  ;;  %18016 = vst [vmem:[#allocation48_spill] sm:$0xff] %v14291_v50  ;;  %v18017_v30 = vld [vmem:[#allocation91_spill] sm:$0xff]  ;;  %v18018_v16 = vunpack.i.h.bf16 %v17991_v31  ;;  %18022 = vst [vmem:[#allocation84_spill] sm:$0xff] %v14318_v1 }
 0x26b   :  { %18006 = vst [vmem:[#allocation79_spill] sm:$0xff] %v14259_v22  ;;  %v18011_v54 = vunpack.i.h.bf16 %v18010_v63  ;;  %v10367_v63 = vpop.permute.xlu1 %10366  ;;  %8173 = vmatprep.subr.bf16.mxu1 %v18020_v27  ;;  %8269 = vmatprep.subr.bf16.mxu0 %v18021_v53  ;;  %v18024_v53 = vld [vmem:[#allocation149_spill] sm:$0xff] }
 0x26c   :  { %v14286_v39 = vsel %vm997_vm4, %v18014_v2, %v10359_v12  ;;  %v10352_v12 = vpop.permute.xlu0 %10351  ;;  %v14303_v2 = vsel %vm1198_vm5, %v18018_v16, %v10328_v61  ;;  %v10369_v62 = vunpack.i.h.bf16 %v10367_v63  ;;  %3202 = vmatmul.mubr.f32.gmra.mrb[14].mxu0 %v14116_v8  ;;  %v8184_v61 = vpack.c.bf16 %v14276_v45, %v14271_v43  ;;  %v18027_v16 = vld [vmem:[#allocation150_spill] sm:$0xff]  ;;  %v18029_v45 = vld [vmem:[#allocation56_spill] sm:$0xff]  ;;  %v18032_v24 = vld [vmem:[#allocation53_spill] sm:$0xff] }
 0x26d   :  { %v14281_v40 = vsel %vm997_vm4, %v18011_v54, %v10358_v42  ;;  %18015 = vst [vmem:[#allocation45_spill] sm:$0xff] %v14286_v39  ;;  %18019 = vst [vmem:[#allocation83_spill] sm:$0xff] %v14303_v2  ;;  %v10368_v42 = vunpack.i.l.bf16 %v10367_v63  ;;  %v10354_v26 = vunpack.i.h.bf16 %v10352_v12  ;;  %v10353_v51 = vunpack.i.l.bf16 %v10352_v12  ;;  %v18026_v12 = vld [vmem:[#allocation153_spill] sm:$0xff]  ;;  %v2547_v43 = vld [vmem:[%s17293_s3 + $0x338] sm:$0xff] }
 0x26e   :  { %18012 = vst [vmem:[#allocation78_spill] sm:$0xff] %v14281_v40  ;;  %v18025_v63 = vpack.c.bf16 %v13924_v17, %v18024_v53  ;;  %v18028_v27 = vpack.c.bf16 %v18026_v12, %v18027_v16  ;;  %v18030_v54 = vunpack.i.h.bf16 %v18029_v45  ;;  %v18033_v17 = vunpack.i.h.bf16 %v18032_v24  ;;  %v18035_v12 = vld [vmem:[#allocation98_spill] sm:$0xff] }
 0x26f   :  { %v10377_v15 = vpop.permute.xlu1 %10376  ;;  %v18042_v16 = vld [vmem:[#allocation154_spill] sm:$0xff]  ;;  %v8280_v36 = vpack.c.bf16 %v2555_v10, %v2547_v43  ;;  %v18052_v43 = vpack.c.bf16 %v14096_v47, %v14091_v55  ;;  %v2552_v10 = vld [vmem:[%s17293_s3 + $0x360] sm:$0xff]  ;;  %v18059_v47 = vpack.c.bf16 %v14127_v18, %v14101_v52 }
 0x270   :  { %8175 = vmatpush1.bf16.msra.mxu1 %v18025_v63  ;;  %8271 = vmatpush1.bf16.msra.mxu0 %v18028_v27  ;;  %v14338_v41 = vsel %vm997_vm4, %v18030_v54, %v10369_v62  ;;  %v14343_v53 = vsel %vm997_vm4, %v18033_v17, %v10368_v42  ;;  %v18036_v27 = vld [vmem:[#allocation116_spill] sm:$0xff]  ;;  %v10362_v62 = vpop.permute.xlu0 %10361  ;;  %v18037_v54 = vunpack.i.h.bf16 %v18007_v60  ;;  %v18039_v42 = vunpack.i.h.bf16 %v18017_v30  ;;  %v18041_v63 = vld [vmem:[#allocation155_spill] sm:$0xff] }
 0x271   :  { %18031 = vst [vmem:[#allocation90_spill] sm:$0xff] %v14338_v41  ;;  %18034 = vst [vmem:[#allocation49_spill] sm:$0xff] %v14343_v53  ;;  %3272 = vmatprep.mubr.f32.mxu1 %v18036_v27  ;;  %3450 = vmatprep.mubr.f32.mxu0 %v18036_v27  ;;  %v18043_v56 = vpack.c.bf16 %v18041_v63, %v18042_v16  ;;  %v18044_v27 = vpack.c.bf16 %v14001_v23, %v13996_v44  ;;  %v10379_v45 = vunpack.i.h.bf16 %v10377_v15  ;;  %v2712_v52 = vld [vmem:[%s17293_s3 + $0x860] sm:$0xff] }
 0x272   :  { %v14355_v24 = vsel %vm1399_vm6, %v18037_v54, %v10353_v51  ;;  %v14360_v17 = vsel %vm1399_vm6, %v18039_v42, %v10354_v26  ;;  %v10378_v50 = vunpack.i.l.bf16 %v10377_v15  ;;  %v10364_v38 = vunpack.i.h.bf16 %v10362_v62 }
 0x273   :  { %18038 = vst [vmem:[#allocation52_spill] sm:$0xff] %v14355_v24  ;;  %18040 = vst [vmem:[#allocation91_spill] sm:$0xff] %v14360_v17  ;;  %8177 = vmatprep.subr.bf16.mxu1 %v18043_v56  ;;  %8273 = vmatprep.subr.bf16.mxu0 %v18044_v27  ;;  %v10363_v22 = vunpack.i.l.bf16 %v10362_v62  ;;  %v18045_v54 = vunpack.i.h.bf16 %v17974_v11  ;;  %v18046_v26 = vunpack.i.l.bf16 %v17974_v11  ;;  %v18048_v56 = vunpack.i.h.bf16 %v17973_v35  ;;  %v2544_v11 = vld [vmem:[%s17293_s3 + $0x320] sm:$0xff]  ;;  %v18056_v62 = vld [vmem:[#allocation60_spill] sm:$0xff]  ;;  %v10387_v18 = vpop.permute.xlu1 %10386 }
 0x274   :  { %v18049_v44 = vunpack.i.l.bf16 %v17973_v35  ;;  %v18051_v15 = vpack.c.bf16 %v14076_v29, %v14071_v57  ;;  %8275 = vmatpush1.bf16.msra.mxu0 %v18052_v43  ;;  %v18053_v35 = vld [vmem:[#allocation57_spill] sm:$0xff]  ;;  %v18057_v57 = vunpack.i.h.bf16 %v18056_v62  ;;  %v18060_v27 = vpack.c.bf16 %v14137_v25, %v14132_v7  ;;  %v2571_v43 = vld [vmem:[%s17293_s3 + $0x3f8] sm:$0xff] }
 0x275   :  { %v14375_v42 = vsel %vm1198_vm5, %v18046_v26, %v18045_v54  ;;  %v18054_v63 = vunpack.i.h.bf16 %v18053_v35  ;;  %v2561_v54 = vld [vmem:[%s17293_s3 + $0x3a8] sm:$0xff]  ;;  %v18061_v26 = vunpack.i.h.bf16 %v18023_v33  ;;  %v18063_v25 = vunpack.i.h.bf16 %v18035_v12  ;;  %v2706_v62 = vld [vmem:[%s17293_s3 + $0x830] sm:$0xff] }
 0x276   :  { %18047 = vst [vmem:[#allocation97_spill] sm:$0xff] %v14375_v42  ;;  %v14382_v23 = vsel %vm1198_vm5, %v18049_v44, %v18048_v56  ;;  %8179 = vmatpush1.bf16.msra.mxu1 %v18051_v15  ;;  %v14404_v29 = vsel %vm997_vm4, %v18057_v57, %v10379_v45  ;;  %8277 = vmatprep.subr.bf16.mxu0 %v18060_v27  ;;  %v2554_v45 = vld [vmem:[%s17293_s3 + $0x370] sm:$0xff]  ;;  %v2569_v44 = vld [vmem:[%s17293_s3 + $0x3e8] sm:$0xff]  ;;  %v2563_v15 = vld [vmem:[%s17293_s3 + $0x3b8] sm:$0xff]  ;;  %v10389_v35 = vunpack.i.h.bf16 %v10387_v18  ;;  %v17638_v17 = vunpack.i.h.bf16 %v14220_v46 }
 0x277   :  { %18050 = vst [vmem:[#allocation149_spill] sm:$0xff] %v14382_v23  ;;  %v14399_v16 = vsel %vm997_vm4, %v18054_v63, %v10378_v50  ;;  %18058 = vst [vmem:[#allocation150_spill] sm:$0xff] %v14404_v29  ;;  %8181 = vmatprep.subr.bf16.mxu1 %v18059_v47  ;;  %v2546_v50 = vld [vmem:[%s17293_s3 + $0x330] sm:$0xff]  ;;  %v14428_v7 = vsel %vm1399_vm6, %v18061_v26, %v10363_v22  ;;  %v14433_v56 = vsel %vm1399_vm6, %v18063_v25, %v10364_v38  ;;  %v2560_v27 = vld [vmem:[%s17293_s3 + $0x3a0] sm:$0xff] }
 0x278   :  { %18055 = vst [vmem:[#allocation153_spill] sm:$0xff] %v14399_v16  ;;  %18062 = vst [vmem:[#allocation56_spill] sm:$0xff] %v14428_v7  ;;  %v10388_v22 = vunpack.i.l.bf16 %v10387_v18  ;;  %v8186_v63 = vpack.c.bf16 %v2552_v10, %v2544_v11  ;;  %v18065_v38 = vpack.c.bf16 %v14160_v58, %v14155_v32  ;;  %v18066_v57 = vpack.c.bf16 %v14201_v14, %v14196_v20  ;;  %v2568_v11 = vld [vmem:[%s17293_s3 + $0x3e0] sm:$0xff]  ;;  %v18067_v10 = vld [vmem:[#allocation64_spill] sm:$0xff] }
 0x279   :  { %18064 = vst [vmem:[#allocation53_spill] sm:$0xff] %v14433_v56  ;;  %v8282_v47 = vpack.c.bf16 %v2554_v45, %v2546_v50  ;;  %v18068_v18 = vunpack.i.h.bf16 %v18067_v10  ;;  %v18070_v32 = vld [vmem:[#allocation61_spill] sm:$0xff]  ;;  %v8188_v20 = vpack.c.bf16 %v2569_v44, %v2561_v54  ;;  %v8284_v14 = vpack.c.bf16 %v2571_v43, %v2563_v15  ;;  %v2587_v54 = vld [vmem:[%s17293_s3 + $0x478] sm:$0xff]  ;;  %v2808_v23 = vld [vmem:[%s17293_s3 + $0xb60] sm:$0xff] }
 0x27a   :  { %8183 = vmatpush1.bf16.msra.mxu1 %v18065_v38  ;;  %8279 = vmatpush1.bf16.msra.mxu0 %v18066_v57  ;;  %v18071_v58 = vunpack.i.h.bf16 %v18070_v32  ;;  %v2562_v50 = vld [vmem:[%s17293_s3 + $0x3b0] sm:$0xff]  ;;  %v18073_v44 = vunpack.i.h.bf16 %v17991_v31  ;;  %v18074_v15 = vunpack.i.l.bf16 %v17991_v31  ;;  %v18076_v38 = vunpack.i.h.bf16 %v18003_v49  ;;  %v2584_v31 = vld [vmem:[%s17293_s3 + $0x460] sm:$0xff]  ;;  %v7187_v7 = vld [vmem:[%s17291_s0 + $0x148] sm:$0xff] }
 0x27b   :  { %v14461_v26 = vsel %vm997_vm4, %v18068_v18, %v10389_v35  ;;  %8185 = vmatprep.subr.bf16.mxu1 %v8184_v61  ;;  %8281 = vmatprep.subr.bf16.mxu0 %v8280_v36  ;;  %v2570_v45 = vld [vmem:[%s17293_s3 + $0x3f0] sm:$0xff]  ;;  %v2577_v35 = vld [vmem:[%s17293_s3 + $0x428] sm:$0xff]  ;;  %v2579_v61 = vld [vmem:[%s17293_s3 + $0x438] sm:$0xff]  ;;  %v18077_v57 = vunpack.i.l.bf16 %v18003_v49  ;;  %v8190_v18 = vpack.c.bf16 %v2568_v11, %v2560_v27 }
 0x27c   :  { %18069 = vst [vmem:[#allocation98_spill] sm:$0xff] %v14461_v26  ;;  %v14466_v25 = vsel %vm997_vm4, %v18071_v58, %v10388_v22  ;;  %v2585_v36 = vld [vmem:[%s17293_s3 + $0x468] sm:$0xff]  ;;  %v14493_v43 = vsel %vm1198_vm5, %v18074_v15, %v18073_v44  ;;  %v8286_v32 = vpack.c.bf16 %v2570_v45, %v2562_v50  ;;  %v2576_v58 = vld [vmem:[%s17293_s3 + $0x420] sm:$0xff]  ;;  %v8288_v15 = vpack.c.bf16 %v2587_v54, %v2579_v61  ;;  %v2819_v26 = vld [vmem:[%s17293_s3 + $0xbb8] sm:$0xff] }
 0x27d   :  { %18072 = vst [vmem:[#allocation116_spill] sm:$0xff] %v14466_v25  ;;  %18075 = vst [vmem:[#allocation155_spill] sm:$0xff] %v14493_v43  ;;  %v14500_v10 = vsel %vm1198_vm5, %v18077_v57, %v18076_v38  ;;  %v8192_v49 = vpack.c.bf16 %v2585_v36, %v2577_v35  ;;  %v2593_v27 = vld [vmem:[%s17293_s3 + $0x4a8] sm:$0xff]  ;;  %v8194_v50 = vpack.c.bf16 %v2584_v31, %v2576_v58  ;;  %v2592_v35 = vld [vmem:[%s17293_s3 + $0x4a0] sm:$0xff] }
 0x27e   :  { %18078 = vst [vmem:[#allocation154_spill] sm:$0xff] %v14500_v10  ;;  %8187 = vmatpush1.bf16.msra.mxu1 %v8186_v63  ;;  %8283 = vmatpush1.bf16.msra.mxu0 %v8282_v47  ;;  %v2578_v63 = vld [vmem:[%s17293_s3 + $0x430] sm:$0xff]  ;;  %v2601_v11 = vld [vmem:[%s17293_s3 + $0x4e8] sm:$0xff]  ;;  %v2600_v36 = vld [vmem:[%s17293_s3 + $0x4e0] sm:$0xff] }
 0x27f   :  { %8189 = vmatprep.subr.bf16.mxu1 %v8188_v20  ;;  %8285 = vmatprep.subr.bf16.mxu0 %v8284_v14  ;;  %v2586_v47 = vld [vmem:[%s17293_s3 + $0x470] sm:$0xff]  ;;  %v2595_v20 = vld [vmem:[%s17293_s3 + $0x4b8] sm:$0xff]  ;;  %v8196_v61 = vpack.c.bf16 %v2601_v11, %v2593_v27  ;;  %v18079_v27 = vunpack.i.h.bf16 %v18007_v60  ;;  %v18080_v11 = vunpack.i.l.bf16 %v18007_v60  ;;  %v2704_v22 = vld [vmem:[%s17293_s3 + $0x820] sm:$0xff] }
 0x280   :  { %v2603_v14 = vld [vmem:[%s17293_s3 + $0x4f8] sm:$0xff]  ;;  %v8290_v45 = vpack.c.bf16 %v2586_v47, %v2578_v63  ;;  %v2594_v38 = vld [vmem:[%s17293_s3 + $0x4b0] sm:$0xff]  ;;  %v2608_v63 = vld [vmem:[%s17293_s3 + $0x520] sm:$0xff] }
 0x281   :  { %v8292_v54 = vpack.c.bf16 %v2603_v14, %v2595_v20  ;;  %v2602_v57 = vld [vmem:[%s17293_s3 + $0x4f0] sm:$0xff]  ;;  %v2611_v58 = vld [vmem:[%s17293_s3 + $0x538] sm:$0xff]  ;;  %v2616_v47 = vld [vmem:[%s17293_s3 + $0x560] sm:$0xff]  ;;  %v14563_v20 = vsel %vm1399_vm6, %v18080_v11, %v18079_v27  ;;  %v18082_v14 = vunpack.i.h.bf16 %v18017_v30 }
 0x282   :  { %8191 = vmatpush1.bf16.msra.mxu1 %v8190_v18  ;;  %8287 = vmatpush1.bf16.msra.mxu0 %v8286_v32  ;;  %v2609_v18 = vld [vmem:[%s17293_s3 + $0x528] sm:$0xff]  ;;  %v2619_v31 = vld [vmem:[%s17293_s3 + $0x578] sm:$0xff]  ;;  %18081 = vst [vmem:[#allocation57_spill] sm:$0xff] %v14563_v20  ;;  %v2618_v60 = vld [vmem:[%s17293_s3 + $0x570] sm:$0xff] }
 0x283   :  { %8193 = vmatprep.subr.bf16.mxu1 %v8192_v49  ;;  %8289 = vmatprep.subr.bf16.mxu0 %v8288_v15  ;;  %v2617_v32 = vld [vmem:[%s17293_s3 + $0x568] sm:$0xff]  ;;  %v8198_v49 = vpack.c.bf16 %v2600_v36, %v2592_v35  ;;  %v8294_v15 = vpack.c.bf16 %v2602_v57, %v2594_v38  ;;  %v8296_v36 = vpack.c.bf16 %v2619_v31, %v2611_v58  ;;  %v2610_v38 = vld [vmem:[%s17293_s3 + $0x530] sm:$0xff]  ;;  %v2624_v31 = vld [vmem:[%s17293_s3 + $0x5a0] sm:$0xff] }
 0x284   :  { %v8200_v35 = vpack.c.bf16 %v2617_v32, %v2609_v18  ;;  %v2625_v57 = vld [vmem:[%s17293_s3 + $0x5a8] sm:$0xff]  ;;  %v2635_v18 = vld [vmem:[%s17293_s3 + $0x5f8] sm:$0xff]  ;;  %v8202_v32 = vpack.c.bf16 %v2616_v47, %v2608_v63  ;;  %v8298_v58 = vpack.c.bf16 %v2618_v60, %v2610_v38  ;;  %v2632_v27 = vld [vmem:[%s17293_s3 + $0x5e0] sm:$0xff] }
 0x285   :  { %v2626_v11 = vld [vmem:[%s17293_s3 + $0x5b0] sm:$0xff]  ;;  %v2649_v63 = vld [vmem:[%s17293_s3 + $0x668] sm:$0xff]  ;;  %v2643_v47 = vld [vmem:[%s17293_s3 + $0x638] sm:$0xff] }
 0x286   :  { %8195 = vmatpush1.bf16.msra.mxu1 %v8194_v50  ;;  %8291 = vmatpush1.bf16.msra.mxu0 %v8290_v45  ;;  %v18083_v50 = vunpack.i.l.bf16 %v18017_v30  ;;  %v2696_v30 = vld [vmem:[%s17293_s3 + $0x7e0] sm:$0xff]  ;;  %v18123_v10 = vld [vmem:[#allocation4_spill] sm:$0xff] }
 0x287   :  { %8197 = vmatprep.subr.bf16.mxu1 %v8196_v61  ;;  %8293 = vmatprep.subr.bf16.mxu0 %v8292_v54  ;;  %v2633_v61 = vld [vmem:[%s17293_s3 + $0x5e8] sm:$0xff]  ;;  %v2627_v54 = vld [vmem:[%s17293_s3 + $0x5b8] sm:$0xff]  ;;  %v18122_v20 = vld [vmem:[#allocation3_spill] sm:$0xff]  ;;  %v9799_v42 = vunpack.i.h.bf16 %v18123_v10 }
 0x288   :  { %v14570_v45 = vsel %vm1399_vm6, %v18083_v50, %v18082_v14  ;;  %v8204_v14 = vpack.c.bf16 %v2633_v61, %v2625_v57  ;;  %v8300_v50 = vpack.c.bf16 %v2635_v18, %v2627_v54  ;;  %v2640_v57 = vld [vmem:[%s17293_s3 + $0x620] sm:$0xff]  ;;  %v2642_v18 = vld [vmem:[%s17293_s3 + $0x630] sm:$0xff] }
 0x289   :  { %18084 = vst [vmem:[#allocation60_spill] sm:$0xff] %v14570_v45  ;;  %v2648_v61 = vld [vmem:[%s17293_s3 + $0x660] sm:$0xff] }
 0x28a   :  { %8199 = vmatpush1.bf16.msra.mxu1 %v8198_v49  ;;  %8295 = vmatpush1.bf16.msra.mxu0 %v8294_v15  ;;  %v2634_v49 = vld [vmem:[%s17293_s3 + $0x5f0] sm:$0xff]  ;;  %v2641_v15 = vld [vmem:[%s17293_s3 + $0x628] sm:$0xff] }
 0x28b   :  { %8201 = vmatprep.subr.bf16.mxu1 %v8200_v35  ;;  %8297 = vmatprep.subr.bf16.mxu0 %v8296_v36  ;;  %v2651_v35 = vld [vmem:[%s17293_s3 + $0x678] sm:$0xff]  ;;  %v8206_v36 = vpack.c.bf16 %v2632_v27, %v2624_v31  ;;  %v8302_v38 = vpack.c.bf16 %v2634_v49, %v2626_v11  ;;  %v8208_v60 = vpack.c.bf16 %v2649_v63, %v2641_v15  ;;  %v18085_v31 = vunpack.i.h.bf16 %v18023_v33  ;;  %v2665_v15 = vld [vmem:[%s17293_s3 + $0x6e8] sm:$0xff] }
 0x28c   :  { %v8304_v54 = vpack.c.bf16 %v2651_v35, %v2643_v47  ;;  %v18086_v27 = vunpack.i.l.bf16 %v18023_v33  ;;  %v2659_v63 = vld [vmem:[%s17293_s3 + $0x6b8] sm:$0xff]  ;;  %v2658_v47 = vld [vmem:[%s17293_s3 + $0x6b0] sm:$0xff] }
 0x28d   :  { %v2667_v33 = vld [vmem:[%s17293_s3 + $0x6f8] sm:$0xff] }
 0x28e   :  { %8203 = vmatpush1.bf16.msra.mxu1 %v8202_v32  ;;  %8299 = vmatpush1.bf16.msra.mxu0 %v8298_v58  ;;  %v2650_v32 = vld [vmem:[%s17293_s3 + $0x670] sm:$0xff]  ;;  %v2657_v58 = vld [vmem:[%s17293_s3 + $0x6a8] sm:$0xff]  ;;  %v14636_v11 = vsel %vm1399_vm6, %v18086_v27, %v18085_v31  ;;  %v2656_v31 = vld [vmem:[%s17293_s3 + $0x6a0] sm:$0xff] }
 0x28f   :  { %8205 = vmatprep.subr.bf16.mxu1 %v8204_v14  ;;  %8301 = vmatprep.subr.bf16.mxu0 %v8300_v50  ;;  %18087 = vst [vmem:[#allocation64_spill] sm:$0xff] %v14636_v11  ;;  %v18088_v14 = vunpack.i.h.bf16 %v18035_v12  ;;  %v18089_v50 = vunpack.i.l.bf16 %v18035_v12  ;;  %v8210_v12 = vpack.c.bf16 %v2648_v61, %v2640_v57  ;;  %v8306_v35 = vpack.c.bf16 %v2650_v32, %v2642_v18  ;;  %v2664_v27 = vld [vmem:[%s17293_s3 + $0x6e0] sm:$0xff]  ;;  %v2681_v57 = vld [vmem:[%s17293_s3 + $0x768] sm:$0xff]  ;;  %v2683_v61 = vld [vmem:[%s17293_s3 + $0x778] sm:$0xff] }
 0x290   :  { %v2672_v32 = vld [vmem:[%s17293_s3 + $0x720] sm:$0xff] }
 0x291   :  { %v14643_v49 = vsel %vm1399_vm6, %v18089_v50, %v18088_v14  ;;  %v8212_v14 = vpack.c.bf16 %v2665_v15, %v2657_v58  ;;  %v8308_v50 = vpack.c.bf16 %v2667_v33, %v2659_v63  ;;  %v2680_v58 = vld [vmem:[%s17293_s3 + $0x760] sm:$0xff]  ;;  %v2674_v33 = vld [vmem:[%s17293_s3 + $0x730] sm:$0xff] }
 0x292   :  { %18090 = vst [vmem:[#allocation61_spill] sm:$0xff] %v14643_v49  ;;  %8207 = vmatpush1.bf16.msra.mxu1 %v8206_v36  ;;  %8303 = vmatpush1.bf16.msra.mxu0 %v8302_v38  ;;  %v2666_v36 = vld [vmem:[%s17293_s3 + $0x6f0] sm:$0xff]  ;;  %v2673_v38 = vld [vmem:[%s17293_s3 + $0x728] sm:$0xff]  ;;  %v18121_v49 = vld [vmem:[#allocation6_spill] sm:$0xff] }
 0x293   :  { %8209 = vmatprep.subr.bf16.mxu1 %v8208_v60  ;;  %8305 = vmatprep.subr.bf16.mxu0 %v8304_v54  ;;  %v2675_v60 = vld [vmem:[%s17293_s3 + $0x738] sm:$0xff]  ;;  %v8214_v54 = vpack.c.bf16 %v2664_v27, %v2656_v31  ;;  %v8310_v18 = vpack.c.bf16 %v2666_v36, %v2658_v47  ;;  %v8216_v15 = vpack.c.bf16 %v2681_v57, %v2673_v38  ;;  %v2682_v47 = vld [vmem:[%s17293_s3 + $0x770] sm:$0xff]  ;;  %v18092_v27 = vld [vmem:[#allocation104_spill] sm:$0xff] }
 0x294   :  { %v8312_v63 = vpack.c.bf16 %v2683_v61, %v2675_v60  ;;  %v17590_v36 = vunpack.i.h.bf16 %v18092_v27  ;;  %v2699_v38 = vld [vmem:[%s17293_s3 + $0x7f8] sm:$0xff]  ;;  %v8218_v57 = vpack.c.bf16 %v2680_v58, %v2672_v32  ;;  %v8314_v60 = vpack.c.bf16 %v2682_v47, %v2674_v33  ;;  %v2688_v61 = vld [vmem:[%s17293_s3 + $0x7a0] sm:$0xff]  ;;  %v2690_v33 = vld [vmem:[%s17293_s3 + $0x7b0] sm:$0xff] }
 0x295   :  { %v2705_v47 = vld [vmem:[%s17293_s3 + $0x828] sm:$0xff] }
 0x296   :  { %8211 = vmatpush1.bf16.msra.mxu1 %v8210_v12  ;;  %8307 = vmatpush1.bf16.msra.mxu0 %v8306_v35  ;;  %v2689_v12 = vld [vmem:[%s17293_s3 + $0x7a8] sm:$0xff]  ;;  %v18091_v35 = vld [vmem:[#allocation103_spill] sm:$0xff] }
 0x297   :  { %8213 = vmatprep.subr.bf16.mxu1 %v8212_v14  ;;  %8309 = vmatprep.subr.bf16.mxu0 %v8308_v50  ;;  %v17591_v31 = vunpack.i.h.bf16 %v18091_v35  ;;  %v2697_v14 = vld [vmem:[%s17293_s3 + $0x7e8] sm:$0xff]  ;;  %v2691_v50 = vld [vmem:[%s17293_s3 + $0x7b8] sm:$0xff]  ;;  %v18093_v44 = vunpack.i.l.bf16 %v18091_v35 }
 0x298   :  { %v8220_v32 = vpack.c.bf16 %v2697_v14, %v2689_v12  ;;  %v8316_v58 = vpack.c.bf16 %v2699_v38, %v2691_v50  ;;  %v2715_v12 = vld [vmem:[%s17293_s3 + $0x878] sm:$0xff]  ;;  %v8222_v14 = vpack.c.bf16 %v2696_v30, %v2688_v61  ;;  %v2714_v30 = vld [vmem:[%s17293_s3 + $0x870] sm:$0xff] }
 0x299   :  { %v14717_v55 = vsel %vm1399_vm6, %v18093_v44, %v17591_v31  ;;  %v2698_v44 = vld [vmem:[%s17293_s3 + $0x7f0] sm:$0xff] }
 0x29a   :  { %8215 = vmatpush1.bf16.msra.mxu1 %v8214_v54  ;;  %8311 = vmatpush1.bf16.msra.mxu0 %v8310_v18  ;;  %18094 = vst [vmem:[#allocation159_spill] sm:$0xff] %v14717_v55  ;;  %v18095_v54 = vunpack.i.l.bf16 %v18092_v27  ;;  %v8318_v50 = vpack.c.bf16 %v2698_v44, %v2690_v33  ;;  %v2729_v33 = vld [vmem:[%s17293_s3 + $0x8e8] sm:$0xff]  ;;  %v2723_v44 = vld [vmem:[%s17293_s3 + $0x8b8] sm:$0xff]  ;;  %v2760_v55 = vld [vmem:[%s17293_s3 + $0x9e0] sm:$0xff] }
 0x29b   :  { %8217 = vmatprep.subr.bf16.mxu1 %v8216_v15  ;;  %8313 = vmatprep.subr.bf16.mxu0 %v8312_v63  ;;  %v2713_v15 = vld [vmem:[%s17293_s3 + $0x868] sm:$0xff]  ;;  %v2707_v63 = vld [vmem:[%s17293_s3 + $0x838] sm:$0xff] }
 0x29c   :  { %v14724_v18 = vsel %vm1399_vm6, %v18095_v54, %v17590_v36  ;;  %v8224_v38 = vpack.c.bf16 %v2713_v15, %v2705_v47  ;;  %v8320_v54 = vpack.c.bf16 %v2715_v12, %v2707_v63  ;;  %v2731_v47 = vld [vmem:[%s17293_s3 + $0x8f8] sm:$0xff]  ;;  %v8226_v15 = vpack.c.bf16 %v2712_v52, %v2704_v22  ;;  %v2720_v12 = vld [vmem:[%s17293_s3 + $0x8a0] sm:$0xff] }
 0x29d   :  { %18096 = vst [vmem:[#allocation160_spill] sm:$0xff] %v14724_v18  ;;  %v8322_v63 = vpack.c.bf16 %v2714_v30, %v2706_v62  ;;  %v2728_v36 = vld [vmem:[%s17293_s3 + $0x8e0] sm:$0xff] }
 0x29e   :  { %8219 = vmatpush1.bf16.msra.mxu1 %v8218_v57  ;;  %8315 = vmatpush1.bf16.msra.mxu0 %v8314_v60  ;;  %v2721_v57 = vld [vmem:[%s17293_s3 + $0x8a8] sm:$0xff]  ;;  %v18097_v60 = vld [vmem:[#allocation111_spill] sm:$0xff] }
 0x29f   :  { %8221 = vmatprep.subr.bf16.mxu1 %v8220_v32  ;;  %8317 = vmatprep.subr.bf16.mxu0 %v8316_v58  ;;  %v17593_v61 = vunpack.i.h.bf16 %v18097_v60  ;;  %v18098_v32 = vld [vmem:[#allocation112_spill] sm:$0xff]  ;;  %v18099_v31 = vunpack.i.l.bf16 %v18097_v60  ;;  %v8228_v22 = vpack.c.bf16 %v2729_v33, %v2721_v57  ;;  %v18103_v30 = vld [vmem:[#allocation115_spill] sm:$0xff]  ;;  %v2739_v33 = vld [vmem:[%s17293_s3 + $0x938] sm:$0xff] }
 0x2a0   :  { %v17592_v58 = vunpack.i.h.bf16 %v18098_v32  ;;  %v18101_v52 = vunpack.i.l.bf16 %v18098_v32  ;;  %v2745_v57 = vld [vmem:[%s17293_s3 + $0x968] sm:$0xff]  ;;  %v18145_v32 = vld [vmem:[#allocation11_spill] sm:$0xff] }
 0x2a1   :  { %v14783_v51 = vsel %vm1399_vm6, %v18099_v31, %v17593_v61  ;;  %v2737_v31 = vld [vmem:[%s17293_s3 + $0x928] sm:$0xff] }
 0x2a2   :  { %8223 = vmatpush1.bf16.msra.mxu1 %v8222_v14  ;;  %8319 = vmatpush1.bf16.msra.mxu0 %v8318_v50  ;;  %18100 = vst [vmem:[#allocation161_spill] sm:$0xff] %v14783_v51  ;;  %v14790_v62 = vsel %vm1399_vm6, %v18101_v52, %v17592_v58  ;;  %v2722_v14 = vld [vmem:[%s17293_s3 + $0x8b0] sm:$0xff]  ;;  %v8230_v52 = vpack.c.bf16 %v2728_v36, %v2720_v12  ;;  %v2744_v58 = vld [vmem:[%s17293_s3 + $0x960] sm:$0xff] }
 0x2a3   :  { %8225 = vmatprep.subr.bf16.mxu1 %v8224_v38  ;;  %8321 = vmatprep.subr.bf16.mxu0 %v8320_v54  ;;  %18102 = vst [vmem:[#allocation162_spill] sm:$0xff] %v14790_v62  ;;  %v8324_v54 = vpack.c.bf16 %v2731_v47, %v2723_v44  ;;  %v2730_v50 = vld [vmem:[%s17293_s3 + $0x8f0] sm:$0xff]  ;;  %v2747_v44 = vld [vmem:[%s17293_s3 + $0x978] sm:$0xff]  ;;  %v18104_v47 = vld [vmem:[#allocation124_spill] sm:$0xff]  ;;  %v8232_v61 = vpack.c.bf16 %v2745_v57, %v2737_v31 }
 0x2a4   :  { %v2736_v38 = vld [vmem:[%s17293_s3 + $0x920] sm:$0xff]  ;;  %v8328_v51 = vpack.c.bf16 %v2747_v44, %v2739_v33  ;;  %v2738_v36 = vld [vmem:[%s17293_s3 + $0x930] sm:$0xff]  ;;  %v18108_v44 = vld [vmem:[#allocation128_spill] sm:$0xff] }
 0x2a5   :  { %3273 = vmatmul.mubr.f32.vlgmr.msra.gmra.mrb[28].mxu1 %v18103_v30  ;;  %3451 = vmatmul.mubr.f32.vlgmr.msra.gmra.mrb[16].mxu0 %v18103_v30  ;;  %v8326_v30 = vpack.c.bf16 %v2730_v50, %v2722_v14  ;;  %v18105_v12 = vld [vmem:[#allocation123_spill] sm:$0xff]  ;;  %v2763_v14 = vld [vmem:[%s17293_s3 + $0x9f8] sm:$0xff]  ;;  %v18107_v57 = vld [vmem:[#allocation125_spill] sm:$0xff] }
 0x2a6   :  { %3278 = vmatprep.mubr.f32.mxu1 %v18104_v47  ;;  %8227 = vmatpush1.bf16.msra.mxu1 %v8226_v15  ;;  %v2746_v15 = vld [vmem:[%s17293_s3 + $0x970] sm:$0xff]  ;;  %v18106_v50 = vld [vmem:[#allocation126_spill] sm:$0xff]  ;;  %v17599_v33 = vunpack.i.h.bf16 %v18107_v57  ;;  %v2752_v62 = vld [vmem:[%s17293_s3 + $0x9a0] sm:$0xff] }
 0x2a7   :  { %3456 = vmatprep.mubr.f32.mxu0 %v18104_v47  ;;  %8323 = vmatpush1.bf16.msra.mxu0 %v8322_v63  ;;  %v2753_v63 = vld [vmem:[%s17293_s3 + $0x9a8] sm:$0xff]  ;;  %v8234_v47 = vpack.c.bf16 %v2744_v58, %v2736_v38  ;;  %v2754_v31 = vld [vmem:[%s17293_s3 + $0x9b0] sm:$0xff] }
 0x2a8   :  { %8229 = vmatprep.subr.bf16.mxu1 %v8228_v22  ;;  %8325 = vmatprep.subr.bf16.mxu0 %v8324_v54  ;;  %v2761_v22 = vld [vmem:[%s17293_s3 + $0x9e8] sm:$0xff]  ;;  %v2755_v54 = vld [vmem:[%s17293_s3 + $0x9b8] sm:$0xff]  ;;  %v2762_v38 = vld [vmem:[%s17293_s3 + $0x9f0] sm:$0xff] }
 0x2a9   :  { %3279 = vmatmul.mubr.f32.gmra.mrb[30].mxu1 %v18105_v12  ;;  %3457 = vmatmul.mubr.f32.gmra.mrb[18].mxu0 %v18105_v12  ;;  %v8330_v12 = vpack.c.bf16 %v2746_v15, %v2738_v36  ;;  %v8332_v58 = vpack.c.bf16 %v2763_v14, %v2755_v54  ;;  %v2777_v36 = vld [vmem:[%s17293_s3 + $0xa68] sm:$0xff]  ;;  %v18109_v15 = vld [vmem:[#allocation127_spill] sm:$0xff]  ;;  %v18111_v54 = vunpack.i.l.bf16 %v18107_v57  ;;  %v8334_v11 = vpack.c.bf16 %v2762_v38, %v2754_v31  ;;  %v2778_v31 = vld [vmem:[%s17293_s3 + $0xa70] sm:$0xff] }
 0x2aa   :  { %3284 = vmatprep.mubr.f32.mxu1 %v18108_v44  ;;  %8231 = vmatpush1.bf16.msra.mxu1 %v8230_v52  ;;  %v8236_v52 = vpack.c.bf16 %v2761_v22, %v2753_v63  ;;  %v18110_v63 = vld [vmem:[#allocation138_spill] sm:$0xff]  ;;  %v8238_v22 = vpack.c.bf16 %v2760_v55, %v2752_v62  ;;  %v2768_v55 = vld [vmem:[%s17293_s3 + $0xa20] sm:$0xff]  ;;  %v2785_v38 = vld [vmem:[%s17293_s3 + $0xaa8] sm:$0xff] }
 0x2ab   :  { %3462 = vmatprep.mubr.f32.mxu0 %v18108_v44  ;;  %8327 = vmatpush1.bf16.msra.mxu0 %v8326_v30  ;;  %v2769_v30 = vld [vmem:[%s17293_s3 + $0xa28] sm:$0xff]  ;;  %v14878_v14 = vsel %vm1600_vm7, %v18111_v54, %v17599_v33  ;;  %v18113_v44 = vunpack.i.h.bf16 %v18106_v50  ;;  %v2776_v62 = vld [vmem:[%s17293_s3 + $0xa60] sm:$0xff]  ;;  %v2770_v54 = vld [vmem:[%s17293_s3 + $0xa30] sm:$0xff] }
 0x2ac   :  { %8233 = vmatprep.subr.bf16.mxu1 %v8232_v61  ;;  %8329 = vmatprep.subr.bf16.mxu0 %v8328_v51  ;;  %v2771_v51 = vld [vmem:[%s17293_s3 + $0xa38] sm:$0xff]  ;;  %18112 = vst [vmem:[#allocation115_spill] sm:$0xff] %v14878_v14  ;;  %v8338_v33 = vpack.c.bf16 %v2778_v31, %v2770_v54  ;;  %v18120_v31 = vld [vmem:[#allocation9_spill] sm:$0xff] }
 0x2ad   :  { %3285 = vmatmul.mubr.f32.gmra.mrb[32].mxu1 %v18109_v15  ;;  %3463 = vmatmul.mubr.f32.gmra.mrb[20].mxu0 %v18109_v15  ;;  %v2779_v61 = vld [vmem:[%s17293_s3 + $0xa78] sm:$0xff]  ;;  %v18114_v15 = vunpack.i.l.bf16 %v18106_v50 }
 0x2ae   :  { %3290 = vmatprep.mubr.f32.mxu1 %v18110_v63  ;;  %8235 = vmatpush1.bf16.msra.mxu1 %v8234_v47  ;;  %v8240_v47 = vpack.c.bf16 %v2777_v36, %v2769_v30  ;;  %v2793_v30 = vld [vmem:[%s17293_s3 + $0xae8] sm:$0xff]  ;;  %v18116_v36 = vld [vmem:[#allocation133_spill] sm:$0xff] }
 0x2af   :  { %v14885_v18 = vsel %vm1600_vm7, %v18114_v15, %v18113_v44  ;;  %3468 = vmatprep.mubr.f32.mxu0 %v18110_v63  ;;  %8331 = vmatpush1.bf16.msra.mxu0 %v8330_v12  ;;  %v8336_v12 = vpack.c.bf16 %v2779_v61, %v2771_v51  ;;  %v8242_v51 = vpack.c.bf16 %v2776_v62, %v2768_v55  ;;  %v2784_v61 = vld [vmem:[%s17293_s3 + $0xaa0] sm:$0xff]  ;;  %v18118_v44 = vld [vmem:[#allocation144_spill] sm:$0xff]  ;;  %v2794_v55 = vld [vmem:[%s17293_s3 + $0xaf0] sm:$0xff] }
 0x2b0   :  { %18115 = vst [vmem:[#allocation124_spill] sm:$0xff] %v14885_v18  ;;  %8237 = vmatprep.subr.bf16.mxu1 %v8236_v52  ;;  %8333 = vmatprep.subr.bf16.mxu0 %v8332_v58  ;;  %v2787_v52 = vld [vmem:[%s17293_s3 + $0xab8] sm:$0xff]  ;;  %v18117_v63 = vld [vmem:[#allocation139_spill] sm:$0xff]  ;;  %v8244_v14 = vpack.c.bf16 %v2793_v30, %v2785_v38  ;;  %v18119_v62 = vld [vmem:[#allocation5_spill] sm:$0xff]  ;;  %v9784_v38 = vunpack.i.h.bf16 %v18120_v31  ;;  %v9783_v30 = vunpack.i.l.bf16 %v18120_v31 }
 0x2b1   :  { %3291 = vmatmul.mubr.f32.gmra.mrb[34].mxu1 %v18116_v36  ;;  %3469 = vmatmul.mubr.f32.gmra.mrb[22].mxu0 %v18116_v36  ;;  %v2795_v58 = vld [vmem:[%s17293_s3 + $0xaf8] sm:$0xff]  ;;  %v2792_v18 = vld [vmem:[%s17293_s3 + $0xae0] sm:$0xff] }
 0x2b2   :  { %8239 = vmatpush1.bf16.msra.mxu1 %v8238_v22  ;;  %3361 = vmatprep.mubr.f32.mxu1 %v17911_v34  ;;  %v2786_v22 = vld [vmem:[%s17293_s3 + $0xab0] sm:$0xff]  ;;  %v8340_v36 = vpack.c.bf16 %v2795_v58, %v2787_v52  ;;  %v2811_v52 = vld [vmem:[%s17293_s3 + $0xb78] sm:$0xff]  ;;  %v8246_v54 = vpack.c.bf16 %v2792_v18, %v2784_v61  ;;  %v2800_v15 = vld [vmem:[%s17293_s3 + $0xb20] sm:$0xff]  ;;  %v18124_v18 = vunpack.i.h.bf16 %v18117_v63  ;;  %v18128_v61 = vunpack.i.l.bf16 %v18118_v44 }
 0x2b3   :  { %8335 = vmatpush1.bf16.msra.mxu0 %v8334_v11  ;;  %8241 = vmatprep.subr.bf16.mxu1 %v8240_v47  ;;  %v2801_v11 = vld [vmem:[%s17293_s3 + $0xb28] sm:$0xff]  ;;  %v8342_v43 = vpack.c.bf16 %v2794_v55, %v2786_v22  ;;  %v2802_v58 = vld [vmem:[%s17293_s3 + $0xb30] sm:$0xff]  ;;  %v18130_v55 = vld [vmem:[#allocation10_spill] sm:$0xff] }
 0x2b4   :  { %8337 = vmatprep.subr.bf16.mxu0 %v8336_v12  ;;  %v2809_v47 = vld [vmem:[%s17293_s3 + $0xb68] sm:$0xff]  ;;  %3539 = vmatprep.mubr.f32.mxu0 %v17911_v34  ;;  %v2803_v12 = vld [vmem:[%s17293_s3 + $0xb38] sm:$0xff] }
 0x2b5   :  { %v8248_v31 = vpack.c.bf16 %v2809_v47, %v2801_v11  ;;  %v9798_v47 = vunpack.i.l.bf16 %v18123_v10  ;;  %v8344_v45 = vpack.c.bf16 %v2811_v52, %v2803_v12  ;;  %v18133_v11 = vld [vmem:[#allocation14_spill] sm:$0xff]  ;;  %v18136_v52 = vunpack.i.l.bf16 %v18122_v20 }
 0x2b6   :  { %8243 = vmatpush1.bf16.msra.mxu1 %v8242_v51  ;;  %v18125_v51 = vunpack.i.l.bf16 %v18117_v63  ;;  %v8346_v63 = vpack.c.bf16 %v2810_v3, %v2802_v58  ;;  %v18143_v50 = vunpack.i.h.bf16 %v18133_v11 }
 0x2b7   :  { %8339 = vmatpush1.bf16.msra.mxu0 %v8338_v33  ;;  %8245 = vmatprep.subr.bf16.mxu1 %v8244_v14  ;;  %v18127_v14 = vunpack.i.h.bf16 %v18118_v44  ;;  %v15013_v25 = vsel %vm193_vm0, %v9799_v42, %v18136_v52  ;;  %v18139_v52 = vld [vmem:[#allocation19_spill] sm:$0xff]  ;;  %v9813_v42 = vunpack.i.l.bf16 %v18145_v32 }
 0x2b8   :  { %v14966_v33 = vsel %vm1600_vm7, %v18125_v51, %v18124_v18  ;;  %8341 = vmatprep.subr.bf16.mxu0 %v8340_v36  ;;  %v2817_v18 = vld [vmem:[%s17293_s3 + $0xba8] sm:$0xff]  ;;  %v18132_v36 = vunpack.i.l.bf16 %v18121_v49 }
 0x2b9   :  { %18126 = vst [vmem:[#allocation123_spill] sm:$0xff] %v14966_v33  ;;  %v14973_v22 = vsel %vm1600_vm7, %v18128_v61, %v18127_v14  ;;  %v2825_v51 = vld [vmem:[%s17293_s3 + $0xbe8] sm:$0xff]  ;;  %v18131_v61 = vunpack.i.l.bf16 %v18119_v62  ;;  %v2827_v14 = vld [vmem:[%s17293_s3 + $0xbf8] sm:$0xff] }
 0x2ba   :  { %18129 = vst [vmem:[#allocation128_spill] sm:$0xff] %v14973_v22  ;;  %v14996_v12 = vsel %vm193_vm0, %v9784_v38, %v18132_v36  ;;  %v18134_v33 = vld [vmem:[#allocation16_spill] sm:$0xff]  ;;  %8247 = vmatpush1.bf16.msra.mxu1 %v8246_v54  ;;  %v8250_v38 = vpack.c.bf16 %v2808_v23, %v2800_v15  ;;  %v8252_v16 = vpack.c.bf16 %v2825_v51, %v2817_v18  ;;  %v2824_v54 = vld [vmem:[%s17293_s3 + $0xbe0] sm:$0xff]  ;;  %v2818_v23 = vld [vmem:[%s17293_s3 + $0xbb0] sm:$0xff] }
 0x2bb   :  { %v14991_v10 = vsel %vm193_vm0, %v9783_v30, %v18131_v61  ;;  %v18135_v61 = vld [vmem:[#allocation65_spill] sm:$0xff]  ;;  %8343 = vmatpush1.bf16.msra.mxu0 %v8342_v43  ;;  %8249 = vmatprep.subr.bf16.mxu1 %v8248_v31  ;;  %v2816_v30 = vld [vmem:[%s17293_s3 + $0xba0] sm:$0xff]  ;;  %v18138_v43 = vunpack.i.l.bf16 %v18130_v55  ;;  %v8348_v58 = vpack.c.bf16 %v2827_v14, %v2819_v26  ;;  %v7181_v18 = vld [vmem:[%s17291_s0 + $0x108] sm:$0xff]  ;;  %v18144_v53 = vunpack.i.h.bf16 %v18134_v33 }
 0x2bc   :  { %v10074_v22 = vunpack.i.h.bf16 %v18135_v61  ;;  %v10073_v44 = vunpack.i.l.bf16 %v18135_v61  ;;  %v18137_v15 = vld [vmem:[#allocation7_spill] sm:$0xff]  ;;  %8345 = vmatprep.subr.bf16.mxu0 %v8344_v45  ;;  %v2826_v31 = vld [vmem:[%s17293_s3 + $0xbf0] sm:$0xff]  ;;  %v7184_v51 = vld [vmem:[%s17291_s0 + $0x128] sm:$0xff]  ;;  %v8254_v29 = vpack.c.bf16 %v2824_v54, %v2816_v30  ;;  %v9814_v61 = vunpack.i.h.bf16 %v18145_v32 }
 0x2bd   :  { %v15029_v3 = vsel %vm193_vm0, %v9798_v47, %v18138_v43  ;;  %v18140_v36 = vld [vmem:[#allocation18_spill] sm:$0xff]  ;;  %v18142_v45 = vld [vmem:[#allocation8_spill] sm:$0xff]  ;;  %v8350_v60 = vpack.c.bf16 %v2826_v31, %v2818_v23  ;;  %v7180_v30 = vld [vmem:[%s17291_s0 + $0x100] sm:$0xff] }
 0x2be   :  { %v18141_v47 = vld [vmem:[#allocation70_spill] sm:$0xff]  ;;  %8251 = vmatpush1.bf16.msra.mxu1 %v8250_v38  ;;  %v3975_v57 = vsel %vm394_vm1, %v18143_v50, %v10073_v44  ;;  %v3978_v41 = vsel %vm394_vm1, %v18144_v53, %v10074_v22  ;;  %v7183_v50 = vld [vmem:[%s17291_s0 + $0x120] sm:$0xff]  ;;  %v18146_v44 = vld [vmem:[#allocation21_spill] sm:$0xff]  ;;  %v18151_v38 = vunpack.i.h.bf16 %v18139_v52 }
 0x2bf   :  { %v10094_v43 = vunpack.i.h.bf16 %v18141_v47  ;;  %v10093_v26 = vunpack.i.l.bf16 %v18141_v47  ;;  %8347 = vmatpush1.bf16.msra.mxu0 %v8346_v63  ;;  %8253 = vmatprep.subr.bf16.mxu1 %v8252_v16  ;;  %v8352_v47 = vpack.c.bf16 %v7184_v51, %v7181_v18  ;;  %v18147_v54 = vld [vmem:[#allocation22_spill] sm:$0xff]  ;;  %v18148_v14 = vld [vmem:[#allocation152_spill] sm:$0xff]  ;;  %v7182_v16 = vld [vmem:[%s17291_s0 + $0x110] sm:$0xff]  ;;  %v8496_v18 = vpack.c.bf16 %v3978_v41, %v3975_v57 }
 0x2c0   :  { %8349 = vmatprep.subr.bf16.mxu0 %v8348_v58  ;;  %v7185_v63 = vld [vmem:[%s17291_s0 + $0x130] sm:$0xff]  ;;  %v18149_v23 = vld [vmem:[#allocation75_spill] sm:$0xff]  ;;  %v18150_v51 = vunpack.i.h.bf16 %v18140_v36  ;;  %v8354_v32 = vpack.c.bf16 %v7183_v50, %v7180_v30  ;;  %v7190_v41 = vld [vmem:[%s17291_s0 + $0x168] sm:$0xff]  ;;  %v18152_v57 = vunpack.i.h.bf16 %v18148_v14  ;;  %v18166_v39 = vunpack.i.h.bf16 %v18147_v54 }
 0x2c1   :  { %v10113_v31 = vunpack.i.l.bf16 %v18149_v23  ;;  %v3984_v22 = vsel %vm394_vm1, %v18151_v38, %v10094_v43  ;;  %v10114_v58 = vunpack.i.h.bf16 %v18149_v23  ;;  %v18155_v43 = vunpack.i.h.bf16 %v13964_v4  ;;  %v18158_v38 = vld [vmem:[#allocation12_spill] sm:$0xff]  ;;  %v7188_v50 = vld [vmem:[%s17291_s0 + $0x150] sm:$0xff] }
 0x2c2   :  { %v3981_v53 = vsel %vm394_vm1, %v18150_v51, %v10093_v26  ;;  %8255 = vmatpush1.bf16.msra.mxu1 %v8254_v29  ;;  %v18153_v26 = vunpack.i.l.bf16 %v18148_v14  ;;  %v18156_v29 = vunpack.i.l.bf16 %v13964_v4  ;;  %v8498_v56 = vpack.c.bf16 %v7185_v63, %v7182_v16  ;;  %v7186_v14 = vld [vmem:[%s17291_s0 + $0x140] sm:$0xff]  ;;  %v18161_v63 = vld [vmem:[#allocation24_spill] sm:$0xff] }
 0x2c3   :  { %8351 = vmatpush1.bf16.msra.mxu0 %v8350_v60  ;;  %8353 = vmatprep.subr.bf16.mxu1 %v8352_v47  ;;  %v18160_v60 = vunpack.i.l.bf16 %v18142_v45  ;;  %v18165_v23 = vld [vmem:[#allocation80_spill] sm:$0xff] }
 0x2c4   :  { %v15088_v51 = vsel %vm1600_vm7, %v18153_v26, %v18152_v57  ;;  %v15095_v30 = vsel %vm1600_vm7, %v18156_v29, %v18155_v43  ;;  %v7189_v57 = vld [vmem:[%s17291_s0 + $0x160] sm:$0xff]  ;;  %v18159_v43 = vunpack.i.l.bf16 %v18137_v15  ;;  %8497 = vmatprep.subr.bf16.mxu0 %v8496_v18  ;;  %v7191_v26 = vld [vmem:[%s17291_s0 + $0x170] sm:$0xff]  ;;  %v10134_v18 = vunpack.i.h.bf16 %v18165_v23 }
 0x2c5   :  { %18154 = vst [vmem:[#allocation127_spill] sm:$0xff] %v15088_v51  ;;  %18157 = vst [vmem:[#allocation138_spill] sm:$0xff] %v15095_v30  ;;  %v15115_v47 = vsel %vm193_vm0, %v9814_v61, %v18160_v60  ;;  %v18163_v51 = vld [vmem:[#allocation131_spill] sm:$0xff]  ;;  %v8500_v30 = vpack.c.bf16 %v3984_v22, %v3981_v53  ;;  %v8356_v61 = vpack.c.bf16 %v7190_v41, %v7187_v7  ;;  %v18164_v60 = vunpack.i.h.bf16 %v18146_v44  ;;  %v7193_v7 = vld [vmem:[%s17291_s0 + $0x188] sm:$0xff] }
 0x2c6   :  { %v15110_v29 = vsel %vm193_vm0, %v9813_v42, %v18159_v43  ;;  %v18162_v42 = vld [vmem:[#allocation25_spill] sm:$0xff]  ;;  %3362 = vmatmul.mubr.f32.vlgmr.msra.gmra.mrb[28].mxu1 %v18163_v51  ;;  %v10133_v4 = vunpack.i.l.bf16 %v18165_v23  ;;  %3540 = vmatmul.mubr.f32.vlgmr.msra.gmra.mrb[16].mxu0 %v18163_v51  ;;  %v8358_v40 = vpack.c.bf16 %v7189_v57, %v7186_v14  ;;  %v3990_v43 = vsel %vm394_vm1, %v18166_v39, %v10114_v58  ;;  %v7196_v53 = vld [vmem:[%s17291_s0 + $0x1a8] sm:$0xff]  ;;  %v18168_v23 = vld [vmem:[#allocation27_spill] sm:$0xff] }
 0x2c7   :  { %v3987_v16 = vsel %vm394_vm1, %v18164_v60, %v10113_v31  ;;  %8355 = vmatpush1.bf16.msra.mxu1 %v8354_v32  ;;  %v18167_v22 = vld [vmem:[#allocation13_spill] sm:$0xff]  ;;  %8499 = vmatpush3.bf16.msra.mxu0 %v8498_v56  ;;  %v8502_v14 = vpack.c.bf16 %v7191_v26, %v7188_v50  ;;  %v7192_v39 = vld [vmem:[%s17291_s0 + $0x180] sm:$0xff]  ;;  %v18169_v58 = vld [vmem:[#allocation28_spill] sm:$0xff]  ;;  %v18171_v26 = vunpack.i.h.bf16 %v18119_v62  ;;  %v18172_v41 = vunpack.i.l.bf16 %v18119_v62 }
 0x2c8   :  { %3367 = vmatprep.mubr.f32.mxu1 %v17911_v34  ;;  %v7195_v32 = vld [vmem:[%s17291_s0 + $0x1a0] sm:$0xff]  ;;  %v18170_v60 = vld [vmem:[#allocation30_spill] sm:$0xff]  ;;  %8501 = vmatprep.subr.bf16.mxu0 %v8500_v30  ;;  %v7194_v56 = vld [vmem:[%s17291_s0 + $0x190] sm:$0xff]  ;;  %v18173_v31 = vunpack.i.h.bf16 %v18121_v49  ;;  %v18174_v30 = vunpack.i.l.bf16 %v18121_v49  ;;  %v8504_v35 = vpack.c.bf16 %v3990_v43, %v3987_v16  ;;  %v8360_v24 = vpack.c.bf16 %v7196_v53, %v7193_v7 }
 0x2c9   :  { %3545 = vmatprep.mubr.f32.mxu0 %v17911_v34  ;;  %v7197_v50 = vld [vmem:[%s17291_s0 + $0x1b0] sm:$0xff]  ;;  %v15166_v51 = vsel %vm193_vm0, %v18172_v41, %v18171_v26  ;;  %8357 = vmatprep.subr.bf16.mxu1 %v8356_v61  ;;  %v8362_v41 = vpack.c.bf16 %v7195_v32, %v7192_v39  ;;  %v18176_v26 = vunpack.i.h.bf16 %v18161_v63  ;;  %v7199_v16 = vld [vmem:[%s17291_s0 + $0x1c8] sm:$0xff]  ;;  %v7201_v61 = vld [vmem:[%s17291_s0 + $0x1e0] sm:$0xff]  ;;  %v18179_v7 = vunpack.i.l.bf16 %v14061_v19 }
 0x2ca   :  { %v15173_v57 = vsel %vm193_vm0, %v18174_v30, %v18173_v31  ;;  %3368 = vmatmul.mubr.f32.gmra.mrb[30].mxu1 %v14046_v9  ;;  %3546 = vmatmul.mubr.f32.gmra.mrb[18].mxu0 %v14046_v9  ;;  %v18177_v30 = vunpack.i.h.bf16 %v18162_v42  ;;  %v7202_v43 = vld [vmem:[%s17291_s0 + $0x1e8] sm:$0xff]  ;;  %v10153_v9 = vunpack.i.l.bf16 %v18175_v28  ;;  %v18181_v28 = vunpack.i.l.bf16 %v14220_v46  ;;  %v18183_v39 = vld [vmem:[#allocation31_spill] sm:$0xff] }
 0x2cb   :  { %8359 = vmatpush1.bf16.msra.mxu1 %v8358_v40  ;;  %v3993_v31 = vsel %vm394_vm1, %v18176_v26, %v10133_v4  ;;  %8503 = vmatpush3.bf16.msra.mxu0 %v8502_v14  ;;  %v8506_v40 = vpack.c.bf16 %v7197_v50, %v7194_v56  ;;  %v7198_v4 = vld [vmem:[%s17291_s0 + $0x1c0] sm:$0xff]  ;;  %v18184_v56 = vld [vmem:[#allocation88_spill] sm:$0xff] }
 0x2cc   :  { %v3996_v27 = vsel %vm394_vm1, %v18177_v30, %v10134_v18  ;;  %3373 = vmatprep.mubr.f32.mxu1 %v17911_v34  ;;  %v18178_v18 = vunpack.i.h.bf16 %v14061_v19  ;;  %v15212_v14 = vsel %vm1600_vm7, %v18181_v28, %v17638_v17  ;;  %v10159_v50 = vunpack.i.h.bf16 %v18184_v56  ;;  %8505 = vmatprep.subr.bf16.mxu0 %v8504_v35  ;;  %v7200_v30 = vld [vmem:[%s17291_s0 + $0x1d0] sm:$0xff]  ;;  %v18186_v46 = vld [vmem:[#allocation15_spill] sm:$0xff] }
 0x2cd   :  { %18182 = vst [vmem:[#allocation5_spill] sm:$0xff] %v15212_v14  ;;  %v10158_v26 = vunpack.i.l.bf16 %v18184_v56  ;;  %3551 = vmatprep.mubr.f32.mxu0 %v17911_v34  ;;  %v18185_v28 = vld [vmem:[#allocation93_spill] sm:$0xff]  ;;  %8361 = vmatprep.subr.bf16.mxu1 %v8360_v24  ;;  %v8364_v35 = vpack.c.bf16 %v7202_v43, %v7199_v16  ;;  %v8368_v56 = vpack.c.bf16 %v15173_v57, %v15166_v51  ;;  %v9829_v19 = vunpack.i.h.bf16 %v18186_v46 }
 0x2ce   :  { %v15205_v53 = vsel %vm1600_vm7, %v18179_v7, %v18178_v18  ;;  %v7203_v18 = vld [vmem:[%s17291_s0 + $0x1f0] sm:$0xff]  ;;  %v10179_v17 = vunpack.i.h.bf16 %v18185_v28  ;;  %v10178_v32 = vunpack.i.l.bf16 %v18185_v28  ;;  %3374 = vmatmul.mubr.f32.gmra.mrb[32].mxu1 %v14148_v21  ;;  %3552 = vmatmul.mubr.f32.gmra.mrb[20].mxu0 %v14148_v21  ;;  %v8508_v2 = vpack.c.bf16 %v3996_v27, %v3993_v31 }
 0x2cf   :  { %18180 = vst [vmem:[#allocation133_spill] sm:$0xff] %v15205_v53  ;;  %8363 = vmatpush1.bf16.msra.mxu1 %v8362_v41  ;;  %v8366_v1 = vpack.c.bf16 %v7201_v61, %v7198_v4  ;;  %v18187_v7 = vunpack.i.h.bf16 %v18130_v55  ;;  %v18188_v53 = vunpack.i.l.bf16 %v18130_v55  ;;  %v9828_v14 = vunpack.i.l.bf16 %v18186_v46  ;;  %8507 = vmatpush3.bf16.msra.mxu0 %v8506_v40  ;;  %v18191_v41 = vld [vmem:[#allocation33_spill] sm:$0xff] }
 0x2d0   :  { %3379 = vmatprep.mubr.f32.mxu1 %v17911_v34  ;;  %v8510_v24 = vpack.c.bf16 %v7203_v18, %v7200_v30  ;;  %v18189_v51 = vunpack.i.h.bf16 %v18168_v23  ;;  %v18190_v21 = vunpack.i.h.bf16 %v18169_v58  ;;  %v9924_v31 = vunpack.i.h.bf16 %v18191_v41  ;;  %8509 = vmatprep.subr.bf16.mxu0 %v8508_v2  ;;  %v18199_v18 = vld [vmem:[#allocation34_spill] sm:$0xff] }
 0x2d1   :  { %v3780_v28 = vsel %vm193_vm0, %v18188_v53, %v18187_v7  ;;  %v18192_v16 = vunpack.i.h.bf16 %v18119_v62  ;;  %v18193_v46 = vunpack.i.h.bf16 %v18121_v49  ;;  %3557 = vmatprep.mubr.f32.mxu0 %v17911_v34  ;;  %v18194_v4 = vunpack.i.h.bf16 %v18122_v20  ;;  %8365 = vmatprep.subr.bf16.mxu1 %v8364_v35 }
 0x2d2   :  { %v4175_v57 = vsel %vm595_vm2, %v18189_v51, %v10153_v9  ;;  %v4178_v27 = vsel %vm595_vm2, %v18190_v21, %v10154_v59  ;;  %v18195_v9 = vunpack.i.l.bf16 %v18122_v20  ;;  %v18196_v59 = vld [vmem:[#allocation96_spill] sm:$0xff]  ;;  %3380 = vmatmul.mubr.f32.gmra.mrb[34].mxu1 %v14116_v8  ;;  %v18197_v49 = vunpack.i.h.bf16 %v18170_v60  ;;  %v18200_v51 = vld [vmem:[#allocation99_spill] sm:$0xff]  ;;  %3558 = vmatmul.mubr.f32.gmra.mrb[22].mxu0 %v14116_v8 }
 0x2d3   :  { %v3775_v43 = vsel %vm193_vm0, %v18192_v16, %v10158_v26  ;;  %v3778_v40 = vsel %vm193_vm0, %v18193_v46, %v10159_v50  ;;  %v10184_v53 = vunpack.i.h.bf16 %v18196_v59  ;;  %v10183_v30 = vunpack.i.l.bf16 %v18196_v59  ;;  %v5246_v26 = vld [vmem:[%s17292_s1 + $0x8] sm:$0xff]  ;;  %8367 = vmatpush1.bf16.msra.mxu1 %v8366_v1  ;;  %8511 = vmatpush3.bf16.msra.mxu0 %v8510_v24 }
 0x2d4   :  { %v3783_v61 = vsel %vm193_vm0, %v18195_v9, %v18194_v4  ;;  %v4181_v62 = vsel %vm595_vm2, %v18197_v49, %v10178_v32  ;;  %v18198_v2 = vunpack.i.h.bf16 %v18183_v39  ;;  %v10204_v21 = vunpack.i.h.bf16 %v18200_v51  ;;  %v18201_v46 = vld [vmem:[#allocation36_spill] sm:$0xff]  ;;  %8369 = vmatprep.subr.bf16.mxu1 %v8368_v56  ;;  %5824 = vmatprep.mubr.f32.mxu0 %v5246_v26 }
 0x2d5   :  { %v10203_v16 = vunpack.i.l.bf16 %v18200_v51  ;;  %v8512_v35 = vpack.c.bf16 %v4178_v27, %v4175_v57  ;;  %v9939_v32 = vunpack.i.h.bf16 %v18201_v46  ;;  %v8372_v4 = vpack.c.bf16 %v3783_v61, %v3780_v28  ;;  %v18209_v27 = vld [vmem:[#allocation102_spill] sm:$0xff]  ;;  %5557 = vmatprep.mubr.f32.mxu1 %v5246_v26 }
 0x2d6   :  { %v4184_v50 = vsel %vm595_vm2, %v18198_v2, %v10179_v17  ;;  %v8370_v17 = vpack.c.bf16 %v14996_v12, %v14991_v10  ;;  %v18202_v9 = vunpack.i.h.bf16 %v18137_v15  ;;  %v18203_v59 = vunpack.i.l.bf16 %v18137_v15  ;;  %v18204_v2 = vld [vmem:[#allocation37_spill] sm:$0xff] }
 0x2d7   :  { %v9944_v51 = vunpack.i.h.bf16 %v18204_v2  ;;  %v8514_v7 = vpack.c.bf16 %v3778_v40, %v3775_v43  ;;  %8513 = vmatprep.subr.bf16.mxu0 %v8512_v35  ;;  %v8516_v8 = vpack.c.bf16 %v4184_v50, %v4181_v62  ;;  %v18205_v1 = vunpack.i.h.bf16 %v18142_v45  ;;  %v18210_v40 = vld [vmem:[#allocation105_spill] sm:$0xff] }
 0x2d8   :  { %v3786_v49 = vsel %vm193_vm0, %v18203_v59, %v18202_v9  ;;  %v18206_v24 = vunpack.i.l.bf16 %v18142_v45  ;;  %v18207_v10 = vunpack.i.h.bf16 %v18130_v55  ;;  %v18208_v28 = vunpack.i.h.bf16 %v18122_v20  ;;  %8371 = vmatpush1.bf16.msra.mxu1 %v8370_v17 }
 0x2d9   :  { %v10209_v61 = vunpack.i.h.bf16 %v18209_v27  ;;  %v10208_v43 = vunpack.i.l.bf16 %v18209_v27  ;;  %v10229_v62 = vunpack.i.h.bf16 %v18210_v40  ;;  %v10228_v50 = vunpack.i.l.bf16 %v18210_v40  ;;  %8515 = vmatpush3.bf16.msra.mxu0 %v8514_v7  ;;  %8373 = vmatprep.subr.bf16.mxu1 %v8372_v4 }
 0x2da   :  { %v3789_v56 = vsel %vm193_vm0, %v18206_v24, %v18205_v1  ;;  %v3781_v12 = vsel %vm193_vm0, %v18207_v10, %v10183_v30  ;;  %v3784_v57 = vsel %vm193_vm0, %v18208_v28, %v10184_v53  ;;  %v4187_v55 = vsel %vm595_vm2, %v9924_v31, %v10203_v16  ;;  %8517 = vmatprep.subr.bf16.mxu0 %v8516_v8  ;;  %v18220_v8 = vld [vmem:[#allocation110_spill] sm:$0xff] }
 0x2db   :  { %v18211_v30 = vunpack.i.h.bf16 %v18199_v18  ;;  %v9833_v53 = vunpack.i.l.bf16 %v18133_v11  ;;  %v18212_v35 = vunpack.i.l.bf16 %v18167_v22  ;;  %v18213_v26 = vunpack.i.l.bf16 %v18158_v38 }
 0x2dc   :  { %v9838_v17 = vunpack.i.l.bf16 %v18134_v33  ;;  %v8374_v16 = vpack.c.bf16 %v15013_v25, %v15029_v3  ;;  %v8376_v1 = vpack.c.bf16 %v3789_v56, %v3786_v49  ;;  %v8518_v27 = vpack.c.bf16 %v3784_v57, %v3781_v12  ;;  %v18221_v12 = vld [vmem:[#allocation17_spill] sm:$0xff] }
 0x2dd   :  { %v4190_v20 = vsel %vm595_vm2, %v18211_v30, %v10204_v21  ;;  %v3794_v9 = vsel %vm193_vm0, %v9829_v19, %v18212_v35  ;;  %v3791_v59 = vsel %vm193_vm0, %v9828_v14, %v18213_v26  ;;  %v18214_v21 = vunpack.i.h.bf16 %v18158_v38 }
 0x2de   :  { %v18215_v24 = vmov %v18213_v26  ;;  %v18216_v19 = vunpack.i.h.bf16 %v18167_v22  ;;  %v18217_v28 = vmov %v18212_v35  ;;  %v18218_v7 = vunpack.i.h.bf16 %v18137_v15  ;;  %8375 = vmatpush1.bf16.msra.mxu1 %v8374_v16  ;;  %8519 = vmatpush3.bf16.msra.mxu0 %v8518_v27  ;;  %v18223_v35 = vld [vmem:[#allocation40_spill] sm:$0xff] }
 0x2df   :  { %v3792_v10 = vsel %vm193_vm0, %v18215_v24, %v18214_v21  ;;  %v18219_v25 = vunpack.i.h.bf16 %v18142_v45  ;;  %v8520_v49 = vpack.c.bf16 %v4190_v20, %v4187_v55  ;;  %v10234_v56 = vunpack.i.h.bf16 %v18220_v8  ;;  %8377 = vmatprep.subr.bf16.mxu1 %v8376_v1  ;;  %v18222_v55 = vld [vmem:[#allocation39_spill] sm:$0xff] }
 0x2e0   :  { %v3795_v14 = vsel %vm193_vm0, %v18217_v28, %v18216_v19  ;;  %v3787_v4 = vsel %vm193_vm0, %v18218_v7, %v10208_v43  ;;  %v10233_v40 = vunpack.i.l.bf16 %v18220_v8  ;;  %v4193_v30 = vsel %vm595_vm2, %v9939_v32, %v10228_v50 }
 0x2e1   :  { %v3790_v3 = vsel %vm193_vm0, %v18219_v25, %v10209_v61  ;;  %v4196_v15 = vsel %vm595_vm2, %v9944_v51, %v10229_v62  ;;  %v9844_v57 = vunpack.i.h.bf16 %v18221_v12  ;;  %v9843_v45 = vunpack.i.l.bf16 %v18221_v12  ;;  %8521 = vmatprep.subr.bf16.mxu0 %v8520_v49  ;;  %v15382_v12 = vld [vmem:[%s17292_s1] sm:$0xff] }
 0x2e2   :  { %v9853_v61 = vunpack.i.l.bf16 %v18139_v52  ;;  %v9848_v43 = vunpack.i.l.bf16 %v18140_v36  ;;  %v9954_v20 = vunpack.i.h.bf16 %v18222_v55  ;;  %v9959_v26 = vunpack.i.h.bf16 %v18223_v35 }
 0x2e3   :  { %v8378_v50 = vpack.c.bf16 %v15115_v47, %v15110_v29  ;;  %v8380_v16 = vpack.c.bf16 %v3795_v14, %v3792_v10  ;;  %v8522_v62 = vpack.c.bf16 %v3790_v3, %v3787_v4  ;;  %v8524_v21 = vpack.c.bf16 %v4196_v15, %v4193_v30  ;;  %v18228_v29 = vld [vmem:[#allocation120_spill] sm:$0xff] }
 0x2e4   :  { %v18224_v24 = vunpack.i.h.bf16 %v18133_v11  ;;  %v18225_v28 = vunpack.i.h.bf16 %v18134_v33  ;;  %v18226_v1 = vunpack.i.h.bf16 %v18158_v38  ;;  %v18227_v25 = vunpack.i.h.bf16 %v18167_v22  ;;  %v18229_v14 = vld [vmem:[#allocation20_spill] sm:$0xff] }
 0x2e5   :  { %v10259_v47 = vunpack.i.h.bf16 %v18228_v29  ;;  %v10258_v10 = vunpack.i.l.bf16 %v18228_v29  ;;  %8379 = vmatpush1.bf16.msra.mxu1 %v8378_v50  ;;  %v3973_v11 = vsel %vm394_vm1, %v9843_v45, %v9833_v53  ;;  %8523 = vmatpush3.bf16.msra.mxu0 %v8522_v62  ;;  %v3976_v33 = vsel %vm394_vm1, %v9844_v57, %v9838_v17  ;;  %v18232_v45 = vld [vmem:[#allocation23_spill] sm:$0xff] }
 0x2e6   :  { %v3974_v19 = vsel %vm394_vm1, %v9833_v53, %v18224_v24  ;;  %v3977_v27 = vsel %vm394_vm1, %v9838_v17, %v18225_v28  ;;  %v3793_v7 = vsel %vm193_vm0, %v18226_v1, %v10233_v40  ;;  %v3796_v49 = vsel %vm193_vm0, %v18227_v25, %v10234_v56  ;;  %8381 = vmatprep.subr.bf16.mxu1 %v8380_v16  ;;  %v15408_v1 = vld [vmem:[%s17292_s1 + $0x28] sm:$0xff]  ;;  %v18236_v25 = vld [vmem:[#allocation26_spill] sm:$0xff] }
 0x2e7   :  { %v9859_v4 = vunpack.i.h.bf16 %v18229_v14  ;;  %v9858_v38 = vunpack.i.l.bf16 %v18229_v14  ;;  %8525 = vmatprep.subr.bf16.mxu0 %v8524_v21  ;;  %v8382_v3 = vpack.c.bf16 %v3794_v9, %v3791_v59  ;;  %v9863_v22 = vunpack.i.l.bf16 %v18146_v44  ;;  %v15423_v14 = vld [vmem:[%s17292_s1 + $0x58] sm:$0xff] }
 0x2e8   :  { %v9868_v8 = vunpack.i.l.bf16 %v18147_v54  ;;  %v8526_v56 = vpack.c.bf16 %v3796_v49, %v3793_v7  ;;  %v8384_v40 = vpack.c.bf16 %v3977_v27, %v3974_v19  ;;  %v4375_v53 = vsel %vm796_vm3, %v9954_v20, %v10258_v10  ;;  %v15394_v19 = vld [vmem:[%s17292_s1 + $0x30] sm:$0xff] }
 0x2e9   :  { %v4378_v17 = vsel %vm796_vm3, %v9959_v26, %v10259_v47  ;;  %8383 = vmatpush1.bf16.msra.mxu1 %v8382_v3  ;;  %v18230_v30 = vunpack.i.h.bf16 %v18140_v36  ;;  %v18231_v9 = vunpack.i.h.bf16 %v18139_v52  ;;  %v3982_v57 = vsel %vm394_vm1, %v9859_v4, %v9853_v61  ;;  %v18240_v3 = vld [vmem:[#allocation29_spill] sm:$0xff] }
 0x2ea   :  { %8527 = vmatpush3.bf16.msra.mxu0 %v8526_v56  ;;  %8385 = vmatprep.subr.bf16.mxu1 %v8384_v40  ;;  %v9873_v50 = vunpack.i.l.bf16 %v18232_v45  ;;  %v18233_v36 = vpack.c.bf16 %v14079_v5, %v14064_v0  ;;  %v8386_v16 = vpack.c.bf16 %v3976_v33, %v3973_v11  ;;  %v3979_v52 = vsel %vm394_vm1, %v9858_v38, %v9848_v43  ;;  %v18241_v56 = vld [vmem:[#allocation143_spill] sm:$0xff]  ;;  %v18242_v40 = vld [vmem:[#allocation142_spill] sm:$0xff] }
 0x2eb   :  { %v3980_v15 = vsel %vm394_vm1, %v9848_v43, %v18230_v30  ;;  %v3983_v59 = vsel %vm394_vm1, %v9853_v61, %v18231_v9  ;;  %v9874_v62 = vunpack.i.h.bf16 %v18232_v45  ;;  %v8530_v21 = vpack.c.bf16 %v4378_v17, %v4375_v53 }
 0x2ec   :  { %8529 = vmatprep.subr.bf16.mxu0 %v18233_v36  ;;  %v8388_v24 = vpack.c.bf16 %v3983_v59, %v3980_v15  ;;  %v9883_v61 = vunpack.i.l.bf16 %v18162_v42  ;;  %v9878_v28 = vunpack.i.l.bf16 %v18161_v63  ;;  %v18234_v0 = vunpack.i.h.bf16 %v18146_v44  ;;  %v10372_v59 = vpop.permute.xlu0 %10371 }
 0x2ed   :  { %8387 = vmatpush1.bf16.msra.mxu1 %v8386_v16  ;;  %5825 = vmatmul.mubr.f32.vlgmr.msra.gmra.mrb[24].mxu0 %v15382_v12  ;;  %v18235_v43 = vunpack.i.h.bf16 %v18147_v54  ;;  %v3985_v7 = vsel %vm394_vm1, %v9873_v50, %v9863_v22  ;;  %v9889_v49 = vunpack.i.h.bf16 %v18236_v25  ;;  %v9888_v29 = vunpack.i.l.bf16 %v18236_v25 }
 0x2ee   :  { %v3986_v5 = vsel %vm394_vm1, %v9863_v22, %v18234_v0  ;;  %8531 = vmatpush3.bf16.msra.mxu0 %v8530_v21  ;;  %8389 = vmatprep.subr.bf16.mxu1 %v8388_v24  ;;  %v18237_v44 = vpack.c.bf16 %v14171_v48, %v14166_v37  ;;  %v8390_v54 = vpack.c.bf16 %v3982_v57, %v3979_v52  ;;  %v9893_v10 = vunpack.i.l.bf16 %v18168_v23  ;;  %v18247_v21 = vld [vmem:[#allocation32_spill] sm:$0xff]  ;;  %v15472_v0 = vld [vmem:[%s17292_s1 + $0x78] sm:$0xff] }
 0x2ef   :  { %v3989_v27 = vsel %vm394_vm1, %v9868_v8, %v18235_v43  ;;  %5829 = vmatprep.mubr.f32.mxu0 %v15394_v19  ;;  %v3988_v47 = vsel %vm394_vm1, %v9874_v62, %v9868_v8  ;;  %v9898_v11 = vunpack.i.l.bf16 %v18169_v58  ;;  %v18238_v4 = vunpack.i.h.bf16 %v18161_v63  ;;  %v15440_v63 = vld [vmem:[%s17292_s1 + $0x50] sm:$0xff] }
 0x2f0   :  { %8533 = vmatprep.subr.bf16.mxu0 %v18237_v44  ;;  %v8392_v33 = vpack.c.bf16 %v3989_v27, %v3986_v5  ;;  %v18239_v48 = vunpack.i.h.bf16 %v18162_v42  ;;  %v9904_v22 = vunpack.i.h.bf16 %v18240_v3  ;;  %v9903_v8 = vunpack.i.l.bf16 %v18240_v3  ;;  %v18251_v27 = vld [vmem:[#allocation84_spill] sm:$0xff]  ;;  %v10382_v3 = vpop.permute.xlu0 %10381 }
 0x2f1   :  { %8391 = vmatpush1.bf16.msra.mxu1 %v8390_v54  ;;  %v3992_v37 = vsel %vm394_vm1, %v9878_v28, %v18238_v4  ;;  %5830 = vmatmul.mubr.f32.gmra.mrb[26].mxu0 %v15408_v1  ;;  %v18243_v53 = vpack.c.bf16 %v18241_v56, %v18242_v40  ;;  %v3994_v42 = vsel %vm394_vm1, %v9889_v49, %v9883_v61  ;;  %v9908_v30 = vunpack.i.l.bf16 %v18170_v60  ;;  %v15489_v4 = vld [vmem:[%s17292_s1 + $0x18] sm:$0xff]  ;;  %v18258_v56 = vld [vmem:[#allocation73_spill] sm:$0xff] }
 0x2f2   :  { %v3995_v38 = vsel %vm394_vm1, %v9883_v61, %v18239_v48  ;;  %8393 = vmatprep.subr.bf16.mxu1 %v8392_v33  ;;  %v3991_v17 = vsel %vm394_vm1, %v9888_v29, %v9878_v28  ;;  %v18244_v15 = vpack.c.bf16 %v14230_v13, %v14225_v6  ;;  %v8394_v9 = vpack.c.bf16 %v3988_v47, %v3985_v7  ;;  %v15459_v6 = vld [vmem:[%s17292_s1 + $0x80] sm:$0xff]  ;;  %v18248_v61 = vld [vmem:[#allocation44_spill] sm:$0xff] }
 0x2f3   :  { %8535 = vmatpush3.bf16.msra.mxu0 %v18243_v53  ;;  %5834 = vmatprep.mubr.f32.mxu0 %v15423_v14  ;;  %v9913_v57 = vunpack.i.l.bf16 %v18183_v39  ;;  %v8396_v45 = vpack.c.bf16 %v3995_v38, %v3992_v37  ;;  %v18245_v50 = vunpack.i.h.bf16 %v18168_v23  ;;  %v18246_v16 = vunpack.i.h.bf16 %v18169_v58  ;;  %v18249_v58 = vld [vmem:[#allocation151_spill] sm:$0xff] }
 0x2f4   :  { %8537 = vmatprep.subr.bf16.mxu0 %v18244_v15  ;;  %v4173_v13 = vsel %vm595_vm2, %v9903_v8, %v9893_v10  ;;  %v4176_v62 = vsel %vm595_vm2, %v9904_v22, %v9898_v11  ;;  %v9919_v23 = vunpack.i.h.bf16 %v18247_v21  ;;  %v9918_v24 = vunpack.i.l.bf16 %v18247_v21  ;;  %v18252_v7 = vld [vmem:[#allocation83_spill] sm:$0xff]  ;;  %v18257_v8 = vld [vmem:[#allocation74_spill] sm:$0xff]  ;;  %v18261_v15 = vld [vmem:[#allocation52_spill] sm:$0xff] }
 0x2f5   :  { %v4174_v36 = vsel %vm595_vm2, %v9893_v10, %v18245_v50  ;;  %v4177_v52 = vsel %vm595_vm2, %v9898_v11, %v18246_v16  ;;  %8395 = vmatpush1.bf16.msra.mxu1 %v8394_v9  ;;  %5835 = vmatmul.mubr.f32.gmra.mrb[28].mxu0 %v15440_v63  ;;  %v18250_v28 = vpack.c.bf16 %v18248_v61, %v18249_v58  ;;  %v9923_v5 = vunpack.i.l.bf16 %v18191_v41  ;;  %v18256_v37 = vld [vmem:[#allocation35_spill] sm:$0xff]  ;;  %v10392_v61 = vpop.permute.xlu0 %10391 }
 0x2f6   :  { %8397 = vmatprep.subr.bf16.mxu1 %v8396_v45  ;;  %v9928_v43 = vunpack.i.l.bf16 %v18199_v18  ;;  %v18253_v25 = vpack.c.bf16 %v18251_v27, %v18252_v7  ;;  %v8398_v49 = vpack.c.bf16 %v3994_v42, %v3991_v17  ;;  %v8400_v29 = vpack.c.bf16 %v4177_v52, %v4174_v36  ;;  %5839 = vmatprep.mubr.f32.mxu0 %v15459_v6  ;;  %v18260_v17 = vld [vmem:[#allocation91_spill] sm:$0xff]  ;;  %v18269_v7 = vld [vmem:[#allocation45_spill] sm:$0xff] }
 0x2f7   :  { %8539 = vmatpush3.bf16.msra.mxu0 %v18250_v28  ;;  %v10374_v44 = vunpack.i.h.bf16 %v10372_v59  ;;  %v10373_v54 = vunpack.i.l.bf16 %v10372_v59  ;;  %v18254_v47 = vunpack.i.h.bf16 %v18170_v60  ;;  %v18255_v11 = vunpack.i.h.bf16 %v18183_v39  ;;  %v18264_v16 = vld [vmem:[#allocation103_spill] sm:$0xff] }
 0x2f8   :  { %8541 = vmatprep.subr.bf16.mxu0 %v18253_v25  ;;  %v9934_v48 = vunpack.i.h.bf16 %v18256_v37  ;;  %v9933_v38 = vunpack.i.l.bf16 %v18256_v37  ;;  %v4182_v60 = vsel %vm595_vm2, %v9919_v23, %v9913_v57  ;;  %v4179_v22 = vsel %vm595_vm2, %v9918_v24, %v9908_v30  ;;  %v18268_v24 = vld [vmem:[#allocation38_spill] sm:$0xff] }
 0x2f9   :  { %v4180_v10 = vsel %vm595_vm2, %v9908_v30, %v18254_v47  ;;  %v4183_v33 = vsel %vm595_vm2, %v9913_v57, %v18255_v11  ;;  %8399 = vmatpush1.bf16.msra.mxu1 %v8398_v49  ;;  %5840 = vmatmul.mubr.f32.gmra.mrb[30].mxu0 %v15472_v0  ;;  %v9938_v39 = vunpack.i.l.bf16 %v18201_v46  ;;  %v18259_v40 = vpack.c.bf16 %v18257_v8, %v18258_v56  ;;  %v18270_v25 = vld [vmem:[#allocation78_spill] sm:$0xff]  ;;  %v10397_v46 = vpop.permute.xlu1 %10396 }
 0x2fa   :  { %8401 = vmatprep.subr.bf16.mxu1 %v8400_v29  ;;  %v8402_v53 = vpack.c.bf16 %v4176_v62, %v4173_v13  ;;  %v9943_v42 = vunpack.i.l.bf16 %v18204_v2  ;;  %v18262_v9 = vpack.c.bf16 %v18260_v17, %v18261_v15  ;;  %v8404_v59 = vpack.c.bf16 %v4183_v33, %v4180_v10  ;;  %5909 = vmatprep.mubr.f32.mxu0 %v15489_v4  ;;  %v18266_v62 = vld [vmem:[#allocation104_spill] sm:$0xff]  ;;  %v18275_v33 = vld [vmem:[#allocation111_spill] sm:$0xff]  ;;  %v18281_v17 = vld [vmem:[#allocation49_spill] sm:$0xff] }
 0x2fb   :  { %8543 = vmatpush3.bf16.msra.mxu0 %v18259_v40  ;;  %v4186_v57 = vsel %vm595_vm2, %v9923_v5, %v9924_v31  ;;  %v18263_v30 = vunpack.i.h.bf16 %v18199_v18  ;;  %v10384_v50 = vunpack.i.h.bf16 %v10382_v3  ;;  %v10383_v36 = vunpack.i.l.bf16 %v10382_v3  ;;  %v18279_v40 = vld [vmem:[#allocation41_spill] sm:$0xff] }
 0x2fc   :  { %8545 = vmatprep.subr.bf16.mxu0 %v18262_v9  ;;  %v18265_v52 = vunpack.i.h.bf16 %v18264_v16  ;;  %v18267_v21 = vunpack.i.h.bf16 %v18266_v62  ;;  %v4185_v41 = vsel %vm595_vm2, %v9933_v38, %v9923_v5  ;;  %v4188_v31 = vsel %vm595_vm2, %v9934_v48, %v9928_v43  ;;  %v18273_v5 = vld [vmem:[#allocation56_spill] sm:$0xff] }
 0x2fd   :  { %v4189_v45 = vsel %vm595_vm2, %v9928_v43, %v18263_v30  ;;  %v9949_v18 = vunpack.i.h.bf16 %v18268_v24  ;;  %8403 = vmatpush1.bf16.msra.mxu1 %v8402_v53  ;;  %v9953_v58 = vunpack.i.l.bf16 %v18222_v55  ;;  %v9948_v28 = vunpack.i.l.bf16 %v18268_v24  ;;  %v18277_v38 = vld [vmem:[#allocation112_spill] sm:$0xff]  ;;  %v18280_v53 = vld [vmem:[#allocation90_spill] sm:$0xff]  ;;  %v18283_v30 = vld [vmem:[#allocation125_spill] sm:$0xff]  ;;  %v10402_v24 = vpop.permute.xlu0 %10401 }
 0x2fe   :  { %v4987_v13 = vsel %vm1399_vm6, %v18265_v52, %v10373_v54  ;;  %v4990_v23 = vsel %vm1399_vm6, %v18267_v21, %v10374_v44  ;;  %v9958_v27 = vunpack.i.l.bf16 %v18223_v35  ;;  %v18271_v49 = vpack.c.bf16 %v18269_v7, %v18270_v25  ;;  %8405 = vmatprep.subr.bf16.mxu1 %v8404_v59  ;;  %v18272_v44 = vld [vmem:[#allocation53_spill] sm:$0xff]  ;;  %v18287_v55 = vld [vmem:[#allocation150_spill] sm:$0xff] }
 0x2ff   :  { %v8406_v29 = vpack.c.bf16 %v4182_v60, %v4179_v22  ;;  %v18274_v54 = vpack.c.bf16 %v18272_v44, %v18273_v5  ;;  %v8408_v43 = vpack.c.bf16 %v4189_v45, %v4186_v57  ;;  %v8552_v47 = vpack.c.bf16 %v4990_v23, %v4987_v13  ;;  %v18288_v23 = vld [vmem:[#allocation153_spill] sm:$0xff]  ;;  %v18294_v44 = vld [vmem:[#allocation98_spill] sm:$0xff]  ;;  %v18295_v5 = vld [vmem:[#allocation116_spill] sm:$0xff] }
 0x300   :  { %8547 = vmatpush3.bf16.msra.mxu0 %v18271_v49  ;;  %v4192_v10 = vsel %vm595_vm2, %v9938_v39, %v9939_v32  ;;  %v4195_v11 = vsel %vm595_vm2, %v9943_v42, %v9944_v51  ;;  %v18276_v37 = vunpack.i.h.bf16 %v18275_v33  ;;  %v18278_v3 = vunpack.i.h.bf16 %v18277_v38  ;;  %v18292_v49 = vld [vmem:[#allocation144_spill] sm:$0xff] }
 0x301   :  { %8549 = vmatprep.subr.bf16.mxu0 %v18274_v54  ;;  %v10394_v22 = vunpack.i.h.bf16 %v10392_v61  ;;  %v10393_v8 = vunpack.i.l.bf16 %v10392_v61  ;;  %v4194_v56 = vsel %vm595_vm2, %v9949_v18, %v9943_v42  ;;  %8407 = vmatpush1.bf16.msra.mxu1 %v8406_v29  ;;  %v4191_v32 = vsel %vm595_vm2, %v9948_v28, %v9938_v39  ;;  %v18290_v28 = vld [vmem:[#allocation139_spill] sm:$0xff] }
 0x302   :  { %v4993_v48 = vsel %vm1399_vm6, %v18276_v37, %v10383_v36  ;;  %v4996_v60 = vsel %vm1399_vm6, %v18278_v3, %v10384_v50  ;;  %v9964_v2 = vunpack.i.h.bf16 %v18279_v40  ;;  %v9963_v51 = vunpack.i.l.bf16 %v18279_v40  ;;  %8409 = vmatprep.subr.bf16.mxu1 %v8408_v43  ;;  %v18285_v36 = vld [vmem:[#allocation126_spill] sm:$0xff]  ;;  %v18297_v37 = vld [vmem:[#allocation152_spill] sm:$0xff] }
 0x303   :  { %v18282_v15 = vpack.c.bf16 %v18280_v53, %v18281_v17  ;;  %v8410_v9 = vpack.c.bf16 %v4188_v31, %v4185_v41  ;;  %v8412_v59 = vpack.c.bf16 %v4195_v11, %v4192_v10  ;;  %v8556_v57 = vpack.c.bf16 %v4996_v60, %v4993_v48  ;;  %v10407_v10 = vpop.permute.xlu1 %10406  ;;  %v18299_v3 = vld [vmem:[#allocation156_spill] sm:$0xff]  ;;  %v15601_v40 = vld [vmem:[%s17292_s1 + $0x38] sm:$0xff] }
 0x304   :  { %v4374_v42 = vsel %vm796_vm3, %v9953_v58, %v9954_v20  ;;  %v4377_v39 = vsel %vm796_vm3, %v9958_v27, %v9959_v26  ;;  %v18284_v45 = vunpack.i.h.bf16 %v18283_v30  ;;  %v18286_v16 = vunpack.i.h.bf16 %v18285_v36  ;;  %v18306_v17 = vld [vmem:[#allocation92_spill] sm:$0xff]  ;;  %v18315_v36 = vld [vmem:[#allocation46_spill] sm:$0xff] }
 0x305   :  { %8551 = vmatpush3.bf16.msra.mxu0 %v18282_v15  ;;  %v10399_v13 = vunpack.i.h.bf16 %v10397_v46  ;;  %v10398_v62 = vunpack.i.l.bf16 %v10397_v46  ;;  %8411 = vmatpush1.bf16.msra.mxu1 %v8410_v9  ;;  %v4373_v21 = vsel %vm796_vm3, %v9963_v51, %v9953_v58  ;;  %v18289_v20 = vpack.c.bf16 %v18287_v55, %v18288_v23  ;;  %v18321_v55 = vld [vmem:[#allocation51_spill] sm:$0xff] }
 0x306   :  { %8553 = vmatprep.subr.bf16.mxu0 %v8552_v47  ;;  %v5175_v50 = vsel %vm1600_vm7, %v18284_v45, %v10393_v8  ;;  %v5178_v52 = vsel %vm1600_vm7, %v18286_v16, %v10394_v22  ;;  %8413 = vmatprep.subr.bf16.mxu1 %v8412_v59  ;;  %v4376_v35 = vsel %vm796_vm3, %v9964_v2, %v9958_v27  ;;  %v10404_v18 = vunpack.i.h.bf16 %v10402_v24  ;;  %v15577_v27 = vld [vmem:[%s17292_s1 + $0x10] sm:$0xff]  ;;  %v15590_v8 = vld [vmem:[%s17292_s1 + $0x40] sm:$0xff] }
 0x307   :  { %v8414_v26 = vpack.c.bf16 %v4194_v56, %v4191_v32  ;;  %v8416_v41 = vpack.c.bf16 %v4377_v39, %v4374_v42  ;;  %v8560_v31 = vpack.c.bf16 %v5178_v52, %v5175_v50  ;;  %v10403_v61 = vunpack.i.l.bf16 %v10402_v24  ;;  %v18301_v56 = vld [vmem:[#allocation109_spill] sm:$0xff]  ;;  %v18304_v2 = vld [vmem:[#allocation119_spill] sm:$0xff]  ;;  %v18311_v42 = vld [vmem:[#allocation114_spill] sm:$0xff] }
 0x308   :  { %v18291_v7 = vunpack.i.h.bf16 %v18290_v28  ;;  %v18293_v58 = vunpack.i.h.bf16 %v18292_v49  ;;  %v18296_v54 = vpack.c.bf16 %v18294_v44, %v18295_v5  ;;  %v8418_v43 = vpack.c.bf16 %v4376_v35, %v4373_v21  ;;  %v18309_v59 = vld [vmem:[#allocation43_spill] sm:$0xff]  ;;  %v18312_v39 = vld [vmem:[#allocation113_spill] sm:$0xff]  ;;  %v18320_v21 = vld [vmem:[#allocation50_spill] sm:$0xff] }
 0x309   :  { %8555 = vmatpush3.bf16.msra.mxu0 %v18289_v20  ;;  %8415 = vmatpush1.bf16.msra.mxu1 %v8414_v26  ;;  %v10409_v11 = vunpack.i.h.bf16 %v10407_v10  ;;  %v10408_v33 = vunpack.i.l.bf16 %v10407_v10  ;;  %v18298_v48 = vunpack.i.h.bf16 %v18297_v37  ;;  %v18300_v60 = vunpack.i.h.bf16 %v18299_v3  ;;  %v18314_v50 = vld [vmem:[#allocation47_spill] sm:$0xff]  ;;  %v15636_v52 = vld [vmem:[%s17292_s1 + $0x90] sm:$0xff]  ;;  %v18323_v35 = vld [vmem:[#allocation130_spill] sm:$0xff] }
 0x30a   :  { %8557 = vmatprep.subr.bf16.mxu0 %v8556_v57  ;;  %v5181_v25 = vsel %vm1600_vm7, %v18291_v7, %v10398_v62  ;;  %v5184_v29 = vsel %vm1600_vm7, %v18293_v58, %v10399_v13  ;;  %8417 = vmatprep.subr.bf16.mxu1 %v8416_v41  ;;  %v18305_v51 = vunpack.i.h.bf16 %v18304_v2  ;;  %v18307_v15 = vunpack.i.h.bf16 %v18306_v17  ;;  %v18317_v13 = vld [vmem:[#allocation122_spill] sm:$0xff]  ;;  %v15656_v20 = vld [vmem:[%s17292_s1 + $0x20] sm:$0xff]  ;;  %v15667_v41 = vld [vmem:[%s17292_s1 + $0x48] sm:$0xff] }
 0x30b   :  { %v8564_v47 = vpack.c.bf16 %v5184_v29, %v5181_v25  ;;  %v5187_v38 = vsel %vm1600_vm7, %v18298_v48, %v10403_v61  ;;  %v5190_v22 = vsel %vm1600_vm7, %v18300_v60, %v10404_v18  ;;  %v18313_v30 = vpack.c.bf16 %v18311_v42, %v18312_v39  ;;  %v15675_v18 = vld [vmem:[%s17292_s1 + $0x70] sm:$0xff]  ;;  %v18330_v28 = vld [vmem:[#allocation140_spill] sm:$0xff]  ;;  %v15687_v25 = vld [vmem:[%s17292_s1 + $0x98] sm:$0xff] }
 0x30c   :  { %5558 = vmatmul.mubr.f32.vlgmr.msra.gmra.mrb[36].mxu1 %v15382_v12  ;;  %v18302_v12 = vld [vmem:[#allocation106_spill] sm:$0xff]  ;;  %v8568_v32 = vpack.c.bf16 %v5190_v22, %v5187_v38  ;;  %v5193_v53 = vsel %vm1600_vm7, %v18305_v51, %v10408_v33  ;;  %v5196_v9 = vsel %vm1600_vm7, %v18307_v15, %v10409_v11  ;;  %v18316_v16 = vpack.c.bf16 %v18314_v50, %v18315_v36  ;;  %v18329_v61 = vld [vmem:[#allocation141_spill] sm:$0xff]  ;;  %v18333_v58 = vld [vmem:[#allocation59_spill] sm:$0xff] }
 0x30d   :  { %8559 = vmatpush3.bf16.msra.mxu0 %v18296_v54  ;;  %8419 = vmatpush1.bf16.msra.mxu1 %v8418_v43  ;;  %v18303_v46 = vpack.c.bf16 %v18301_v56, %v18302_v12  ;;  %v8572_v45 = vpack.c.bf16 %v5196_v9, %v5193_v53  ;;  %v18322_v23 = vpack.c.bf16 %v18320_v21, %v18321_v55  ;;  %v18332_v49 = vld [vmem:[#allocation58_spill] sm:$0xff]  ;;  %v18335_v44 = vld [vmem:[#allocation148_spill] sm:$0xff]  ;;  %v18336_v5 = vld [vmem:[#allocation147_spill] sm:$0xff] }
 0x30e   :  { %8561 = vmatprep.subr.bf16.mxu0 %v8560_v31  ;;  %5563 = vmatprep.mubr.f32.mxu1 %v15394_v19  ;;  %v18308_v19 = vld [vmem:[#allocation42_spill] sm:$0xff]  ;;  %v18331_v7 = vpack.c.bf16 %v18329_v61, %v18330_v28  ;;  %v18334_v29 = vpack.c.bf16 %v18332_v49, %v18333_v58  ;;  %v18337_v54 = vpack.c.bf16 %v18335_v44, %v18336_v5  ;;  %v18338_v43 = vld [vmem:[#allocation63_spill] sm:$0xff]  ;;  %v18342_v33 = vld [vmem:[#allocation157_spill] sm:$0xff] }
 0x30f   :  { %8421 = vmatprep.subr.bf16.mxu1 %v18303_v46  ;;  %v18310_v57 = vpack.c.bf16 %v18308_v19, %v18309_v59  ;;  %v18341_v11 = vld [vmem:[#allocation158_spill] sm:$0xff]  ;;  %v18345_v38 = vld [vmem:[#allocation67_spill] sm:$0xff]  ;;  %v18348_v22 = vld [vmem:[#allocation69_spill] sm:$0xff] }
 0x310   :  { %5910 = vmatmul.mubr.f32.vlgmr.msra.gmra.mrb[32].mxu0 %v15577_v27  ;;  %5564 = vmatmul.mubr.f32.gmra.mrb[38].mxu1 %v15408_v1  ;;  %v15616_v1 = vld [vmem:[%s17292_s1 + $0x68] sm:$0xff]  ;;  %v18343_v37 = vpack.c.bf16 %v18341_v11, %v18342_v33  ;;  %v18344_v48 = vld [vmem:[#allocation66_spill] sm:$0xff]  ;;  %v18347_v60 = vld [vmem:[#allocation135_spill] sm:$0xff] }
 0x311   :  { %8563 = vmatpush3.bf16.msra.mxu0 %v8560_v31  ;;  %5914 = vmatprep.mubr.f32.mxu0 %v15590_v8  ;;  %v18327_v31 = vld [vmem:[#allocation54_spill] sm:$0xff]  ;;  %v18346_v3 = vpack.c.bf16 %v18344_v48, %v18345_v38  ;;  %v18349_v56 = vpack.c.bf16 %v18347_v60, %v18348_v22  ;;  %v18350_v12 = vld [vmem:[#allocation71_spill] sm:$0xff]  ;;  %v18351_v46 = vld [vmem:[#allocation72_spill] sm:$0xff] }
 0x312   :  { %8565 = vmatprep.subr.bf16.mxu0 %v8564_v47  ;;  %8423 = vmatpush1.bf16.msra.mxu1 %v18310_v57  ;;  %v18353_v2 = vld [vmem:[#allocation79_spill] sm:$0xff]  ;;  %v18354_v51 = vld [vmem:[#allocation132_spill] sm:$0xff]  ;;  %v18357_v19 = vld [vmem:[#allocation77_spill] sm:$0xff] }
 0x313   :  { %5569 = vmatprep.mubr.f32.mxu1 %v15423_v14  ;;  %8425 = vmatprep.subr.bf16.mxu1 %v18313_v30  ;;  %v15627_v14 = vld [vmem:[%s17292_s1 + $0x60] sm:$0xff]  ;;  %v18355_v53 = vpack.c.bf16 %v18353_v2, %v18354_v51  ;;  %v6016_v17 = vld [vmem:[%s17293_s3 + $0x8] sm:$0xff]  ;;  %v18359_v30 = vld [vmem:[#allocation149_spill] sm:$0xff] }
 0x314   :  { %5915 = vmatmul.mubr.f32.gmra.mrb[34].mxu0 %v15601_v40  ;;  %5570 = vmatmul.mubr.f32.gmra.mrb[40].mxu1 %v15440_v63  ;;  %v18318_v63 = vld [vmem:[#allocation121_spill] sm:$0xff]  ;;  %v6024_v15 = vld [vmem:[%s17293_s3 + $0x48] sm:$0xff]  ;;  %v6015_v42 = vld [vmem:[%s17293_s3] sm:$0xff] }
 0x315   :  { %8567 = vmatpush3.bf16.msra.mxu0 %v8564_v47  ;;  %5919 = vmatprep.mubr.f32.mxu0 %v15616_v1  ;;  %v18319_v62 = vpack.c.bf16 %v18317_v13, %v18318_v63  ;;  %v18339_v47 = vld [vmem:[#allocation62_spill] sm:$0xff]  ;;  %v18356_v9 = vld [vmem:[#allocation76_spill] sm:$0xff]  ;;  %v8576_v57 = vpack.c.bf16 %v6024_v15, %v6016_v17  ;;  %v6023_v39 = vld [vmem:[%s17293_s3 + $0x40] sm:$0xff] }
 0x316   :  { %8569 = vmatprep.subr.bf16.mxu0 %v8568_v32  ;;  %8427 = vmatpush1.bf16.msra.mxu1 %v18316_v16  ;;  %v18340_v10 = vpack.c.bf16 %v18338_v43, %v18339_v47  ;;  %v18358_v59 = vpack.c.bf16 %v18356_v9, %v18357_v19  ;;  %v8578_v36 = vpack.c.bf16 %v6023_v39, %v6015_v42  ;;  %v6032_v16 = vld [vmem:[%s17293_s3 + $0x88] sm:$0xff]  ;;  %v6039_v21 = vld [vmem:[%s17293_s3 + $0xc0] sm:$0xff]  ;;  %v18362_v55 = vld [vmem:[#allocation81_spill] sm:$0xff]  ;;  %v15801_v9 = vpop.permute.xlu1 %2839 }
 0x317   :  { %5575 = vmatprep.mubr.f32.mxu1 %v15459_v6  ;;  %8429 = vmatprep.subr.bf16.mxu1 %v18319_v62  ;;  %v15647_v6 = vld [vmem:[%s17292_s1 + $0x88] sm:$0xff]  ;;  %v6031_v62 = vld [vmem:[%s17293_s3 + $0x80] sm:$0xff]  ;;  %v18368_v5 = vld [vmem:[#allocation86_spill] sm:$0xff] }
 0x318   :  { %5920 = vmatmul.mubr.f32.gmra.mrb[36].mxu0 %v15627_v14  ;;  %5576 = vmatmul.mubr.f32.gmra.mrb[42].mxu1 %v15472_v0  ;;  %v18324_v0 = vld [vmem:[#allocation129_spill] sm:$0xff]  ;;  %v6040_v13 = vld [vmem:[%s17293_s3 + $0xc8] sm:$0xff]  ;;  %v6055_v49 = vld [vmem:[%s17293_s3 + $0x140] sm:$0xff] }
 0x319   :  { %8571 = vmatpush3.bf16.msra.mxu0 %v8568_v32  ;;  %5924 = vmatprep.mubr.f32.mxu0 %v15636_v52  ;;  %v18325_v26 = vpack.c.bf16 %v18323_v35, %v18324_v0  ;;  %v18352_v32 = vpack.c.bf16 %v18350_v12, %v18351_v46  ;;  %v8580_v63 = vpack.c.bf16 %v6040_v13, %v6032_v16  ;;  %v6072_v44 = vld [vmem:[%s17293_s3 + $0x1c8] sm:$0xff]  ;;  %v6071_v11 = vld [vmem:[%s17293_s3 + $0x1c0] sm:$0xff]  ;;  %v15790_v46 = vpop.permute.xlu0 %2834 }
 0x31a   :  { %8573 = vmatprep.subr.bf16.mxu0 %v8572_v45  ;;  %8431 = vmatpush1.bf16.msra.mxu1 %v18322_v23  ;;  %v18363_v23 = vld [vmem:[#allocation82_spill] sm:$0xff]  ;;  %v8582_v0 = vpack.c.bf16 %v6039_v21, %v6031_v62  ;;  %v18371_v33 = vld [vmem:[#allocation60_spill] sm:$0xff]  ;;  %v18374_v22 = vld [vmem:[#allocation95_spill] sm:$0xff] }
 0x31b   :  { %5646 = vmatprep.mubr.f32.mxu1 %v15489_v4  ;;  %8433 = vmatprep.subr.bf16.mxu1 %v18325_v26  ;;  %v18326_v4 = vld [vmem:[#allocation55_spill] sm:$0xff]  ;;  %v18364_v35 = vpack.c.bf16 %v18362_v55, %v18363_v23  ;;  %v6048_v26 = vld [vmem:[%s17293_s3 + $0x108] sm:$0xff]  ;;  %v18381_v62 = vld [vmem:[#allocation101_spill] sm:$0xff] }
 0x31c   :  { %5925 = vmatmul.mubr.f32.gmra.mrb[38].mxu0 %v15647_v6  ;;  %v18328_v24 = vpack.c.bf16 %v18326_v4, %v18327_v31  ;;  %v6056_v4 = vld [vmem:[%s17293_s3 + $0x148] sm:$0xff]  ;;  %v18365_v31 = vld [vmem:[#allocation154_spill] sm:$0xff]  ;;  %v6079_v2 = vld [vmem:[%s17293_s3 + $0x200] sm:$0xff] }
 0x31d   :  { %8575 = vmatpush3.bf16.msra.mxu0 %v8572_v45  ;;  %7738 = vmatprep.mubr.msk.f32.mxu0 %vm1909_vm8, %v15656_v20  ;;  %v18360_v45 = vld [vmem:[#allocation97_spill] sm:$0xff]  ;;  %v8584_v28 = vpack.c.bf16 %v6056_v4, %v6048_v26  ;;  %v6080_v38 = vld [vmem:[%s17293_s3 + $0x208] sm:$0xff]  ;;  %v6087_v51 = vld [vmem:[%s17293_s3 + $0x240] sm:$0xff] }
 0x31e   :  { %8435 = vmatpush1.bf16.msra.mxu1 %v18328_v24  ;;  %v18361_v50 = vpack.c.bf16 %v18359_v30, %v18360_v45  ;;  %8577 = vmatprep.subr.bf16.mxu0 %v8576_v57  ;;  %v18366_v24 = vld [vmem:[#allocation155_spill] sm:$0xff]  ;;  %v18378_v17 = vld [vmem:[#allocation64_spill] sm:$0xff] }
 0x31f   :  { %8437 = vmatprep.subr.bf16.mxu1 %v18331_v7  ;;  %v18367_v61 = vpack.c.bf16 %v18365_v31, %v18366_v24  ;;  %v6047_v7 = vld [vmem:[%s17293_s3 + $0x100] sm:$0xff]  ;;  %v6096_v19 = vld [vmem:[%s17293_s3 + $0x288] sm:$0xff] }
 0x320   :  { %7739 = vmatmul.mubr.msk.f32.vlgmr.msra.gmra.mrb[40].mxu0 %vm1909_vm8, %v15667_v41  ;;  %v8586_v58 = vpack.c.bf16 %v6055_v49, %v6047_v7  ;;  %v6095_v23 = vld [vmem:[%s17293_s3 + $0x280] sm:$0xff]  ;;  %v6112_v31 = vld [vmem:[%s17293_s3 + $0x308] sm:$0xff] }
 0x321   :  { %7741 = vmatprep.mubr.msk.f32.mxu0 %vm1909_vm8, %v15675_v18  ;;  %8579 = vmatpush1.bf16.msra.mxu0 %v8578_v36  ;;  %v8594_v36 = vpack.c.bf16 %v6087_v51, %v6079_v2  ;;  %v18384_v26 = vld [vmem:[#allocation159_spill] sm:$0xff]  ;;  %v6120_v24 = vld [vmem:[%s17293_s3 + $0x348] sm:$0xff] }
 0x322   :  { %8439 = vmatpush1.bf16.msra.mxu1 %v18334_v29  ;;  %8581 = vmatprep.subr.bf16.mxu0 %v8580_v63  ;;  %v6064_v29 = vld [vmem:[%s17293_s3 + $0x188] sm:$0xff] }
 0x323   :  { %8441 = vmatprep.subr.bf16.mxu1 %v18337_v54  ;;  %v18369_v54 = vld [vmem:[#allocation87_spill] sm:$0xff]  ;;  %v8588_v47 = vpack.c.bf16 %v6072_v44, %v6064_v29  ;;  %v18380_v63 = vld [vmem:[#allocation100_spill] sm:$0xff] }
 0x324   :  { %7742 = vmatmul.mubr.msk.f32.gmra.mrb[42].mxu0 %vm1909_vm8, %v15687_v25  ;;  %v18370_v43 = vpack.c.bf16 %v18368_v5, %v18369_v54  ;;  %v18382_v21 = vpack.c.bf16 %v18380_v63, %v18381_v62 }
 0x325   :  { %8583 = vmatpush1.bf16.msra.mxu0 %v8582_v0  ;;  %v18383_v0 = vld [vmem:[#allocation160_spill] sm:$0xff] }
 0x326   :  { %8443 = vmatpush1.bf16.msra.mxu1 %v18340_v10  ;;  %8585 = vmatprep.subr.bf16.mxu0 %v8584_v28  ;;  %v6063_v10 = vld [vmem:[%s17293_s3 + $0x180] sm:$0xff]  ;;  %v18385_v4 = vpack.c.bf16 %v18383_v0, %v18384_v26 }
 0x327   :  { %8445 = vmatprep.subr.bf16.mxu1 %v18343_v37  ;;  %v18372_v37 = vld [vmem:[#allocation57_spill] sm:$0xff]  ;;  %v8590_v60 = vpack.c.bf16 %v6071_v11, %v6063_v10  ;;  %v15850_v11 = vpop.permute.xlu1 %2844 }
 0x328   :  { %v18373_v48 = vpack.c.bf16 %v18371_v33, %v18372_v37  ;;  %v8600_v33 = vpack.c.bf16 %v6120_v24, %v6112_v31  ;;  %v6111_v37 = vld [vmem:[%s17293_s3 + $0x300] sm:$0xff] }
 0x329   :  { %8587 = vmatpush1.bf16.msra.mxu0 %v8586_v58 }
 0x32a   :  { %8447 = vmatpush1.bf16.msra.mxu1 %v18346_v3  ;;  %v6088_v3 = vld [vmem:[%s17293_s3 + $0x248] sm:$0xff]  ;;  %8589 = vmatprep.subr.bf16.mxu0 %v8588_v47  ;;  %v18387_v47 = vld [vmem:[#allocation107_spill] sm:$0xff] }
 0x32b   :  { %8449 = vmatprep.subr.bf16.mxu1 %v18349_v56  ;;  %v18375_v56 = vld [vmem:[#allocation94_spill] sm:$0xff] }
 0x32c   :  { %v18376_v12 = vpack.c.bf16 %v18374_v22, %v18375_v56 }
 0x32d   :  { %8591 = vmatpush1.bf16.msra.mxu0 %v8590_v60 }
 0x32e   :  { %8451 = vmatpush1.bf16.msra.mxu1 %v18352_v32  ;;  %v8592_v32 = vpack.c.bf16 %v6088_v3, %v6080_v38  ;;  %v18389_v38 = vld [vmem:[#allocation162_spill] sm:$0xff]  ;;  %v18390_v3 = vld [vmem:[#allocation161_spill] sm:$0xff] }
 0x32f   :  { %8453 = vmatprep.subr.bf16.mxu1 %v18355_v53  ;;  %v18377_v53 = vld [vmem:[#allocation61_spill] sm:$0xff]  ;;  %v3007_v57 = vpop.f32.mrb[20].mxu1  ;;  %v18391_v60 = vpack.c.bf16 %v18389_v38, %v18390_v3  ;;  %v6167_v38 = vld [vmem:[%s17293_s3 + $0x4c0] sm:$0xff]  ;;  %v18407_v3 = vld [vmem:[#allocation138_spill] sm:$0xff] }
 0x330   :  { %v18379_v15 = vpack.c.bf16 %v18377_v53, %v18378_v17  ;;  %v8960_v39 = vadd.f32 %v3007_v57, %v15790_v46  ;;  %v3009_v45 = vpop.f32.mrb[21].mxu1  ;;  %8593 = vmatprep.subr.bf16.mxu0 %v8592_v32  ;;  %v6136_v32 = vld [vmem:[%s17293_s3 + $0x3c8] sm:$0xff]  ;;  %v18392_v57 = vld [vmem:[#allocation118_spill] sm:$0xff] }
 0x331   :  { %v3185_v42 = vpop.f32.mrb[8].mxu0  ;;  %v8961_v16 = vadd.f32 %v3009_v45, %v15790_v46  ;;  %8595 = vmatpush1.bf16.msra.mxu0 %v8594_v36  ;;  %v6127_v45 = vld [vmem:[%s17293_s3 + $0x380] sm:$0xff]  ;;  %v18395_v36 = vld [vmem:[#allocation124_spill] sm:$0xff] }
 0x332   :  { %8455 = vmatpush1.bf16.msra.mxu1 %v18358_v59  ;;  %v6104_v59 = vld [vmem:[%s17293_s3 + $0x2c8] sm:$0xff]  ;;  %v8968_v30 = vadd.f32 %v3185_v42, %v15790_v46  ;;  %3564 = vst [vmem:[%s17295_s4] sm:$0xff] %v8960_v39  ;;  %v18393_v42 = vld [vmem:[#allocation117_spill] sm:$0xff] }
 0x333   :  { %8457 = vmatprep.subr.bf16.mxu1 %v18361_v50  ;;  %v3187_v50 = vpop.f32.mrb[9].mxu0  ;;  %v8596_v55 = vpack.c.bf16 %v6104_v59, %v6096_v19  ;;  %3565 = vst [vmem:[%s17295_s4 + $0x8] sm:$0xff] %v8961_v16  ;;  %v18394_v39 = vpack.c.bf16 %v18392_v57, %v18393_v42  ;;  %v18396_v16 = vld [vmem:[#allocation115_spill] sm:$0xff]  ;;  %v6017_v42 = vld [vmem:[%s17293_s3 + $0x10] sm:$0xff] }
 0x334   :  { %v8969_v13 = vadd.f32 %v3187_v50, %v15790_v46  ;;  %3566 = vst [vmem:[%s17295_s4 + $0x10] sm:$0xff] %v8968_v30  ;;  %v15886_v30 = vpop.permute.xlu0 %2849  ;;  %v6135_v50 = vld [vmem:[%s17293_s3 + $0x3c0] sm:$0xff] }
 0x335   :  { %v3191_v28 = vpop.f32.mrb[10].mxu0  ;;  %8597 = vmatprep.subr.bf16.mxu0 %v8596_v55  ;;  %v6144_v55 = vld [vmem:[%s17293_s3 + $0x408] sm:$0xff]  ;;  %v8606_v31 = vpack.c.bf16 %v6135_v50, %v6127_v45  ;;  %v6034_v45 = vld [vmem:[%s17293_s3 + $0x98] sm:$0xff] }
 0x336   :  { %8459 = vmatpush1.bf16.msra.mxu1 %v18364_v35  ;;  %v6103_v35 = vld [vmem:[%s17293_s3 + $0x2c0] sm:$0xff]  ;;  %3567 = vst [vmem:[%s17295_s4 + $0x18] sm:$0xff] %v8969_v13  ;;  %v8970_v49 = vadd.f32 %v3191_v28, %v15801_v9  ;;  %v3193_v29 = vpop.f32.mrb[11].mxu0  ;;  %v18397_v13 = vpack.c.bf16 %v18395_v36, %v18396_v16  ;;  %v18398_v28 = vld [vmem:[#allocation137_spill] sm:$0xff]  ;;  %v18416_v50 = vld [vmem:[#allocation48_spill] sm:$0xff] }
 0x337   :  { %8461 = vmatprep.subr.bf16.mxu1 %v18367_v61  ;;  %v3013_v61 = vpop.f32.mrb[22].mxu1  ;;  %v8598_v44 = vpack.c.bf16 %v6103_v35, %v6095_v23  ;;  %v8971_v54 = vadd.f32 %v3193_v29, %v15801_v9  ;;  %v6152_v23 = vld [vmem:[%s17293_s3 + $0x448] sm:$0xff]  ;;  %v18417_v36 = vld [vmem:[#allocation134_spill] sm:$0xff] }
 0x338   :  { %v8962_v7 = vadd.f32 %v3013_v61, %v15801_v9  ;;  %v3015_v58 = vpop.f32.mrb[23].mxu1  ;;  %3574 = vst [vmem:[%s17295_s4 + $0x50] sm:$0xff] %v8970_v49  ;;  %v18401_v29 = vld [vmem:[#allocation128_spill] sm:$0xff]  ;;  %v18418_v16 = vpack.c.bf16 %v18416_v50, %v18417_v36 }
 0x339   :  { %v8963_v5 = vadd.f32 %v3015_v58, %v15801_v9  ;;  %3575 = vst [vmem:[%s17295_s4 + $0x58] sm:$0xff] %v8971_v54  ;;  %v3019_v22 = vpop.f32.mrb[24].mxu1  ;;  %v3197_v56 = vpop.f32.mrb[12].mxu0  ;;  %8599 = vmatpush1.bf16.msra.mxu0 %v8598_v44  ;;  %v6143_v58 = vld [vmem:[%s17293_s3 + $0x400] sm:$0xff]  ;;  %v6160_v54 = vld [vmem:[%s17293_s3 + $0x488] sm:$0xff] }
 0x33a   :  { %8463 = vmatpush1.bf16.msra.mxu1 %v18370_v43  ;;  %v18386_v43 = vld [vmem:[#allocation108_spill] sm:$0xff]  ;;  %3572 = vst [vmem:[%s17295_s4 + $0x40] sm:$0xff] %v8962_v7  ;;  %v8964_v2 = vadd.f32 %v3019_v22, %v15850_v11  ;;  %v8972_v51 = vadd.f32 %v3197_v56, %v15850_v11  ;;  %v3021_v53 = vpop.f32.mrb[25].mxu1  ;;  %v3199_v17 = vpop.f32.mrb[13].mxu0  ;;  %8601 = vmatprep.subr.bf16.mxu0 %v8600_v33  ;;  %v18402_v44 = vld [vmem:[#allocation123_spill] sm:$0xff]  ;;  %v18405_v33 = vld [vmem:[#allocation145_spill] sm:$0xff] }
 0x33b   :  { %8465 = vmatprep.subr.bf16.mxu1 %v18373_v48  ;;  %v18388_v10 = vpack.c.bf16 %v18386_v43, %v18387_v47  ;;  %v6119_v48 = vld [vmem:[%s17293_s3 + $0x340] sm:$0xff]  ;;  %3573 = vst [vmem:[%s17295_s4 + $0x48] sm:$0xff] %v8963_v5  ;;  %v8965_v19 = vadd.f32 %v3021_v53, %v15850_v11  ;;  %v8973_v59 = vadd.f32 %v3199_v17, %v15850_v11  ;;  %v18399_v7 = vld [vmem:[#allocation136_spill] sm:$0xff]  ;;  %v18411_v53 = vld [vmem:[#allocation89_spill] sm:$0xff] }
 0x33c   :  { %3580 = vst [vmem:[%s17295_s4 + $0x80] sm:$0xff] %v8964_v2  ;;  %3582 = vst [vmem:[%s17295_s4 + $0x90] sm:$0xff] %v8972_v51  ;;  %v3025_v62 = vpop.f32.mrb[26].mxu1  ;;  %v18400_v49 = vpack.c.bf16 %v18398_v28, %v18399_v7  ;;  %v18403_v5 = vpack.c.bf16 %v18401_v29, %v18402_v44  ;;  %v6168_v43 = vld [vmem:[%s17293_s3 + $0x4c8] sm:$0xff] }
 0x33d   :  { %3581 = vst [vmem:[%s17295_s4 + $0x88] sm:$0xff] %v8965_v19  ;;  %3583 = vst [vmem:[%s17295_s4 + $0x98] sm:$0xff] %v8973_v59  ;;  %v8966_v35 = vadd.f32 %v3025_v62, %v15886_v30  ;;  %v3027_v26 = vpop.f32.mrb[27].mxu1  ;;  %v8612_v56 = vpack.c.bf16 %v6168_v43, %v6160_v54  ;;  %v18410_v51 = vld [vmem:[#allocation68_spill] sm:$0xff]  ;;  %v18414_v19 = vld [vmem:[#allocation133_spill] sm:$0xff] }
 0x33e   :  { %8467 = vmatpush1.bf16.msra.mxu1 %v18376_v12  ;;  %v6128_v12 = vld [vmem:[%s17293_s3 + $0x388] sm:$0xff]  ;;  %v8967_v24 = vadd.f32 %v3027_v26, %v15886_v30  ;;  %v18412_v17 = vpack.c.bf16 %v18410_v51, %v18411_v53  ;;  %v6033_v62 = vld [vmem:[%s17293_s3 + $0x90] sm:$0xff]  ;;  %v6098_v54 = vld [vmem:[%s17293_s3 + $0x298] sm:$0xff] }
 0x33f   :  { %8469 = vmatprep.subr.bf16.mxu1 %v18379_v15  ;;  %v8602_v15 = vpack.c.bf16 %v6119_v48, %v6111_v37  ;;  %v8604_v63 = vpack.c.bf16 %v6136_v32, %v6128_v12  ;;  %3588 = vst [vmem:[%s17295_s4 + $0xc0] sm:$0xff] %v8966_v35  ;;  %v6159_v48 = vld [vmem:[%s17293_s3 + $0x480] sm:$0xff]  ;;  %v6176_v12 = vld [vmem:[%s17293_s3 + $0x508] sm:$0xff]  ;;  %v6057_v26 = vld [vmem:[%s17293_s3 + $0x150] sm:$0xff] }
 0x340   :  { %3589 = vst [vmem:[%s17295_s4 + $0xc8] sm:$0xff] %v8967_v24  ;;  %v6184_v32 = vld [vmem:[%s17293_s3 + $0x548] sm:$0xff]  ;;  %v8614_v2 = vpack.c.bf16 %v6167_v38, %v6159_v48  ;;  %v6183_v24 = vld [vmem:[%s17293_s3 + $0x540] sm:$0xff]  ;;  %v6138_v51 = vld [vmem:[%s17293_s3 + $0x3d8] sm:$0xff] }
 0x341   :  { %8603 = vmatpush1.bf16.msra.mxu0 %v8602_v15  ;;  %v18413_v15 = vld [vmem:[#allocation5_spill] sm:$0xff]  ;;  %v6192_v43 = vld [vmem:[%s17293_s3 + $0x588] sm:$0xff]  ;;  %v6191_v38 = vld [vmem:[%s17293_s3 + $0x580] sm:$0xff] }
 0x342   :  { %8471 = vmatpush1.bf16.msra.mxu1 %v18382_v21  ;;  %v3203_v21 = vpop.f32.mrb[14].mxu0  ;;  %8605 = vmatprep.subr.bf16.mxu0 %v8604_v63  ;;  %v18415_v59 = vpack.c.bf16 %v18413_v15, %v18414_v19  ;;  %v6208_v53 = vld [vmem:[%s17293_s3 + $0x608] sm:$0xff] }
 0x343   :  { %8473 = vmatprep.subr.bf16.mxu1 %v18385_v4  ;;  %v8974_v0 = vadd.f32 %v3203_v21, %v15886_v30  ;;  %v3205_v4 = vpop.f32.mrb[15].mxu0  ;;  %v6041_v21 = vld [vmem:[%s17293_s3 + $0xd0] sm:$0xff]  ;;  %v6224_v36 = vld [vmem:[%s17293_s3 + $0x688] sm:$0xff] }
 0x344   :  { %v8975_v61 = vadd.f32 %v3205_v4, %v15886_v30  ;;  %v6066_v4 = vld [vmem:[%s17293_s3 + $0x198] sm:$0xff] }
 0x345   :  { %3590 = vst [vmem:[%s17295_s4 + $0xd0] sm:$0xff] %v8974_v0  ;;  %8607 = vmatpush1.bf16.msra.mxu0 %v8606_v31  ;;  %v6049_v0 = vld [vmem:[%s17293_s3 + $0x110] sm:$0xff]  ;;  %v6175_v31 = vld [vmem:[%s17293_s3 + $0x500] sm:$0xff] }
 0x346   :  { %8475 = vmatpush1.bf16.msra.mxu1 %v18388_v10  ;;  %3591 = vst [vmem:[%s17295_s4 + $0xd8] sm:$0xff] %v8975_v61  ;;  %v18404_v10 = vld [vmem:[#allocation146_spill] sm:$0xff]  ;;  %v8682_v61 = vpack.c.bf16 %v6057_v26, %v6049_v0  ;;  %v8618_v28 = vpack.c.bf16 %v6183_v24, %v6175_v31  ;;  %v6239_v24 = vld [vmem:[%s17293_s3 + $0x700] sm:$0xff] }
 0x347   :  { %8477 = vmatprep.subr.bf16.mxu1 %v18391_v60  ;;  %v18406_v37 = vpack.c.bf16 %v18404_v10, %v18405_v33  ;;  %v18408_v60 = vld [vmem:[#allocation127_spill] sm:$0xff]  ;;  %v6097_v33 = vld [vmem:[%s17293_s3 + $0x290] sm:$0xff]  ;;  %v6170_v0 = vld [vmem:[%s17293_s3 + $0x4d8] sm:$0xff] }
 0x348   :  { %v18409_v22 = vpack.c.bf16 %v18407_v3, %v18408_v60  ;;  %v6199_v3 = vld [vmem:[%s17293_s3 + $0x5c0] sm:$0xff]  ;;  %v6114_v60 = vld [vmem:[%s17293_s3 + $0x318] sm:$0xff] }
 0x34a   :  { %8479 = vmatpush1.bf16.msra.mxu1 %v18394_v39  ;;  %v8616_v39 = vpack.c.bf16 %v6184_v32, %v6176_v12  ;;  %v6113_v12 = vld [vmem:[%s17293_s3 + $0x310] sm:$0xff] }
 0x34b   :  { %8481 = vmatprep.subr.bf16.mxu1 %v18397_v13  ;;  %v6121_v32 = vld [vmem:[%s17293_s3 + $0x350] sm:$0xff] }
 0x34c   :  { %v8698_v15 = vpack.c.bf16 %v6121_v32, %v6113_v12  ;;  %v6209_v32 = vld [vmem:[%s17293_s3 + $0x610] sm:$0xff] }
 0x34d   :  { %5647 = vmatmul.mubr.f32.vlgmr.msra.gmra.mrb[36].mxu1 %v15577_v27  ;;  %v6151_v27 = vld [vmem:[%s17293_s3 + $0x440] sm:$0xff] }
 0x34e   :  { %8483 = vmatpush1.bf16.msra.mxu1 %v18400_v49  ;;  %5652 = vmatprep.mubr.f32.mxu1 %v15590_v8  ;;  %v8608_v8 = vpack.c.bf16 %v6152_v23, %v6144_v55  ;;  %v8610_v47 = vpack.c.bf16 %v6151_v27, %v6143_v58  ;;  %v6058_v55 = vld [vmem:[%s17293_s3 + $0x158] sm:$0xff]  ;;  %v8678_v23 = vpack.c.bf16 %v6041_v21, %v6033_v62  ;;  %v6065_v49 = vld [vmem:[%s17293_s3 + $0x190] sm:$0xff]  ;;  %v6223_v21 = vld [vmem:[%s17293_s3 + $0x680] sm:$0xff] }
 0x34f   :  { %8485 = vmatprep.subr.bf16.mxu1 %v18403_v5  ;;  %v6082_v58 = vld [vmem:[%s17293_s3 + $0x218] sm:$0xff]  ;;  %v6081_v5 = vld [vmem:[%s17293_s3 + $0x210] sm:$0xff] }
 0x350   :  { %8609 = vmatprep.subr.bf16.mxu0 %v8608_v8  ;;  %v6090_v27 = vld [vmem:[%s17293_s3 + $0x258] sm:$0xff]  ;;  %v6089_v8 = vld [vmem:[%s17293_s3 + $0x250] sm:$0xff] }
 0x351   :  { %5653 = vmatmul.mubr.f32.gmra.mrb[38].mxu1 %v15601_v40  ;;  %v6018_v40 = vld [vmem:[%s17293_s3 + $0x18] sm:$0xff]  ;;  %8611 = vmatpush1.bf16.msra.mxu0 %v8610_v47  ;;  %v8688_v44 = vpack.c.bf16 %v6090_v27, %v6082_v58  ;;  %v6200_v47 = vld [vmem:[%s17293_s3 + $0x5c8] sm:$0xff]  ;;  %v8690_v10 = vpack.c.bf16 %v6089_v8, %v6081_v5  ;;  %v6169_v58 = vld [vmem:[%s17293_s3 + $0x4d0] sm:$0xff] }
 0x352   :  { %8487 = vmatpush1.bf16.msra.mxu1 %v18406_v37  ;;  %5658 = vmatprep.mubr.f32.mxu1 %v15616_v1  ;;  %v6026_v1 = vld [vmem:[%s17293_s3 + $0x58] sm:$0xff]  ;;  %v8620_v37 = vpack.c.bf16 %v6200_v47, %v6192_v43 }
 0x353   :  { %8489 = vmatprep.subr.bf16.mxu1 %v18409_v22  ;;  %v8672_v57 = vpack.c.bf16 %v6026_v1, %v6018_v40  ;;  %8613 = vmatprep.subr.bf16.mxu0 %v8612_v56  ;;  %v6122_v22 = vld [vmem:[%s17293_s3 + $0x358] sm:$0xff]  ;;  %v8622_v40 = vpack.c.bf16 %v6199_v3, %v6191_v38 }
 0x354   :  { %v8696_v1 = vpack.c.bf16 %v6122_v22, %v6114_v60  ;;  %v6178_v27 = vld [vmem:[%s17293_s3 + $0x518] sm:$0xff]  ;;  %v6193_v60 = vld [vmem:[%s17293_s3 + $0x590] sm:$0xff] }
 0x355   :  { %5659 = vmatmul.mubr.f32.gmra.mrb[40].mxu1 %v15627_v14  ;;  %v6025_v14 = vld [vmem:[%s17293_s3 + $0x50] sm:$0xff]  ;;  %8615 = vmatpush1.bf16.msra.mxu0 %v8614_v2  ;;  %v6130_v2 = vld [vmem:[%s17293_s3 + $0x398] sm:$0xff] }
 0x356   :  { %8491 = vmatpush1.bf16.msra.mxu1 %v18412_v17  ;;  %5664 = vmatprep.mubr.f32.mxu1 %v15636_v52  ;;  %v6042_v52 = vld [vmem:[%s17293_s3 + $0xd8] sm:$0xff]  ;;  %v8674_v13 = vpack.c.bf16 %v6025_v14, %v6017_v42  ;;  %v6216_v17 = vld [vmem:[%s17293_s3 + $0x648] sm:$0xff]  ;;  %v6137_v42 = vld [vmem:[%s17293_s3 + $0x3d0] sm:$0xff] }
 0x357   :  { %8493 = vmatprep.subr.bf16.mxu1 %v18415_v59  ;;  %v8676_v63 = vpack.c.bf16 %v6042_v52, %v6034_v45  ;;  %8617 = vmatprep.subr.bf16.mxu0 %v8616_v39  ;;  %v8624_v19 = vpack.c.bf16 %v6216_v17, %v6208_v53  ;;  %v8700_v59 = vpack.c.bf16 %v6138_v51, %v6130_v2  ;;  %v6146_v14 = vld [vmem:[%s17293_s3 + $0x418] sm:$0xff]  ;;  %v6207_v45 = vld [vmem:[%s17293_s3 + $0x600] sm:$0xff]  ;;  %v6201_v22 = vld [vmem:[%s17293_s3 + $0x5d0] sm:$0xff] }
 0x358   :  { %v6154_v39 = vld [vmem:[%s17293_s3 + $0x458] sm:$0xff]  ;;  %v6215_v52 = vld [vmem:[%s17293_s3 + $0x640] sm:$0xff]  ;;  %v6217_v2 = vld [vmem:[%s17293_s3 + $0x650] sm:$0xff] }
 0x359   :  { %5665 = vmatmul.mubr.f32.gmra.mrb[42].mxu1 %v15647_v6  ;;  %v6050_v6 = vld [vmem:[%s17293_s3 + $0x118] sm:$0xff]  ;;  %8619 = vmatpush1.bf16.msra.mxu0 %v8618_v28  ;;  %v8626_v50 = vpack.c.bf16 %v6215_v52, %v6207_v45  ;;  %v8722_v17 = vpack.c.bf16 %v6217_v2, %v6209_v32  ;;  %v6241_v45 = vld [vmem:[%s17293_s3 + $0x710] sm:$0xff] }
 0x35a   :  { %8495 = vmatpush1.bf16.msra.mxu1 %v18418_v16  ;;  %5735 = vmatprep.mubr.f32.mxu1 %v17911_v34  ;;  %v8680_v35 = vpack.c.bf16 %v6058_v55, %v6050_v6  ;;  %v6232_v16 = vld [vmem:[%s17293_s3 + $0x6c8] sm:$0xff]  ;;  %v8704_v6 = vpack.c.bf16 %v6154_v39, %v6146_v14  ;;  %v6153_v55 = vld [vmem:[%s17293_s3 + $0x450] sm:$0xff]  ;;  %v6186_v5 = vld [vmem:[%s17293_s3 + $0x558] sm:$0xff] }
 0x35b   :  { %8673 = vmatprep.subr.bf16.mxu1 %v8672_v57  ;;  %8621 = vmatprep.subr.bf16.mxu0 %v8620_v37  ;;  %v6129_v57 = vld [vmem:[%s17293_s3 + $0x390] sm:$0xff]  ;;  %v8628_v62 = vpack.c.bf16 %v6232_v16, %v6224_v36  ;;  %v8712_v47 = vpack.c.bf16 %v6186_v5, %v6178_v27  ;;  %v6226_v51 = vld [vmem:[%s17293_s3 + $0x698] sm:$0xff] }
 0x35c   :  { %v6234_v53 = vld [vmem:[%s17293_s3 + $0x6d8] sm:$0xff]  ;;  %v6249_v52 = vld [vmem:[%s17293_s3 + $0x750] sm:$0xff] }
 0x35d   :  { %7460 = vmatmul.mubr.msk.f32.vlgmr.msra.gmra.mrb[36].mxu1 %vm1909_vm8, %v15656_v20  ;;  %v6074_v20 = vld [vmem:[%s17293_s3 + $0x1d8] sm:$0xff]  ;;  %8623 = vmatpush1.bf16.msra.mxu0 %v8622_v40  ;;  %v8730_v16 = vpack.c.bf16 %v6249_v52, %v6241_v45 }
 0x35e   :  { %5741 = vmatprep.mubr.f32.mxu1 %v17911_v34  ;;  %8675 = vmatpush1.bf16.msra.mxu1 %v8674_v13  ;;  %v8684_v7 = vpack.c.bf16 %v6074_v20, %v6066_v4  ;;  %v8702_v13 = vpack.c.bf16 %v6137_v42, %v6129_v57  ;;  %v6240_v4 = vld [vmem:[%s17293_s3 + $0x708] sm:$0xff]  ;;  %v6210_v40 = vld [vmem:[%s17293_s3 + $0x618] sm:$0xff] }
 0x35f   :  { %8677 = vmatprep.subr.bf16.mxu1 %v8676_v63  ;;  %8625 = vmatprep.subr.bf16.mxu0 %v8624_v19  ;;  %v6145_v63 = vld [vmem:[%s17293_s3 + $0x410] sm:$0xff]  ;;  %v6248_v20 = vld [vmem:[%s17293_s3 + $0x748] sm:$0xff]  ;;  %v6242_v57 = vld [vmem:[%s17293_s3 + $0x718] sm:$0xff] }
 0x360   :  { %v8632_v31 = vpack.c.bf16 %v6248_v20, %v6240_v4  ;;  %v8706_v28 = vpack.c.bf16 %v6153_v55, %v6145_v63  ;;  %v6225_v19 = vld [vmem:[%s17293_s3 + $0x690] sm:$0xff]  ;;  %v6250_v42 = vld [vmem:[%s17293_s3 + $0x758] sm:$0xff] }
 0x361   :  { %7461 = vmatmul.mubr.msk.f32.gmra.mrb[38].mxu1 %vm1909_vm8, %v15667_v41  ;;  %v6073_v41 = vld [vmem:[%s17293_s3 + $0x1d0] sm:$0xff]  ;;  %8627 = vmatpush1.bf16.msra.mxu0 %v8626_v50  ;;  %v8728_v39 = vpack.c.bf16 %v6250_v42, %v6242_v57  ;;  %v6258_v50 = vld [vmem:[%s17293_s3 + $0x798] sm:$0xff] }
 0x362   :  { %5747 = vmatprep.mubr.f32.mxu1 %v17911_v34  ;;  %8679 = vmatpush1.bf16.msra.mxu1 %v8678_v23  ;;  %v8686_v29 = vpack.c.bf16 %v6073_v41, %v6065_v49  ;;  %v6162_v23 = vld [vmem:[%s17293_s3 + $0x498] sm:$0xff]  ;;  %v6256_v49 = vld [vmem:[%s17293_s3 + $0x788] sm:$0xff]  ;;  %v6257_v63 = vld [vmem:[%s17293_s3 + $0x790] sm:$0xff] }
 0x363   :  { %8681 = vmatprep.subr.bf16.mxu1 %v8680_v35  ;;  %v6231_v35 = vld [vmem:[%s17293_s3 + $0x6c0] sm:$0xff]  ;;  %8629 = vmatprep.subr.bf16.mxu0 %v8628_v62  ;;  %v8708_v41 = vpack.c.bf16 %v6170_v0, %v6162_v23  ;;  %v6266_v36 = vld [vmem:[%s17293_s3 + $0x7d8] sm:$0xff]  ;;  %v6265_v62 = vld [vmem:[%s17293_s3 + $0x7d0] sm:$0xff] }
 0x364   :  { %v8630_v26 = vpack.c.bf16 %v6231_v35, %v6223_v21  ;;  %v8734_v21 = vpack.c.bf16 %v6265_v62, %v6257_v63 }
 0x365   :  { %7462 = vmatmul.mubr.msk.f32.gmra.mrb[40].mxu1 %vm1909_vm8, %v15675_v18  ;;  %v6106_v18 = vld [vmem:[%s17293_s3 + $0x2d8] sm:$0xff] }
 0x366   :  { %5753 = vmatprep.mubr.f32.mxu1 %v17911_v34  ;;  %8683 = vmatpush1.bf16.msra.mxu1 %v8682_v61  ;;  %v8692_v48 = vpack.c.bf16 %v6106_v18, %v6098_v54  ;;  %v6247_v61 = vld [vmem:[%s17293_s3 + $0x740] sm:$0xff] }
 0x367   :  { %8685 = vmatprep.subr.bf16.mxu1 %v8684_v7  ;;  %v6161_v7 = vld [vmem:[%s17293_s3 + $0x490] sm:$0xff]  ;;  %8631 = vmatpush1.bf16.msra.mxu0 %v8630_v26  ;;  %v6255_v54 = vld [vmem:[%s17293_s3 + $0x780] sm:$0xff] }
 0x368   :  { %8633 = vmatprep.subr.bf16.mxu0 %v8632_v31  ;;  %v6263_v18 = vld [vmem:[%s17293_s3 + $0x7c0] sm:$0xff]  ;;  %v8710_v43 = vpack.c.bf16 %v6169_v58, %v6161_v7 }
 0x369   :  { %7463 = vmatmul.mubr.msk.f32.gmra.mrb[42].mxu1 %vm1909_vm8, %v15687_v25  ;;  %v6105_v25 = vld [vmem:[%s17293_s3 + $0x2d0] sm:$0xff]  ;;  %v8638_v37 = vpack.c.bf16 %v6263_v18, %v6255_v54 }
 0x36a   :  { %8687 = vmatpush1.bf16.msra.mxu1 %v8686_v29  ;;  %v8694_v56 = vpack.c.bf16 %v6105_v25, %v6097_v33  ;;  %v8634_v29 = vpack.c.bf16 %v6247_v61, %v6239_v24  ;;  %v6185_v33 = vld [vmem:[%s17293_s3 + $0x550] sm:$0xff]  ;;  %v6202_v25 = vld [vmem:[%s17293_s3 + $0x5d8] sm:$0xff] }
 0x36b   :  { %8689 = vmatprep.subr.bf16.mxu1 %v8688_v44  ;;  %v6264_v44 = vld [vmem:[%s17293_s3 + $0x7c8] sm:$0xff] }
 0x36c   :  { %v8636_v8 = vpack.c.bf16 %v6264_v44, %v6256_v49  ;;  %8635 = vmatpush1.bf16.msra.mxu0 %v8634_v29 }
 0x36e   :  { %8691 = vmatpush1.bf16.msra.mxu1 %v8690_v10  ;;  %v6177_v10 = vld [vmem:[%s17293_s3 + $0x510] sm:$0xff]  ;;  %8637 = vmatprep.subr.bf16.mxu0 %v8636_v8 }
 0x36f   :  { %8693 = vmatprep.subr.bf16.mxu1 %v8692_v48  ;;  %v6194_v48 = vld [vmem:[%s17293_s3 + $0x598] sm:$0xff]  ;;  %v8714_v38 = vpack.c.bf16 %v6185_v33, %v6177_v10 }
 0x370   :  { %v8716_v3 = vpack.c.bf16 %v6202_v25, %v6194_v48  ;;  %8639 = vmatpush1.bf16.msra.mxu0 %v8638_v37  ;;  %v6272_v25 = vld [vmem:[%s17293_s3 + $0x808] sm:$0xff] }
 0x372   :  { %8695 = vmatpush1.bf16.msra.mxu1 %v8694_v56  ;;  %v6218_v56 = vld [vmem:[%s17293_s3 + $0x658] sm:$0xff] }
 0x373   :  { %8697 = vmatprep.subr.bf16.mxu1 %v8696_v1  ;;  %v8718_v1 = vpack.c.bf16 %v6201_v22, %v6193_v60  ;;  %v8720_v12 = vpack.c.bf16 %v6218_v56, %v6210_v40  ;;  %v6282_v60 = vld [vmem:[%s17293_s3 + $0x858] sm:$0xff] }
 0x376   :  { %8699 = vmatpush1.bf16.msra.mxu1 %v8698_v15  ;;  %v8724_v15 = vpack.c.bf16 %v6234_v53, %v6226_v51 }
 0x377   :  { %8701 = vmatprep.subr.bf16.mxu1 %v8700_v59  ;;  %v6233_v59 = vld [vmem:[%s17293_s3 + $0x6d0] sm:$0xff] }
 0x378   :  { %v8726_v14 = vpack.c.bf16 %v6233_v59, %v6225_v19 }
 0x37a   :  { %8703 = vmatpush1.bf16.msra.mxu1 %v8702_v13  ;;  %v8732_v13 = vpack.c.bf16 %v6266_v36, %v6258_v50 }
 0x37b   :  { %8705 = vmatprep.subr.bf16.mxu1 %v8704_v6 }
 0x37e   :  { %8707 = vmatpush1.bf16.msra.mxu1 %v8706_v28 }
 0x37f   :  { %8709 = vmatprep.subr.bf16.mxu1 %v8708_v41 }
 0x382   :  { %8711 = vmatpush1.bf16.msra.mxu1 %v8710_v43 }
 0x383   :  { %8713 = vmatprep.subr.bf16.mxu1 %v8712_v47 }
 0x386   :  { %8715 = vmatpush1.bf16.msra.mxu1 %v8714_v38  ;;  %v6280_v38 = vld [vmem:[%s17293_s3 + $0x848] sm:$0xff] }
 0x387   :  { %8717 = vmatprep.subr.bf16.mxu1 %v8716_v3  ;;  %v8640_v3 = vpack.c.bf16 %v6280_v38, %v6272_v25  ;;  %v6304_v25 = vld [vmem:[%s17293_s3 + $0x908] sm:$0xff] }
 0x388   :  { %v6312_v38 = vld [vmem:[%s17293_s3 + $0x948] sm:$0xff] }
 0x389   :  { %8641 = vmatprep.subr.bf16.mxu0 %v8640_v3  ;;  %v6314_v3 = vld [vmem:[%s17293_s3 + $0x958] sm:$0xff] }
 0x38a   :  { %8719 = vmatpush1.bf16.msra.mxu1 %v8718_v1 }
 0x38b   :  { %8721 = vmatprep.subr.bf16.mxu1 %v8720_v12 }
 0x38e   :  { %8723 = vmatpush1.bf16.msra.mxu1 %v8722_v17 }
 0x38f   :  { %8725 = vmatprep.subr.bf16.mxu1 %v8724_v15 }
 0x392   :  { %8727 = vmatpush1.bf16.msra.mxu1 %v8726_v14 }
 0x393   :  { %8729 = vmatprep.subr.bf16.mxu1 %v8728_v39 }
 0x396   :  { %8731 = vmatpush1.bf16.msra.mxu1 %v8730_v16 }
 0x397   :  { %8733 = vmatprep.subr.bf16.mxu1 %v8732_v13 }
 0x399   :  { %v3363_v6 = vpop.f32.mrb[28].mxu1  ;;  %v3541_v23 = vpop.f32.mrb[16].mxu0 }
 0x39a   :  { %8735 = vmatpush1.bf16.msra.mxu1 %v8734_v21  ;;  %v8976_v55 = vadd.f32 %v3363_v6, %v15790_v46  ;;  %v3365_v35 = vpop.f32.mrb[29].mxu1  ;;  %v8984_v0 = vadd.f32 %v3541_v23, %v15790_v46  ;;  %v3543_v4 = vpop.f32.mrb[17].mxu0 }
 0x39b   :  { %v8977_v26 = vadd.f32 %v3365_v35, %v15790_v46  ;;  %v8985_v20 = vadd.f32 %v3543_v4, %v15790_v46 }
 0x39c   :  { %3568 = vst [vmem:[%s17295_s4 + $0x20] sm:$0xff] %v8976_v55  ;;  %3570 = vst [vmem:[%s17295_s4 + $0x30] sm:$0xff] %v8984_v0 }
 0x39d   :  { %3569 = vst [vmem:[%s17295_s4 + $0x28] sm:$0xff] %v8977_v26  ;;  %v3369_v31 = vpop.f32.mrb[30].mxu1  ;;  %3571 = vst [vmem:[%s17295_s4 + $0x38] sm:$0xff] %v8985_v20  ;;  %v3547_v61 = vpop.f32.mrb[18].mxu0 }
 0x39e   :  { %v8978_v24 = vadd.f32 %v3369_v31, %v15801_v9  ;;  %v3371_v28 = vpop.f32.mrb[31].mxu1  ;;  %v8986_v7 = vadd.f32 %v3547_v61, %v15801_v9  ;;  %v3549_v49 = vpop.f32.mrb[19].mxu0 }
 0x39f   :  { %v8979_v46 = vadd.f32 %v3371_v28, %v15801_v9  ;;  %v8987_v41 = vadd.f32 %v3549_v49, %v15801_v9  ;;  %v6399_v28 = vld [vmem:[%s17294_s2] sm:$0xff] }
 0x3a0   :  { %3576 = vst [vmem:[%s17295_s4 + $0x60] sm:$0xff] %v8978_v24  ;;  %3578 = vst [vmem:[%s17295_s4 + $0x70] sm:$0xff] %v8986_v7  ;;  %6405 = vperm.xlu1 %10411, %v6399_v28   ;;  %v6400_v7 = vld [vmem:[%s17294_s2 + $0x8] sm:$0xff]  ;;  %v6279_v49 = vld [vmem:[%s17293_s3 + $0x840] sm:$0xff] }
 0x3a1   :  { %3577 = vst [vmem:[%s17295_s4 + $0x68] sm:$0xff] %v8979_v46  ;;  %v3375_v58 = vpop.f32.mrb[32].mxu1  ;;  %3579 = vst [vmem:[%s17295_s4 + $0x78] sm:$0xff] %v8987_v41  ;;  %v3553_v29 = vpop.f32.mrb[20].mxu0  ;;  %6410 = vperm.xlu0 %10410, %v6400_v7   ;;  %v6271_v46 = vld [vmem:[%s17293_s3 + $0x800] sm:$0xff]  ;;  %v6273_v41 = vld [vmem:[%s17293_s3 + $0x810] sm:$0xff] }
 0x3a2   :  { %v8980_v27 = vadd.f32 %v3375_v58, %v15850_v11  ;;  %v3377_v44 = vpop.f32.mrb[33].mxu1  ;;  %v8988_v5 = vadd.f32 %v3553_v29, %v15850_v11  ;;  %v3555_v8 = vpop.f32.mrb[21].mxu0  ;;  %v6281_v58 = vld [vmem:[%s17293_s3 + $0x850] sm:$0xff]  ;;  %v6296_v29 = vld [vmem:[%s17293_s3 + $0x8c8] sm:$0xff] }
 0x3a3   :  { %v8981_v9 = vadd.f32 %v3377_v44, %v15850_v11  ;;  %v8989_v54 = vadd.f32 %v3555_v8, %v15850_v11  ;;  %v6290_v44 = vld [vmem:[%s17293_s3 + $0x898] sm:$0xff] }
 0x3a4   :  { %3584 = vst [vmem:[%s17295_s4 + $0xa0] sm:$0xff] %v8980_v27  ;;  %3586 = vst [vmem:[%s17295_s4 + $0xb0] sm:$0xff] %v8988_v5  ;;  %v6288_v27 = vld [vmem:[%s17293_s3 + $0x888] sm:$0xff]  ;;  %v6298_v5 = vld [vmem:[%s17293_s3 + $0x8d8] sm:$0xff] }
 0x3a5   :  { %3585 = vst [vmem:[%s17295_s4 + $0xa8] sm:$0xff] %v8981_v9  ;;  %v3381_v18 = vpop.f32.mrb[34].mxu1  ;;  %3587 = vst [vmem:[%s17295_s4 + $0xb8] sm:$0xff] %v8989_v54  ;;  %v3559_v47 = vpop.f32.mrb[22].mxu0  ;;  %v6401_v9 = vld [vmem:[%s17294_s2 + $0x10] sm:$0xff]  ;;  %v8642_v54 = vpack.c.bf16 %v6279_v49, %v6271_v46 }
 0x3a6   :  { %v8982_v43 = vadd.f32 %v3381_v18, %v15886_v30  ;;  %v3383_v10 = vpop.f32.mrb[35].mxu1  ;;  %v8990_v33 = vadd.f32 %v3559_v47, %v15886_v30  ;;  %v3561_v37 = vpop.f32.mrb[23].mxu0  ;;  %6415 = vperm.xlu1 %10411, %v6401_v9   ;;  %v8738_v18 = vpack.c.bf16 %v6281_v58, %v6273_v41  ;;  %v6295_v47 = vld [vmem:[%s17293_s3 + $0x8c0] sm:$0xff]  ;;  %v6337_v46 = vld [vmem:[%s17293_s3 + $0xa10] sm:$0xff]  ;;  %v6352_v41 = vld [vmem:[%s17293_s3 + $0xa88] sm:$0xff] }
 0x3a7   :  { %v8983_v11 = vadd.f32 %v3383_v10, %v15886_v30  ;;  %v8991_v48 = vadd.f32 %v3561_v37, %v15886_v30  ;;  %v6274_v30 = vld [vmem:[%s17293_s3 + $0x818] sm:$0xff]  ;;  %v6289_v37 = vld [vmem:[%s17293_s3 + $0x890] sm:$0xff]  ;;  %v6360_v58 = vld [vmem:[%s17293_s3 + $0xac8] sm:$0xff] }
 0x3a8   :  { %3592 = vst [vmem:[%s17295_s4 + $0xe0] sm:$0xff] %v8982_v43  ;;  %3594 = vst [vmem:[%s17295_s4 + $0xf0] sm:$0xff] %v8990_v33  ;;  %v8736_v22 = vpack.c.bf16 %v6282_v60, %v6274_v30  ;;  %v6287_v43 = vld [vmem:[%s17293_s3 + $0x880] sm:$0xff]  ;;  %v8644_v33 = vpack.c.bf16 %v6296_v29, %v6288_v27  ;;  %v6306_v30 = vld [vmem:[%s17293_s3 + $0x918] sm:$0xff] }
 0x3a9   :  { %3593 = vst [vmem:[%s17295_s4 + $0xe8] sm:$0xff] %v8983_v11  ;;  %3595 = vst [vmem:[%s17295_s4 + $0xf8] sm:$0xff] %v8991_v48  ;;  %v8740_v11 = vpack.c.bf16 %v6298_v5, %v6290_v44  ;;  %v6297_v48 = vld [vmem:[%s17293_s3 + $0x8d0] sm:$0xff]  ;;  %v6354_v27 = vld [vmem:[%s17293_s3 + $0xa98] sm:$0xff] }
 0x3aa   :  { %8737 = vmatprep.subr.bf16.mxu1 %v8736_v22  ;;  %v8646_v22 = vpack.c.bf16 %v6295_v47, %v6287_v43  ;;  %v6345_v49 = vld [vmem:[%s17293_s3 + $0xa50] sm:$0xff]  ;;  %v6362_v29 = vld [vmem:[%s17293_s3 + $0xad8] sm:$0xff]  ;;  %v6351_v9 = vld [vmem:[%s17293_s3 + $0xa80] sm:$0xff]  ;;  %v8660_v43 = vpack.c.bf16 %v6360_v58, %v6352_v41 }
 0x3ab   :  { %v8754_v5 = vpack.c.bf16 %v6345_v49, %v6337_v46  ;;  %v8756_v47 = vpack.c.bf16 %v6362_v29, %v6354_v27  ;;  %v6036_v46 = vld [vmem:[%s17293_s3 + $0xa8] sm:$0xff]  ;;  %v6038_v41 = vld [vmem:[%s17293_s3 + $0xb8] sm:$0xff] }
 0x3ac   :  { %v6044_v49 = vld [vmem:[%s17293_s3 + $0xe8] sm:$0xff]  ;;  %v6046_v58 = vld [vmem:[%s17293_s3 + $0xf8] sm:$0xff] }
 0x3c0   :  { %v7632_v40 = vpop.f32.mrb[24].mxu0 }
 0x3c1   :  { %v7633_v56 = vpop.f32.mrb[25].mxu0 }
 0x3c2   :  { %v7634_v1 = vadd.f32 %v7633_v56, %v7632_v40  ;;  %v8742_v40 = vpack.c.bf16 %v6297_v48, %v6289_v37  ;;  %v6303_v56 = vld [vmem:[%s17293_s3 + $0x900] sm:$0xff]  ;;  %v6368_v37 = vld [vmem:[%s17293_s3 + $0xb08] sm:$0xff] }
 0x3c3   :  { %v6376_v48 = vld [vmem:[%s17293_s3 + $0xb48] sm:$0xff] }
 0x3c4   :  { %v7635_v12 = vpop.f32.mrb[26].mxu0 }
 0x3c5   :  { %v7636_v32 = vpop.f32.mrb[27].mxu0 }
 0x3c6   :  { %v7637_v2 = vadd.f32 %v7636_v32, %v7635_v12  ;;  %v8648_v32 = vpack.c.bf16 %v6312_v38, %v6304_v25  ;;  %v6370_v25 = vld [vmem:[%s17293_s3 + $0xb18] sm:$0xff] }
 0x3c7   :  { %v6378_v38 = vld [vmem:[%s17293_s3 + $0xb58] sm:$0xff] }
 0x3c8   :  { %v7638_v51 = vpop.f32.mrb[28].mxu0 }
 0x3c9   :  { %v7639_v53 = vpop.f32.mrb[29].mxu0 }
 0x3ca   :  { %v7640_v17 = vadd.f32 %v7639_v53, %v7638_v51  ;;  %v6305_v51 = vld [vmem:[%s17293_s3 + $0x910] sm:$0xff] }
 0x3cb   :  { %v6313_v53 = vld [vmem:[%s17293_s3 + $0x950] sm:$0xff] }
 0x3cc   :  { %v7641_v15 = vpop.f32.mrb[30].mxu0 }
 0x3cd   :  { %v7642_v19 = vpop.f32.mrb[31].mxu0 }
 0x3ce   :  { %v7643_v59 = vadd.f32 %v7642_v19, %v7641_v15  ;;  %v6328_v15 = vld [vmem:[%s17293_s3 + $0x9c8] sm:$0xff]  ;;  %v6322_v19 = vld [vmem:[%s17293_s3 + $0x998] sm:$0xff] }
 0x3e3   :  { %v7676_v57 = vpop.f32.mrb[32].mxu0 }
 0x3e4   :  { %v7677_v42 = vpop.f32.mrb[33].mxu0 }
 0x3e5   :  { %v7678_v14 = vadd.f32 %v7677_v42, %v7676_v57 }
 0x3e7   :  { %v5912_v39 = vadd.f32 %v7678_v14, %v7634_v1  ;;  %v7679_v45 = vpop.f32.mrb[34].mxu0  ;;  %v6311_v1 = vld [vmem:[%s17293_s3 + $0x940] sm:$0xff]  ;;  %v8746_v14 = vpack.c.bf16 %v6313_v53, %v6305_v51  ;;  %v6384_v51 = vld [vmem:[%s17293_s3 + $0xb88] sm:$0xff] }
 0x3e8   :  { %v7680_v52 = vpop.f32.mrb[35].mxu0  ;;  %v8650_v42 = vpack.c.bf16 %v6311_v1, %v6303_v56  ;;  %v8664_v56 = vpack.c.bf16 %v6376_v48, %v6368_v37  ;;  %v8760_v1 = vpack.c.bf16 %v6378_v38, %v6370_v25  ;;  %v6392_v53 = vld [vmem:[%s17293_s3 + $0xbc8] sm:$0xff]  ;;  %v6062_v37 = vld [vmem:[%s17293_s3 + $0x178] sm:$0xff]  ;;  %v6051_v38 = vld [vmem:[%s17293_s3 + $0x120] sm:$0xff] }
 0x3e9   :  { %v7681_v50 = vadd.f32 %v7680_v52, %v7679_v45  ;;  %v6327_v45 = vld [vmem:[%s17293_s3 + $0x9c0] sm:$0xff] }
 0x3eb   :  { %v7682_v36 = vpop.f32.mrb[36].mxu0  ;;  %v5917_v16 = vadd.f32 %v7681_v50, %v7637_v2  ;;  %v8744_v2 = vpack.c.bf16 %v6314_v3, %v6306_v30 }
 0x3ec   :  { %v7683_v13 = vpop.f32.mrb[37].mxu0 }
 0x3ed   :  { %v7684_v63 = vadd.f32 %v7683_v13, %v7682_v36  ;;  %v6329_v13 = vld [vmem:[%s17293_s3 + $0x9d0] sm:$0xff] }
 0x3ef   :  { %v7685_v62 = vpop.f32.mrb[38].mxu0  ;;  %v5922_v21 = vadd.f32 %v7684_v63, %v7640_v17  ;;  %v6320_v17 = vld [vmem:[%s17293_s3 + $0x988] sm:$0xff] }
 0x3f0   :  { %v7686_v6 = vpop.f32.mrb[39].mxu0  ;;  %v8652_v50 = vpack.c.bf16 %v6328_v15, %v6320_v17  ;;  %v6336_v63 = vld [vmem:[%s17293_s3 + $0xa08] sm:$0xff]  ;;  %v6386_v17 = vld [vmem:[%s17293_s3 + $0xb98] sm:$0xff] }
 0x3f1   :  { %v7687_v55 = vadd.f32 %v7686_v6, %v7685_v62  ;;  %v6344_v62 = vld [vmem:[%s17293_s3 + $0xa48] sm:$0xff]  ;;  %v6346_v6 = vld [vmem:[%s17293_s3 + $0xa58] sm:$0xff] }
 0x3f2   :  { %v8656_v28 = vpack.c.bf16 %v6344_v62, %v6336_v63  ;;  %v6394_v15 = vld [vmem:[%s17293_s3 + $0xbd8] sm:$0xff] }
 0x3f3   :  { %v7740_v23 = vpop.f32.mrb[40].mxu0  ;;  %v5927_v35 = vadd.f32 %v7687_v55, %v7643_v59  ;;  %v6330_v59 = vld [vmem:[%s17293_s3 + $0x9d8] sm:$0xff] }
 0x3f4   :  { %v16329_v0 = vadd.f32 %v7740_v23, %v5917_v16  ;;  %v5996_v26 = vpop.f32.mrb[41].mxu0  ;;  %v8748_v36 = vpack.c.bf16 %v6330_v59, %v6322_v19  ;;  %v6321_v16 = vld [vmem:[%s17293_s3 + $0x990] sm:$0xff]  ;;  %v6022_v63 = vld [vmem:[%s17293_s3 + $0x38] sm:$0xff] }
 0x3f5   :  { %v16331_v4 = vadd.f32 %v5996_v26, %v5912_v39  ;;  %v6319_v39 = vld [vmem:[%s17293_s3 + $0x980] sm:$0xff]  ;;  %v6030_v62 = vld [vmem:[%s17293_s3 + $0x78] sm:$0xff] }
 0x3f6   :  { %v8654_v23 = vpack.c.bf16 %v6327_v45, %v6319_v39  ;;  %v6335_v26 = vld [vmem:[%s17293_s3 + $0xa00] sm:$0xff]  ;;  %v8668_v39 = vpack.c.bf16 %v6392_v53, %v6384_v51  ;;  %v8764_v45 = vpack.c.bf16 %v6394_v15, %v6386_v17  ;;  %v6078_v51 = vld [vmem:[%s17293_s3 + $0x1f8] sm:$0xff] }
 0x3f7   :  { %v7743_v20 = vpop.f32.mrb[42].mxu0  ;;  %v6067_v15 = vld [vmem:[%s17293_s3 + $0x1a0] sm:$0xff] }
 0x3f8   :  { %v16333_v31 = vadd.f32 %v7743_v20, %v5927_v35  ;;  %v6006_v24 = vpop.f32.mrb[43].mxu0  ;;  %v8750_v35 = vpack.c.bf16 %v6329_v13, %v6321_v16  ;;  %v6343_v20 = vld [vmem:[%s17293_s3 + $0xa40] sm:$0xff]  ;;  %v6020_v16 = vld [vmem:[%s17293_s3 + $0x28] sm:$0xff] }
 0x3f9   :  { %v16335_v61 = vadd.f32 %v6006_v24, %v5922_v21  ;;  %v6338_v21 = vld [vmem:[%s17293_s3 + $0xa18] sm:$0xff]  ;;  %v8658_v44 = vpack.c.bf16 %v6343_v20, %v6335_v26  ;;  %v6028_v13 = vld [vmem:[%s17293_s3 + $0x68] sm:$0xff]  ;;  %v8864_v26 = vpack.c.bf16 %v6030_v62, %v6022_v63  ;;  %v6027_v20 = vld [vmem:[%s17293_s3 + $0x60] sm:$0xff] }
 0x3fa   :  { %v8752_v7 = vpack.c.bf16 %v6346_v6, %v6338_v21  ;;  %v6083_v62 = vld [vmem:[%s17293_s3 + $0x220] sm:$0xff] }
 0x430   :  { %v16370_v8 = vpop.f32.mrb[36].mxu1 }
 0x431   :  { %v16378_v10 = vpop.f32.mrb[37].mxu1 }
 0x432   :  { %6487 = vmatprep.mubr.f32.mxu0 %v16378_v10  ;;  %6665 = vmatprep.mubr.f32.mxu1 %v16378_v10 }
 0x433   :  { %6488 = vmatmul.mubr.f32.vlgmr.msra.gmra.mrb[44].mxu0 %v16370_v8  ;;  %6666 = vmatmul.mubr.f32.vlgmr.msra.gmra.mrb[44].mxu1 %v16370_v8 }
 0x434   :  { %8643 = vmatpush1.bf16.msra.mxu0 %v8642_v54  ;;  %8739 = vmatpush1.bf16.msra.mxu1 %v8738_v18  ;;  %v16402_v60 = vpop.f32.mrb[38].mxu1  ;;  %v6359_v54 = vld [vmem:[%s17293_s3 + $0xac0] sm:$0xff]  ;;  %v6402_v18 = vld [vmem:[%s17294_s2 + $0x18] sm:$0xff] }
 0x435   :  { %v16410_v12 = vpop.f32.mrb[39].mxu1  ;;  %8645 = vmatprep.subr.bf16.mxu0 %v8644_v33  ;;  %8741 = vmatprep.subr.bf16.mxu1 %v8740_v11  ;;  %v6353_v33 = vld [vmem:[%s17293_s3 + $0xa90] sm:$0xff]  ;;  %v8662_v30 = vpack.c.bf16 %v6359_v54, %v6351_v9 }
 0x436   :  { %6493 = vmatprep.mubr.f32.mxu0 %v16410_v12  ;;  %6671 = vmatprep.mubr.f32.mxu1 %v16410_v12  ;;  %v6361_v11 = vld [vmem:[%s17293_s3 + $0xad0] sm:$0xff] }
 0x437   :  { %6494 = vmatmul.mubr.f32.gmra.mrb[46].mxu0 %v16402_v60  ;;  %6672 = vmatmul.mubr.f32.gmra.mrb[46].mxu1 %v16402_v60  ;;  %v8758_v3 = vpack.c.bf16 %v6361_v11, %v6353_v33  ;;  %v6037_v9 = vld [vmem:[%s17293_s3 + $0xb0] sm:$0xff]  ;;  %v6060_v33 = vld [vmem:[%s17293_s3 + $0x168] sm:$0xff]  ;;  %v6054_v11 = vld [vmem:[%s17293_s3 + $0x138] sm:$0xff] }
 0x438   :  { %8647 = vmatpush1.bf16.msra.mxu0 %v8646_v22  ;;  %8743 = vmatpush1.bf16.msra.mxu1 %v8742_v40  ;;  %v16434_v57 = vpop.f32.mrb[40].mxu1  ;;  %v6367_v22 = vld [vmem:[%s17293_s3 + $0xb00] sm:$0xff]  ;;  %v6045_v54 = vld [vmem:[%s17293_s3 + $0xf0] sm:$0xff] }
 0x439   :  { %v16442_v52 = vpop.f32.mrb[41].mxu1  ;;  %8649 = vmatprep.subr.bf16.mxu0 %v8648_v32  ;;  %8745 = vmatprep.subr.bf16.mxu1 %v8744_v2  ;;  %v6375_v40 = vld [vmem:[%s17293_s3 + $0xb40] sm:$0xff]  ;;  %v6369_v32 = vld [vmem:[%s17293_s3 + $0xb10] sm:$0xff]  ;;  %v8870_v25 = vpack.c.bf16 %v6045_v54, %v6037_v9  ;;  %v6116_v9 = vld [vmem:[%s17293_s3 + $0x328] sm:$0xff] }
 0x43a   :  { %6499 = vmatprep.mubr.f32.mxu0 %v16442_v52  ;;  %6677 = vmatprep.mubr.f32.mxu1 %v16442_v52  ;;  %v6377_v2 = vld [vmem:[%s17293_s3 + $0xb50] sm:$0xff]  ;;  %v8666_v19 = vpack.c.bf16 %v6375_v40, %v6367_v22  ;;  %v6124_v54 = vld [vmem:[%s17293_s3 + $0x368] sm:$0xff] }
 0x43b   :  { %6500 = vmatmul.mubr.f32.gmra.mrb[48].mxu0 %v16434_v57  ;;  %6678 = vmatmul.mubr.f32.gmra.mrb[48].mxu1 %v16434_v57  ;;  %v8762_v59 = vpack.c.bf16 %v6377_v2, %v6369_v32  ;;  %v6061_v22 = vld [vmem:[%s17293_s3 + $0x170] sm:$0xff]  ;;  %v6076_v32 = vld [vmem:[%s17293_s3 + $0x1e8] sm:$0xff]  ;;  %v6070_v2 = vld [vmem:[%s17293_s3 + $0x1b8] sm:$0xff] }
 0x43c   :  { %8651 = vmatpush1.bf16.msra.mxu0 %v8650_v42  ;;  %8747 = vmatpush1.bf16.msra.mxu1 %v8746_v14  ;;  %v16466_v55 = vpop.f32.mrb[42].mxu1  ;;  %v6383_v42 = vld [vmem:[%s17293_s3 + $0xb80] sm:$0xff] }
 0x43d   :  { %v16474_v24 = vpop.f32.mrb[43].mxu1  ;;  %8653 = vmatprep.subr.bf16.mxu0 %v8652_v50  ;;  %8749 = vmatprep.subr.bf16.mxu1 %v8748_v36  ;;  %v6391_v14 = vld [vmem:[%s17293_s3 + $0xbc0] sm:$0xff]  ;;  %v6385_v50 = vld [vmem:[%s17293_s3 + $0xb90] sm:$0xff] }
 0x43e   :  { %6505 = vmatprep.mubr.f32.mxu0 %v16474_v24  ;;  %6683 = vmatprep.mubr.f32.mxu1 %v16474_v24  ;;  %v6393_v36 = vld [vmem:[%s17293_s3 + $0xbd0] sm:$0xff]  ;;  %v8670_v21 = vpack.c.bf16 %v6391_v14, %v6383_v42  ;;  %v8876_v42 = vpack.c.bf16 %v6078_v51, %v6070_v2  ;;  %v6131_v51 = vld [vmem:[%s17293_s3 + $0x3a0] sm:$0xff] }
 0x43f   :  { %6506 = vmatmul.mubr.f32.gmra.mrb[50].mxu0 %v16466_v55  ;;  %6684 = vmatmul.mubr.f32.gmra.mrb[50].mxu1 %v16466_v55  ;;  %v8766_v6 = vpack.c.bf16 %v6393_v36, %v6385_v50  ;;  %v6069_v14 = vld [vmem:[%s17293_s3 + $0x1b0] sm:$0xff]  ;;  %v6092_v50 = vld [vmem:[%s17293_s3 + $0x268] sm:$0xff]  ;;  %v6086_v36 = vld [vmem:[%s17293_s3 + $0x238] sm:$0xff] }
 0x440   :  { %8655 = vmatpush1.bf16.msra.mxu0 %v8654_v23  ;;  %8751 = vmatpush1.bf16.msra.mxu1 %v8750_v35  ;;  %v6019_v23 = vld [vmem:[%s17293_s3 + $0x20] sm:$0xff]  ;;  %v8768_v35 = vpack.c.bf16 %v6028_v13, %v6020_v16  ;;  %v6094_v16 = vld [vmem:[%s17293_s3 + $0x278] sm:$0xff] }
 0x441   :  { %8657 = vmatprep.subr.bf16.mxu0 %v8656_v28  ;;  %8753 = vmatprep.subr.bf16.mxu1 %v8752_v7  ;;  %v6021_v28 = vld [vmem:[%s17293_s3 + $0x30] sm:$0xff]  ;;  %v8770_v27 = vpack.c.bf16 %v6027_v20, %v6019_v23  ;;  %v6100_v20 = vld [vmem:[%s17293_s3 + $0x2a8] sm:$0xff] }
 0x442   :  { %6576 = vmatprep.mubr.f32.mxu0 %v17911_v34  ;;  %6754 = vmatprep.mubr.f32.mxu1 %v17911_v34  ;;  %v6029_v7 = vld [vmem:[%s17293_s3 + $0x70] sm:$0xff] }
 0x443   :  { %6420 = vperm.xlu0 %10410, %v6402_v18   ;;  %v8866_v29 = vpack.c.bf16 %v6029_v7, %v6021_v28  ;;  %v8772_v18 = vpack.c.bf16 %v6044_v49, %v6036_v46  ;;  %v6108_v28 = vld [vmem:[%s17293_s3 + $0x2e8] sm:$0xff]  ;;  %v6102_v7 = vld [vmem:[%s17293_s3 + $0x2b8] sm:$0xff] }
 0x444   :  { %8659 = vmatpush1.bf16.msra.mxu0 %v8658_v44  ;;  %8755 = vmatpush1.bf16.msra.mxu1 %v8754_v5  ;;  %v6035_v44 = vld [vmem:[%s17293_s3 + $0xa0] sm:$0xff]  ;;  %v6110_v46 = vld [vmem:[%s17293_s3 + $0x2f8] sm:$0xff] }
 0x445   :  { %8661 = vmatprep.subr.bf16.mxu0 %v8660_v43  ;;  %8757 = vmatprep.subr.bf16.mxu1 %v8756_v47  ;;  %v6043_v5 = vld [vmem:[%s17293_s3 + $0xe0] sm:$0xff]  ;;  %v8868_v43 = vpack.c.bf16 %v6046_v58, %v6038_v41  ;;  %v6052_v47 = vld [vmem:[%s17293_s3 + $0x128] sm:$0xff]  ;;  %v8788_v58 = vpack.c.bf16 %v6108_v28, %v6100_v20 }
 0x446   :  { %v8774_v48 = vpack.c.bf16 %v6043_v5, %v6035_v44  ;;  %v8776_v40 = vpack.c.bf16 %v6060_v33, %v6052_v47  ;;  %v6101_v44 = vld [vmem:[%s17293_s3 + $0x2b0] sm:$0xff]  ;;  %v8884_v5 = vpack.c.bf16 %v6110_v46, %v6102_v7  ;;  %v6163_v46 = vld [vmem:[%s17293_s3 + $0x4a0] sm:$0xff] }
 0x448   :  { %8663 = vmatpush1.bf16.msra.mxu0 %v8662_v30  ;;  %8759 = vmatpush1.bf16.msra.mxu1 %v8758_v3  ;;  %v6059_v30 = vld [vmem:[%s17293_s3 + $0x160] sm:$0xff]  ;;  %v6053_v3 = vld [vmem:[%s17293_s3 + $0x130] sm:$0xff] }
 0x449   :  { %8665 = vmatprep.subr.bf16.mxu0 %v8664_v56  ;;  %8761 = vmatprep.subr.bf16.mxu1 %v8760_v1  ;;  %v8872_v56 = vpack.c.bf16 %v6062_v37, %v6054_v11  ;;  %v6068_v1 = vld [vmem:[%s17293_s3 + $0x1a8] sm:$0xff]  ;;  %v8778_v53 = vpack.c.bf16 %v6059_v30, %v6051_v38  ;;  %v8874_v17 = vpack.c.bf16 %v6061_v22, %v6053_v3  ;;  %v6115_v37 = vld [vmem:[%s17293_s3 + $0x320] sm:$0xff]  ;;  %v6125_v30 = vld [vmem:[%s17293_s3 + $0x370] sm:$0xff] }
 0x44a   :  { %v8792_v11 = vpack.c.bf16 %v6124_v54, %v6116_v9  ;;  %v6132_v3 = vld [vmem:[%s17293_s3 + $0x3a8] sm:$0xff] }
 0x44b   :  { %v6140_v22 = vld [vmem:[%s17293_s3 + $0x3e8] sm:$0xff] }
 0x44c   :  { %8667 = vmatpush1.bf16.msra.mxu0 %v8666_v19  ;;  %8763 = vmatpush1.bf16.msra.mxu1 %v8762_v59  ;;  %v6075_v19 = vld [vmem:[%s17293_s3 + $0x1e0] sm:$0xff]  ;;  %v8780_v59 = vpack.c.bf16 %v6076_v32, %v6068_v1  ;;  %v8796_v2 = vpack.c.bf16 %v6140_v22, %v6132_v3 }
 0x44d   :  { %8669 = vmatprep.subr.bf16.mxu0 %v8668_v39  ;;  %8765 = vmatprep.subr.bf16.mxu1 %v8764_v45  ;;  %v6077_v39 = vld [vmem:[%s17293_s3 + $0x1f0] sm:$0xff]  ;;  %v6084_v45 = vld [vmem:[%s17293_s3 + $0x228] sm:$0xff]  ;;  %v8782_v13 = vpack.c.bf16 %v6075_v19, %v6067_v15 }
 0x44e   :  { %v8878_v63 = vpack.c.bf16 %v6077_v39, %v6069_v14  ;;  %v8784_v23 = vpack.c.bf16 %v6092_v50, %v6084_v45  ;;  %v6141_v19 = vld [vmem:[%s17293_s3 + $0x3f0] sm:$0xff]  ;;  %v6150_v14 = vld [vmem:[%s17293_s3 + $0x438] sm:$0xff] }
 0x44f   :  { %v6158_v39 = vld [vmem:[%s17293_s3 + $0x478] sm:$0xff] }
 0x450   :  { %8671 = vmatpush1.bf16.msra.mxu0 %v8670_v21  ;;  %8767 = vmatpush1.bf16.msra.mxu1 %v8766_v6  ;;  %v6091_v21 = vld [vmem:[%s17293_s3 + $0x260] sm:$0xff]  ;;  %v6085_v6 = vld [vmem:[%s17293_s3 + $0x230] sm:$0xff] }
 0x451   :  { %8769 = vmatprep.subr.bf16.mxu0 %v8768_v35  ;;  %8865 = vmatprep.subr.bf16.mxu1 %v8864_v26  ;;  %v8880_v35 = vpack.c.bf16 %v6094_v16, %v6086_v36  ;;  %v6093_v26 = vld [vmem:[%s17293_s3 + $0x270] sm:$0xff]  ;;  %v8786_v49 = vpack.c.bf16 %v6091_v21, %v6083_v62  ;;  %v6147_v16 = vld [vmem:[%s17293_s3 + $0x420] sm:$0xff]  ;;  %v8896_v62 = vpack.c.bf16 %v6158_v39, %v6150_v14 }
 0x452   :  { %v8882_v41 = vpack.c.bf16 %v6093_v26, %v6085_v6  ;;  %v6157_v21 = vld [vmem:[%s17293_s3 + $0x470] sm:$0xff]  ;;  %v6164_v6 = vld [vmem:[%s17293_s3 + $0x4a8] sm:$0xff]  ;;  %v6174_v26 = vld [vmem:[%s17293_s3 + $0x4f8] sm:$0xff] }
 0x453   :  { %6577 = vmatmul.mubr.f32.vlgmr.msra.gmra.mrb[44].mxu0 %v16331_v4  ;;  %6755 = vmatmul.mubr.f32.vlgmr.msra.gmra.mrb[44].mxu1 %v16331_v4  ;;  %v6211_v39 = vld [vmem:[%s17293_s3 + $0x620] sm:$0xff] }
 0x454   :  { %8771 = vmatpush1.bf16.msra.mxu0 %v8770_v27  ;;  %8867 = vmatpush1.bf16.msra.mxu1 %v8866_v29  ;;  %v6099_v27 = vld [vmem:[%s17293_s3 + $0x2a0] sm:$0xff] }
 0x455   :  { %6582 = vmatprep.mubr.f32.mxu0 %v17911_v34  ;;  %6760 = vmatprep.mubr.f32.mxu1 %v17911_v34  ;;  %v6107_v29 = vld [vmem:[%s17293_s3 + $0x2e0] sm:$0xff] }
 0x456   :  { %8773 = vmatprep.subr.bf16.mxu0 %v8772_v18  ;;  %8869 = vmatprep.subr.bf16.mxu1 %v8868_v43  ;;  %v6118_v18 = vld [vmem:[%s17293_s3 + $0x338] sm:$0xff]  ;;  %v8790_v47 = vpack.c.bf16 %v6107_v29, %v6099_v27  ;;  %v6173_v27 = vld [vmem:[%s17293_s3 + $0x4f0] sm:$0xff]  ;;  %v6180_v29 = vld [vmem:[%s17293_s3 + $0x528] sm:$0xff] }
 0x457   :  { %6583 = vmatmul.mubr.f32.gmra.mrb[46].mxu0 %v16329_v0  ;;  %6761 = vmatmul.mubr.f32.gmra.mrb[46].mxu1 %v16329_v0  ;;  %v6126_v43 = vld [vmem:[%s17293_s3 + $0x378] sm:$0xff] }
 0x458   :  { %8775 = vmatpush1.bf16.msra.mxu0 %v8774_v48  ;;  %8871 = vmatpush1.bf16.msra.mxu1 %v8870_v25  ;;  %v6123_v48 = vld [vmem:[%s17293_s3 + $0x360] sm:$0xff]  ;;  %v6117_v25 = vld [vmem:[%s17293_s3 + $0x330] sm:$0xff]  ;;  %v8888_v38 = vpack.c.bf16 %v6126_v43, %v6118_v18 }
 0x459   :  { %6588 = vmatprep.mubr.f32.mxu0 %v17911_v34  ;;  %6766 = vmatprep.mubr.f32.mxu1 %v17911_v34  ;;  %v8794_v1 = vpack.c.bf16 %v6123_v48, %v6115_v37  ;;  %v8890_v32 = vpack.c.bf16 %v6125_v30, %v6117_v25  ;;  %v6179_v43 = vld [vmem:[%s17293_s3 + $0x520] sm:$0xff]  ;;  %v6189_v37 = vld [vmem:[%s17293_s3 + $0x570] sm:$0xff]  ;;  %v6196_v48 = vld [vmem:[%s17293_s3 + $0x5a8] sm:$0xff] }
 0x45a   :  { %8777 = vmatprep.subr.bf16.mxu0 %v8776_v40  ;;  %8873 = vmatprep.subr.bf16.mxu1 %v8872_v56  ;;  %v6134_v40 = vld [vmem:[%s17293_s3 + $0x3b8] sm:$0xff]  ;;  %v6204_v25 = vld [vmem:[%s17293_s3 + $0x5e8] sm:$0xff] }
 0x45b   :  { %6589 = vmatmul.mubr.f32.gmra.mrb[48].mxu0 %v16335_v61  ;;  %6767 = vmatmul.mubr.f32.gmra.mrb[48].mxu1 %v16335_v61  ;;  %v6142_v56 = vld [vmem:[%s17293_s3 + $0x3f8] sm:$0xff] }
 0x45c   :  { %8779 = vmatpush1.bf16.msra.mxu0 %v8778_v53  ;;  %8875 = vmatpush1.bf16.msra.mxu1 %v8874_v17  ;;  %v6139_v53 = vld [vmem:[%s17293_s3 + $0x3e0] sm:$0xff]  ;;  %v6133_v17 = vld [vmem:[%s17293_s3 + $0x3b0] sm:$0xff]  ;;  %v8892_v15 = vpack.c.bf16 %v6142_v56, %v6134_v40  ;;  %v6206_v30 = vld [vmem:[%s17293_s3 + $0x5f8] sm:$0xff]  ;;  %v8812_v40 = vpack.c.bf16 %v6204_v25, %v6196_v48 }
 0x45d   :  { %6594 = vmatprep.mubr.f32.mxu0 %v17911_v34  ;;  %6772 = vmatprep.mubr.f32.mxu1 %v17911_v34  ;;  %v8798_v45 = vpack.c.bf16 %v6139_v53, %v6131_v51  ;;  %v8894_v50 = vpack.c.bf16 %v6141_v19, %v6133_v17  ;;  %v6195_v56 = vld [vmem:[%s17293_s3 + $0x5a0] sm:$0xff]  ;;  %v6205_v51 = vld [vmem:[%s17293_s3 + $0x5f0] sm:$0xff]  ;;  %v6212_v53 = vld [vmem:[%s17293_s3 + $0x628] sm:$0xff] }
 0x45e   :  { %8781 = vmatprep.subr.bf16.mxu0 %v8780_v59  ;;  %8877 = vmatprep.subr.bf16.mxu1 %v8876_v42  ;;  %v6148_v59 = vld [vmem:[%s17293_s3 + $0x428] sm:$0xff]  ;;  %v6222_v19 = vld [vmem:[%s17293_s3 + $0x678] sm:$0xff] }
 0x45f   :  { %6595 = vmatmul.mubr.f32.gmra.mrb[50].mxu0 %v16333_v31  ;;  %6773 = vmatmul.mubr.f32.gmra.mrb[50].mxu1 %v16333_v31  ;;  %v6156_v42 = vld [vmem:[%s17293_s3 + $0x468] sm:$0xff] }
 0x460   :  { %8783 = vmatpush1.bf16.msra.mxu0 %v8782_v13  ;;  %6843 = vmatprep.mubr.f32.mxu0 %v16378_v10  ;;  %v8800_v36 = vpack.c.bf16 %v6156_v42, %v6148_v59  ;;  %v6155_v13 = vld [vmem:[%s17293_s3 + $0x460] sm:$0xff]  ;;  %v6220_v17 = vld [vmem:[%s17293_s3 + $0x668] sm:$0xff] }
 0x461   :  { %8879 = vmatpush1.bf16.msra.mxu1 %v8878_v63  ;;  %7021 = vmatprep.mubr.f32.mxu1 %v16378_v10  ;;  %v6109_v10 = vld [vmem:[%s17293_s3 + $0x2f0] sm:$0xff]  ;;  %v8802_v20 = vpack.c.bf16 %v6155_v13, %v6147_v16  ;;  %v8816_v14 = vpack.c.bf16 %v6220_v17, %v6212_v53  ;;  %v6228_v13 = vld [vmem:[%s17293_s3 + $0x6a8] sm:$0xff] }
 0x462   :  { %8785 = vmatprep.subr.bf16.mxu0 %v8784_v23  ;;  %8881 = vmatprep.subr.bf16.mxu1 %v8880_v35  ;;  %v8886_v33 = vpack.c.bf16 %v6109_v10, %v6101_v44  ;;  %v6149_v63 = vld [vmem:[%s17293_s3 + $0x430] sm:$0xff]  ;;  %v6172_v23 = vld [vmem:[%s17293_s3 + $0x4e8] sm:$0xff]  ;;  %v6166_v35 = vld [vmem:[%s17293_s3 + $0x4b8] sm:$0xff] }
 0x463   :  { %v8898_v28 = vpack.c.bf16 %v6157_v21, %v6149_v63  ;;  %v8804_v7 = vpack.c.bf16 %v6172_v23, %v6164_v6  ;;  %v6188_v44 = vld [vmem:[%s17293_s3 + $0x568] sm:$0xff]  ;;  %v6190_v10 = vld [vmem:[%s17293_s3 + $0x578] sm:$0xff]  ;;  %v6221_v16 = vld [vmem:[%s17293_s3 + $0x670] sm:$0xff] }
 0x464   :  { %8787 = vmatpush1.bf16.msra.mxu0 %v8786_v49  ;;  %v6171_v49 = vld [vmem:[%s17293_s3 + $0x4e0] sm:$0xff]  ;;  %v8808_v18 = vpack.c.bf16 %v6188_v44, %v6180_v29  ;;  %v6236_v63 = vld [vmem:[%s17293_s3 + $0x6e8] sm:$0xff]  ;;  %v6238_v21 = vld [vmem:[%s17293_s3 + $0x6f8] sm:$0xff] }
 0x465   :  { %8883 = vmatpush1.bf16.msra.mxu1 %v8882_v41  ;;  %8789 = vmatprep.subr.bf16.mxu0 %v8788_v58  ;;  %v6165_v41 = vld [vmem:[%s17293_s3 + $0x4b0] sm:$0xff]  ;;  %v8900_v58 = vpack.c.bf16 %v6174_v26, %v6166_v35  ;;  %v8806_v9 = vpack.c.bf16 %v6171_v49, %v6163_v46  ;;  %v8820_v35 = vpack.c.bf16 %v6236_v63, %v6228_v13  ;;  %v6227_v26 = vld [vmem:[%s17293_s3 + $0x6a0] sm:$0xff]  ;;  %v6244_v49 = vld [vmem:[%s17293_s3 + $0x728] sm:$0xff] }
 0x466   :  { %8885 = vmatprep.subr.bf16.mxu1 %v8884_v5  ;;  %v6182_v5 = vld [vmem:[%s17293_s3 + $0x538] sm:$0xff]  ;;  %v8902_v54 = vpack.c.bf16 %v6173_v27, %v6165_v41  ;;  %v6237_v46 = vld [vmem:[%s17293_s3 + $0x6f0] sm:$0xff]  ;;  %v6252_v41 = vld [vmem:[%s17293_s3 + $0x768] sm:$0xff] }
 0x467   :  { %v6254_v27 = vld [vmem:[%s17293_s3 + $0x778] sm:$0xff] }
 0x468   :  { %8791 = vmatpush1.bf16.msra.mxu0 %v8790_v47  ;;  %v6187_v47 = vld [vmem:[%s17293_s3 + $0x560] sm:$0xff] }
 0x469   :  { %8887 = vmatpush1.bf16.msra.mxu1 %v8886_v33  ;;  %8793 = vmatprep.subr.bf16.mxu0 %v8792_v11  ;;  %v6181_v33 = vld [vmem:[%s17293_s3 + $0x530] sm:$0xff]  ;;  %v8904_v11 = vpack.c.bf16 %v6190_v10, %v6182_v5  ;;  %v8810_v3 = vpack.c.bf16 %v6187_v47, %v6179_v43  ;;  %v8824_v5 = vpack.c.bf16 %v6252_v41, %v6244_v49  ;;  %v6243_v10 = vld [vmem:[%s17293_s3 + $0x720] sm:$0xff]  ;;  %v6260_v47 = vld [vmem:[%s17293_s3 + $0x7a8] sm:$0xff] }
 0x46a   :  { %8889 = vmatprep.subr.bf16.mxu1 %v8888_v38  ;;  %v6198_v38 = vld [vmem:[%s17293_s3 + $0x5b8] sm:$0xff]  ;;  %v8906_v22 = vpack.c.bf16 %v6189_v37, %v6181_v33  ;;  %v6253_v43 = vld [vmem:[%s17293_s3 + $0x770] sm:$0xff]  ;;  %v6268_v33 = vld [vmem:[%s17293_s3 + $0x7e8] sm:$0xff] }
 0x46b   :  { %v6270_v37 = vld [vmem:[%s17293_s3 + $0x7f8] sm:$0xff] }
 0x46c   :  { %8795 = vmatpush1.bf16.msra.mxu0 %v8794_v1  ;;  %v6203_v1 = vld [vmem:[%s17293_s3 + $0x5e0] sm:$0xff] }
 0x46d   :  { %8891 = vmatpush1.bf16.msra.mxu1 %v8890_v32  ;;  %8797 = vmatprep.subr.bf16.mxu0 %v8796_v2  ;;  %v6197_v32 = vld [vmem:[%s17293_s3 + $0x5b0] sm:$0xff]  ;;  %v8908_v2 = vpack.c.bf16 %v6206_v30, %v6198_v38  ;;  %v8814_v59 = vpack.c.bf16 %v6203_v1, %v6195_v56  ;;  %v8828_v38 = vpack.c.bf16 %v6268_v33, %v6260_v47  ;;  %v6259_v30 = vld [vmem:[%s17293_s3 + $0x7a0] sm:$0xff]  ;;  %v6276_v1 = vld [vmem:[%s17293_s3 + $0x828] sm:$0xff] }
 0x46e   :  { %8893 = vmatprep.subr.bf16.mxu1 %v8892_v15  ;;  %v6214_v15 = vld [vmem:[%s17293_s3 + $0x638] sm:$0xff]  ;;  %v8910_v42 = vpack.c.bf16 %v6205_v51, %v6197_v32  ;;  %v6269_v56 = vld [vmem:[%s17293_s3 + $0x7f0] sm:$0xff]  ;;  %v6284_v32 = vld [vmem:[%s17293_s3 + $0x868] sm:$0xff] }
 0x46f   :  { %v6286_v51 = vld [vmem:[%s17293_s3 + $0x878] sm:$0xff]  ;;  %v6331_v33 = vld [vmem:[%s17293_s3 + $0x9e0] sm:$0xff] }
 0x470   :  { %8799 = vmatpush1.bf16.msra.mxu0 %v8798_v45  ;;  %v6219_v45 = vld [vmem:[%s17293_s3 + $0x660] sm:$0xff] }
 0x471   :  { %8895 = vmatpush1.bf16.msra.mxu1 %v8894_v50  ;;  %8801 = vmatprep.subr.bf16.mxu0 %v8800_v36  ;;  %v6213_v50 = vld [vmem:[%s17293_s3 + $0x630] sm:$0xff]  ;;  %v8912_v36 = vpack.c.bf16 %v6222_v19, %v6214_v15  ;;  %v8818_v6 = vpack.c.bf16 %v6219_v45, %v6211_v39  ;;  %v8832_v15 = vpack.c.bf16 %v6284_v32, %v6276_v1  ;;  %v6292_v45 = vld [vmem:[%s17293_s3 + $0x8a8] sm:$0xff] }
 0x472   :  { %8897 = vmatprep.subr.bf16.mxu1 %v8896_v62  ;;  %v6230_v62 = vld [vmem:[%s17293_s3 + $0x6b8] sm:$0xff]  ;;  %v8914_v23 = vpack.c.bf16 %v6221_v16, %v6213_v50  ;;  %v6285_v39 = vld [vmem:[%s17293_s3 + $0x870] sm:$0xff]  ;;  %v6300_v50 = vld [vmem:[%s17293_s3 + $0x8e8] sm:$0xff] }
 0x473   :  { %v6302_v16 = vld [vmem:[%s17293_s3 + $0x8f8] sm:$0xff]  ;;  %v6341_v1 = vld [vmem:[%s17293_s3 + $0xa30] sm:$0xff] }
 0x474   :  { %8803 = vmatpush1.bf16.msra.mxu0 %v8802_v20  ;;  %v6235_v20 = vld [vmem:[%s17293_s3 + $0x6e0] sm:$0xff]  ;;  %v6349_v32 = vld [vmem:[%s17293_s3 + $0xa70] sm:$0xff] }
 0x475   :  { %8899 = vmatpush1.bf16.msra.mxu1 %v8898_v28  ;;  %8805 = vmatprep.subr.bf16.mxu0 %v8804_v7  ;;  %v6229_v28 = vld [vmem:[%s17293_s3 + $0x6b0] sm:$0xff]  ;;  %v8916_v7 = vpack.c.bf16 %v6238_v21, %v6230_v62  ;;  %v8822_v29 = vpack.c.bf16 %v6235_v20, %v6227_v26  ;;  %v8836_v62 = vpack.c.bf16 %v6300_v50, %v6292_v45  ;;  %v6291_v21 = vld [vmem:[%s17293_s3 + $0x8a0] sm:$0xff]  ;;  %v6308_v20 = vld [vmem:[%s17293_s3 + $0x928] sm:$0xff] }
 0x476   :  { %8901 = vmatprep.subr.bf16.mxu1 %v8900_v58  ;;  %v6246_v58 = vld [vmem:[%s17293_s3 + $0x738] sm:$0xff]  ;;  %v8918_v44 = vpack.c.bf16 %v6237_v46, %v6229_v28  ;;  %v6301_v26 = vld [vmem:[%s17293_s3 + $0x8f0] sm:$0xff]  ;;  %v6316_v28 = vld [vmem:[%s17293_s3 + $0x968] sm:$0xff] }
 0x477   :  { %v6318_v46 = vld [vmem:[%s17293_s3 + $0x978] sm:$0xff]  ;;  %v6365_v45 = vld [vmem:[%s17293_s3 + $0xaf0] sm:$0xff]  ;;  %v6372_v50 = vld [vmem:[%s17293_s3 + $0xb28] sm:$0xff] }
 0x478   :  { %8807 = vmatpush1.bf16.msra.mxu0 %v8806_v9  ;;  %v6251_v9 = vld [vmem:[%s17293_s3 + $0x760] sm:$0xff] }
 0x479   :  { %8903 = vmatpush1.bf16.msra.mxu1 %v8902_v54  ;;  %8809 = vmatprep.subr.bf16.mxu0 %v8808_v18  ;;  %v6245_v54 = vld [vmem:[%s17293_s3 + $0x730] sm:$0xff]  ;;  %v8920_v18 = vpack.c.bf16 %v6254_v27, %v6246_v58  ;;  %v8826_v48 = vpack.c.bf16 %v6251_v9, %v6243_v10  ;;  %v8840_v58 = vpack.c.bf16 %v6316_v28, %v6308_v20  ;;  %v6315_v27 = vld [vmem:[%s17293_s3 + $0x960] sm:$0xff]  ;;  %v6332_v10 = vld [vmem:[%s17293_s3 + $0x9e8] sm:$0xff] }
 0x47a   :  { %8905 = vmatprep.subr.bf16.mxu1 %v8904_v11  ;;  %v6262_v11 = vld [vmem:[%s17293_s3 + $0x7b8] sm:$0xff]  ;;  %v8922_v25 = vpack.c.bf16 %v6253_v43, %v6245_v54  ;;  %v6381_v20 = vld [vmem:[%s17293_s3 + $0xb70] sm:$0xff]  ;;  %v6388_v28 = vld [vmem:[%s17293_s3 + $0xba8] sm:$0xff] }
 0x47b   :  { %v6326_v9 = vld [vmem:[%s17293_s3 + $0x9b8] sm:$0xff] }
 0x47c   :  { %8811 = vmatpush1.bf16.msra.mxu0 %v8810_v3  ;;  %v6267_v3 = vld [vmem:[%s17293_s3 + $0x7e0] sm:$0xff]  ;;  %v6334_v54 = vld [vmem:[%s17293_s3 + $0x9f8] sm:$0xff] }
 0x47d   :  { %8907 = vmatpush1.bf16.msra.mxu1 %v8906_v22  ;;  %8813 = vmatprep.subr.bf16.mxu0 %v8812_v40  ;;  %v6261_v22 = vld [vmem:[%s17293_s3 + $0x7b0] sm:$0xff]  ;;  %v8924_v40 = vpack.c.bf16 %v6270_v37, %v6262_v11  ;;  %v8830_v53 = vpack.c.bf16 %v6267_v3, %v6259_v30  ;;  %v6350_v30 = vld [vmem:[%s17293_s3 + $0xa78] sm:$0xff] }
 0x47e   :  { %8909 = vmatprep.subr.bf16.mxu1 %v8908_v2  ;;  %v6278_v2 = vld [vmem:[%s17293_s3 + $0x838] sm:$0xff]  ;;  %v8926_v17 = vpack.c.bf16 %v6269_v56, %v6261_v22  ;;  %v6325_v11 = vld [vmem:[%s17293_s3 + $0x9b0] sm:$0xff]  ;;  %v6347_v56 = vld [vmem:[%s17293_s3 + $0xa60] sm:$0xff] }
 0x47f   :  { %v8928_v19 = vpack.c.bf16 %v6286_v51, %v6278_v2  ;;  %v6333_v37 = vld [vmem:[%s17293_s3 + $0x9f0] sm:$0xff]  ;;  %v6356_v2 = vld [vmem:[%s17293_s3 + $0xaa8] sm:$0xff] }
 0x480   :  { %8815 = vmatpush1.bf16.msra.mxu0 %v8814_v59  ;;  %v6275_v59 = vld [vmem:[%s17293_s3 + $0x820] sm:$0xff]  ;;  %v8942_v22 = vpack.c.bf16 %v6333_v37, %v6325_v11  ;;  %v6364_v51 = vld [vmem:[%s17293_s3 + $0xae8] sm:$0xff] }
 0x481   :  { %8911 = vmatpush1.bf16.msra.mxu1 %v8910_v42  ;;  %8817 = vmatprep.subr.bf16.mxu0 %v8816_v14  ;;  %v6283_v42 = vld [vmem:[%s17293_s3 + $0x860] sm:$0xff]  ;;  %v6277_v14 = vld [vmem:[%s17293_s3 + $0x830] sm:$0xff] }
 0x482   :  { %8913 = vmatprep.subr.bf16.mxu1 %v8912_v36  ;;  %v6294_v36 = vld [vmem:[%s17293_s3 + $0x8b8] sm:$0xff]  ;;  %v8834_v13 = vpack.c.bf16 %v6283_v42, %v6275_v59  ;;  %v8930_v63 = vpack.c.bf16 %v6285_v39, %v6277_v14  ;;  %v8852_v59 = vpack.c.bf16 %v6364_v51, %v6356_v2  ;;  %v6363_v42 = vld [vmem:[%s17293_s3 + $0xae0] sm:$0xff]  ;;  %v6357_v14 = vld [vmem:[%s17293_s3 + $0xab0] sm:$0xff] }
 0x484   :  { %8819 = vmatpush1.bf16.msra.mxu0 %v8818_v6  ;;  %v6299_v6 = vld [vmem:[%s17293_s3 + $0x8e0] sm:$0xff] }
 0x485   :  { %8915 = vmatpush1.bf16.msra.mxu1 %v8914_v23  ;;  %8821 = vmatprep.subr.bf16.mxu0 %v8820_v35  ;;  %v6293_v23 = vld [vmem:[%s17293_s3 + $0x8b0] sm:$0xff]  ;;  %v8932_v35 = vpack.c.bf16 %v6302_v16, %v6294_v36  ;;  %v8838_v49 = vpack.c.bf16 %v6299_v6, %v6291_v21  ;;  %v6380_v36 = vld [vmem:[%s17293_s3 + $0xb68] sm:$0xff]  ;;  %v6374_v16 = vld [vmem:[%s17293_s3 + $0xb38] sm:$0xff] }
 0x486   :  { %8917 = vmatprep.subr.bf16.mxu1 %v8916_v7  ;;  %v6310_v7 = vld [vmem:[%s17293_s3 + $0x938] sm:$0xff]  ;;  %v8934_v41 = vpack.c.bf16 %v6301_v26, %v6293_v23  ;;  %v8856_v21 = vpack.c.bf16 %v6380_v36, %v6372_v50  ;;  %v6371_v6 = vld [vmem:[%s17293_s3 + $0xb20] sm:$0xff] }
 0x487   :  { %v6379_v23 = vld [vmem:[%s17293_s3 + $0xb60] sm:$0xff] }
 0x488   :  { %8823 = vmatpush1.bf16.msra.mxu0 %v8822_v29  ;;  %v6309_v29 = vld [vmem:[%s17293_s3 + $0x930] sm:$0xff] }
 0x489   :  { %8919 = vmatpush1.bf16.msra.mxu1 %v8918_v44  ;;  %8825 = vmatprep.subr.bf16.mxu0 %v8824_v5  ;;  %v6317_v44 = vld [vmem:[%s17293_s3 + $0x970] sm:$0xff]  ;;  %v6324_v5 = vld [vmem:[%s17293_s3 + $0x9a8] sm:$0xff] }
 0x48a   :  { %8921 = vmatprep.subr.bf16.mxu1 %v8920_v18  ;;  %v8938_v43 = vpack.c.bf16 %v6317_v44, %v6309_v29  ;;  %v8844_v47 = vpack.c.bf16 %v6332_v10, %v6324_v5  ;;  %v6395_v29 = vld [vmem:[%s17293_s3 + $0xbe0] sm:$0xff]  ;;  %v6389_v44 = vld [vmem:[%s17293_s3 + $0xbb0] sm:$0xff] }
 0x48b   :  { %v6397_v5 = vld [vmem:[%s17293_s3 + $0xbf0] sm:$0xff] }
 0x48c   :  { %8827 = vmatpush1.bf16.msra.mxu0 %v8826_v48  ;;  %v6340_v48 = vld [vmem:[%s17293_s3 + $0xa28] sm:$0xff] }
 0x48d   :  { %8923 = vmatpush1.bf16.msra.mxu1 %v8922_v25  ;;  %8829 = vmatprep.subr.bf16.mxu0 %v8828_v38  ;;  %v6348_v25 = vld [vmem:[%s17293_s3 + $0xa68] sm:$0xff]  ;;  %v6342_v38 = vld [vmem:[%s17293_s3 + $0xa38] sm:$0xff] }
 0x48e   :  { %8925 = vmatprep.subr.bf16.mxu1 %v8924_v40  ;;  %v8848_v40 = vpack.c.bf16 %v6348_v25, %v6340_v48 }
 0x490   :  { %8831 = vmatpush1.bf16.msra.mxu0 %v8830_v53  ;;  %v6358_v53 = vld [vmem:[%s17293_s3 + $0xab8] sm:$0xff] }
 0x491   :  { %8927 = vmatpush1.bf16.msra.mxu1 %v8926_v17  ;;  %8833 = vmatprep.subr.bf16.mxu0 %v8832_v15  ;;  %v6366_v17 = vld [vmem:[%s17293_s3 + $0xaf8] sm:$0xff] }
 0x492   :  { %8929 = vmatprep.subr.bf16.mxu1 %v8928_v19  ;;  %v8946_v19 = vpack.c.bf16 %v6349_v32, %v6341_v1  ;;  %v8948_v39 = vpack.c.bf16 %v6366_v17, %v6358_v53 }
 0x493   :  { %6844 = vmatmul.mubr.f32.vlgmr.msra.gmra.mrb[52].mxu0 %v16370_v8 }
 0x494   :  { %7022 = vmatmul.mubr.f32.vlgmr.msra.gmra.mrb[52].mxu1 %v16370_v8  ;;  %6849 = vmatprep.mubr.f32.mxu0 %v16410_v12  ;;  %v6307_v8 = vld [vmem:[%s17293_s3 + $0x920] sm:$0xff] }
 0x495   :  { %8835 = vmatpush1.bf16.msra.mxu0 %v8834_v13  ;;  %7027 = vmatprep.mubr.f32.mxu1 %v16410_v12  ;;  %v8936_v12 = vpack.c.bf16 %v6318_v46, %v6310_v7  ;;  %v8842_v18 = vpack.c.bf16 %v6315_v27, %v6307_v8  ;;  %v6382_v13 = vld [vmem:[%s17293_s3 + $0xb78] sm:$0xff]  ;;  %v6396_v7 = vld [vmem:[%s17293_s3 + $0xbe8] sm:$0xff]  ;;  %v6387_v27 = vld [vmem:[%s17293_s3 + $0xba0] sm:$0xff] }
 0x496   :  { %8931 = vmatpush1.bf16.msra.mxu1 %v8930_v63  ;;  %8837 = vmatprep.subr.bf16.mxu0 %v8836_v62  ;;  %v8950_v62 = vpack.c.bf16 %v6365_v45, %v6357_v14  ;;  %v8952_v26 = vpack.c.bf16 %v6382_v13, %v6374_v16  ;;  %v6390_v46 = vld [vmem:[%s17293_s3 + $0xbb8] sm:$0xff]  ;;  %v8860_v8 = vpack.c.bf16 %v6396_v7, %v6388_v28 }
 0x497   :  { %6850 = vmatmul.mubr.f32.gmra.mrb[54].mxu0 %v16402_v60  ;;  %8933 = vmatprep.subr.bf16.mxu1 %v8932_v35  ;;  %v6373_v35 = vld [vmem:[%s17293_s3 + $0xb30] sm:$0xff]  ;;  %v8862_v10 = vpack.c.bf16 %v6395_v29, %v6387_v27 }
 0x498   :  { %7028 = vmatmul.mubr.f32.gmra.mrb[54].mxu1 %v16402_v60  ;;  %6855 = vmatprep.mubr.f32.mxu0 %v16442_v52  ;;  %v6323_v60 = vld [vmem:[%s17293_s3 + $0x9a0] sm:$0xff] }
 0x499   :  { %8839 = vmatpush1.bf16.msra.mxu0 %v8838_v49  ;;  %7033 = vmatprep.mubr.f32.mxu1 %v16442_v52  ;;  %v8940_v52 = vpack.c.bf16 %v6334_v54, %v6326_v9  ;;  %v8846_v3 = vpack.c.bf16 %v6331_v33, %v6323_v60  ;;  %v6398_v49 = vld [vmem:[%s17293_s3 + $0xbf8] sm:$0xff]  ;;  %v8958_v9 = vpack.c.bf16 %v6397_v5, %v6389_v44 }
 0x49a   :  { %8935 = vmatpush1.bf16.msra.mxu1 %v8934_v41  ;;  %8841 = vmatprep.subr.bf16.mxu0 %v8840_v58  ;;  %v8858_v41 = vpack.c.bf16 %v6379_v23, %v6371_v6  ;;  %v8954_v58 = vpack.c.bf16 %v6381_v20, %v6373_v35 }
 0x49b   :  { %6856 = vmatmul.mubr.f32.gmra.mrb[56].mxu0 %v16434_v57  ;;  %8937 = vmatprep.subr.bf16.mxu1 %v8936_v12  ;;  %v8956_v12 = vpack.c.bf16 %v6398_v49, %v6390_v46 }
 0x49c   :  { %7034 = vmatmul.mubr.f32.gmra.mrb[56].mxu1 %v16434_v57  ;;  %6861 = vmatprep.mubr.f32.mxu0 %v16474_v24  ;;  %v6339_v57 = vld [vmem:[%s17293_s3 + $0xa20] sm:$0xff] }
 0x49d   :  { %8843 = vmatpush1.bf16.msra.mxu0 %v8842_v18  ;;  %7039 = vmatprep.mubr.f32.mxu1 %v16474_v24  ;;  %v8944_v24 = vpack.c.bf16 %v6350_v30, %v6342_v38  ;;  %v8850_v15 = vpack.c.bf16 %v6347_v56, %v6339_v57 }
 0x49e   :  { %8939 = vmatpush1.bf16.msra.mxu1 %v8938_v43  ;;  %8845 = vmatprep.subr.bf16.mxu0 %v8844_v47 }
 0x49f   :  { %6862 = vmatmul.mubr.f32.gmra.mrb[58].mxu0 %v16466_v55  ;;  %8941 = vmatprep.subr.bf16.mxu1 %v8940_v52  ;;  %v17185_v52 = vpop.permute.xlu0 %6410 }
 0x4a0   :  { %7040 = vmatmul.mubr.f32.gmra.mrb[58].mxu1 %v16466_v55  ;;  %6932 = vmatprep.mubr.f32.mxu0 %v17911_v34  ;;  %v6355_v55 = vld [vmem:[%s17293_s3 + $0xaa0] sm:$0xff] }
 0x4a1   :  { %8847 = vmatpush1.bf16.msra.mxu0 %v8846_v3  ;;  %7110 = vmatprep.mubr.f32.mxu1 %v17911_v34  ;;  %v8854_v63 = vpack.c.bf16 %v6363_v42, %v6355_v55 }
 0x4a2   :  { %8943 = vmatpush1.bf16.msra.mxu1 %v8942_v22  ;;  %8849 = vmatprep.subr.bf16.mxu0 %v8848_v40 }
 0x4a3   :  { %8945 = vmatprep.subr.bf16.mxu1 %v8944_v24 }
 0x4a5   :  { %8851 = vmatpush1.bf16.msra.mxu0 %v8850_v15 }
 0x4a6   :  { %8947 = vmatpush1.bf16.msra.mxu1 %v8946_v19  ;;  %8853 = vmatprep.subr.bf16.mxu0 %v8852_v59 }
 0x4a7   :  { %8949 = vmatprep.subr.bf16.mxu1 %v8948_v39 }
 0x4a9   :  { %8855 = vmatpush1.bf16.msra.mxu0 %v8854_v63 }
 0x4aa   :  { %8951 = vmatpush1.bf16.msra.mxu1 %v8950_v62  ;;  %8857 = vmatprep.subr.bf16.mxu0 %v8856_v21 }
 0x4ab   :  { %8953 = vmatprep.subr.bf16.mxu1 %v8952_v26 }
 0x4ad   :  { %8859 = vmatpush1.bf16.msra.mxu0 %v8858_v41 }
 0x4ae   :  { %8955 = vmatpush1.bf16.msra.mxu1 %v8954_v58  ;;  %8861 = vmatprep.subr.bf16.mxu0 %v8860_v8 }
 0x4af   :  { %8957 = vmatprep.subr.bf16.mxu1 %v8956_v12 }
 0x4b1   :  { %8863 = vmatpush1.bf16.msra.mxu0 %v8862_v10 }
 0x4b2   :  { %8959 = vmatpush1.bf16.msra.mxu1 %v8958_v9 }
 0x4b4   :  { %6933 = vmatmul.mubr.f32.vlgmr.msra.gmra.mrb[52].mxu0 %v16331_v4 }
 0x4b5   :  { %7111 = vmatmul.mubr.f32.vlgmr.msra.gmra.mrb[52].mxu1 %v16331_v4  ;;  %6938 = vmatprep.mubr.f32.mxu0 %v17911_v34  ;;  %v6406_v4 = vpop.permute.xlu1 %6405 }
 0x4b6   :  { %7116 = vmatprep.mubr.f32.mxu1 %v17911_v34 }
 0x4b8   :  { %6939 = vmatmul.mubr.f32.gmra.mrb[54].mxu0 %v16329_v0 }
 0x4b9   :  { %7117 = vmatmul.mubr.f32.gmra.mrb[54].mxu1 %v16329_v0  ;;  %6944 = vmatprep.mubr.f32.mxu0 %v17911_v34  ;;  %v6416_v3 = vpop.permute.xlu1 %6415 }
 0x4ba   :  { %7122 = vmatprep.mubr.f32.mxu1 %v17911_v34 }
 0x4bc   :  { %6945 = vmatmul.mubr.f32.gmra.mrb[56].mxu0 %v16335_v61 }
 0x4bd   :  { %7123 = vmatmul.mubr.f32.gmra.mrb[56].mxu1 %v16335_v61  ;;  %6950 = vmatprep.mubr.f32.mxu0 %v17911_v34 }
 0x4be   :  { %7128 = vmatprep.mubr.f32.mxu1 %v17911_v34 }
 0x4c0   :  { %6951 = vmatmul.mubr.f32.gmra.mrb[58].mxu0 %v16333_v31 }
 0x4c1   :  { %7129 = vmatmul.mubr.f32.gmra.mrb[58].mxu1 %v16333_v31 }
 0x4c2   :  { %v6421_v51 = vpop.permute.xlu0 %6420 }
 0x526   :  { %v6578_v54 = vpop.f32.mrb[44].mxu0  ;;  %v6756_v18 = vpop.f32.mrb[44].mxu1 }
 0x527   :  { %v8992_v0 = vadd.f32 %v6578_v54, %v6406_v4  ;;  %v9000_v43 = vadd.f32 %v6756_v18, %v6406_v4  ;;  %v6580_v47 = vpop.f32.mrb[45].mxu0  ;;  %v6758_v60 = vpop.f32.mrb[45].mxu1 }
 0x528   :  { %v8993_v33 = vadd.f32 %v6580_v47, %v6406_v4  ;;  %v9001_v11 = vadd.f32 %v6758_v60, %v6406_v4 }
 0x529   :  { %7468 = vst [vmem:[%s17295_s4 + $0x100] sm:$0xff] %v8992_v0  ;;  %7470 = vst [vmem:[%s17295_s4 + $0x110] sm:$0xff] %v9000_v43 }
 0x52a   :  { %7469 = vst [vmem:[%s17295_s4 + $0x108] sm:$0xff] %v8993_v33  ;;  %7471 = vst [vmem:[%s17295_s4 + $0x118] sm:$0xff] %v9001_v11  ;;  %v6584_v34 = vpop.f32.mrb[46].mxu0  ;;  %v6762_v31 = vpop.f32.mrb[46].mxu1 }
 0x52b   :  { %v8994_v61 = vadd.f32 %v6584_v34, %v17185_v52  ;;  %v9002_v37 = vadd.f32 %v6762_v31, %v17185_v52  ;;  %v6586_v48 = vpop.f32.mrb[47].mxu0  ;;  %v6764_v25 = vpop.f32.mrb[47].mxu1 }
 0x52c   :  { %v8995_v38 = vadd.f32 %v6586_v48, %v17185_v52  ;;  %v9003_v30 = vadd.f32 %v6764_v25, %v17185_v52 }
 0x52d   :  { %7476 = vst [vmem:[%s17295_s4 + $0x140] sm:$0xff] %v8994_v61  ;;  %7478 = vst [vmem:[%s17295_s4 + $0x150] sm:$0xff] %v9002_v37 }
 0x52e   :  { %7477 = vst [vmem:[%s17295_s4 + $0x148] sm:$0xff] %v8995_v38  ;;  %7479 = vst [vmem:[%s17295_s4 + $0x158] sm:$0xff] %v9003_v30  ;;  %v6590_v22 = vpop.f32.mrb[48].mxu0  ;;  %v6768_v40 = vpop.f32.mrb[48].mxu1 }
 0x52f   :  { %v8996_v57 = vadd.f32 %v6590_v22, %v6416_v3  ;;  %v9004_v56 = vadd.f32 %v6768_v40, %v6416_v3  ;;  %v6592_v1 = vpop.f32.mrb[49].mxu0  ;;  %v6770_v24 = vpop.f32.mrb[49].mxu1 }
 0x530   :  { %v8997_v32 = vadd.f32 %v6592_v1, %v6416_v3  ;;  %v9005_v2 = vadd.f32 %v6770_v24, %v6416_v3 }
 0x531   :  { %7484 = vst [vmem:[%s17295_s4 + $0x180] sm:$0xff] %v8996_v57  ;;  %7486 = vst [vmem:[%s17295_s4 + $0x190] sm:$0xff] %v9004_v56 }
 0x532   :  { %7485 = vst [vmem:[%s17295_s4 + $0x188] sm:$0xff] %v8997_v32  ;;  %7487 = vst [vmem:[%s17295_s4 + $0x198] sm:$0xff] %v9005_v2  ;;  %v6596_v53 = vpop.f32.mrb[50].mxu0  ;;  %v6774_v17 = vpop.f32.mrb[50].mxu1 }
 0x533   :  { %v8998_v15 = vadd.f32 %v6596_v53, %v6421_v51  ;;  %v9006_v19 = vadd.f32 %v6774_v17, %v6421_v51  ;;  %v6598_v59 = vpop.f32.mrb[51].mxu0  ;;  %v6776_v55 = vpop.f32.mrb[51].mxu1 }
 0x534   :  { %v8999_v42 = vadd.f32 %v6598_v59, %v6421_v51  ;;  %v9007_v14 = vadd.f32 %v6776_v55, %v6421_v51 }
 0x535   :  { %7492 = vst [vmem:[%s17295_s4 + $0x1c0] sm:$0xff] %v8998_v15  ;;  %7494 = vst [vmem:[%s17295_s4 + $0x1d0] sm:$0xff] %v9006_v19 }
 0x536   :  { %7493 = vst [vmem:[%s17295_s4 + $0x1c8] sm:$0xff] %v8999_v42  ;;  %7495 = vst [vmem:[%s17295_s4 + $0x1d8] sm:$0xff] %v9007_v14 }
 0x587   :  { %v6934_v39 = vpop.f32.mrb[52].mxu0 }
 0x588   :  { %v9008_v45 = vadd.f32 %v6934_v39, %v6406_v4  ;;  %v7112_v50 = vpop.f32.mrb[52].mxu1  ;;  %v6936_v36 = vpop.f32.mrb[53].mxu0 }
 0x589   :  { %v9016_v16 = vadd.f32 %v7112_v50, %v6406_v4  ;;  %v9009_v13 = vadd.f32 %v6936_v36, %v6406_v4  ;;  %v7114_v63 = vpop.f32.mrb[53].mxu1 }
 0x58a   :  { %7472 = vst [vmem:[%s17295_s4 + $0x120] sm:$0xff] %v9008_v45  ;;  %v9017_v62 = vadd.f32 %v7114_v63, %v6406_v4 }
 0x58b   :  { %7474 = vst [vmem:[%s17295_s4 + $0x130] sm:$0xff] %v9016_v16  ;;  %7473 = vst [vmem:[%s17295_s4 + $0x128] sm:$0xff] %v9009_v13  ;;  %v6940_v21 = vpop.f32.mrb[54].mxu0 }
 0x58c   :  { %7475 = vst [vmem:[%s17295_s4 + $0x138] sm:$0xff] %v9017_v62  ;;  %v9010_v6 = vadd.f32 %v6940_v21, %v17185_v52  ;;  %v7118_v23 = vpop.f32.mrb[54].mxu1  ;;  %v6942_v35 = vpop.f32.mrb[55].mxu0 }
 0x58d   :  { %v9018_v26 = vadd.f32 %v7118_v23, %v17185_v52  ;;  %v9011_v20 = vadd.f32 %v6942_v35, %v17185_v52  ;;  %v7120_v28 = vpop.f32.mrb[55].mxu1 }
 0x58e   :  { %7480 = vst [vmem:[%s17295_s4 + $0x160] sm:$0xff] %v9010_v6  ;;  %v9019_v7 = vadd.f32 %v7120_v28, %v17185_v52 }
 0x58f   :  { %7482 = vst [vmem:[%s17295_s4 + $0x170] sm:$0xff] %v9018_v26  ;;  %7481 = vst [vmem:[%s17295_s4 + $0x168] sm:$0xff] %v9011_v20  ;;  %v6946_v46 = vpop.f32.mrb[56].mxu0 }
 0x590   :  { %7483 = vst [vmem:[%s17295_s4 + $0x178] sm:$0xff] %v9019_v7  ;;  %v9012_v49 = vadd.f32 %v6946_v46, %v6416_v3  ;;  %v7124_v41 = vpop.f32.mrb[56].mxu1  ;;  %v6948_v58 = vpop.f32.mrb[57].mxu0 }
 0x591   :  { %v9020_v8 = vadd.f32 %v7124_v41, %v6416_v3  ;;  %v9013_v27 = vadd.f32 %v6948_v58, %v6416_v3  ;;  %v7126_v29 = vpop.f32.mrb[57].mxu1 }
 0x592   :  { %7488 = vst [vmem:[%s17295_s4 + $0x1a0] sm:$0xff] %v9012_v49  ;;  %v9021_v12 = vadd.f32 %v7126_v29, %v6416_v3 }
 0x593   :  { %7490 = vst [vmem:[%s17295_s4 + $0x1b0] sm:$0xff] %v9020_v8  ;;  %7489 = vst [vmem:[%s17295_s4 + $0x1a8] sm:$0xff] %v9013_v27  ;;  %v6952_v44 = vpop.f32.mrb[58].mxu0 }
 0x594   :  { %7491 = vst [vmem:[%s17295_s4 + $0x1b8] sm:$0xff] %v9021_v12  ;;  %v9014_v5 = vadd.f32 %v6952_v44, %v6421_v51  ;;  %v7130_v10 = vpop.f32.mrb[58].mxu1  ;;  %v6954_v9 = vpop.f32.mrb[59].mxu0 }
 0x595   :  { %v9022_v4 = vadd.f32 %v7130_v10, %v6421_v51  ;;  %v9015_v54 = vadd.f32 %v6954_v9, %v6421_v51  ;;  %v7132_v18 = vpop.f32.mrb[59].mxu1 }
 0x596   :  { %7496 = vst [vmem:[%s17295_s4 + $0x1e0] sm:$0xff] %v9014_v5  ;;  %v9023_v0 = vadd.f32 %v7132_v18, %v6421_v51 }
 0x597   :  { %7498 = vst [vmem:[%s17295_s4 + $0x1f0] sm:$0xff] %v9022_v4  ;;  %7497 = vst [vmem:[%s17295_s4 + $0x1e8] sm:$0xff] %v9015_v54 }
 0x598   :  { %7499 = vst [vmem:[%s17295_s4 + $0x1f8] sm:$0xff] %v9023_v0 }

</bundles_post_ra>
